<compile_context>
chip_gen: v7x
topology: tpu7x:2x2x1
jax: 0.10.0
libtpu: 0.0.40
codegen_flags: <defaults>
</compile_context>

<pallas_src>
import functools

import jax
import jax.numpy as jnp
from jax.experimental import pallas as pl
from jax.experimental.pallas import tpu as pltpu

LANE = 128          # padded width of every feature dimension
HP = LANE           # padded hidden width
GPAD = 8            # graph (batch) dimension padded to one full sublane group


# ---------------------------------------------------------------------------
# Small helpers
# ---------------------------------------------------------------------------
def _bf(x):
    return x.astype(jnp.bfloat16)


def _gru_gates(gi, gh, h, hp):
    """PyTorch GRU cell (gate order r, z, n); gi/gh already include biases."""
    r = jax.nn.sigmoid(gi[:, :hp] + gh[:, :hp])
    z = jax.nn.sigmoid(gi[:, hp:2 * hp] + gh[:, hp:2 * hp])
    n = jnp.tanh(gi[:, 2 * hp:] + r * gh[:, 2 * hp:])
    return (1.0 - z) * n + z * h


def _full_spec(shape):
    nd = len(shape)
    return pl.BlockSpec(shape, lambda i, _nd=nd: (0,) * _nd)


def _pad2(a, rows, cols):
    out = jnp.zeros((rows, cols), jnp.float32)
    return out.at[: a.shape[0], : a.shape[1]].set(a)


# ---------------------------------------------------------------------------
# The fused kernel: word graph -> sentence graph -> fusion/classifier epilogue
# ---------------------------------------------------------------------------
def _cograph_kernel(
        # word graph
        wx_ref, adj_w_ref,
        w_in_w_ref, w_in_b_ref, w_wih_ref, w_whh_ref, w_bih_ref, w_bhh_ref,
        w_wgv_ref, w_out_w_ref, w_out_b_ref,
        # sentence graph
        sx_ref, adj_s_ref, adj_st_ref,
        s_in_w_ref, s_in_b_ref,
        s_wih_f_ref, s_wih_b_ref, s_whh_fb_ref,
        s_bih_f_ref, s_bhh_f_ref, s_bih_b_ref, s_bhh_b_ref,
        s_comb_wf_ref, s_comb_wb_ref, s_comb_b_ref,
        s_wgv_ref, s_out_w_ref, s_out_b_ref,
        # fusion + classifier
        pool_w_ref, pool_s_ref,
        f_w_w_ref, f_w_b_ref, f_s_w_ref, f_s_b_ref, alpha_ref,
        ln_g_ref, ln_b_ref, c1_w_ref, c1_b_ref, c2_w_ref, c2_b_ref,
        # output
        o_ref,
        *, n_word_layers, n_sent_layers, hp, f_real, eps):
    # ------------------- word graph: GRU + SwiGLU message passing -------------
    nw = wx_ref.shape[0]
    adj_w = adj_w_ref[...]                                   # bf16
    w_wih, w_whh, w_wgv = w_wih_ref[...], w_whh_ref[...], w_wgv_ref[...]
    # bias broadcasts hoisted out of the unrolled layer loop
    w_bih = jnp.broadcast_to(w_bih_ref[...], (nw, 3 * hp))
    w_bhh = jnp.broadcast_to(w_bhh_ref[...], (nw, 3 * hp))

    h = jnp.maximum(
        jnp.dot(wx_ref[...], w_in_w_ref[...],
                preferred_element_type=jnp.float32) + w_in_b_ref[...], 0.0)
    for _ in range(n_word_layers):
        h_bf = _bf(h)
        msg = jnp.dot(adj_w, h_bf, preferred_element_type=jnp.float32)
        gi = jnp.dot(_bf(msg), w_wih, preferred_element_type=jnp.float32) + w_bih
        gh = jnp.dot(h_bf, w_whh, preferred_element_type=jnp.float32) + w_bhh
        h = _gru_gates(gi, gh, h, hp)
        # packed SwiGLU: one [128,256] matmul, slice gate / value
        gv = jnp.dot(_bf(h), w_wgv, preferred_element_type=jnp.float32)
        g, v = gv[:, :hp], gv[:, hp:]
        h = (g * jax.nn.sigmoid(g)) * v
    word_nodes = (jnp.dot(_bf(h), w_out_w_ref[...],
                          preferred_element_type=jnp.float32) + w_out_b_ref[...])

    # -------------- sentence graph: position-aware BiGRU + SwiGLU -------------
    ns = sx_ref.shape[0]
    adj_s, adj_st = adj_s_ref[...], adj_st_ref[...]          # bf16, adj.T hoisted to host
    s_wih_f, s_wih_b = s_wih_f_ref[...], s_wih_b_ref[...]
    s_whh_fb = s_whh_fb_ref[...]                             # packed [128, 768]
    s_comb_wf, s_comb_wb = s_comb_wf_ref[...], s_comb_wb_ref[...]
    s_wgv = s_wgv_ref[...]
    s_bih_f = jnp.broadcast_to(s_bih_f_ref[...], (ns, 3 * hp))
    s_bhh_f = jnp.broadcast_to(s_bhh_f_ref[...], (ns, 3 * hp))
    s_bih_b = jnp.broadcast_to(s_bih_b_ref[...], (ns, 3 * hp))
    s_bhh_b = jnp.broadcast_to(s_bhh_b_ref[...], (ns, 3 * hp))
    s_comb_b = jnp.broadcast_to(s_comb_b_ref[...], (ns, hp))

    h = jnp.maximum(
        jnp.dot(sx_ref[...], s_in_w_ref[...],
                preferred_element_type=jnp.float32) + s_in_b_ref[...], 0.0)
    for _ in range(n_sent_layers):
        h_bf = _bf(h)
        m_f = jnp.dot(adj_s, h_bf, preferred_element_type=jnp.float32)    # forward hop
        m_b = jnp.dot(adj_st, h_bf, preferred_element_type=jnp.float32)   # backward hop
        # packed fwd|bwd hidden matmul (same LHS h): one [·,768] dot
        gh_fb = jnp.dot(h_bf, s_whh_fb, preferred_element_type=jnp.float32)
        gi_f = jnp.dot(_bf(m_f), s_wih_f, preferred_element_type=jnp.float32) + s_bih_f
        gi_b = jnp.dot(_bf(m_b), s_wih_b, preferred_element_type=jnp.float32) + s_bih_b
        h_f = _gru_gates(gi_f, gh_fb[:, :3 * hp] + s_bhh_f, h, hp)
        h_b = _gru_gates(gi_b, gh_fb[:, 3 * hp:] + s_bhh_b, h, hp)
        # fused BiGRU combine: [h_f | h_b] @ W == h_f @ W[:H] + h_b @ W[H:]
        h = (jnp.dot(_bf(h_f), s_comb_wf, preferred_element_type=jnp.float32)
             + jnp.dot(_bf(h_b), s_comb_wb, preferred_element_type=jnp.float32)
             + s_comb_b)
        gv = jnp.dot(_bf(h), s_wgv, preferred_element_type=jnp.float32)
        g, v = gv[:, :hp], gv[:, hp:]
        h = (g * jax.nn.sigmoid(g)) * v
    sent_nodes = (jnp.dot(_bf(h), s_out_w_ref[...],
                          preferred_element_type=jnp.float32) + s_out_b_ref[...])

    # ---------- fusion + classifier epilogue (node features stay in VMEM) -----
    word_pool = jnp.dot(pool_w_ref[...], _bf(word_nodes),
                        preferred_element_type=jnp.float32)
    sent_pool = jnp.dot(pool_s_ref[...], _bf(sent_nodes),
                        preferred_element_type=jnp.float32)
    wp = jnp.dot(_bf(word_pool), f_w_w_ref[...],
                 preferred_element_type=jnp.float32) + f_w_b_ref[...]
    sp = jnp.dot(_bf(sent_pool), f_s_w_ref[...],
                 preferred_element_type=jnp.float32) + f_s_b_ref[...]

    # learned softmax(alpha) 2-way fusion; alpha lanes >= 2 are padded with -1e30
    al = alpha_ref[...]
    al = al - jnp.max(al, axis=-1, keepdims=True)
    e = jnp.exp(al)
    a = e / jnp.sum(e, axis=-1, keepdims=True)
    fused = a[:, 0:1] * wp + a[:, 1:2] * sp
    # F.dropout(p=0.2) is identity in eval mode.

    # LayerNorm over the REAL (unpadded) fusion features only
    lane = jax.lax.broadcasted_iota(jnp.int32, fused.shape, 1)
    mask = (lane < f_real).astype(jnp.float32)
    inv_n = 1.0 / float(f_real)
    mu = jnp.sum(fused * mask, axis=-1, keepdims=True) * inv_n
    diff = (fused - mu) * mask
    var = jnp.sum(diff * diff, axis=-1, keepdims=True) * inv_n
    ln = diff * jax.lax.rsqrt(var + eps) * ln_g_ref[...] + ln_b_ref[...]

    # classifier MLP (Dropout(0.1) identity in eval mode)
    hid = jnp.maximum(
        jnp.dot(_bf(ln), c1_w_ref[...],
                preferred_element_type=jnp.float32) + c1_b_ref[...], 0.0)
    o_ref[...] = (jnp.dot(_bf(hid), c2_w_ref[...],
                          preferred_element_type=jnp.float32) + c2_b_ref[...])


# ---------------------------------------------------------------------------
# Parameter init (xavier_uniform weights, zero biases) — stored pre-padded,
# matmul weights in bf16, biases / LN params in f32.
# ---------------------------------------------------------------------------
def init_params(key, input_dim, hidden_dim, word_out, sent_out, fusion_dim, num_classes):
    keys = iter(jax.random.split(key, 64))
    H = hidden_dim
    p = {}

    def xavier(fan_in, fan_out, shape):
        limit = (6.0 / (fan_in + fan_out)) ** 0.5
        return jax.random.uniform(next(keys), shape, jnp.float32, -limit, limit)

    def lin(din, dout):
        w = xavier(din, dout, (din, dout))
        return (_pad2(w, LANE, LANE).astype(jnp.bfloat16),
                jnp.zeros((1, LANE), jnp.float32))

    def gru(din, dh):
        wih = xavier(din, 3 * dh, (din, 3 * dh))
        whh = xavier(dh, 3 * dh, (dh, 3 * dh))

        def pad_gates(w):   # per-gate padding so each gate starts at k*128
            return jnp.concatenate(
                [_pad2(w[:, g * dh:(g + 1) * dh], LANE, HP) for g in range(3)], axis=1)

        z3 = jnp.zeros((1, 3 * HP), jnp.float32)
        return (pad_gates(wih).astype(jnp.bfloat16),
                pad_gates(whh).astype(jnp.bfloat16), z3, z3)

    # Word graph model
    p["w_in_w"], p["w_in_b"] = lin(input_dim, H)
    p["w_wih"], p["w_whh"], p["w_bih"], p["w_bhh"] = gru(H, H)
    wg, _ = lin(H, H)
    wv, _ = lin(H, H)
    p["w_wgv"] = jnp.concatenate([wg, wv], axis=1)              # packed SwiGLU [128,256]
    p["w_out_w"], p["w_out_b"] = lin(H, word_out)

    # Sentence graph model (BiGRU)
    p["s_in_w"], p["s_in_b"] = lin(input_dim, H)
    p["s_wih_f"], whh_f, p["s_bih_f"], p["s_bhh_f"] = gru(H, H)
    p["s_wih_b"], whh_b, p["s_bih_b"], p["s_bhh_b"] = gru(H, H)
    p["s_whh_fb"] = jnp.concatenate([whh_f, whh_b], axis=1)     # packed fwd|bwd [128,768]
    comb_w = xavier(2 * H, H, (2 * H, H))
    p["s_comb_wf"] = _pad2(comb_w[:H], LANE, LANE).astype(jnp.bfloat16)
    p["s_comb_wb"] = _pad2(comb_w[H:], LANE, LANE).astype(jnp.bfloat16)
    p["s_comb_b"] = jnp.zeros((1, LANE), jnp.float32)
    sg, _ = lin(H, H)
    sv, _ = lin(H, H)
    p["s_wgv"] = jnp.concatenate([sg, sv], axis=1)
    p["s_out_w"], p["s_out_b"] = lin(H, sent_out)

    # Feature fusion (learned softmax over the two sources)
    p["f_w_w"], p["f_w_b"] = lin(word_out, fusion_dim)
    p["f_s_w"], p["f_s_b"] = lin(sent_out, fusion_dim)
    p["f_alpha"] = jnp.full((1, LANE), -1e30, jnp.float32).at[:, :2].set(0.0)

    # Classifier: LayerNorm -> Linear -> ReLU -> Dropout(id) -> Linear
    p["c_ln_g"] = _pad2(jnp.ones((1, fusion_dim), jnp.float32), 1, LANE)
    p["c_ln_b"] = jnp.zeros((1, LANE), jnp.float32)
    p["c1_w"], p["c1_b"] = lin(fusion_dim, H)
    p["c2_w"], p["c2_b"] = lin(H, num_classes)
    return p


# ---------------------------------------------------------------------------
# Graph glue (host-side input prep; not the hot path)
# ---------------------------------------------------------------------------
def dense_adjacency(edge_index, edge_attr, num_nodes):
    adj = jnp.zeros((num_nodes, num_nodes), jnp.float32)
    return adj.at[edge_index[1], edge_index[0]].add(edge_attr)


def mean_pool_matrix(batch, num_graphs, rows_pad):
    onehot = (batch[None, :] == jnp.arange(num_graphs)[:, None]).astype(jnp.float32)
    counts = jnp.maximum(onehot.sum(axis=1, keepdims=True), 1.0)
    m = onehot / counts
    out = jnp.zeros((rows_pad, m.shape[1]), jnp.float32)
    return out.at[:num_graphs].set(m)


def sinusoidal_pe(positions, dim):
    pos = positions[:, None].astype(jnp.float32)
    i = jnp.arange(dim // 2)[None, :].astype(jnp.float32)
    angles = pos / jnp.power(10000.0, 2.0 * i / dim)
    return jnp.concatenate([jnp.sin(angles), jnp.cos(angles)], axis=-1)


# ---------------------------------------------------------------------------
# Model forward: exactly ONE pallas_call
# ---------------------------------------------------------------------------
def cograph_net_forward(p, data, num_graphs, fusion_dim, num_classes,
                        num_word_layers=3, num_sentence_layers=3):
    word_x, word_ei, word_ea, word_batch = data["word"]
    sent_x, sent_ei, sent_ea, sent_batch, sent_pos = data["sentence"]

    adj_w = dense_adjacency(word_ei, word_ea, word_x.shape[0]).astype(jnp.bfloat16)
    adj_s_f32 = dense_adjacency(sent_ei, sent_ea, sent_x.shape[0])
    adj_s = adj_s_f32.astype(jnp.bfloat16)
    adj_st = adj_s_f32.T.astype(jnp.bfloat16)   # backward-hop transpose hoisted to host

    # position-aware sentence features, then pad feature dim to 128 lanes
    sent_x = sent_x + sinusoidal_pe(sent_pos, sent_x.shape[-1])
    wx_pad = _pad2(word_x, word_x.shape[0], LANE).astype(jnp.bfloat16)
    sx_pad = _pad2(sent_x, sent_x.shape[0], LANE).astype(jnp.bfloat16)

    pool_w = mean_pool_matrix(word_batch, num_graphs, GPAD).astype(jnp.bfloat16)
    pool_s = mean_pool_matrix(sent_batch, num_graphs, GPAD).astype(jnp.bfloat16)

    kern = functools.partial(
        _cograph_kernel, n_word_layers=num_word_layers,
        n_sent_layers=num_sentence_layers, hp=HP, f_real=fusion_dim, eps=1e-5)

    args = (
        # word graph
        wx_pad, adj_w,
        p["w_in_w"], p["w_in_b"], p["w_wih"], p["w_whh"], p["w_bih"], p["w_bhh"],
        p["w_wgv"], p["w_out_w"], p["w_out_b"],
        # sentence graph
        sx_pad, adj_s, adj_st,
        p["s_in_w"], p["s_in_b"],
        p["s_wih_f"], p["s_wih_b"], p["s_whh_fb"],
        p["s_bih_f"], p["s_bhh_f"], p["s_bih_b"], p["s_bhh_b"],
        p["s_comb_wf"], p["s_comb_wb"], p["s_comb_b"],
        p["s_wgv"], p["s_out_w"], p["s_out_b"],
        # fusion + classifier
        pool_w, pool_s,
        p["f_w_w"], p["f_w_b"], p["f_s_w"], p["f_s_b"], p["f_alpha"],
        p["c_ln_g"], p["c_ln_b"], p["c1_w"], p["c1_b"], p["c2_w"], p["c2_b"],
    )
    out_shape = (GPAD, LANE)
    logits_pad = pl.pallas_call(
        kern,
        out_shape=jax.ShapeDtypeStruct(out_shape, jnp.float32),
        grid=(1,),
        in_specs=[_full_spec(a.shape) for a in args],
        out_specs=_full_spec(out_shape),
        compiler_params=pltpu.CompilerParams(
            dimension_semantics=("arbitrary",),
            vmem_limit_bytes=32 * 1024 * 1024),
    )(*args)
    return logits_pad[:num_graphs, :num_classes]


# ---------------------------------------------------------------------------
# Main
# ---------------------------------------------------------------------------
if __name__ == "__main__":
    input_dim, hidden_dim = 8, 16
    word_output_dim, sentence_output_dim = 16, 16
    fusion_output_dim, num_classes = 16, 4
    num_graphs = 2
    n_word, n_sent = 16, 8              # 8 word / 4 sentence nodes per graph
    e_word, e_sent = 20, 8              # edges per graph

    root = jax.random.PRNGKey(0)
    k_param, k_wx, k_sx, k_we, k_se, k_wa, k_sa = jax.random.split(root, 7)

    params = init_params(k_param, input_dim, hidden_dim, word_output_dim,
                         sentence_output_dim, fusion_output_dim, num_classes)

    word_x = jax.random.normal(k_wx, (n_word, input_dim), jnp.float32)
    sent_x = jax.random.normal(k_sx, (n_sent, input_dim), jnp.float32)
    word_batch = jnp.repeat(jnp.arange(num_graphs), n_word // num_graphs)
    sent_batch = jnp.repeat(jnp.arange(num_graphs), n_sent // num_graphs)
    sent_pos = jnp.tile(jnp.arange(n_sent // num_graphs), num_graphs)

    def make_edges(key, n_per_graph, e_per_graph):
        srcs, dsts = [], []
        keys = jax.random.split(key, 2 * num_graphs)
        for g in range(num_graphs):
            off = g * n_per_graph
            srcs.append(jax.random.randint(keys[2 * g], (e_per_graph,), 0, n_per_graph) + off)
            dsts.append(jax.random.randint(keys[2 * g + 1], (e_per_graph,), 0, n_per_graph) + off)
        return jnp.stack([jnp.concatenate(srcs), jnp.concatenate(dsts)], axis=0)

    word_edge_index = make_edges(k_we, n_word // num_graphs, e_word)
    sent_edge_index = make_edges(k_se, n_sent // num_graphs, e_sent)
    word_edge_attr = jax.random.uniform(k_wa, (word_edge_index.shape[1],), jnp.float32, 0.1, 1.0)
    sent_edge_attr = jax.random.uniform(k_sa, (sent_edge_index.shape[1],), jnp.float32, 0.1, 1.0)

    data = {
        "word": (word_x, word_edge_index, word_edge_attr, word_batch),
        "sentence": (sent_x, sent_edge_index, sent_edge_attr, sent_batch, sent_pos),
    }

    logits = cograph_net_forward(params, data, num_graphs,
                                 fusion_output_dim, num_classes)
    logits = jax.block_until_ready(logits)
    assert logits.shape == (num_graphs, num_classes)
    assert bool(jnp.all(jnp.isfinite(logits)))
    print("KERNEL_OK")
</pallas_src>

<mosaic_0001>
module attributes {stable_mosaic.version = 11 : i64} {
  func.func @_cograph_kernel(%arg0: i32, %arg1: memref<16x128xbf16, #tpu.memory_space<vmem>>, %arg2: memref<16x16xbf16, #tpu.memory_space<vmem>>, %arg3: memref<128x128xbf16, #tpu.memory_space<vmem>>, %arg4: memref<1x128xf32, #tpu.memory_space<vmem>>, %arg5: memref<128x384xbf16, #tpu.memory_space<vmem>>, %arg6: memref<128x384xbf16, #tpu.memory_space<vmem>>, %arg7: memref<1x384xf32, #tpu.memory_space<vmem>>, %arg8: memref<1x384xf32, #tpu.memory_space<vmem>>, %arg9: memref<128x256xbf16, #tpu.memory_space<vmem>>, %arg10: memref<128x128xbf16, #tpu.memory_space<vmem>>, %arg11: memref<1x128xf32, #tpu.memory_space<vmem>>, %arg12: memref<8x128xbf16, #tpu.memory_space<vmem>>, %arg13: memref<8x8xbf16, #tpu.memory_space<vmem>>, %arg14: memref<8x8xbf16, #tpu.memory_space<vmem>>, %arg15: memref<128x128xbf16, #tpu.memory_space<vmem>>, %arg16: memref<1x128xf32, #tpu.memory_space<vmem>>, %arg17: memref<128x384xbf16, #tpu.memory_space<vmem>>, %arg18: memref<128x384xbf16, #tpu.memory_space<vmem>>, %arg19: memref<128x768xbf16, #tpu.memory_space<vmem>>, %arg20: memref<1x384xf32, #tpu.memory_space<vmem>>, %arg21: memref<1x384xf32, #tpu.memory_space<vmem>>, %arg22: memref<1x384xf32, #tpu.memory_space<vmem>>, %arg23: memref<1x384xf32, #tpu.memory_space<vmem>>, %arg24: memref<128x128xbf16, #tpu.memory_space<vmem>>, %arg25: memref<128x128xbf16, #tpu.memory_space<vmem>>, %arg26: memref<1x128xf32, #tpu.memory_space<vmem>>, %arg27: memref<128x256xbf16, #tpu.memory_space<vmem>>, %arg28: memref<128x128xbf16, #tpu.memory_space<vmem>>, %arg29: memref<1x128xf32, #tpu.memory_space<vmem>>, %arg30: memref<8x16xbf16, #tpu.memory_space<vmem>>, %arg31: memref<8x8xbf16, #tpu.memory_space<vmem>>, %arg32: memref<128x128xbf16, #tpu.memory_space<vmem>>, %arg33: memref<1x128xf32, #tpu.memory_space<vmem>>, %arg34: memref<128x128xbf16, #tpu.memory_space<vmem>>, %arg35: memref<1x128xf32, #tpu.memory_space<vmem>>, %arg36: memref<1x128xf32, #tpu.memory_space<vmem>>, %arg37: memref<1x128xf32, #tpu.memory_space<vmem>>, %arg38: memref<1x128xf32, #tpu.memory_space<vmem>>, %arg39: memref<128x128xbf16, #tpu.memory_space<vmem>>, %arg40: memref<1x128xf32, #tpu.memory_space<vmem>>, %arg41: memref<128x128xbf16, #tpu.memory_space<vmem>>, %arg42: memref<1x128xf32, #tpu.memory_space<vmem>>, %arg43: memref<8x128xf32, #tpu.memory_space<vmem>>) attributes {dimension_semantics = [#tpu.dimension_semantics<arbitrary>], iteration_bounds = array<i64: 1>, scalar_prefetch = 0 : i64, scratch_operands = 0 : i64, tpu.core_type = #tpu.core_type<tc>, window_params = [{pipeline_mode = #tpu.pipeline_mode<synchronous>, transform_indices = @transform_0, window_bounds = array<i64: 16, 128>}, {pipeline_mode = #tpu.pipeline_mode<synchronous>, transform_indices = @transform_1, window_bounds = array<i64: 16, 16>}, {pipeline_mode = #tpu.pipeline_mode<synchronous>, transform_indices = @transform_2, window_bounds = array<i64: 128, 128>}, {pipeline_mode = #tpu.pipeline_mode<synchronous>, transform_indices = @transform_3, window_bounds = array<i64: 1, 128>}, {pipeline_mode = #tpu.pipeline_mode<synchronous>, transform_indices = @transform_4, window_bounds = array<i64: 128, 384>}, {pipeline_mode = #tpu.pipeline_mode<synchronous>, transform_indices = @transform_5, window_bounds = array<i64: 128, 384>}, {pipeline_mode = #tpu.pipeline_mode<synchronous>, transform_indices = @transform_6, window_bounds = array<i64: 1, 384>}, {pipeline_mode = #tpu.pipeline_mode<synchronous>, transform_indices = @transform_7, window_bounds = array<i64: 1, 384>}, {pipeline_mode = #tpu.pipeline_mode<synchronous>, transform_indices = @transform_8, window_bounds = array<i64: 128, 256>}, {pipeline_mode = #tpu.pipeline_mode<synchronous>, transform_indices = @transform_9, window_bounds = array<i64: 128, 128>}, {pipeline_mode = #tpu.pipeline_mode<synchronous>, transform_indices = @transform_10, window_bounds = array<i64: 1, 128>}, {pipeline_mode = #tpu.pipeline_mode<synchronous>, transform_indices = @transform_11, window_bounds = array<i64: 8, 128>}, {pipeline_mode = #tpu.pipeline_mode<synchronous>, transform_indices = @transform_12, window_bounds = array<i64: 8, 8>}, {pipeline_mode = #tpu.pipeline_mode<synchronous>, transform_indices = @transform_13, window_bounds = array<i64: 8, 8>}, {pipeline_mode = #tpu.pipeline_mode<synchronous>, transform_indices = @transform_14, window_bounds = array<i64: 128, 128>}, {pipeline_mode = #tpu.pipeline_mode<synchronous>, transform_indices = @transform_15, window_bounds = array<i64: 1, 128>}, {pipeline_mode = #tpu.pipeline_mode<synchronous>, transform_indices = @transform_16, window_bounds = array<i64: 128, 384>}, {pipeline_mode = #tpu.pipeline_mode<synchronous>, transform_indices = @transform_17, window_bounds = array<i64: 128, 384>}, {pipeline_mode = #tpu.pipeline_mode<synchronous>, transform_indices = @transform_18, window_bounds = array<i64: 128, 768>}, {pipeline_mode = #tpu.pipeline_mode<synchronous>, transform_indices = @transform_19, window_bounds = array<i64: 1, 384>}, {pipeline_mode = #tpu.pipeline_mode<synchronous>, transform_indices = @transform_20, window_bounds = array<i64: 1, 384>}, {pipeline_mode = #tpu.pipeline_mode<synchronous>, transform_indices = @transform_21, window_bounds = array<i64: 1, 384>}, {pipeline_mode = #tpu.pipeline_mode<synchronous>, transform_indices = @transform_22, window_bounds = array<i64: 1, 384>}, {pipeline_mode = #tpu.pipeline_mode<synchronous>, transform_indices = @transform_23, window_bounds = array<i64: 128, 128>}, {pipeline_mode = #tpu.pipeline_mode<synchronous>, transform_indices = @transform_24, window_bounds = array<i64: 128, 128>}, {pipeline_mode = #tpu.pipeline_mode<synchronous>, transform_indices = @transform_25, window_bounds = array<i64: 1, 128>}, {pipeline_mode = #tpu.pipeline_mode<synchronous>, transform_indices = @transform_26, window_bounds = array<i64: 128, 256>}, {pipeline_mode = #tpu.pipeline_mode<synchronous>, transform_indices = @transform_27, window_bounds = array<i64: 128, 128>}, {pipeline_mode = #tpu.pipeline_mode<synchronous>, transform_indices = @transform_28, window_bounds = array<i64: 1, 128>}, {pipeline_mode = #tpu.pipeline_mode<synchronous>, transform_indices = @transform_29, window_bounds = array<i64: 8, 16>}, {pipeline_mode = #tpu.pipeline_mode<synchronous>, transform_indices = @transform_30, window_bounds = array<i64: 8, 8>}, {pipeline_mode = #tpu.pipeline_mode<synchronous>, transform_indices = @transform_31, window_bounds = array<i64: 128, 128>}, {pipeline_mode = #tpu.pipeline_mode<synchronous>, transform_indices = @transform_32, window_bounds = array<i64: 1, 128>}, {pipeline_mode = #tpu.pipeline_mode<synchronous>, transform_indices = @transform_33, window_bounds = array<i64: 128, 128>}, {pipeline_mode = #tpu.pipeline_mode<synchronous>, transform_indices = @transform_34, window_bounds = array<i64: 1, 128>}, {pipeline_mode = #tpu.pipeline_mode<synchronous>, transform_indices = @transform_35, window_bounds = array<i64: 1, 128>}, {pipeline_mode = #tpu.pipeline_mode<synchronous>, transform_indices = @transform_36, window_bounds = array<i64: 1, 128>}, {pipeline_mode = #tpu.pipeline_mode<synchronous>, transform_indices = @transform_37, window_bounds = array<i64: 1, 128>}, {pipeline_mode = #tpu.pipeline_mode<synchronous>, transform_indices = @transform_38, window_bounds = array<i64: 128, 128>}, {pipeline_mode = #tpu.pipeline_mode<synchronous>, transform_indices = @transform_39, window_bounds = array<i64: 1, 128>}, {pipeline_mode = #tpu.pipeline_mode<synchronous>, transform_indices = @transform_40, window_bounds = array<i64: 128, 128>}, {pipeline_mode = #tpu.pipeline_mode<synchronous>, transform_indices = @transform_41, window_bounds = array<i64: 1, 128>}, {pipeline_mode = #tpu.pipeline_mode<synchronous>, transform_indices = @transform_42, window_bounds = array<i64: 8, 128>}]} {
    %c0 = arith.constant 0 : index
    %c0_0 = arith.constant 0 : index
    %0 = vector.load %arg2[%c0, %c0_0] : memref<16x16xbf16, #tpu.memory_space<vmem>>, vector<16x16xbf16>
    %c0_1 = arith.constant 0 : index
    %c0_2 = arith.constant 0 : index
    %1 = vector.load %arg5[%c0_1, %c0_2] : memref<128x384xbf16, #tpu.memory_space<vmem>>, vector<128x384xbf16>
    %c0_3 = arith.constant 0 : index
    %c0_4 = arith.constant 0 : index
    %2 = vector.load %arg6[%c0_3, %c0_4] : memref<128x384xbf16, #tpu.memory_space<vmem>>, vector<128x384xbf16>
    %c0_5 = arith.constant 0 : index
    %c0_6 = arith.constant 0 : index
    %3 = vector.load %arg9[%c0_5, %c0_6] : memref<128x256xbf16, #tpu.memory_space<vmem>>, vector<128x256xbf16>
    %c0_7 = arith.constant 0 : index
    %c0_8 = arith.constant 0 : index
    %4 = vector.load %arg7[%c0_7, %c0_8] : memref<1x384xf32, #tpu.memory_space<vmem>>, vector<1x384xf32>
    %5 = vector.shape_cast %4 : vector<1x384xf32> to vector<1x384xf32>
    %6 = vector.broadcast %5 : vector<1x384xf32> to vector<16x384xf32>
    %c0_9 = arith.constant 0 : index
    %c0_10 = arith.constant 0 : index
    %7 = vector.load %arg8[%c0_9, %c0_10] : memref<1x384xf32, #tpu.memory_space<vmem>>, vector<1x384xf32>
    %8 = vector.shape_cast %7 : vector<1x384xf32> to vector<1x384xf32>
    %9 = vector.broadcast %8 : vector<1x384xf32> to vector<16x384xf32>
    %c0_11 = arith.constant 0 : index
    %c0_12 = arith.constant 0 : index
    %10 = vector.load %arg1[%c0_11, %c0_12] : memref<16x128xbf16, #tpu.memory_space<vmem>>, vector<16x128xbf16>
    %c0_13 = arith.constant 0 : index
    %c0_14 = arith.constant 0 : index
    %11 = vector.load %arg3[%c0_13, %c0_14] : memref<128x128xbf16, #tpu.memory_space<vmem>>, vector<128x128xbf16>
    %cst = arith.constant dense<0.000000e+00> : vector<16x128xf32>
    %12 = tpu.matmul %10, %11, %cst {dimension_numbers = #tpu.dot_dimension_numbers<[1], [0], [0], [1], [0, 0, 1, 1], [], []>} : vector<16x128xbf16>, vector<128x128xbf16>, vector<16x128xf32> -> vector<16x128xf32>
    %c0_15 = arith.constant 0 : index
    %c0_16 = arith.constant 0 : index
    %13 = vector.load %arg4[%c0_15, %c0_16] : memref<1x128xf32, #tpu.memory_space<vmem>>, vector<1x128xf32>
    %14 = vector.broadcast %13 : vector<1x128xf32> to vector<16x128xf32>
    %15 = arith.addf %12, %14 : vector<16x128xf32>
    %cst_17 = arith.constant 0.000000e+00 : f32
    %16 = vector.broadcast %cst_17 : f32 to vector<16x128xf32>
    %17 = arith.maximumf %15, %16 : vector<16x128xf32>
    %18 = arith.truncf %17 : vector<16x128xf32> to vector<16x128xbf16>
    %cst_18 = arith.constant dense<0.000000e+00> : vector<16x128xf32>
    %19 = tpu.matmul %0, %18, %cst_18 {dimension_numbers = #tpu.dot_dimension_numbers<[1], [0], [0], [1], [0, 0, 1, 1], [], []>} : vector<16x16xbf16>, vector<16x128xbf16>, vector<16x128xf32> -> vector<16x128xf32>
    %20 = arith.truncf %19 : vector<16x128xf32> to vector<16x128xbf16>
    %cst_19 = arith.constant dense<0.000000e+00> : vector<16x384xf32>
    %21 = tpu.matmul %20, %1, %cst_19 {dimension_numbers = #tpu.dot_dimension_numbers<[1], [0], [0], [1], [0, 0, 1, 1], [], []>} : vector<16x128xbf16>, vector<128x384xbf16>, vector<16x384xf32> -> vector<16x384xf32>
    %22 = arith.addf %21, %6 : vector<16x384xf32>
    %cst_20 = arith.constant dense<0.000000e+00> : vector<16x384xf32>
    %23 = tpu.matmul %18, %2, %cst_20 {dimension_numbers = #tpu.dot_dimension_numbers<[1], [0], [0], [1], [0, 0, 1, 1], [], []>} : vector<16x128xbf16>, vector<128x384xbf16>, vector<16x384xf32> -> vector<16x384xf32>
    %24 = arith.addf %23, %9 : vector<16x384xf32>
    %25 = vector.extract_strided_slice %22 {offsets = [0, 0], sizes = [16, 128], strides = [1, 1]} : vector<16x384xf32> to vector<16x128xf32>
    %26 = vector.extract_strided_slice %24 {offsets = [0, 0], sizes = [16, 128], strides = [1, 1]} : vector<16x384xf32> to vector<16x128xf32>
    %27 = arith.addf %25, %26 : vector<16x128xf32>
    %28 = arith.negf %27 : vector<16x128xf32>
    %29 = math.exp %28 : vector<16x128xf32>
    %cst_21 = arith.constant 1.000000e+00 : f32
    %30 = vector.broadcast %cst_21 : f32 to vector<16x128xf32>
    %31 = arith.addf %30, %29 : vector<16x128xf32>
    %32 = arith.divf %30, %31 : vector<16x128xf32>
    %33 = vector.extract_strided_slice %22 {offsets = [0, 128], sizes = [16, 128], strides = [1, 1]} : vector<16x384xf32> to vector<16x128xf32>
    %34 = vector.extract_strided_slice %24 {offsets = [0, 128], sizes = [16, 128], strides = [1, 1]} : vector<16x384xf32> to vector<16x128xf32>
    %35 = arith.addf %33, %34 : vector<16x128xf32>
    %36 = arith.negf %35 : vector<16x128xf32>
    %37 = math.exp %36 : vector<16x128xf32>
    %cst_22 = arith.constant 1.000000e+00 : f32
    %38 = vector.broadcast %cst_22 : f32 to vector<16x128xf32>
    %39 = arith.addf %38, %37 : vector<16x128xf32>
    %40 = arith.divf %38, %39 : vector<16x128xf32>
    %41 = vector.extract_strided_slice %22 {offsets = [0, 256], sizes = [16, 128], strides = [1, 1]} : vector<16x384xf32> to vector<16x128xf32>
    %42 = vector.extract_strided_slice %24 {offsets = [0, 256], sizes = [16, 128], strides = [1, 1]} : vector<16x384xf32> to vector<16x128xf32>
    %43 = arith.mulf %32, %42 : vector<16x128xf32>
    %44 = arith.addf %41, %43 : vector<16x128xf32>
    %45 = math.tanh %44 : vector<16x128xf32>
    %cst_23 = arith.constant 1.000000e+00 : f32
    %46 = vector.broadcast %cst_23 : f32 to vector<16x128xf32>
    %47 = arith.subf %46, %40 : vector<16x128xf32>
    %48 = arith.mulf %47, %45 : vector<16x128xf32>
    %49 = arith.mulf %40, %17 : vector<16x128xf32>
    %50 = arith.addf %48, %49 : vector<16x128xf32>
    %51 = arith.truncf %50 : vector<16x128xf32> to vector<16x128xbf16>
    %cst_24 = arith.constant dense<0.000000e+00> : vector<16x256xf32>
    %52 = tpu.matmul %51, %3, %cst_24 {dimension_numbers = #tpu.dot_dimension_numbers<[1], [0], [0], [1], [0, 0, 1, 1], [], []>} : vector<16x128xbf16>, vector<128x256xbf16>, vector<16x256xf32> -> vector<16x256xf32>
    %53 = vector.extract_strided_slice %52 {offsets = [0, 0], sizes = [16, 128], strides = [1, 1]} : vector<16x256xf32> to vector<16x128xf32>
    %54 = vector.extract_strided_slice %52 {offsets = [0, 128], sizes = [16, 128], strides = [1, 1]} : vector<16x256xf32> to vector<16x128xf32>
    %55 = arith.negf %53 : vector<16x128xf32>
    %56 = math.exp %55 : vector<16x128xf32>
    %cst_25 = arith.constant 1.000000e+00 : f32
    %57 = vector.broadcast %cst_25 : f32 to vector<16x128xf32>
    %58 = arith.addf %57, %56 : vector<16x128xf32>
    %59 = arith.divf %57, %58 : vector<16x128xf32>
    %60 = arith.mulf %53, %59 : vector<16x128xf32>
    %61 = arith.mulf %60, %54 : vector<16x128xf32>
    %62 = arith.truncf %61 : vector<16x128xf32> to vector<16x128xbf16>
    %cst_26 = arith.constant dense<0.000000e+00> : vector<16x128xf32>
    %63 = tpu.matmul %0, %62, %cst_26 {dimension_numbers = #tpu.dot_dimension_numbers<[1], [0], [0], [1], [0, 0, 1, 1], [], []>} : vector<16x16xbf16>, vector<16x128xbf16>, vector<16x128xf32> -> vector<16x128xf32>
    %64 = arith.truncf %63 : vector<16x128xf32> to vector<16x128xbf16>
    %cst_27 = arith.constant dense<0.000000e+00> : vector<16x384xf32>
    %65 = tpu.matmul %64, %1, %cst_27 {dimension_numbers = #tpu.dot_dimension_numbers<[1], [0], [0], [1], [0, 0, 1, 1], [], []>} : vector<16x128xbf16>, vector<128x384xbf16>, vector<16x384xf32> -> vector<16x384xf32>
    %66 = arith.addf %65, %6 : vector<16x384xf32>
    %cst_28 = arith.constant dense<0.000000e+00> : vector<16x384xf32>
    %67 = tpu.matmul %62, %2, %cst_28 {dimension_numbers = #tpu.dot_dimension_numbers<[1], [0], [0], [1], [0, 0, 1, 1], [], []>} : vector<16x128xbf16>, vector<128x384xbf16>, vector<16x384xf32> -> vector<16x384xf32>
    %68 = arith.addf %67, %9 : vector<16x384xf32>
    %69 = vector.extract_strided_slice %66 {offsets = [0, 0], sizes = [16, 128], strides = [1, 1]} : vector<16x384xf32> to vector<16x128xf32>
    %70 = vector.extract_strided_slice %68 {offsets = [0, 0], sizes = [16, 128], strides = [1, 1]} : vector<16x384xf32> to vector<16x128xf32>
    %71 = arith.addf %69, %70 : vector<16x128xf32>
    %72 = arith.negf %71 : vector<16x128xf32>
    %73 = math.exp %72 : vector<16x128xf32>
    %cst_29 = arith.constant 1.000000e+00 : f32
    %74 = vector.broadcast %cst_29 : f32 to vector<16x128xf32>
    %75 = arith.addf %74, %73 : vector<16x128xf32>
    %76 = arith.divf %74, %75 : vector<16x128xf32>
    %77 = vector.extract_strided_slice %66 {offsets = [0, 128], sizes = [16, 128], strides = [1, 1]} : vector<16x384xf32> to vector<16x128xf32>
    %78 = vector.extract_strided_slice %68 {offsets = [0, 128], sizes = [16, 128], strides = [1, 1]} : vector<16x384xf32> to vector<16x128xf32>
    %79 = arith.addf %77, %78 : vector<16x128xf32>
    %80 = arith.negf %79 : vector<16x128xf32>
    %81 = math.exp %80 : vector<16x128xf32>
    %cst_30 = arith.constant 1.000000e+00 : f32
    %82 = vector.broadcast %cst_30 : f32 to vector<16x128xf32>
    %83 = arith.addf %82, %81 : vector<16x128xf32>
    %84 = arith.divf %82, %83 : vector<16x128xf32>
    %85 = vector.extract_strided_slice %66 {offsets = [0, 256], sizes = [16, 128], strides = [1, 1]} : vector<16x384xf32> to vector<16x128xf32>
    %86 = vector.extract_strided_slice %68 {offsets = [0, 256], sizes = [16, 128], strides = [1, 1]} : vector<16x384xf32> to vector<16x128xf32>
    %87 = arith.mulf %76, %86 : vector<16x128xf32>
    %88 = arith.addf %85, %87 : vector<16x128xf32>
    %89 = math.tanh %88 : vector<16x128xf32>
    %cst_31 = arith.constant 1.000000e+00 : f32
    %90 = vector.broadcast %cst_31 : f32 to vector<16x128xf32>
    %91 = arith.subf %90, %84 : vector<16x128xf32>
    %92 = arith.mulf %91, %89 : vector<16x128xf32>
    %93 = arith.mulf %84, %61 : vector<16x128xf32>
    %94 = arith.addf %92, %93 : vector<16x128xf32>
    %95 = arith.truncf %94 : vector<16x128xf32> to vector<16x128xbf16>
    %cst_32 = arith.constant dense<0.000000e+00> : vector<16x256xf32>
    %96 = tpu.matmul %95, %3, %cst_32 {dimension_numbers = #tpu.dot_dimension_numbers<[1], [0], [0], [1], [0, 0, 1, 1], [], []>} : vector<16x128xbf16>, vector<128x256xbf16>, vector<16x256xf32> -> vector<16x256xf32>
    %97 = vector.extract_strided_slice %96 {offsets = [0, 0], sizes = [16, 128], strides = [1, 1]} : vector<16x256xf32> to vector<16x128xf32>
    %98 = vector.extract_strided_slice %96 {offsets = [0, 128], sizes = [16, 128], strides = [1, 1]} : vector<16x256xf32> to vector<16x128xf32>
    %99 = arith.negf %97 : vector<16x128xf32>
    %100 = math.exp %99 : vector<16x128xf32>
    %cst_33 = arith.constant 1.000000e+00 : f32
    %101 = vector.broadcast %cst_33 : f32 to vector<16x128xf32>
    %102 = arith.addf %101, %100 : vector<16x128xf32>
    %103 = arith.divf %101, %102 : vector<16x128xf32>
    %104 = arith.mulf %97, %103 : vector<16x128xf32>
    %105 = arith.mulf %104, %98 : vector<16x128xf32>
    %106 = arith.truncf %105 : vector<16x128xf32> to vector<16x128xbf16>
    %cst_34 = arith.constant dense<0.000000e+00> : vector<16x128xf32>
    %107 = tpu.matmul %0, %106, %cst_34 {dimension_numbers = #tpu.dot_dimension_numbers<[1], [0], [0], [1], [0, 0, 1, 1], [], []>} : vector<16x16xbf16>, vector<16x128xbf16>, vector<16x128xf32> -> vector<16x128xf32>
    %108 = arith.truncf %107 : vector<16x128xf32> to vector<16x128xbf16>
    %cst_35 = arith.constant dense<0.000000e+00> : vector<16x384xf32>
    %109 = tpu.matmul %108, %1, %cst_35 {dimension_numbers = #tpu.dot_dimension_numbers<[1], [0], [0], [1], [0, 0, 1, 1], [], []>} : vector<16x128xbf16>, vector<128x384xbf16>, vector<16x384xf32> -> vector<16x384xf32>
    %110 = arith.addf %109, %6 : vector<16x384xf32>
    %cst_36 = arith.constant dense<0.000000e+00> : vector<16x384xf32>
    %111 = tpu.matmul %106, %2, %cst_36 {dimension_numbers = #tpu.dot_dimension_numbers<[1], [0], [0], [1], [0, 0, 1, 1], [], []>} : vector<16x128xbf16>, vector<128x384xbf16>, vector<16x384xf32> -> vector<16x384xf32>
    %112 = arith.addf %111, %9 : vector<16x384xf32>
    %113 = vector.extract_strided_slice %110 {offsets = [0, 0], sizes = [16, 128], strides = [1, 1]} : vector<16x384xf32> to vector<16x128xf32>
    %114 = vector.extract_strided_slice %112 {offsets = [0, 0], sizes = [16, 128], strides = [1, 1]} : vector<16x384xf32> to vector<16x128xf32>
    %115 = arith.addf %113, %114 : vector<16x128xf32>
    %116 = arith.negf %115 : vector<16x128xf32>
    %117 = math.exp %116 : vector<16x128xf32>
    %cst_37 = arith.constant 1.000000e+00 : f32
    %118 = vector.broadcast %cst_37 : f32 to vector<16x128xf32>
    %119 = arith.addf %118, %117 : vector<16x128xf32>
    %120 = arith.divf %118, %119 : vector<16x128xf32>
    %121 = vector.extract_strided_slice %110 {offsets = [0, 128], sizes = [16, 128], strides = [1, 1]} : vector<16x384xf32> to vector<16x128xf32>
    %122 = vector.extract_strided_slice %112 {offsets = [0, 128], sizes = [16, 128], strides = [1, 1]} : vector<16x384xf32> to vector<16x128xf32>
    %123 = arith.addf %121, %122 : vector<16x128xf32>
    %124 = arith.negf %123 : vector<16x128xf32>
    %125 = math.exp %124 : vector<16x128xf32>
    %cst_38 = arith.constant 1.000000e+00 : f32
    %126 = vector.broadcast %cst_38 : f32 to vector<16x128xf32>
    %127 = arith.addf %126, %125 : vector<16x128xf32>
    %128 = arith.divf %126, %127 : vector<16x128xf32>
    %129 = vector.extract_strided_slice %110 {offsets = [0, 256], sizes = [16, 128], strides = [1, 1]} : vector<16x384xf32> to vector<16x128xf32>
    %130 = vector.extract_strided_slice %112 {offsets = [0, 256], sizes = [16, 128], strides = [1, 1]} : vector<16x384xf32> to vector<16x128xf32>
    %131 = arith.mulf %120, %130 : vector<16x128xf32>
    %132 = arith.addf %129, %131 : vector<16x128xf32>
    %133 = math.tanh %132 : vector<16x128xf32>
    %cst_39 = arith.constant 1.000000e+00 : f32
    %134 = vector.broadcast %cst_39 : f32 to vector<16x128xf32>
    %135 = arith.subf %134, %128 : vector<16x128xf32>
    %136 = arith.mulf %135, %133 : vector<16x128xf32>
    %137 = arith.mulf %128, %105 : vector<16x128xf32>
    %138 = arith.addf %136, %137 : vector<16x128xf32>
    %139 = arith.truncf %138 : vector<16x128xf32> to vector<16x128xbf16>
    %cst_40 = arith.constant dense<0.000000e+00> : vector<16x256xf32>
    %140 = tpu.matmul %139, %3, %cst_40 {dimension_numbers = #tpu.dot_dimension_numbers<[1], [0], [0], [1], [0, 0, 1, 1], [], []>} : vector<16x128xbf16>, vector<128x256xbf16>, vector<16x256xf32> -> vector<16x256xf32>
    %141 = vector.extract_strided_slice %140 {offsets = [0, 0], sizes = [16, 128], strides = [1, 1]} : vector<16x256xf32> to vector<16x128xf32>
    %142 = vector.extract_strided_slice %140 {offsets = [0, 128], sizes = [16, 128], strides = [1, 1]} : vector<16x256xf32> to vector<16x128xf32>
    %143 = arith.negf %141 : vector<16x128xf32>
    %144 = math.exp %143 : vector<16x128xf32>
    %cst_41 = arith.constant 1.000000e+00 : f32
    %145 = vector.broadcast %cst_41 : f32 to vector<16x128xf32>
    %146 = arith.addf %145, %144 : vector<16x128xf32>
    %147 = arith.divf %145, %146 : vector<16x128xf32>
    %148 = arith.mulf %141, %147 : vector<16x128xf32>
    %149 = arith.mulf %148, %142 : vector<16x128xf32>
    %150 = arith.truncf %149 : vector<16x128xf32> to vector<16x128xbf16>
    %c0_42 = arith.constant 0 : index
    %c0_43 = arith.constant 0 : index
    %151 = vector.load %arg10[%c0_42, %c0_43] : memref<128x128xbf16, #tpu.memory_space<vmem>>, vector<128x128xbf16>
    %cst_44 = arith.constant dense<0.000000e+00> : vector<16x128xf32>
    %152 = tpu.matmul %150, %151, %cst_44 {dimension_numbers = #tpu.dot_dimension_numbers<[1], [0], [0], [1], [0, 0, 1, 1], [], []>} : vector<16x128xbf16>, vector<128x128xbf16>, vector<16x128xf32> -> vector<16x128xf32>
    %c0_45 = arith.constant 0 : index
    %c0_46 = arith.constant 0 : index
    %153 = vector.load %arg11[%c0_45, %c0_46] : memref<1x128xf32, #tpu.memory_space<vmem>>, vector<1x128xf32>
    %154 = vector.broadcast %153 : vector<1x128xf32> to vector<16x128xf32>
    %155 = arith.addf %152, %154 : vector<16x128xf32>
    %c0_47 = arith.constant 0 : index
    %c0_48 = arith.constant 0 : index
    %156 = vector.load %arg13[%c0_47, %c0_48] : memref<8x8xbf16, #tpu.memory_space<vmem>>, vector<8x8xbf16>
    %c0_49 = arith.constant 0 : index
    %c0_50 = arith.constant 0 : index
    %157 = vector.load %arg14[%c0_49, %c0_50] : memref<8x8xbf16, #tpu.memory_space<vmem>>, vector<8x8xbf16>
    %c0_51 = arith.constant 0 : index
    %c0_52 = arith.constant 0 : index
    %158 = vector.load %arg17[%c0_51, %c0_52] : memref<128x384xbf16, #tpu.memory_space<vmem>>, vector<128x384xbf16>
    %c0_53 = arith.constant 0 : index
    %c0_54 = arith.constant 0 : index
    %159 = vector.load %arg18[%c0_53, %c0_54] : memref<128x384xbf16, #tpu.memory_space<vmem>>, vector<128x384xbf16>
    %c0_55 = arith.constant 0 : index
    %c0_56 = arith.constant 0 : index
    %160 = vector.load %arg19[%c0_55, %c0_56] : memref<128x768xbf16, #tpu.memory_space<vmem>>, vector<128x768xbf16>
    %c0_57 = arith.constant 0 : index
    %c0_58 = arith.constant 0 : index
    %161 = vector.load %arg24[%c0_57, %c0_58] : memref<128x128xbf16, #tpu.memory_space<vmem>>, vector<128x128xbf16>
    %c0_59 = arith.constant 0 : index
    %c0_60 = arith.constant 0 : index
    %162 = vector.load %arg25[%c0_59, %c0_60] : memref<128x128xbf16, #tpu.memory_space<vmem>>, vector<128x128xbf16>
    %c0_61 = arith.constant 0 : index
    %c0_62 = arith.constant 0 : index
    %163 = vector.load %arg27[%c0_61, %c0_62] : memref<128x256xbf16, #tpu.memory_space<vmem>>, vector<128x256xbf16>
    %c0_63 = arith.constant 0 : index
    %c0_64 = arith.constant 0 : index
    %164 = vector.load %arg20[%c0_63, %c0_64] : memref<1x384xf32, #tpu.memory_space<vmem>>, vector<1x384xf32>
    %165 = vector.shape_cast %164 : vector<1x384xf32> to vector<1x384xf32>
    %166 = vector.broadcast %165 : vector<1x384xf32> to vector<8x384xf32>
    %c0_65 = arith.constant 0 : index
    %c0_66 = arith.constant 0 : index
    %167 = vector.load %arg21[%c0_65, %c0_66] : memref<1x384xf32, #tpu.memory_space<vmem>>, vector<1x384xf32>
    %168 = vector.shape_cast %167 : vector<1x384xf32> to vector<1x384xf32>
    %169 = vector.broadcast %168 : vector<1x384xf32> to vector<8x384xf32>
    %c0_67 = arith.constant 0 : index
    %c0_68 = arith.constant 0 : index
    %170 = vector.load %arg22[%c0_67, %c0_68] : memref<1x384xf32, #tpu.memory_space<vmem>>, vector<1x384xf32>
    %171 = vector.shape_cast %170 : vector<1x384xf32> to vector<1x384xf32>
    %172 = vector.broadcast %171 : vector<1x384xf32> to vector<8x384xf32>
    %c0_69 = arith.constant 0 : index
    %c0_70 = arith.constant 0 : index
    %173 = vector.load %arg23[%c0_69, %c0_70] : memref<1x384xf32, #tpu.memory_space<vmem>>, vector<1x384xf32>
    %174 = vector.shape_cast %173 : vector<1x384xf32> to vector<1x384xf32>
    %175 = vector.broadcast %174 : vector<1x384xf32> to vector<8x384xf32>
    %c0_71 = arith.constant 0 : index
    %c0_72 = arith.constant 0 : index
    %176 = vector.load %arg26[%c0_71, %c0_72] : memref<1x128xf32, #tpu.memory_space<vmem>>, vector<1x128xf32>
    %177 = vector.shape_cast %176 : vector<1x128xf32> to vector<1x128xf32>
    %178 = vector.broadcast %177 : vector<1x128xf32> to vector<8x128xf32>
    %c0_73 = arith.constant 0 : index
    %c0_74 = arith.constant 0 : index
    %179 = vector.load %arg12[%c0_73, %c0_74] : memref<8x128xbf16, #tpu.memory_space<vmem>>, vector<8x128xbf16>
    %c0_75 = arith.constant 0 : index
    %c0_76 = arith.constant 0 : index
    %180 = vector.load %arg15[%c0_75, %c0_76] : memref<128x128xbf16, #tpu.memory_space<vmem>>, vector<128x128xbf16>
    %cst_77 = arith.constant dense<0.000000e+00> : vector<8x128xf32>
    %181 = tpu.matmul %179, %180, %cst_77 {dimension_numbers = #tpu.dot_dimension_numbers<[1], [0], [0], [1], [0, 0, 1, 1], [], []>} : vector<8x128xbf16>, vector<128x128xbf16>, vector<8x128xf32> -> vector<8x128xf32>
    %c0_78 = arith.constant 0 : index
    %c0_79 = arith.constant 0 : index
    %182 = vector.load %arg16[%c0_78, %c0_79] : memref<1x128xf32, #tpu.memory_space<vmem>>, vector<1x128xf32>
    %183 = vector.broadcast %182 : vector<1x128xf32> to vector<8x128xf32>
    %184 = arith.addf %181, %183 : vector<8x128xf32>
    %cst_80 = arith.constant 0.000000e+00 : f32
    %185 = vector.broadcast %cst_80 : f32 to vector<8x128xf32>
    %186 = arith.maximumf %184, %185 : vector<8x128xf32>
    %187 = arith.truncf %186 : vector<8x128xf32> to vector<8x128xbf16>
    %cst_81 = arith.constant dense<0.000000e+00> : vector<8x128xf32>
    %188 = tpu.matmul %156, %187, %cst_81 {dimension_numbers = #tpu.dot_dimension_numbers<[1], [0], [0], [1], [0, 0, 1, 1], [], []>} : vector<8x8xbf16>, vector<8x128xbf16>, vector<8x128xf32> -> vector<8x128xf32>
    %cst_82 = arith.constant dense<0.000000e+00> : vector<8x128xf32>
    %189 = tpu.matmul %157, %187, %cst_82 {dimension_numbers = #tpu.dot_dimension_numbers<[1], [0], [0], [1], [0, 0, 1, 1], [], []>} : vector<8x8xbf16>, vector<8x128xbf16>, vector<8x128xf32> -> vector<8x128xf32>
    %cst_83 = arith.constant dense<0.000000e+00> : vector<8x768xf32>
    %190 = tpu.matmul %187, %160, %cst_83 {dimension_numbers = #tpu.dot_dimension_numbers<[1], [0], [0], [1], [0, 0, 1, 1], [], []>} : vector<8x128xbf16>, vector<128x768xbf16>, vector<8x768xf32> -> vector<8x768xf32>
    %191 = arith.truncf %188 : vector<8x128xf32> to vector<8x128xbf16>
    %cst_84 = arith.constant dense<0.000000e+00> : vector<8x384xf32>
    %192 = tpu.matmul %191, %158, %cst_84 {dimension_numbers = #tpu.dot_dimension_numbers<[1], [0], [0], [1], [0, 0, 1, 1], [], []>} : vector<8x128xbf16>, vector<128x384xbf16>, vector<8x384xf32> -> vector<8x384xf32>
    %193 = arith.addf %192, %166 : vector<8x384xf32>
    %194 = arith.truncf %189 : vector<8x128xf32> to vector<8x128xbf16>
    %cst_85 = arith.constant dense<0.000000e+00> : vector<8x384xf32>
    %195 = tpu.matmul %194, %159, %cst_85 {dimension_numbers = #tpu.dot_dimension_numbers<[1], [0], [0], [1], [0, 0, 1, 1], [], []>} : vector<8x128xbf16>, vector<128x384xbf16>, vector<8x384xf32> -> vector<8x384xf32>
    %196 = arith.addf %195, %172 : vector<8x384xf32>
    %197 = vector.extract_strided_slice %190 {offsets = [0, 0], sizes = [8, 384], strides = [1, 1]} : vector<8x768xf32> to vector<8x384xf32>
    %198 = arith.addf %197, %169 : vector<8x384xf32>
    %199 = vector.extract_strided_slice %193 {offsets = [0, 0], sizes = [8, 128], strides = [1, 1]} : vector<8x384xf32> to vector<8x128xf32>
    %200 = vector.extract_strided_slice %198 {offsets = [0, 0], sizes = [8, 128], strides = [1, 1]} : vector<8x384xf32> to vector<8x128xf32>
    %201 = arith.addf %199, %200 : vector<8x128xf32>
    %202 = arith.negf %201 : vector<8x128xf32>
    %203 = math.exp %202 : vector<8x128xf32>
    %cst_86 = arith.constant 1.000000e+00 : f32
    %204 = vector.broadcast %cst_86 : f32 to vector<8x128xf32>
    %205 = arith.addf %204, %203 : vector<8x128xf32>
    %206 = arith.divf %204, %205 : vector<8x128xf32>
    %207 = vector.extract_strided_slice %193 {offsets = [0, 128], sizes = [8, 128], strides = [1, 1]} : vector<8x384xf32> to vector<8x128xf32>
    %208 = vector.extract_strided_slice %198 {offsets = [0, 128], sizes = [8, 128], strides = [1, 1]} : vector<8x384xf32> to vector<8x128xf32>
    %209 = arith.addf %207, %208 : vector<8x128xf32>
    %210 = arith.negf %209 : vector<8x128xf32>
    %211 = math.exp %210 : vector<8x128xf32>
    %cst_87 = arith.constant 1.000000e+00 : f32
    %212 = vector.broadcast %cst_87 : f32 to vector<8x128xf32>
    %213 = arith.addf %212, %211 : vector<8x128xf32>
    %214 = arith.divf %212, %213 : vector<8x128xf32>
    %215 = vector.extract_strided_slice %193 {offsets = [0, 256], sizes = [8, 128], strides = [1, 1]} : vector<8x384xf32> to vector<8x128xf32>
    %216 = vector.extract_strided_slice %198 {offsets = [0, 256], sizes = [8, 128], strides = [1, 1]} : vector<8x384xf32> to vector<8x128xf32>
    %217 = arith.mulf %206, %216 : vector<8x128xf32>
    %218 = arith.addf %215, %217 : vector<8x128xf32>
    %219 = math.tanh %218 : vector<8x128xf32>
    %cst_88 = arith.constant 1.000000e+00 : f32
    %220 = vector.broadcast %cst_88 : f32 to vector<8x128xf32>
    %221 = arith.subf %220, %214 : vector<8x128xf32>
    %222 = arith.mulf %221, %219 : vector<8x128xf32>
    %223 = arith.mulf %214, %186 : vector<8x128xf32>
    %224 = arith.addf %222, %223 : vector<8x128xf32>
    %225 = vector.extract_strided_slice %190 {offsets = [0, 384], sizes = [8, 384], strides = [1, 1]} : vector<8x768xf32> to vector<8x384xf32>
    %226 = arith.addf %225, %175 : vector<8x384xf32>
    %227 = vector.extract_strided_slice %196 {offsets = [0, 0], sizes = [8, 128], strides = [1, 1]} : vector<8x384xf32> to vector<8x128xf32>
    %228 = vector.extract_strided_slice %226 {offsets = [0, 0], sizes = [8, 128], strides = [1, 1]} : vector<8x384xf32> to vector<8x128xf32>
    %229 = arith.addf %227, %228 : vector<8x128xf32>
    %230 = arith.negf %229 : vector<8x128xf32>
    %231 = math.exp %230 : vector<8x128xf32>
    %cst_89 = arith.constant 1.000000e+00 : f32
    %232 = vector.broadcast %cst_89 : f32 to vector<8x128xf32>
    %233 = arith.addf %232, %231 : vector<8x128xf32>
    %234 = arith.divf %232, %233 : vector<8x128xf32>
    %235 = vector.extract_strided_slice %196 {offsets = [0, 128], sizes = [8, 128], strides = [1, 1]} : vector<8x384xf32> to vector<8x128xf32>
    %236 = vector.extract_strided_slice %226 {offsets = [0, 128], sizes = [8, 128], strides = [1, 1]} : vector<8x384xf32> to vector<8x128xf32>
    %237 = arith.addf %235, %236 : vector<8x128xf32>
    %238 = arith.negf %237 : vector<8x128xf32>
    %239 = math.exp %238 : vector<8x128xf32>
    %cst_90 = arith.constant 1.000000e+00 : f32
    %240 = vector.broadcast %cst_90 : f32 to vector<8x128xf32>
    %241 = arith.addf %240, %239 : vector<8x128xf32>
    %242 = arith.divf %240, %241 : vector<8x128xf32>
    %243 = vector.extract_strided_slice %196 {offsets = [0, 256], sizes = [8, 128], strides = [1, 1]} : vector<8x384xf32> to vector<8x128xf32>
    %244 = vector.extract_strided_slice %226 {offsets = [0, 256], sizes = [8, 128], strides = [1, 1]} : vector<8x384xf32> to vector<8x128xf32>
    %245 = arith.mulf %234, %244 : vector<8x128xf32>
    %246 = arith.addf %243, %245 : vector<8x128xf32>
    %247 = math.tanh %246 : vector<8x128xf32>
    %cst_91 = arith.constant 1.000000e+00 : f32
    %248 = vector.broadcast %cst_91 : f32 to vector<8x128xf32>
    %249 = arith.subf %248, %242 : vector<8x128xf32>
    %250 = arith.mulf %249, %247 : vector<8x128xf32>
    %251 = arith.mulf %242, %186 : vector<8x128xf32>
    %252 = arith.addf %250, %251 : vector<8x128xf32>
    %253 = arith.truncf %224 : vector<8x128xf32> to vector<8x128xbf16>
    %cst_92 = arith.constant dense<0.000000e+00> : vector<8x128xf32>
    %254 = tpu.matmul %253, %161, %cst_92 {dimension_numbers = #tpu.dot_dimension_numbers<[1], [0], [0], [1], [0, 0, 1, 1], [], []>} : vector<8x128xbf16>, vector<128x128xbf16>, vector<8x128xf32> -> vector<8x128xf32>
    %255 = arith.truncf %252 : vector<8x128xf32> to vector<8x128xbf16>
    %cst_93 = arith.constant dense<0.000000e+00> : vector<8x128xf32>
    %256 = tpu.matmul %255, %162, %cst_93 {dimension_numbers = #tpu.dot_dimension_numbers<[1], [0], [0], [1], [0, 0, 1, 1], [], []>} : vector<8x128xbf16>, vector<128x128xbf16>, vector<8x128xf32> -> vector<8x128xf32>
    %257 = arith.addf %254, %256 : vector<8x128xf32>
    %258 = arith.addf %257, %178 : vector<8x128xf32>
    %259 = arith.truncf %258 : vector<8x128xf32> to vector<8x128xbf16>
    %cst_94 = arith.constant dense<0.000000e+00> : vector<8x256xf32>
    %260 = tpu.matmul %259, %163, %cst_94 {dimension_numbers = #tpu.dot_dimension_numbers<[1], [0], [0], [1], [0, 0, 1, 1], [], []>} : vector<8x128xbf16>, vector<128x256xbf16>, vector<8x256xf32> -> vector<8x256xf32>
    %261 = vector.extract_strided_slice %260 {offsets = [0, 0], sizes = [8, 128], strides = [1, 1]} : vector<8x256xf32> to vector<8x128xf32>
    %262 = vector.extract_strided_slice %260 {offsets = [0, 128], sizes = [8, 128], strides = [1, 1]} : vector<8x256xf32> to vector<8x128xf32>
    %263 = arith.negf %261 : vector<8x128xf32>
    %264 = math.exp %263 : vector<8x128xf32>
    %cst_95 = arith.constant 1.000000e+00 : f32
    %265 = vector.broadcast %cst_95 : f32 to vector<8x128xf32>
    %266 = arith.addf %265, %264 : vector<8x128xf32>
    %267 = arith.divf %265, %266 : vector<8x128xf32>
    %268 = arith.mulf %261, %267 : vector<8x128xf32>
    %269 = arith.mulf %268, %262 : vector<8x128xf32>
    %270 = arith.truncf %269 : vector<8x128xf32> to vector<8x128xbf16>
    %cst_96 = arith.constant dense<0.000000e+00> : vector<8x128xf32>
    %271 = tpu.matmul %156, %270, %cst_96 {dimension_numbers = #tpu.dot_dimension_numbers<[1], [0], [0], [1], [0, 0, 1, 1], [], []>} : vector<8x8xbf16>, vector<8x128xbf16>, vector<8x128xf32> -> vector<8x128xf32>
    %cst_97 = arith.constant dense<0.000000e+00> : vector<8x128xf32>
    %272 = tpu.matmul %157, %270, %cst_97 {dimension_numbers = #tpu.dot_dimension_numbers<[1], [0], [0], [1], [0, 0, 1, 1], [], []>} : vector<8x8xbf16>, vector<8x128xbf16>, vector<8x128xf32> -> vector<8x128xf32>
    %cst_98 = arith.constant dense<0.000000e+00> : vector<8x768xf32>
    %273 = tpu.matmul %270, %160, %cst_98 {dimension_numbers = #tpu.dot_dimension_numbers<[1], [0], [0], [1], [0, 0, 1, 1], [], []>} : vector<8x128xbf16>, vector<128x768xbf16>, vector<8x768xf32> -> vector<8x768xf32>
    %274 = arith.truncf %271 : vector<8x128xf32> to vector<8x128xbf16>
    %cst_99 = arith.constant dense<0.000000e+00> : vector<8x384xf32>
    %275 = tpu.matmul %274, %158, %cst_99 {dimension_numbers = #tpu.dot_dimension_numbers<[1], [0], [0], [1], [0, 0, 1, 1], [], []>} : vector<8x128xbf16>, vector<128x384xbf16>, vector<8x384xf32> -> vector<8x384xf32>
    %276 = arith.addf %275, %166 : vector<8x384xf32>
    %277 = arith.truncf %272 : vector<8x128xf32> to vector<8x128xbf16>
    %cst_100 = arith.constant dense<0.000000e+00> : vector<8x384xf32>
    %278 = tpu.matmul %277, %159, %cst_100 {dimension_numbers = #tpu.dot_dimension_numbers<[1], [0], [0], [1], [0, 0, 1, 1], [], []>} : vector<8x128xbf16>, vector<128x384xbf16>, vector<8x384xf32> -> vector<8x384xf32>
    %279 = arith.addf %278, %172 : vector<8x384xf32>
    %280 = vector.extract_strided_slice %273 {offsets = [0, 0], sizes = [8, 384], strides = [1, 1]} : vector<8x768xf32> to vector<8x384xf32>
    %281 = arith.addf %280, %169 : vector<8x384xf32>
    %282 = vector.extract_strided_slice %276 {offsets = [0, 0], sizes = [8, 128], strides = [1, 1]} : vector<8x384xf32> to vector<8x128xf32>
    %283 = vector.extract_strided_slice %281 {offsets = [0, 0], sizes = [8, 128], strides = [1, 1]} : vector<8x384xf32> to vector<8x128xf32>
    %284 = arith.addf %282, %283 : vector<8x128xf32>
    %285 = arith.negf %284 : vector<8x128xf32>
    %286 = math.exp %285 : vector<8x128xf32>
    %cst_101 = arith.constant 1.000000e+00 : f32
    %287 = vector.broadcast %cst_101 : f32 to vector<8x128xf32>
    %288 = arith.addf %287, %286 : vector<8x128xf32>
    %289 = arith.divf %287, %288 : vector<8x128xf32>
    %290 = vector.extract_strided_slice %276 {offsets = [0, 128], sizes = [8, 128], strides = [1, 1]} : vector<8x384xf32> to vector<8x128xf32>
    %291 = vector.extract_strided_slice %281 {offsets = [0, 128], sizes = [8, 128], strides = [1, 1]} : vector<8x384xf32> to vector<8x128xf32>
    %292 = arith.addf %290, %291 : vector<8x128xf32>
    %293 = arith.negf %292 : vector<8x128xf32>
    %294 = math.exp %293 : vector<8x128xf32>
    %cst_102 = arith.constant 1.000000e+00 : f32
    %295 = vector.broadcast %cst_102 : f32 to vector<8x128xf32>
    %296 = arith.addf %295, %294 : vector<8x128xf32>
    %297 = arith.divf %295, %296 : vector<8x128xf32>
    %298 = vector.extract_strided_slice %276 {offsets = [0, 256], sizes = [8, 128], strides = [1, 1]} : vector<8x384xf32> to vector<8x128xf32>
    %299 = vector.extract_strided_slice %281 {offsets = [0, 256], sizes = [8, 128], strides = [1, 1]} : vector<8x384xf32> to vector<8x128xf32>
    %300 = arith.mulf %289, %299 : vector<8x128xf32>
    %301 = arith.addf %298, %300 : vector<8x128xf32>
    %302 = math.tanh %301 : vector<8x128xf32>
    %cst_103 = arith.constant 1.000000e+00 : f32
    %303 = vector.broadcast %cst_103 : f32 to vector<8x128xf32>
    %304 = arith.subf %303, %297 : vector<8x128xf32>
    %305 = arith.mulf %304, %302 : vector<8x128xf32>
    %306 = arith.mulf %297, %269 : vector<8x128xf32>
    %307 = arith.addf %305, %306 : vector<8x128xf32>
    %308 = vector.extract_strided_slice %273 {offsets = [0, 384], sizes = [8, 384], strides = [1, 1]} : vector<8x768xf32> to vector<8x384xf32>
    %309 = arith.addf %308, %175 : vector<8x384xf32>
    %310 = vector.extract_strided_slice %279 {offsets = [0, 0], sizes = [8, 128], strides = [1, 1]} : vector<8x384xf32> to vector<8x128xf32>
    %311 = vector.extract_strided_slice %309 {offsets = [0, 0], sizes = [8, 128], strides = [1, 1]} : vector<8x384xf32> to vector<8x128xf32>
    %312 = arith.addf %310, %311 : vector<8x128xf32>
    %313 = arith.negf %312 : vector<8x128xf32>
    %314 = math.exp %313 : vector<8x128xf32>
    %cst_104 = arith.constant 1.000000e+00 : f32
    %315 = vector.broadcast %cst_104 : f32 to vector<8x128xf32>
    %316 = arith.addf %315, %314 : vector<8x128xf32>
    %317 = arith.divf %315, %316 : vector<8x128xf32>
    %318 = vector.extract_strided_slice %279 {offsets = [0, 128], sizes = [8, 128], strides = [1, 1]} : vector<8x384xf32> to vector<8x128xf32>
    %319 = vector.extract_strided_slice %309 {offsets = [0, 128], sizes = [8, 128], strides = [1, 1]} : vector<8x384xf32> to vector<8x128xf32>
    %320 = arith.addf %318, %319 : vector<8x128xf32>
    %321 = arith.negf %320 : vector<8x128xf32>
    %322 = math.exp %321 : vector<8x128xf32>
    %cst_105 = arith.constant 1.000000e+00 : f32
    %323 = vector.broadcast %cst_105 : f32 to vector<8x128xf32>
    %324 = arith.addf %323, %322 : vector<8x128xf32>
    %325 = arith.divf %323, %324 : vector<8x128xf32>
    %326 = vector.extract_strided_slice %279 {offsets = [0, 256], sizes = [8, 128], strides = [1, 1]} : vector<8x384xf32> to vector<8x128xf32>
    %327 = vector.extract_strided_slice %309 {offsets = [0, 256], sizes = [8, 128], strides = [1, 1]} : vector<8x384xf32> to vector<8x128xf32>
    %328 = arith.mulf %317, %327 : vector<8x128xf32>
    %329 = arith.addf %326, %328 : vector<8x128xf32>
    %330 = math.tanh %329 : vector<8x128xf32>
    %cst_106 = arith.constant 1.000000e+00 : f32
    %331 = vector.broadcast %cst_106 : f32 to vector<8x128xf32>
    %332 = arith.subf %331, %325 : vector<8x128xf32>
    %333 = arith.mulf %332, %330 : vector<8x128xf32>
    %334 = arith.mulf %325, %269 : vector<8x128xf32>
    %335 = arith.addf %333, %334 : vector<8x128xf32>
    %336 = arith.truncf %307 : vector<8x128xf32> to vector<8x128xbf16>
    %cst_107 = arith.constant dense<0.000000e+00> : vector<8x128xf32>
    %337 = tpu.matmul %336, %161, %cst_107 {dimension_numbers = #tpu.dot_dimension_numbers<[1], [0], [0], [1], [0, 0, 1, 1], [], []>} : vector<8x128xbf16>, vector<128x128xbf16>, vector<8x128xf32> -> vector<8x128xf32>
    %338 = arith.truncf %335 : vector<8x128xf32> to vector<8x128xbf16>
    %cst_108 = arith.constant dense<0.000000e+00> : vector<8x128xf32>
    %339 = tpu.matmul %338, %162, %cst_108 {dimension_numbers = #tpu.dot_dimension_numbers<[1], [0], [0], [1], [0, 0, 1, 1], [], []>} : vector<8x128xbf16>, vector<128x128xbf16>, vector<8x128xf32> -> vector<8x128xf32>
    %340 = arith.addf %337, %339 : vector<8x128xf32>
    %341 = arith.addf %340, %178 : vector<8x128xf32>
    %342 = arith.truncf %341 : vector<8x128xf32> to vector<8x128xbf16>
    %cst_109 = arith.constant dense<0.000000e+00> : vector<8x256xf32>
    %343 = tpu.matmul %342, %163, %cst_109 {dimension_numbers = #tpu.dot_dimension_numbers<[1], [0], [0], [1], [0, 0, 1, 1], [], []>} : vector<8x128xbf16>, vector<128x256xbf16>, vector<8x256xf32> -> vector<8x256xf32>
    %344 = vector.extract_strided_slice %343 {offsets = [0, 0], sizes = [8, 128], strides = [1, 1]} : vector<8x256xf32> to vector<8x128xf32>
    %345 = vector.extract_strided_slice %343 {offsets = [0, 128], sizes = [8, 128], strides = [1, 1]} : vector<8x256xf32> to vector<8x128xf32>
    %346 = arith.negf %344 : vector<8x128xf32>
    %347 = math.exp %346 : vector<8x128xf32>
    %cst_110 = arith.constant 1.000000e+00 : f32
    %348 = vector.broadcast %cst_110 : f32 to vector<8x128xf32>
    %349 = arith.addf %348, %347 : vector<8x128xf32>
    %350 = arith.divf %348, %349 : vector<8x128xf32>
    %351 = arith.mulf %344, %350 : vector<8x128xf32>
    %352 = arith.mulf %351, %345 : vector<8x128xf32>
    %353 = arith.truncf %352 : vector<8x128xf32> to vector<8x128xbf16>
    %cst_111 = arith.constant dense<0.000000e+00> : vector<8x128xf32>
    %354 = tpu.matmul %156, %353, %cst_111 {dimension_numbers = #tpu.dot_dimension_numbers<[1], [0], [0], [1], [0, 0, 1, 1], [], []>} : vector<8x8xbf16>, vector<8x128xbf16>, vector<8x128xf32> -> vector<8x128xf32>
    %cst_112 = arith.constant dense<0.000000e+00> : vector<8x128xf32>
    %355 = tpu.matmul %157, %353, %cst_112 {dimension_numbers = #tpu.dot_dimension_numbers<[1], [0], [0], [1], [0, 0, 1, 1], [], []>} : vector<8x8xbf16>, vector<8x128xbf16>, vector<8x128xf32> -> vector<8x128xf32>
    %cst_113 = arith.constant dense<0.000000e+00> : vector<8x768xf32>
    %356 = tpu.matmul %353, %160, %cst_113 {dimension_numbers = #tpu.dot_dimension_numbers<[1], [0], [0], [1], [0, 0, 1, 1], [], []>} : vector<8x128xbf16>, vector<128x768xbf16>, vector<8x768xf32> -> vector<8x768xf32>
    %357 = arith.truncf %354 : vector<8x128xf32> to vector<8x128xbf16>
    %cst_114 = arith.constant dense<0.000000e+00> : vector<8x384xf32>
    %358 = tpu.matmul %357, %158, %cst_114 {dimension_numbers = #tpu.dot_dimension_numbers<[1], [0], [0], [1], [0, 0, 1, 1], [], []>} : vector<8x128xbf16>, vector<128x384xbf16>, vector<8x384xf32> -> vector<8x384xf32>
    %359 = arith.addf %358, %166 : vector<8x384xf32>
    %360 = arith.truncf %355 : vector<8x128xf32> to vector<8x128xbf16>
    %cst_115 = arith.constant dense<0.000000e+00> : vector<8x384xf32>
    %361 = tpu.matmul %360, %159, %cst_115 {dimension_numbers = #tpu.dot_dimension_numbers<[1], [0], [0], [1], [0, 0, 1, 1], [], []>} : vector<8x128xbf16>, vector<128x384xbf16>, vector<8x384xf32> -> vector<8x384xf32>
    %362 = arith.addf %361, %172 : vector<8x384xf32>
    %363 = vector.extract_strided_slice %356 {offsets = [0, 0], sizes = [8, 384], strides = [1, 1]} : vector<8x768xf32> to vector<8x384xf32>
    %364 = arith.addf %363, %169 : vector<8x384xf32>
    %365 = vector.extract_strided_slice %359 {offsets = [0, 0], sizes = [8, 128], strides = [1, 1]} : vector<8x384xf32> to vector<8x128xf32>
    %366 = vector.extract_strided_slice %364 {offsets = [0, 0], sizes = [8, 128], strides = [1, 1]} : vector<8x384xf32> to vector<8x128xf32>
    %367 = arith.addf %365, %366 : vector<8x128xf32>
    %368 = arith.negf %367 : vector<8x128xf32>
    %369 = math.exp %368 : vector<8x128xf32>
    %cst_116 = arith.constant 1.000000e+00 : f32
    %370 = vector.broadcast %cst_116 : f32 to vector<8x128xf32>
    %371 = arith.addf %370, %369 : vector<8x128xf32>
    %372 = arith.divf %370, %371 : vector<8x128xf32>
    %373 = vector.extract_strided_slice %359 {offsets = [0, 128], sizes = [8, 128], strides = [1, 1]} : vector<8x384xf32> to vector<8x128xf32>
    %374 = vector.extract_strided_slice %364 {offsets = [0, 128], sizes = [8, 128], strides = [1, 1]} : vector<8x384xf32> to vector<8x128xf32>
    %375 = arith.addf %373, %374 : vector<8x128xf32>
    %376 = arith.negf %375 : vector<8x128xf32>
    %377 = math.exp %376 : vector<8x128xf32>
    %cst_117 = arith.constant 1.000000e+00 : f32
    %378 = vector.broadcast %cst_117 : f32 to vector<8x128xf32>
    %379 = arith.addf %378, %377 : vector<8x128xf32>
    %380 = arith.divf %378, %379 : vector<8x128xf32>
    %381 = vector.extract_strided_slice %359 {offsets = [0, 256], sizes = [8, 128], strides = [1, 1]} : vector<8x384xf32> to vector<8x128xf32>
    %382 = vector.extract_strided_slice %364 {offsets = [0, 256], sizes = [8, 128], strides = [1, 1]} : vector<8x384xf32> to vector<8x128xf32>
    %383 = arith.mulf %372, %382 : vector<8x128xf32>
    %384 = arith.addf %381, %383 : vector<8x128xf32>
    %385 = math.tanh %384 : vector<8x128xf32>
    %cst_118 = arith.constant 1.000000e+00 : f32
    %386 = vector.broadcast %cst_118 : f32 to vector<8x128xf32>
    %387 = arith.subf %386, %380 : vector<8x128xf32>
    %388 = arith.mulf %387, %385 : vector<8x128xf32>
    %389 = arith.mulf %380, %352 : vector<8x128xf32>
    %390 = arith.addf %388, %389 : vector<8x128xf32>
    %391 = vector.extract_strided_slice %356 {offsets = [0, 384], sizes = [8, 384], strides = [1, 1]} : vector<8x768xf32> to vector<8x384xf32>
    %392 = arith.addf %391, %175 : vector<8x384xf32>
    %393 = vector.extract_strided_slice %362 {offsets = [0, 0], sizes = [8, 128], strides = [1, 1]} : vector<8x384xf32> to vector<8x128xf32>
    %394 = vector.extract_strided_slice %392 {offsets = [0, 0], sizes = [8, 128], strides = [1, 1]} : vector<8x384xf32> to vector<8x128xf32>
    %395 = arith.addf %393, %394 : vector<8x128xf32>
    %396 = arith.negf %395 : vector<8x128xf32>
    %397 = math.exp %396 : vector<8x128xf32>
    %cst_119 = arith.constant 1.000000e+00 : f32
    %398 = vector.broadcast %cst_119 : f32 to vector<8x128xf32>
    %399 = arith.addf %398, %397 : vector<8x128xf32>
    %400 = arith.divf %398, %399 : vector<8x128xf32>
    %401 = vector.extract_strided_slice %362 {offsets = [0, 128], sizes = [8, 128], strides = [1, 1]} : vector<8x384xf32> to vector<8x128xf32>
    %402 = vector.extract_strided_slice %392 {offsets = [0, 128], sizes = [8, 128], strides = [1, 1]} : vector<8x384xf32> to vector<8x128xf32>
    %403 = arith.addf %401, %402 : vector<8x128xf32>
    %404 = arith.negf %403 : vector<8x128xf32>
    %405 = math.exp %404 : vector<8x128xf32>
    %cst_120 = arith.constant 1.000000e+00 : f32
    %406 = vector.broadcast %cst_120 : f32 to vector<8x128xf32>
    %407 = arith.addf %406, %405 : vector<8x128xf32>
    %408 = arith.divf %406, %407 : vector<8x128xf32>
    %409 = vector.extract_strided_slice %362 {offsets = [0, 256], sizes = [8, 128], strides = [1, 1]} : vector<8x384xf32> to vector<8x128xf32>
    %410 = vector.extract_strided_slice %392 {offsets = [0, 256], sizes = [8, 128], strides = [1, 1]} : vector<8x384xf32> to vector<8x128xf32>
    %411 = arith.mulf %400, %410 : vector<8x128xf32>
    %412 = arith.addf %409, %411 : vector<8x128xf32>
    %413 = math.tanh %412 : vector<8x128xf32>
    %cst_121 = arith.constant 1.000000e+00 : f32
    %414 = vector.broadcast %cst_121 : f32 to vector<8x128xf32>
    %415 = arith.subf %414, %408 : vector<8x128xf32>
    %416 = arith.mulf %415, %413 : vector<8x128xf32>
    %417 = arith.mulf %408, %352 : vector<8x128xf32>
    %418 = arith.addf %416, %417 : vector<8x128xf32>
    %419 = arith.truncf %390 : vector<8x128xf32> to vector<8x128xbf16>
    %cst_122 = arith.constant dense<0.000000e+00> : vector<8x128xf32>
    %420 = tpu.matmul %419, %161, %cst_122 {dimension_numbers = #tpu.dot_dimension_numbers<[1], [0], [0], [1], [0, 0, 1, 1], [], []>} : vector<8x128xbf16>, vector<128x128xbf16>, vector<8x128xf32> -> vector<8x128xf32>
    %421 = arith.truncf %418 : vector<8x128xf32> to vector<8x128xbf16>
    %cst_123 = arith.constant dense<0.000000e+00> : vector<8x128xf32>
    %422 = tpu.matmul %421, %162, %cst_123 {dimension_numbers = #tpu.dot_dimension_numbers<[1], [0], [0], [1], [0, 0, 1, 1], [], []>} : vector<8x128xbf16>, vector<128x128xbf16>, vector<8x128xf32> -> vector<8x128xf32>
    %423 = arith.addf %420, %422 : vector<8x128xf32>
    %424 = arith.addf %423, %178 : vector<8x128xf32>
    %425 = arith.truncf %424 : vector<8x128xf32> to vector<8x128xbf16>
    %cst_124 = arith.constant dense<0.000000e+00> : vector<8x256xf32>
    %426 = tpu.matmul %425, %163, %cst_124 {dimension_numbers = #tpu.dot_dimension_numbers<[1], [0], [0], [1], [0, 0, 1, 1], [], []>} : vector<8x128xbf16>, vector<128x256xbf16>, vector<8x256xf32> -> vector<8x256xf32>
    %427 = vector.extract_strided_slice %426 {offsets = [0, 0], sizes = [8, 128], strides = [1, 1]} : vector<8x256xf32> to vector<8x128xf32>
    %428 = vector.extract_strided_slice %426 {offsets = [0, 128], sizes = [8, 128], strides = [1, 1]} : vector<8x256xf32> to vector<8x128xf32>
    %429 = arith.negf %427 : vector<8x128xf32>
    %430 = math.exp %429 : vector<8x128xf32>
    %cst_125 = arith.constant 1.000000e+00 : f32
    %431 = vector.broadcast %cst_125 : f32 to vector<8x128xf32>
    %432 = arith.addf %431, %430 : vector<8x128xf32>
    %433 = arith.divf %431, %432 : vector<8x128xf32>
    %434 = arith.mulf %427, %433 : vector<8x128xf32>
    %435 = arith.mulf %434, %428 : vector<8x128xf32>
    %436 = arith.truncf %435 : vector<8x128xf32> to vector<8x128xbf16>
    %c0_126 = arith.constant 0 : index
    %c0_127 = arith.constant 0 : index
    %437 = vector.load %arg28[%c0_126, %c0_127] : memref<128x128xbf16, #tpu.memory_space<vmem>>, vector<128x128xbf16>
    %cst_128 = arith.constant dense<0.000000e+00> : vector<8x128xf32>
    %438 = tpu.matmul %436, %437, %cst_128 {dimension_numbers = #tpu.dot_dimension_numbers<[1], [0], [0], [1], [0, 0, 1, 1], [], []>} : vector<8x128xbf16>, vector<128x128xbf16>, vector<8x128xf32> -> vector<8x128xf32>
    %c0_129 = arith.constant 0 : index
    %c0_130 = arith.constant 0 : index
    %439 = vector.load %arg29[%c0_129, %c0_130] : memref<1x128xf32, #tpu.memory_space<vmem>>, vector<1x128xf32>
    %440 = vector.broadcast %439 : vector<1x128xf32> to vector<8x128xf32>
    %441 = arith.addf %438, %440 : vector<8x128xf32>
    %c0_131 = arith.constant 0 : index
    %c0_132 = arith.constant 0 : index
    %442 = vector.load %arg30[%c0_131, %c0_132] : memref<8x16xbf16, #tpu.memory_space<vmem>>, vector<8x16xbf16>
    %443 = arith.truncf %155 : vector<16x128xf32> to vector<16x128xbf16>
    %cst_133 = arith.constant dense<0.000000e+00> : vector<8x128xf32>
    %444 = tpu.matmul %442, %443, %cst_133 {dimension_numbers = #tpu.dot_dimension_numbers<[1], [0], [0], [1], [0, 0, 1, 1], [], []>} : vector<8x16xbf16>, vector<16x128xbf16>, vector<8x128xf32> -> vector<8x128xf32>
    %c0_134 = arith.constant 0 : index
    %c0_135 = arith.constant 0 : index
    %445 = vector.load %arg31[%c0_134, %c0_135] : memref<8x8xbf16, #tpu.memory_space<vmem>>, vector<8x8xbf16>
    %446 = arith.truncf %441 : vector<8x128xf32> to vector<8x128xbf16>
    %cst_136 = arith.constant dense<0.000000e+00> : vector<8x128xf32>
    %447 = tpu.matmul %445, %446, %cst_136 {dimension_numbers = #tpu.dot_dimension_numbers<[1], [0], [0], [1], [0, 0, 1, 1], [], []>} : vector<8x8xbf16>, vector<8x128xbf16>, vector<8x128xf32> -> vector<8x128xf32>
    %448 = arith.truncf %444 : vector<8x128xf32> to vector<8x128xbf16>
    %c0_137 = arith.constant 0 : index
    %c0_138 = arith.constant 0 : index
    %449 = vector.load %arg32[%c0_137, %c0_138] : memref<128x128xbf16, #tpu.memory_space<vmem>>, vector<128x128xbf16>
    %cst_139 = arith.constant dense<0.000000e+00> : vector<8x128xf32>
    %450 = tpu.matmul %448, %449, %cst_139 {dimension_numbers = #tpu.dot_dimension_numbers<[1], [0], [0], [1], [0, 0, 1, 1], [], []>} : vector<8x128xbf16>, vector<128x128xbf16>, vector<8x128xf32> -> vector<8x128xf32>
    %c0_140 = arith.constant 0 : index
    %c0_141 = arith.constant 0 : index
    %451 = vector.load %arg33[%c0_140, %c0_141] : memref<1x128xf32, #tpu.memory_space<vmem>>, vector<1x128xf32>
    %452 = vector.broadcast %451 : vector<1x128xf32> to vector<8x128xf32>
    %453 = arith.addf %450, %452 : vector<8x128xf32>
    %454 = arith.truncf %447 : vector<8x128xf32> to vector<8x128xbf16>
    %c0_142 = arith.constant 0 : index
    %c0_143 = arith.constant 0 : index
    %455 = vector.load %arg34[%c0_142, %c0_143] : memref<128x128xbf16, #tpu.memory_space<vmem>>, vector<128x128xbf16>
    %cst_144 = arith.constant dense<0.000000e+00> : vector<8x128xf32>
    %456 = tpu.matmul %454, %455, %cst_144 {dimension_numbers = #tpu.dot_dimension_numbers<[1], [0], [0], [1], [0, 0, 1, 1], [], []>} : vector<8x128xbf16>, vector<128x128xbf16>, vector<8x128xf32> -> vector<8x128xf32>
    %c0_145 = arith.constant 0 : index
    %c0_146 = arith.constant 0 : index
    %457 = vector.load %arg35[%c0_145, %c0_146] : memref<1x128xf32, #tpu.memory_space<vmem>>, vector<1x128xf32>
    %458 = vector.broadcast %457 : vector<1x128xf32> to vector<8x128xf32>
    %459 = arith.addf %456, %458 : vector<8x128xf32>
    %c0_147 = arith.constant 0 : index
    %c0_148 = arith.constant 0 : index
    %460 = vector.load %arg36[%c0_147, %c0_148] : memref<1x128xf32, #tpu.memory_space<vmem>>, vector<1x128xf32>
    %cst_149 = arith.constant dense<0xFF800000> : vector<1xf32>
    %461 = vector.multi_reduction <maximumf>, %460, %cst_149 [1] : vector<1x128xf32> to vector<1xf32>
    %462 = vector.shape_cast %461 : vector<1xf32> to vector<1x1xf32>
    %463 = vector.broadcast %462 : vector<1x1xf32> to vector<1x128xf32>
    %464 = arith.subf %460, %463 : vector<1x128xf32>
    %465 = math.exp %464 : vector<1x128xf32>
    %cst_150 = arith.constant dense<0.000000e+00> : vector<1xf32>
    %466 = vector.multi_reduction <add>, %465, %cst_150 [1] : vector<1x128xf32> to vector<1xf32>
    %467 = vector.shape_cast %466 : vector<1xf32> to vector<1x1xf32>
    %468 = vector.broadcast %467 : vector<1x1xf32> to vector<1x128xf32>
    %469 = arith.divf %465, %468 : vector<1x128xf32>
    %470 = vector.extract_strided_slice %469 {offsets = [0, 0], sizes = [1, 1], strides = [1, 1]} : vector<1x128xf32> to vector<1x1xf32>
    %471 = vector.broadcast %470 : vector<1x1xf32> to vector<8x128xf32>
    %472 = arith.mulf %471, %453 : vector<8x128xf32>
    %473 = vector.extract_strided_slice %469 {offsets = [0, 1], sizes = [1, 1], strides = [1, 1]} : vector<1x128xf32> to vector<1x1xf32>
    %474 = vector.broadcast %473 : vector<1x1xf32> to vector<8x128xf32>
    %475 = arith.mulf %474, %459 : vector<8x128xf32>
    %476 = arith.addf %472, %475 : vector<8x128xf32>
    %477 = tpu.iota {dimensions = array<i32: 1>} : vector<8x128xi32>
    %c16_i32 = arith.constant 16 : i32
    %478 = vector.broadcast %c16_i32 : i32 to vector<8x128xi32>
    %479 = arith.cmpi slt, %477, %478 : vector<8x128xi32>
    %480 = arith.extui %479 : vector<8x128xi1> to vector<8x128xi32>
    %481 = arith.sitofp %480 : vector<8x128xi32> to vector<8x128xf32>
    %482 = arith.mulf %476, %481 : vector<8x128xf32>
    %cst_151 = arith.constant dense<0.000000e+00> : vector<8xf32>
    %483 = vector.multi_reduction <add>, %482, %cst_151 [1] : vector<8x128xf32> to vector<8xf32>
    %484 = vector.shape_cast %483 : vector<8xf32> to vector<8x1xf32>
    %cst_152 = arith.constant 6.250000e-02 : f32
    %485 = vector.broadcast %cst_152 : f32 to vector<8x1xf32>
    %486 = arith.mulf %484, %485 : vector<8x1xf32>
    %487 = vector.broadcast %486 : vector<8x1xf32> to vector<8x128xf32>
    %488 = arith.subf %476, %487 : vector<8x128xf32>
    %489 = arith.mulf %488, %481 : vector<8x128xf32>
    %490 = arith.mulf %489, %489 : vector<8x128xf32>
    %cst_153 = arith.constant dense<0.000000e+00> : vector<8xf32>
    %491 = vector.multi_reduction <add>, %490, %cst_153 [1] : vector<8x128xf32> to vector<8xf32>
    %492 = vector.shape_cast %491 : vector<8xf32> to vector<8x1xf32>
    %cst_154 = arith.constant 6.250000e-02 : f32
    %493 = vector.broadcast %cst_154 : f32 to vector<8x1xf32>
    %494 = arith.mulf %492, %493 : vector<8x1xf32>
    %cst_155 = arith.constant 9.99999974E-6 : f32
    %495 = vector.broadcast %cst_155 : f32 to vector<8x1xf32>
    %496 = arith.addf %494, %495 : vector<8x1xf32>
    %497 = math.rsqrt %496 : vector<8x1xf32>
    %498 = vector.broadcast %497 : vector<8x1xf32> to vector<8x128xf32>
    %499 = arith.mulf %489, %498 : vector<8x128xf32>
    %c0_156 = arith.constant 0 : index
    %c0_157 = arith.constant 0 : index
    %500 = vector.load %arg37[%c0_156, %c0_157] : memref<1x128xf32, #tpu.memory_space<vmem>>, vector<1x128xf32>
    %501 = vector.broadcast %500 : vector<1x128xf32> to vector<8x128xf32>
    %502 = arith.mulf %499, %501 : vector<8x128xf32>
    %c0_158 = arith.constant 0 : index
    %c0_159 = arith.constant 0 : index
    %503 = vector.load %arg38[%c0_158, %c0_159] : memref<1x128xf32, #tpu.memory_space<vmem>>, vector<1x128xf32>
    %504 = vector.broadcast %503 : vector<1x128xf32> to vector<8x128xf32>
    %505 = arith.addf %502, %504 : vector<8x128xf32>
    %506 = arith.truncf %505 : vector<8x128xf32> to vector<8x128xbf16>
    %c0_160 = arith.constant 0 : index
    %c0_161 = arith.constant 0 : index
    %507 = vector.load %arg39[%c0_160, %c0_161] : memref<128x128xbf16, #tpu.memory_space<vmem>>, vector<128x128xbf16>
    %cst_162 = arith.constant dense<0.000000e+00> : vector<8x128xf32>
    %508 = tpu.matmul %506, %507, %cst_162 {dimension_numbers = #tpu.dot_dimension_numbers<[1], [0], [0], [1], [0, 0, 1, 1], [], []>} : vector<8x128xbf16>, vector<128x128xbf16>, vector<8x128xf32> -> vector<8x128xf32>
    %c0_163 = arith.constant 0 : index
    %c0_164 = arith.constant 0 : index
    %509 = vector.load %arg40[%c0_163, %c0_164] : memref<1x128xf32, #tpu.memory_space<vmem>>, vector<1x128xf32>
    %510 = vector.broadcast %509 : vector<1x128xf32> to vector<8x128xf32>
    %511 = arith.addf %508, %510 : vector<8x128xf32>
    %cst_165 = arith.constant 0.000000e+00 : f32
    %512 = vector.broadcast %cst_165 : f32 to vector<8x128xf32>
    %513 = arith.maximumf %511, %512 : vector<8x128xf32>
    %514 = arith.truncf %513 : vector<8x128xf32> to vector<8x128xbf16>
    %c0_166 = arith.constant 0 : index
    %c0_167 = arith.constant 0 : index
    %515 = vector.load %arg41[%c0_166, %c0_167] : memref<128x128xbf16, #tpu.memory_space<vmem>>, vector<128x128xbf16>
    %cst_168 = arith.constant dense<0.000000e+00> : vector<8x128xf32>
    %516 = tpu.matmul %514, %515, %cst_168 {dimension_numbers = #tpu.dot_dimension_numbers<[1], [0], [0], [1], [0, 0, 1, 1], [], []>} : vector<8x128xbf16>, vector<128x128xbf16>, vector<8x128xf32> -> vector<8x128xf32>
    %c0_169 = arith.constant 0 : index
    %c0_170 = arith.constant 0 : index
    %517 = vector.load %arg42[%c0_169, %c0_170] : memref<1x128xf32, #tpu.memory_space<vmem>>, vector<1x128xf32>
    %518 = vector.broadcast %517 : vector<1x128xf32> to vector<8x128xf32>
    %519 = arith.addf %516, %518 : vector<8x128xf32>
    %c0_171 = arith.constant 0 : index
    %c0_172 = arith.constant 0 : index
    %520 = vector.load %arg43[%c0_171, %c0_172] : memref<8x128xf32, #tpu.memory_space<vmem>>, vector<8x128xf32>
    tpu.vector_store %arg43[%c0_171, %c0_172], %519 {strides = array<i32>} : memref<8x128xf32, #tpu.memory_space<vmem>>, vector<8x128xf32>,
    return
  }
  func.func @transform_0(%arg0: i32) -> (i32, i32) {
    %c0_i32 = arith.constant 0 : i32
    %c0_i32_0 = arith.constant 0 : i32
    %c0_i32_1 = arith.constant 0 : i32
    return %c0_i32, %c0_i32_0 : i32, i32
  }
  func.func @transform_1(%arg0: i32) -> (i32, i32) {
    %c0_i32 = arith.constant 0 : i32
    %c0_i32_0 = arith.constant 0 : i32
    %c0_i32_1 = arith.constant 0 : i32
    return %c0_i32, %c0_i32_0 : i32, i32
  }
  func.func @transform_2(%arg0: i32) -> (i32, i32) {
    %c0_i32 = arith.constant 0 : i32
    %c0_i32_0 = arith.constant 0 : i32
    %c0_i32_1 = arith.constant 0 : i32
    return %c0_i32, %c0_i32_0 : i32, i32
  }
  func.func @transform_3(%arg0: i32) -> (i32, i32) {
    %c0_i32 = arith.constant 0 : i32
    %c0_i32_0 = arith.constant 0 : i32
    %c0_i32_1 = arith.constant 0 : i32
    return %c0_i32, %c0_i32_0 : i32, i32
  }
  func.func @transform_4(%arg0: i32) -> (i32, i32) {
    %c0_i32 = arith.constant 0 : i32
    %c0_i32_0 = arith.constant 0 : i32
    %c0_i32_1 = arith.constant 0 : i32
    return %c0_i32, %c0_i32_0 : i32, i32
  }
  func.func @transform_5(%arg0: i32) -> (i32, i32) {
    %c0_i32 = arith.constant 0 : i32
    %c0_i32_0 = arith.constant 0 : i32
    %c0_i32_1 = arith.constant 0 : i32
    return %c0_i32, %c0_i32_0 : i32, i32
  }
  func.func @transform_6(%arg0: i32) -> (i32, i32) {
    %c0_i32 = arith.constant 0 : i32
    %c0_i32_0 = arith.constant 0 : i32
    %c0_i32_1 = arith.constant 0 : i32
    return %c0_i32, %c0_i32_0 : i32, i32
  }
  func.func @transform_7(%arg0: i32) -> (i32, i32) {
    %c0_i32 = arith.constant 0 : i32
    %c0_i32_0 = arith.constant 0 : i32
    %c0_i32_1 = arith.constant 0 : i32
    return %c0_i32, %c0_i32_0 : i32, i32
  }
  func.func @transform_8(%arg0: i32) -> (i32, i32) {
    %c0_i32 = arith.constant 0 : i32
    %c0_i32_0 = arith.constant 0 : i32
    %c0_i32_1 = arith.constant 0 : i32
    return %c0_i32, %c0_i32_0 : i32, i32
  }
  func.func @transform_9(%arg0: i32) -> (i32, i32) {
    %c0_i32 = arith.constant 0 : i32
    %c0_i32_0 = arith.constant 0 : i32
    %c0_i32_1 = arith.constant 0 : i32
    return %c0_i32, %c0_i32_0 : i32, i32
  }
  func.func @transform_10(%arg0: i32) -> (i32, i32) {
    %c0_i32 = arith.constant 0 : i32
    %c0_i32_0 = arith.constant 0 : i32
    %c0_i32_1 = arith.constant 0 : i32
    return %c0_i32, %c0_i32_0 : i32, i32
  }
  func.func @transform_11(%arg0: i32) -> (i32, i32) {
    %c0_i32 = arith.constant 0 : i32
    %c0_i32_0 = arith.constant 0 : i32
    %c0_i32_1 = arith.constant 0 : i32
    return %c0_i32, %c0_i32_0 : i32, i32
  }
  func.func @transform_12(%arg0: i32) -> (i32, i32) {
    %c0_i32 = arith.constant 0 : i32
    %c0_i32_0 = arith.constant 0 : i32
    %c0_i32_1 = arith.constant 0 : i32
    return %c0_i32, %c0_i32_0 : i32, i32
  }
  func.func @transform_13(%arg0: i32) -> (i32, i32) {
    %c0_i32 = arith.constant 0 : i32
    %c0_i32_0 = arith.constant 0 : i32
    %c0_i32_1 = arith.constant 0 : i32
    return %c0_i32, %c0_i32_0 : i32, i32
  }
  func.func @transform_14(%arg0: i32) -> (i32, i32) {
    %c0_i32 = arith.constant 0 : i32
    %c0_i32_0 = arith.constant 0 : i32
    %c0_i32_1 = arith.constant 0 : i32
    return %c0_i32, %c0_i32_0 : i32, i32
  }
  func.func @transform_15(%arg0: i32) -> (i32, i32) {
    %c0_i32 = arith.constant 0 : i32
    %c0_i32_0 = arith.constant 0 : i32
    %c0_i32_1 = arith.constant 0 : i32
    return %c0_i32, %c0_i32_0 : i32, i32
  }
  func.func @transform_16(%arg0: i32) -> (i32, i32) {
    %c0_i32 = arith.constant 0 : i32
    %c0_i32_0 = arith.constant 0 : i32
    %c0_i32_1 = arith.constant 0 : i32
    return %c0_i32, %c0_i32_0 : i32, i32
  }
  func.func @transform_17(%arg0: i32) -> (i32, i32) {
    %c0_i32 = arith.constant 0 : i32
    %c0_i32_0 = arith.constant 0 : i32
    %c0_i32_1 = arith.constant 0 : i32
    return %c0_i32, %c0_i32_0 : i32, i32
  }
  func.func @transform_18(%arg0: i32) -> (i32, i32) {
    %c0_i32 = arith.constant 0 : i32
    %c0_i32_0 = arith.constant 0 : i32
    %c0_i32_1 = arith.constant 0 : i32
    return %c0_i32, %c0_i32_0 : i32, i32
  }
  func.func @transform_19(%arg0: i32) -> (i32, i32) {
    %c0_i32 = arith.constant 0 : i32
    %c0_i32_0 = arith.constant 0 : i32
    %c0_i32_1 = arith.constant 0 : i32
    return %c0_i32, %c0_i32_0 : i32, i32
  }
  func.func @transform_20(%arg0: i32) -> (i32, i32) {
    %c0_i32 = arith.constant 0 : i32
    %c0_i32_0 = arith.constant 0 : i32
    %c0_i32_1 = arith.constant 0 : i32
    return %c0_i32, %c0_i32_0 : i32, i32
  }
  func.func @transform_21(%arg0: i32) -> (i32, i32) {
    %c0_i32 = arith.constant 0 : i32
    %c0_i32_0 = arith.constant 0 : i32
    %c0_i32_1 = arith.constant 0 : i32
    return %c0_i32, %c0_i32_0 : i32, i32
  }
  func.func @transform_22(%arg0: i32) -> (i32, i32) {
    %c0_i32 = arith.constant 0 : i32
    %c0_i32_0 = arith.constant 0 : i32
    %c0_i32_1 = arith.constant 0 : i32
    return %c0_i32, %c0_i32_0 : i32, i32
  }
  func.func @transform_23(%arg0: i32) -> (i32, i32) {
    %c0_i32 = arith.constant 0 : i32
    %c0_i32_0 = arith.constant 0 : i32
    %c0_i32_1 = arith.constant 0 : i32
    return %c0_i32, %c0_i32_0 : i32, i32
  }
  func.func @transform_24(%arg0: i32) -> (i32, i32) {
    %c0_i32 = arith.constant 0 : i32
    %c0_i32_0 = arith.constant 0 : i32
    %c0_i32_1 = arith.constant 0 : i32
    return %c0_i32, %c0_i32_0 : i32, i32
  }
  func.func @transform_25(%arg0: i32) -> (i32, i32) {
    %c0_i32 = arith.constant 0 : i32
    %c0_i32_0 = arith.constant 0 : i32
    %c0_i32_1 = arith.constant 0 : i32
    return %c0_i32, %c0_i32_0 : i32, i32
  }
  func.func @transform_26(%arg0: i32) -> (i32, i32) {
    %c0_i32 = arith.constant 0 : i32
    %c0_i32_0 = arith.constant 0 : i32
    %c0_i32_1 = arith.constant 0 : i32
    return %c0_i32, %c0_i32_0 : i32, i32
  }
  func.func @transform_27(%arg0: i32) -> (i32, i32) {
    %c0_i32 = arith.constant 0 : i32
    %c0_i32_0 = arith.constant 0 : i32
    %c0_i32_1 = arith.constant 0 : i32
    return %c0_i32, %c0_i32_0 : i32, i32
  }
  func.func @transform_28(%arg0: i32) -> (i32, i32) {
    %c0_i32 = arith.constant 0 : i32
    %c0_i32_0 = arith.constant 0 : i32
    %c0_i32_1 = arith.constant 0 : i32
    return %c0_i32, %c0_i32_0 : i32, i32
  }
  func.func @transform_29(%arg0: i32) -> (i32, i32) {
    %c0_i32 = arith.constant 0 : i32
    %c0_i32_0 = arith.constant 0 : i32
    %c0_i32_1 = arith.constant 0 : i32
    return %c0_i32, %c0_i32_0 : i32, i32
  }
  func.func @transform_30(%arg0: i32) -> (i32, i32) {
    %c0_i32 = arith.constant 0 : i32
    %c0_i32_0 = arith.constant 0 : i32
    %c0_i32_1 = arith.constant 0 : i32
    return %c0_i32, %c0_i32_0 : i32, i32
  }
  func.func @transform_31(%arg0: i32) -> (i32, i32) {
    %c0_i32 = arith.constant 0 : i32
    %c0_i32_0 = arith.constant 0 : i32
    %c0_i32_1 = arith.constant 0 : i32
    return %c0_i32, %c0_i32_0 : i32, i32
  }
  func.func @transform_32(%arg0: i32) -> (i32, i32) {
    %c0_i32 = arith.constant 0 : i32
    %c0_i32_0 = arith.constant 0 : i32
    %c0_i32_1 = arith.constant 0 : i32
    return %c0_i32, %c0_i32_0 : i32, i32
  }
  func.func @transform_33(%arg0: i32) -> (i32, i32) {
    %c0_i32 = arith.constant 0 : i32
    %c0_i32_0 = arith.constant 0 : i32
    %c0_i32_1 = arith.constant 0 : i32
    return %c0_i32, %c0_i32_0 : i32, i32
  }
  func.func @transform_34(%arg0: i32) -> (i32, i32) {
    %c0_i32 = arith.constant 0 : i32
    %c0_i32_0 = arith.constant 0 : i32
    %c0_i32_1 = arith.constant 0 : i32
    return %c0_i32, %c0_i32_0 : i32, i32
  }
  func.func @transform_35(%arg0: i32) -> (i32, i32) {
    %c0_i32 = arith.constant 0 : i32
    %c0_i32_0 = arith.constant 0 : i32
    %c0_i32_1 = arith.constant 0 : i32
    return %c0_i32, %c0_i32_0 : i32, i32
  }
  func.func @transform_36(%arg0: i32) -> (i32, i32) {
    %c0_i32 = arith.constant 0 : i32
    %c0_i32_0 = arith.constant 0 : i32
    %c0_i32_1 = arith.constant 0 : i32
    return %c0_i32, %c0_i32_0 : i32, i32
  }
  func.func @transform_37(%arg0: i32) -> (i32, i32) {
    %c0_i32 = arith.constant 0 : i32
    %c0_i32_0 = arith.constant 0 : i32
    %c0_i32_1 = arith.constant 0 : i32
    return %c0_i32, %c0_i32_0 : i32, i32
  }
  func.func @transform_38(%arg0: i32) -> (i32, i32) {
    %c0_i32 = arith.constant 0 : i32
    %c0_i32_0 = arith.constant 0 : i32
    %c0_i32_1 = arith.constant 0 : i32
    return %c0_i32, %c0_i32_0 : i32, i32
  }
  func.func @transform_39(%arg0: i32) -> (i32, i32) {
    %c0_i32 = arith.constant 0 : i32
    %c0_i32_0 = arith.constant 0 : i32
    %c0_i32_1 = arith.constant 0 : i32
    return %c0_i32, %c0_i32_0 : i32, i32
  }
  func.func @transform_40(%arg0: i32) -> (i32, i32) {
    %c0_i32 = arith.constant 0 : i32
    %c0_i32_0 = arith.constant 0 : i32
    %c0_i32_1 = arith.constant 0 : i32
    return %c0_i32, %c0_i32_0 : i32, i32
  }
  func.func @transform_41(%arg0: i32) -> (i32, i32) {
    %c0_i32 = arith.constant 0 : i32
    %c0_i32_0 = arith.constant 0 : i32
    %c0_i32_1 = arith.constant 0 : i32
    return %c0_i32, %c0_i32_0 : i32, i32
  }
  func.func @transform_42(%arg0: i32) -> (i32, i32) {
    %c0_i32 = arith.constant 0 : i32
    %c0_i32_0 = arith.constant 0 : i32
    %c0_i32_1 = arith.constant 0 : i32
    return %c0_i32, %c0_i32_0 : i32, i32
  }
}

</mosaic_0001>

<bundles_post_ra>
// kernel: tpu_custom_call.1
= control target key start
LH: loop header
LB: loop body
LE: loop exit
PB: predicated region body
PF: predicated region fallthrough
CT: control target
= control target key end

     0   :  { %s8488_s6 = smov 1   ;;  %s8489_s10 = smov 2   ;;  %s10489_s0 = inlined_call_operand.smem [shape: u32[43], index: -1, kind: input, shape index: {}] }
   0x1   :  { %s8586_s5 = sld [smem:[%s10489_s0]]   ;;  %s8490_s14 = smov 3  }
   0x2   :  { %s8591_s9 = sld [smem:[%s10489_s0 + %s8488_s6]]   ;;  %s8491_s18 = smov 4  }
   0x3   :  { %s8596_s13 = sld [smem:[%s10489_s0 + %s8489_s10]]   ;;  %s8492_s22 = smov 5  }
   0x4   :  { %s8601_s17 = sld [smem:[%s10489_s0 + %s8490_s14]]   ;;  %s8493_s26 = smov 6  }
   0x5   :  { %s8606_s21 = sld [smem:[%s10489_s0 + %s8491_s18]]   ;;  %s8494_s30 = smov 7  }
   0x6   :  { %s8611_s25 = sld [smem:[%s10489_s0 + %s8492_s22]]   ;;  %s8495_s4 = smov 8  }
   0x7   :  { %10674 = sst [smem:[#allocation76_spill]] %s8586_s5  ;;  %s8496_s10 = smov 9  }
   0x8   :  { %s8616_s29 = sld [smem:[%s10489_s0 + %s8493_s26]]   ;;  %s8497_s15 = smov 10  }
   0x9   :  { %10675 = sst [smem:[#allocation77_spill]] %s8596_s13  ;;  %s8498_s20 = smov 11  }
   0xa   :  { %s8621_s3 = sld [smem:[%s10489_s0 + %s8494_s30]]   ;;  %s8499_s26 = smov 12  }
   0xb   :  { %10676 = sst [smem:[#allocation78_spill]] %s8606_s21  ;;  %s8500_s1 = smov 13  }
   0xc   :  { %s8626_s8 = sld [smem:[%s10489_s0 + %s8495_s4]]   ;;  %s8501_s7 = smov 14  }
   0xd   :  { %s8631_s14 = sld [smem:[%s10489_s0 + %s8496_s10]]   ;;  %s8503_s22 = smov 16  }
   0xe   :  { %10677 = sst [smem:[#allocation79_spill]] %s8616_s29  ;;  %s8504_s28 = smov 17  }
   0xf   :  { %s8636_s19 = sld [smem:[%s10489_s0 + %s8497_s15]]   ;;  %s8502_s15 = smov 15  }
  0x10   :  { %s8641_s24 = sld [smem:[%s10489_s0 + %s8498_s20]]  }
  0x11   :  { %s8646_s30 = sld [smem:[%s10489_s0 + %s8499_s26]]  }
  0x12   :  { %10678 = sst [smem:[#allocation80_spill]] %s8626_s8 }
  0x13   :  { %s8651_s6 = sld [smem:[%s10489_s0 + %s8500_s1]]  }
  0x14   :  { %s8656_s12 = sld [smem:[%s10489_s0 + %s8501_s7]]   ;;  %s8505_s7 = smov 18  }
  0x15   :  { %10679 = sst [smem:[#allocation81_spill]] %s8636_s19 }
  0x16   :  { %s8661_s20 = sld [smem:[%s10489_s0 + %s8502_s15]]   ;;  %s8506_s15 = smov 19  }
  0x17   :  { %10680 = sst [smem:[#allocation82_spill]] %s8646_s30 }
  0x18   :  { %s8666_s27 = sld [smem:[%s10489_s0 + %s8503_s22]]   ;;  %s8507_s22 = smov 20  }
  0x19   :  { %s8671_s4 = sld [smem:[%s10489_s0 + %s8504_s28]]   ;;  %s8508_s28 = smov 21  }
  0x1a   :  { %10681 = sst [smem:[#allocation83_spill]] %s8656_s12 }
  0x1b   :  { %s8676_s12 = sld [smem:[%s10489_s0 + %s8505_s7]]   ;;  %s8509_s7 = smov 22  }
  0x1c   :  { %s8681_s30 = sld [smem:[%s10489_s0 + %s8506_s15]]   ;;  %s8510_s15 = smov 23  }
  0x1d   :  { %s8691_s19 = sld [smem:[%s10489_s0 + %s8508_s28]]   ;;  %s8512_s28 = smov 25  }
  0x1e   :  { %10682 = sst [smem:[#allocation84_spill]] %s8666_s27 }
  0x1f   :  { %s8686_s27 = sld [smem:[%s10489_s0 + %s8507_s22]]   ;;  %s8511_s22 = smov 24  }
  0x20   :  { %s8701_s8 = sld [smem:[%s10489_s0 + %s8510_s15]]   ;;  %s8514_s15 = smov 27  }
  0x21   :  { %10683 = sst [smem:[#allocation85_spill]] %s8676_s12 }
  0x22   :  { %s8696_s12 = sld [smem:[%s10489_s0 + %s8509_s7]]   ;;  %s8513_s7 = smov 26  }
  0x23   :  { %s8711_s29 = sld [smem:[%s10489_s0 + %s8512_s28]]   ;;  %s8516_s28 = smov 29  }
  0x25   :  { %10684 = sst [smem:[#allocation86_spill]] %s8686_s27 }
  0x26   :  { %10686 = sst [smem:[#allocation88_spill]] %s8701_s8 }
  0x27   :  { %s8706_s27 = sld [smem:[%s10489_s0 + %s8511_s22]]   ;;  %s8515_s22 = smov 28  }
  0x28   :  { %10685 = sst [smem:[#allocation87_spill]] %s8696_s12 }
  0x29   :  { %10687 = sst [smem:[#allocation89_spill]] %s8711_s29 }
  0x2a   :  { %s8716_s12 = sld [smem:[%s10489_s0 + %s8513_s7]]   ;;  %s8517_s7 = smov 30  }
  0x2b   :  { %s8721_s8 = sld [smem:[%s10489_s0 + %s8514_s15]]   ;;  %s8518_s15 = smov 31  }
  0x2c   :  { %s8726_s21 = sld [smem:[%s10489_s0 + %s8515_s22]]   ;;  %s8519_s22 = smov 32  }
  0x2d   :  { %s8731_s29 = sld [smem:[%s10489_s0 + %s8516_s28]]   ;;  %s8520_s28 = smov 33  }
  0x2e   :  { %s8736_s13 = sld [smem:[%s10489_s0 + %s8517_s7]]   ;;  %s8521_s7 = smov 34  }
  0x2f   :  { %s8746_s5 = sld [smem:[%s10489_s0 + %s8519_s22]]   ;;  %s8523_s22 = smov 36  }
  0x31   :  { %10688 = sst [smem:[#allocation90_spill]] %s8721_s8 }
  0x32   :  { %s8741_s8 = sld [smem:[%s10489_s0 + %s8518_s15]]   ;;  %s8522_s15 = smov 35  }
  0x33   :  { %10689 = sst [smem:[#allocation91_spill]] %s8731_s29 }
  0x34   :  { %10690 = sst [smem:[#allocation92_spill]] %s8736_s13 }
  0x35   :  { %10692 = sst [smem:[#allocation94_spill]] %s8746_s5 }
  0x36   :  { %s8751_s29 = sld [smem:[%s10489_s0 + %s8520_s28]]   ;;  %s8524_s28 = smov 37  }
  0x37   :  { %s8756_s13 = sld [smem:[%s10489_s0 + %s8521_s7]]   ;;  %s8525_s7 = smov 38  }
  0x38   :  { %10691 = sst [smem:[#allocation93_spill]] %s8741_s8 }
  0x39   :  { %s8761_s8 = sld [smem:[%s10489_s0 + %s8522_s15]]   ;;  %s8526_s15 = smov 39  }
  0x3a   :  { %s8766_s5 = sld [smem:[%s10489_s0 + %s8523_s22]]   ;;  %s8527_s22 = smov 40  }
  0x3c   :  { %10693 = sst [smem:[#allocation95_spill]] %s8751_s29 }
  0x3d   :  { %10694 = sst [smem:[#allocation96_spill]] %s8756_s13 }
  0x3e   :  { %s8771_s29 = sld [smem:[%s10489_s0 + %s8524_s28]]   ;;  %s8528_s28 = smov 41  }
  0x3f   :  { %10695 = sst [smem:[#allocation97_spill]] %s8761_s8 }
  0x40   :  { %10696 = sst [smem:[#allocation98_spill]] %s8766_s5 }
  0x41   :  { %s8776_s13 = sld [smem:[%s10489_s0 + %s8525_s7]]   ;;  %s8529_s7 = smov 42  }
  0x42   :  { %s8781_s8 = sld [smem:[%s10489_s0 + %s8526_s15]]  }
  0x43   :  { %s8786_s5 = sld [smem:[%s10489_s0 + %s8527_s22]]  }
  0x44   :  { %10697 = sst [smem:[#allocation99_spill]] %s8771_s29 }
  0x45   :  { %s8791_s29 = sld [smem:[%s10489_s0 + %s8528_s28]]  }
  0x47   :  { %10698 = sst [smem:[#allocation100_spill]] %s8776_s13 }
  0x48   :  { %s8796_s13 = sld [smem:[%s10489_s0 + %s8529_s7]]  }
  0x49   :  { %90 = vsyncpa [#allocation3], 0 }
  0x4a   :  { %91 = vsyncpa [#allocation6], 0 }
  0x4b   :  { %92 = vsyncpa [#allocation9], 0 }
  0x4c   :  { %93 = vsyncpa [#allocation12], 0 }
  0x4d   :  { %94 = vsyncpa [#allocation15], 0 }
  0x4e   :  { %95 = vsyncpa [#allocation18], 0 }
  0x4f   :  { %96 = vsyncpa [#allocation21], 0 }
  0x50   :  { %97 = vsyncpa [#allocation24], 0 }
  0x51   :  { %98 = vsyncpa [#allocation27], 0 }
  0x52   :  { %99 = vsyncpa [#allocation30], 0 }
  0x53   :  { %100 = vsyncpa [#allocation33], 0 }
  0x54   :  { %101 = vsyncpa [#allocation36], 0 }
  0x55   :  { %102 = vsyncpa [#allocation39], 0 }
  0x56   :  { %103 = vsyncpa [#allocation42], 0 }
  0x57   :  { %104 = vsyncpa [#allocation45], 0 }
  0x58   :  { %105 = vsyncpa [#allocation48], 0 }
  0x59   :  { %106 = vsyncpa [#allocation51], 0 }
  0x5a   :  { %107 = vsyncpa [#allocation54], 0 }
  0x5b   :  { %108 = vsyncpa [#allocation4], 0  ;;  %s8530_s0 = smov [#allocation5]   ;;  %s8531_s16 = smov [#allocation8]  }
  0x5c   :  { %s126_s15 = sshll.u32 %s8530_s0, 4  ;;  %s151_s18 = sshll.u32 %s8531_s16, 4  ;;  %s127_s15 = int_to_ptr.vmem [resolvable:$true] %s126_s15  ;;  %s8798_s18 = int_to_ptr.vmem [resolvable:$true] %s151_s18 }
  0x5d   :  { %s7658_s22 = scalar_lea.hbm %s8591_s9, 128 }
  0x5e   :  { %p7659_p0 = scmp.ne.s32.totalorder %s8591_s9, %s7658_s22  ;;  %p7662_p1 = scmp.lt.u32.totalorder %s7658_s22, %s8591_s9 }
  0x60   :  { %p7664_p2 = pnand %p7662_p1, %p7659_p0 }
  0x62   :  { %7667 = shalt.err (!%p7664_p2)
}
  0x63   :  { %s7668_s23 = scalar_lea.vmem %s127_s15, 128  ;;  %p7673_p4 = scmp.lt.s32.totalorder %s127_s15, %s127_s15 }
  0x64   :  { %p7669_p3 = scmp.ne.s32.totalorder %s127_s15, %s7668_s23  ;;  %p7674_p5 = scmp.lt.s32.totalorder %s7668_s23, %s7668_s23 }
  0x66   :  { %p7675_p6 = por %p7674_p5, %p7673_p4 }
  0x68   :  { %p7676_p7 = pnand %p7675_p6, %p7669_p3 }
  0x6a   :  { %7679 = shalt.err (!%p7676_p7)
}
  0x6b   :  { %s8532_s26 = smov 64   ;;  %s8533_s28 = smov 4  }
  0x6c   :  { %132 = dma.hbm_to_vmem [thread:$0]  %s8591_s9, 128, %s127_s15, [#allocation6], %s8532_s26, %s8532_s26, %s8533_s28  }
  0x6d   :  { %s7680_s1 = scalar_lea.hbm %s8601_s17, 16 }
  0x6e   :  { %p7681_p8 = scmp.ne.s32.totalorder %s8601_s17, %s7680_s1  ;;  %p7684_p9 = scmp.lt.u32.totalorder %s7680_s1, %s8601_s17 }
  0x70   :  { %p7686_p10 = pnand %p7684_p9, %p7681_p8 }
  0x72   :  { %7689 = shalt.err (!%p7686_p10)
}
  0x73   :  { %s7690_s2 = scalar_lea.vmem %s8798_s18, 16  ;;  %s7694_s7 = scalar_lea.vmem %s8798_s18, 32 }
  0x74   :  { %p7691_p11 = scmp.ne.s32.totalorder %s8798_s18, %s7690_s2  ;;  %p7695_p12 = scmp.lt.s32.totalorder %s8798_s18, %s8798_s18 }
  0x75   :  { %p7696_p13 = scmp.lt.s32.totalorder %s7694_s7, %s7690_s2 }
  0x77   :  { %p7697_p0 = por %p7696_p13, %p7695_p12 }
  0x79   :  { %p7698_p1 = pnand %p7697_p0, %p7691_p11 }
  0x7b   :  { %7701 = shalt.err (!%p7698_p1)
}
  0x7c   :  { %154 = dma.hbm_to_vmem [thread:$0]  %s8601_s17, 16, %s8798_s18, [#allocation9]  }
  0x7d   :  { %s8534_s9 = smov [#allocation11]   ;;  %s8535_s11 = smov [#allocation14]  }
  0x7e   :  { %s172_s10 = sshll.u32 %s8534_s9, 4  ;;  %s195_s0 = sshll.u32 %s8535_s11, 4  ;;  %s173_s10 = int_to_ptr.vmem [resolvable:$true] %s172_s10  ;;  %s8817_s0 = int_to_ptr.vmem [resolvable:$true] %s195_s0 }
  0x7f   :  { %s7702_s15 = scalar_lea.hbm %s8611_s25, 3072 }
  0x80   :  { %p7703_p2 = scmp.ne.s32.totalorder %s8611_s25, %s7702_s15  ;;  %p7706_p3 = scmp.lt.u32.totalorder %s7702_s15, %s8611_s25 }
  0x82   :  { %p7708_p4 = pnand %p7706_p3, %p7703_p2 }
  0x84   :  { %7711 = shalt.err (!%p7708_p4)
}
  0x85   :  { %s7712_s16 = scalar_lea.vmem %s173_s10, 3072  ;;  %p7717_p6 = scmp.lt.s32.totalorder %s173_s10, %s173_s10 }
  0x86   :  { %p7713_p5 = scmp.ne.s32.totalorder %s173_s10, %s7712_s16  ;;  %p7718_p7 = scmp.lt.s32.totalorder %s7712_s16, %s7712_s16 }
  0x88   :  { %p7719_p8 = por %p7718_p7, %p7717_p6 }
  0x8a   :  { %p7720_p9 = pnand %p7719_p8, %p7713_p5 }
  0x8c   :  { %7723 = shalt.err (!%p7720_p9)
}
  0x8d   :  { %s8536_s17 = smov 192   ;;  %s8537_s18 = smov 12  }
  0x8e   :  { %178 = dma.hbm_to_vmem [thread:$0]  %s8611_s25, 3072, %s173_s10, [#allocation12], %s8536_s17, %s8536_s17, %s8537_s18  }
  0x8f   :  { %s7724_s22 = scalar_lea.hbm %s8621_s3, 48 }
  0x90   :  { %p7725_p10 = scmp.ne.s32.totalorder %s8621_s3, %s7724_s22  ;;  %p7728_p11 = scmp.lt.u32.totalorder %s7724_s22, %s8621_s3 }
  0x92   :  { %p7730_p12 = pnand %p7728_p11, %p7725_p10 }
  0x94   :  { %7733 = shalt.err (!%p7730_p12)
}
  0x95   :  { %s7734_s23 = scalar_lea.vmem %s8817_s0, 48  ;;  %s7738_s1 = scalar_lea.vmem %s8817_s0, 64 }
  0x96   :  { %p7735_p13 = scmp.ne.s32.totalorder %s8817_s0, %s7734_s23  ;;  %p7739_p0 = scmp.lt.s32.totalorder %s8817_s0, %s8817_s0 }
  0x97   :  { %p7740_p1 = scmp.lt.s32.totalorder %s7738_s1, %s7734_s23 }
  0x99   :  { %p7741_p2 = por %p7740_p1, %p7739_p0 }
  0x9b   :  { %p7742_p3 = pnand %p7741_p2, %p7735_p13 }
  0x9d   :  { %7745 = shalt.err (!%p7742_p3)
}
  0x9e   :  { %198 = dma.hbm_to_vmem [thread:$0]  %s8621_s3, 48, %s8817_s0, [#allocation15]  }
  0x9f   :  { %s8538_s25 = smov [#allocation17]   ;;  %s8539_s7 = smov [#allocation20]  }
  0xa0   :  { %s216_s2 = sshll.u32 %s8538_s25, 4  ;;  %s239_s9 = sshll.u32 %s8539_s7, 4  ;;  %s217_s2 = int_to_ptr.vmem [resolvable:$true] %s216_s2  ;;  %s240_s9 = int_to_ptr.vmem [resolvable:$true] %s239_s9 }
  0xa1   :  { %s7746_s10 = scalar_lea.hbm %s8631_s14, 1024 }
  0xa2   :  { %p7747_p4 = scmp.ne.s32.totalorder %s8631_s14, %s7746_s10  ;;  %p7750_p5 = scmp.lt.u32.totalorder %s7746_s10, %s8631_s14 }
  0xa4   :  { %p7752_p6 = pnand %p7750_p5, %p7747_p4 }
  0xa6   :  { %7755 = shalt.err (!%p7752_p6)
}
  0xa7   :  { %s7756_s11 = scalar_lea.vmem %s217_s2, 1024  ;;  %p7761_p8 = scmp.lt.s32.totalorder %s217_s2, %s217_s2 }
  0xa8   :  { %p7757_p7 = scmp.ne.s32.totalorder %s217_s2, %s7756_s11  ;;  %p7762_p9 = scmp.lt.s32.totalorder %s7756_s11, %s7756_s11 }
  0xaa   :  { %p7763_p10 = por %p7762_p9, %p7761_p8 }
  0xac   :  { %p7764_p11 = pnand %p7763_p10, %p7757_p7 }
  0xae   :  { %7767 = shalt.err (!%p7764_p11)
}
  0xaf   :  { %222 = dma.hbm_to_vmem [thread:$0]  %s8631_s14, 1024, %s217_s2, [#allocation18], %s8532_s26, %s8532_s26, %s8533_s28  }
  0xb0   :  { %s7768_s3 = scalar_lea.hbm %s8641_s24, 64 }
  0xb1   :  { %p7769_p12 = scmp.ne.s32.totalorder %s8641_s24, %s7768_s3  ;;  %p7772_p13 = scmp.lt.u32.totalorder %s7768_s3, %s8641_s24 }
  0xb3   :  { %p7774_p0 = pnand %p7772_p13, %p7769_p12 }
  0xb5   :  { %7777 = shalt.err (!%p7774_p0)
}
  0xb6   :  { %s7778_s0 = scalar_lea.vmem %s240_s9, 64  ;;  %p7783_p2 = scmp.lt.s32.totalorder %s240_s9, %s240_s9 }
  0xb7   :  { %p7779_p1 = scmp.ne.s32.totalorder %s240_s9, %s7778_s0  ;;  %p7784_p3 = scmp.lt.s32.totalorder %s7778_s0, %s7778_s0 }
  0xb9   :  { %p7785_p4 = por %p7784_p3, %p7783_p2 }
  0xbb   :  { %p7786_p5 = pnand %p7785_p4, %p7779_p1 }
  0xbd   :  { %7789 = shalt.err (!%p7786_p5)
}
  0xbe   :  { %242 = dma.hbm_to_vmem [thread:$0]  %s8641_s24, 64, %s240_s9, [#allocation21]  }
  0xbf   :  { %s8540_s15 = smov [#allocation23]   ;;  %s8541_s14 = smov [#allocation26]  }
  0xc0   :  { %s259_s16 = sshll.u32 %s8540_s15, 4  ;;  %s281_s22 = sshll.u32 %s8541_s14, 4  ;;  %s260_s16 = int_to_ptr.vmem [resolvable:$true] %s259_s16  ;;  %s282_s22 = int_to_ptr.vmem [resolvable:$true] %s281_s22 }
  0xc1   :  { %s7790_s23 = scalar_lea.hbm %s8651_s6, 64 }
  0xc2   :  { %p7791_p6 = scmp.ne.s32.totalorder %s8651_s6, %s7790_s23  ;;  %p7794_p7 = scmp.lt.u32.totalorder %s7790_s23, %s8651_s6 }
  0xc4   :  { %p7796_p8 = pnand %p7794_p7, %p7791_p6 }
  0xc6   :  { %7799 = shalt.err (!%p7796_p8)
}
  0xc7   :  { %s7800_s1 = scalar_lea.vmem %s260_s16, 64  ;;  %p7805_p10 = scmp.lt.s32.totalorder %s260_s16, %s260_s16 }
  0xc8   :  { %p7801_p9 = scmp.ne.s32.totalorder %s260_s16, %s7800_s1  ;;  %p7806_p11 = scmp.lt.s32.totalorder %s7800_s1, %s7800_s1 }
  0xca   :  { %p7807_p12 = por %p7806_p11, %p7805_p10 }
  0xcc   :  { %p7808_p13 = pnand %p7807_p12, %p7801_p9 }
  0xce   :  { %7811 = shalt.err (!%p7808_p13)
}
  0xcf   :  { %262 = dma.hbm_to_vmem [thread:$0]  %s8651_s6, 64, %s260_s16, [#allocation24]  }
  0xd0   :  { %s7812_s24 = scalar_lea.hbm %s8661_s20, 16 }
  0xd1   :  { %p7813_p0 = scmp.ne.s32.totalorder %s8661_s20, %s7812_s24  ;;  %p7816_p1 = scmp.lt.u32.totalorder %s7812_s24, %s8661_s20 }
  0xd3   :  { %p7818_p2 = pnand %p7816_p1, %p7813_p0 }
  0xd5   :  { %7821 = shalt.err (!%p7818_p2)
}
  0xd6   :  { %s7822_s25 = scalar_lea.vmem %s282_s22, 16  ;;  %s7826_s2 = scalar_lea.vmem %s282_s22, 32 }
  0xd7   :  { %p7823_p3 = scmp.ne.s32.totalorder %s282_s22, %s7822_s25  ;;  %p7827_p4 = scmp.lt.s32.totalorder %s282_s22, %s282_s22 }
  0xd8   :  { %p7828_p5 = scmp.lt.s32.totalorder %s7826_s2, %s7822_s25 }
  0xda   :  { %p7829_p6 = por %p7828_p5, %p7827_p4 }
  0xdc   :  { %p7830_p7 = pnand %p7829_p6, %p7823_p3 }
  0xde   :  { %7833 = shalt.err (!%p7830_p7)
}
  0xdf   :  { %284 = dma.hbm_to_vmem [thread:$0]  %s8661_s20, 16, %s282_s22, [#allocation27]  }
  0xe0   :  { %s8542_s7 = smov [#allocation29]   ;;  %s8543_s9 = smov [#allocation32]  }
  0xe1   :  { %s302_s6 = sshll.u32 %s8542_s7, 4  ;;  %s327_s10 = sshll.u32 %s8543_s9, 4  ;;  %s303_s6 = int_to_ptr.vmem [resolvable:$true] %s302_s6  ;;  %s328_s10 = int_to_ptr.vmem [resolvable:$true] %s327_s10 }
  0xe2   :  { %s7834_s11 = scalar_lea.hbm %s8671_s4, 3072 }
  0xe3   :  { %p7835_p8 = scmp.ne.s32.totalorder %s8671_s4, %s7834_s11  ;;  %p7838_p9 = scmp.lt.u32.totalorder %s7834_s11, %s8671_s4 }
  0xe5   :  { %p7840_p10 = pnand %p7838_p9, %p7835_p8 }
  0xe7   :  { %7843 = shalt.err (!%p7840_p10)
}
  0xe8   :  { %s7844_s3 = scalar_lea.vmem %s303_s6, 3072  ;;  %p7849_p12 = scmp.lt.s32.totalorder %s303_s6, %s303_s6 }
  0xe9   :  { %p7845_p11 = scmp.ne.s32.totalorder %s303_s6, %s7844_s3  ;;  %p7850_p13 = scmp.lt.s32.totalorder %s7844_s3, %s7844_s3 }
  0xeb   :  { %p7851_p0 = por %p7850_p13, %p7849_p12 }
  0xed   :  { %p7852_p1 = pnand %p7851_p0, %p7845_p11 }
  0xef   :  { %7855 = shalt.err (!%p7852_p1)
}
  0xf0   :  { %308 = dma.hbm_to_vmem [thread:$0]  %s8671_s4, 3072, %s303_s6, [#allocation30], %s8536_s17, %s8536_s17, %s8537_s18  }
  0xf1   :  { %s7856_s20 = scalar_lea.hbm %s8681_s30, 48 }
  0xf2   :  { %p7857_p2 = scmp.ne.s32.totalorder %s8681_s30, %s7856_s20  ;;  %p7860_p3 = scmp.lt.u32.totalorder %s7856_s20, %s8681_s30 }
  0xf4   :  { %p7862_p4 = pnand %p7860_p3, %p7857_p2 }
  0xf6   :  { %7865 = shalt.err (!%p7862_p4)
}
  0xf7   :  { %s7866_s0 = scalar_lea.vmem %s328_s10, 48  ;;  %s7870_s15 = scalar_lea.vmem %s328_s10, 64 }
  0xf8   :  { %p7867_p5 = scmp.ne.s32.totalorder %s328_s10, %s7866_s0  ;;  %p7871_p6 = scmp.lt.s32.totalorder %s328_s10, %s328_s10 }
  0xf9   :  { %p7872_p7 = scmp.lt.s32.totalorder %s7870_s15, %s7866_s0 }
  0xfb   :  { %p7873_p8 = por %p7872_p7, %p7871_p6 }
  0xfd   :  { %p7874_p9 = pnand %p7873_p8, %p7867_p5 }
  0xff   :  { %7877 = shalt.err (!%p7874_p9)
}
 0x100   :  { %330 = dma.hbm_to_vmem [thread:$0]  %s8681_s30, 48, %s328_s10, [#allocation33]  }
 0x101   :  { %s8544_s16 = smov [#allocation35]   ;;  %s8545_s14 = smov [#allocation38]  }
 0x102   :  { %s347_s4 = sshll.u32 %s8544_s16, 4  ;;  %s368_s22 = sshll.u32 %s8545_s14, 4  ;;  %s348_s4 = int_to_ptr.vmem [resolvable:$true] %s347_s4  ;;  %s8866_s22 = int_to_ptr.vmem [resolvable:$true] %s368_s22 }
 0x103   :  { %s7878_s23 = scalar_lea.hbm %s8691_s19, 48 }
 0x104   :  { %p7879_p10 = scmp.ne.s32.totalorder %s8691_s19, %s7878_s23  ;;  %p7882_p11 = scmp.lt.u32.totalorder %s7878_s23, %s8691_s19 }
 0x106   :  { %p7884_p12 = pnand %p7882_p11, %p7879_p10 }
 0x108   :  { %7887 = shalt.err (!%p7884_p12)
}
 0x109   :  { %s7888_s1 = scalar_lea.vmem %s348_s4, 48  ;;  %s7892_s24 = scalar_lea.vmem %s348_s4, 64 }
 0x10a   :  { %p7889_p13 = scmp.ne.s32.totalorder %s348_s4, %s7888_s1  ;;  %p7893_p0 = scmp.lt.s32.totalorder %s348_s4, %s348_s4 }
 0x10b   :  { %p7894_p1 = scmp.lt.s32.totalorder %s7892_s24, %s7888_s1 }
 0x10d   :  { %p7895_p2 = por %p7894_p1, %p7893_p0 }
 0x10f   :  { %p7896_p3 = pnand %p7895_p2, %p7889_p13 }
 0x111   :  { %7899 = shalt.err (!%p7896_p3)
}
 0x112   :  { %350 = dma.hbm_to_vmem [thread:$0]  %s8691_s19, 48, %s348_s4, [#allocation36]  }
 0x113   :  { %s7900_s30 = scalar_lea.hbm %s8706_s27, 1024 }
 0x114   :  { %p7901_p4 = scmp.ne.s32.totalorder %s8706_s27, %s7900_s30  ;;  %p7904_p5 = scmp.lt.u32.totalorder %s7900_s30, %s8706_s27 }
 0x116   :  { %p7906_p6 = pnand %p7904_p5, %p7901_p4 }
 0x118   :  { %7909 = shalt.err (!%p7906_p6)
}
 0x119   :  { %s7910_s25 = scalar_lea.vmem %s8866_s22, 1024  ;;  %p7915_p8 = scmp.lt.s32.totalorder %s8866_s22, %s8866_s22 }
 0x11a   :  { %p7911_p7 = scmp.ne.s32.totalorder %s8866_s22, %s7910_s25  ;;  %p7916_p9 = scmp.lt.s32.totalorder %s7910_s25, %s7910_s25 }
 0x11c   :  { %p7917_p10 = por %p7916_p9, %p7915_p8 }
 0x11e   :  { %p7918_p11 = pnand %p7917_p10, %p7911_p7 }
 0x120   :  { %7921 = shalt.err (!%p7918_p11)
}
 0x121   :  { %374 = dma.hbm_to_vmem [thread:$0]  %s8706_s27, 1024, %s8866_s22, [#allocation39], %s8532_s26, %s8532_s26, %s8533_s28  }
 0x122   :  { %s8546_s19 = smov [#allocation41]   ;;  %s8547_s7 = smov [#allocation44]  }
 0x123   :  { %s390_s2 = sshll.u32 %s8546_s19, 4  ;;  %s415_s6 = sshll.u32 %s8547_s7, 4  ;;  %s391_s2 = int_to_ptr.vmem [resolvable:$true] %s390_s2  ;;  %s8884_s6 = int_to_ptr.vmem [resolvable:$true] %s415_s6 }
 0x124   :  { %s7922_s9 = scalar_lea.hbm %s8716_s12, 2048 }
 0x125   :  { %p7923_p12 = scmp.ne.s32.totalorder %s8716_s12, %s7922_s9  ;;  %p7926_p13 = scmp.lt.u32.totalorder %s7922_s9, %s8716_s12 }
 0x127   :  { %p7928_p0 = pnand %p7926_p13, %p7923_p12 }
 0x129   :  { %7931 = shalt.err (!%p7928_p0)
}
 0x12a   :  { %s7932_s10 = scalar_lea.vmem %s391_s2, 2048  ;;  %p7937_p2 = scmp.lt.s32.totalorder %s391_s2, %s391_s2 }
 0x12b   :  { %p7933_p1 = scmp.ne.s32.totalorder %s391_s2, %s7932_s10  ;;  %p7938_p3 = scmp.lt.s32.totalorder %s7932_s10, %s7932_s10 }
 0x12d   :  { %p7939_p4 = por %p7938_p3, %p7937_p2 }
 0x12f   :  { %p7940_p5 = pnand %p7939_p4, %p7933_p1 }
 0x131   :  { %7943 = shalt.err (!%p7940_p5)
}
 0x132   :  { %s8548_s27 = smov 128   ;;  %s8549_s11 = smov 8  }
 0x133   :  { %396 = dma.hbm_to_vmem [thread:$0]  %s8716_s12, 2048, %s391_s2, [#allocation42], %s8548_s27, %s8548_s27, %s8549_s11  }
 0x134   :  { %s7944_s3 = scalar_lea.hbm %s8726_s21, 16 }
 0x135   :  { %p7945_p6 = scmp.ne.s32.totalorder %s8726_s21, %s7944_s3  ;;  %p7948_p7 = scmp.lt.u32.totalorder %s7944_s3, %s8726_s21 }
 0x137   :  { %p7950_p8 = pnand %p7948_p7, %p7945_p6 }
 0x139   :  { %7953 = shalt.err (!%p7950_p8)
}
 0x13a   :  { %s7954_s20 = scalar_lea.vmem %s8884_s6, 16  ;;  %s7958_s0 = scalar_lea.vmem %s8884_s6, 32 }
 0x13b   :  { %p7955_p9 = scmp.ne.s32.totalorder %s8884_s6, %s7954_s20  ;;  %p7959_p10 = scmp.lt.s32.totalorder %s8884_s6, %s8884_s6 }
 0x13c   :  { %p7960_p11 = scmp.lt.s32.totalorder %s7958_s0, %s7954_s20 }
 0x13e   :  { %p7961_p12 = por %p7960_p11, %p7959_p10 }
 0x140   :  { %p7962_p13 = pnand %p7961_p12, %p7955_p9 }
 0x142   :  { %7965 = shalt.err (!%p7962_p13)
}
 0x143   :  { %s10699_s12 = sld [smem:[#allocation92_spill]]  ;;  %s8550_s15 = smov [#allocation47]  }
 0x144   :  { %418 = dma.hbm_to_vmem [thread:$0]  %s8726_s21, 16, %s8884_s6, [#allocation45]  }
 0x145   :  { %s435_s16 = sshll.u32 %s8550_s15, 4  ;;  %s8551_s4 = smov [#allocation50]   ;;  %s436_s16 = int_to_ptr.vmem [resolvable:$true] %s435_s16 }
 0x146   :  { %s457_s14 = sshll.u32 %s8551_s4, 4  ;;  %s458_s14 = int_to_ptr.vmem [resolvable:$true] %s457_s14 }
 0x149   :  { %s7966_s22 = scalar_lea.hbm %s10699_s12, 64 }
 0x14a   :  { %p7967_p0 = scmp.ne.s32.totalorder %s10699_s12, %s7966_s22  ;;  %p7970_p1 = scmp.lt.u32.totalorder %s7966_s22, %s10699_s12 }
 0x14c   :  { %p7972_p2 = pnand %p7970_p1, %p7967_p0 }
 0x14e   :  { %7975 = shalt.err (!%p7972_p2)
}
 0x14f   :  { %s7976_s23 = scalar_lea.vmem %s436_s16, 64  ;;  %p7981_p4 = scmp.lt.s32.totalorder %s436_s16, %s436_s16 }
 0x150   :  { %p7977_p3 = scmp.ne.s32.totalorder %s436_s16, %s7976_s23  ;;  %p7982_p5 = scmp.lt.s32.totalorder %s7976_s23, %s7976_s23 }
 0x152   :  { %p7983_p6 = por %p7982_p5, %p7981_p4 }
 0x154   :  { %p7984_p7 = pnand %p7983_p6, %p7977_p3 }
 0x156   :  { %7987 = shalt.err (!%p7984_p7)
}
 0x157   :  { %s10700_s21 = sld [smem:[#allocation94_spill]] }
 0x158   :  { %438 = dma.hbm_to_vmem [thread:$0]  %s10699_s12, 64, %s436_s16, [#allocation48]  }
 0x15d   :  { %s7988_s1 = scalar_lea.hbm %s10700_s21, 16 }
 0x15e   :  { %p7989_p8 = scmp.ne.s32.totalorder %s10700_s21, %s7988_s1  ;;  %p7992_p9 = scmp.lt.u32.totalorder %s7988_s1, %s10700_s21 }
 0x160   :  { %p7994_p10 = pnand %p7992_p9, %p7989_p8 }
 0x162   :  { %7997 = shalt.err (!%p7994_p10)
}
 0x163   :  { %s7998_s24 = scalar_lea.vmem %s458_s14, 16  ;;  %s8002_s30 = scalar_lea.vmem %s458_s14, 32 }
 0x164   :  { %p7999_p11 = scmp.ne.s32.totalorder %s458_s14, %s7998_s24  ;;  %p8003_p12 = scmp.lt.s32.totalorder %s458_s14, %s458_s14 }
 0x165   :  { %p8004_p13 = scmp.lt.s32.totalorder %s8002_s30, %s7998_s24 }
 0x167   :  { %p8005_p0 = por %p8004_p13, %p8003_p12 }
 0x169   :  { %p8006_p1 = pnand %p8005_p0, %p7999_p11 }
 0x16b   :  { %8009 = shalt.err (!%p8006_p1)
}
 0x16c   :  { %s10701_s25 = sld [smem:[#allocation96_spill]]  ;;  %s8552_s19 = smov [#allocation53]  }
 0x16d   :  { %460 = dma.hbm_to_vmem [thread:$0]  %s10700_s21, 16, %s458_s14, [#allocation51]  }
 0x16e   :  { %s479_s2 = sshll.u32 %s8552_s19, 4  ;;  %s8553_s7 = smov [#allocation2]   ;;  %s480_s2 = int_to_ptr.vmem [resolvable:$true] %s479_s2 }
 0x16f   :  { %s114_s6 = sshll.u32 %s8553_s7, 4  ;;  %s8911_s6 = int_to_ptr.vmem [resolvable:$true] %s114_s6 }
 0x172   :  { %s8010_s9 = scalar_lea.hbm %s10701_s25, 16 }
 0x173   :  { %p8011_p2 = scmp.ne.s32.totalorder %s10701_s25, %s8010_s9  ;;  %p8014_p3 = scmp.lt.u32.totalorder %s8010_s9, %s10701_s25 }
 0x175   :  { %p8016_p4 = pnand %p8014_p3, %p8011_p2 }
 0x177   :  { %8019 = shalt.err (!%p8016_p4)
}
 0x178   :  { %s8020_s10 = scalar_lea.vmem %s480_s2, 16  ;;  %s8024_s3 = scalar_lea.vmem %s480_s2, 32 }
 0x179   :  { %p8021_p5 = scmp.ne.s32.totalorder %s480_s2, %s8020_s10  ;;  %p8025_p6 = scmp.lt.s32.totalorder %s480_s2, %s480_s2 }
 0x17a   :  { %p8026_p7 = scmp.lt.s32.totalorder %s8024_s3, %s8020_s10 }
 0x17c   :  { %p8027_p8 = por %p8026_p7, %p8025_p6 }
 0x17e   :  { %p8028_p9 = pnand %p8027_p8, %p8021_p5 }
 0x180   :  { %8031 = shalt.err (!%p8028_p9)
}
 0x181   :  { %s10702_s20 = sld [smem:[#allocation76_spill]] }
 0x182   :  { %482 = dma.hbm_to_vmem [thread:$0]  %s10701_s25, 16, %s480_s2, [#allocation54]  }
 0x187   :  { %s8032_s0 = scalar_lea.hbm %s10702_s20, 128 }
 0x188   :  { %p8033_p10 = scmp.ne.s32.totalorder %s10702_s20, %s8032_s0  ;;  %p8036_p11 = scmp.lt.u32.totalorder %s8032_s0, %s10702_s20 }
 0x18a   :  { %p8038_p12 = pnand %p8036_p11, %p8033_p10 }
 0x18c   :  { %8041 = shalt.err (!%p8038_p12)
}
 0x18d   :  { %s8042_s12 = scalar_lea.vmem %s8911_s6, 128  ;;  %p8047_p0 = scmp.lt.s32.totalorder %s8911_s6, %s8911_s6 }
 0x18e   :  { %p8043_p13 = scmp.ne.s32.totalorder %s8911_s6, %s8042_s12  ;;  %p8048_p1 = scmp.lt.s32.totalorder %s8042_s12, %s8042_s12 }
 0x190   :  { %p8049_p2 = por %p8048_p1, %p8047_p0 }
 0x192   :  { %p8050_p3 = pnand %p8049_p2, %p8043_p13 }
 0x194   :  { %8053 = shalt.err (!%p8050_p3)
}
 0x195   :  { %s10703_s15 = sld [smem:[#allocation77_spill]]  ;;  %s8554_s16 = smov [#allocation7]  }
 0x196   :  { %120 = dma.hbm_to_vmem [thread:$0]  %s10702_s20, 128, %s8911_s6, [#allocation3], %s8532_s26, %s8532_s26, %s8533_s28  }
 0x197   :  { %s138_s4 = sshll.u32 %s8554_s16, 4  ;;  %s8555_s14 = smov [#allocation10]   ;;  %s139_s4 = int_to_ptr.vmem [resolvable:$true] %s138_s4 }
 0x198   :  { %s160_s22 = sshll.u32 %s8555_s14, 4  ;;  %s8929_s22 = int_to_ptr.vmem [resolvable:$true] %s160_s22 }
 0x19b   :  { %s8054_s23 = scalar_lea.hbm %s10703_s15, 1024 }
 0x19c   :  { %p8055_p4 = scmp.ne.s32.totalorder %s10703_s15, %s8054_s23  ;;  %p8058_p5 = scmp.lt.u32.totalorder %s8054_s23, %s10703_s15 }
 0x19e   :  { %p8060_p6 = pnand %p8058_p5, %p8055_p4 }
 0x1a0   :  { %8063 = shalt.err (!%p8060_p6)
}
 0x1a1   :  { %s8064_s21 = scalar_lea.vmem %s139_s4, 1024  ;;  %p8069_p8 = scmp.lt.s32.totalorder %s139_s4, %s139_s4 }
 0x1a2   :  { %p8065_p7 = scmp.ne.s32.totalorder %s139_s4, %s8064_s21  ;;  %p8070_p9 = scmp.lt.s32.totalorder %s8064_s21, %s8064_s21 }
 0x1a4   :  { %p8071_p10 = por %p8070_p9, %p8069_p8 }
 0x1a6   :  { %p8072_p11 = pnand %p8071_p10, %p8065_p7 }
 0x1a8   :  { %8075 = shalt.err (!%p8072_p11)
}
 0x1a9   :  { %s10704_s1 = sld [smem:[#allocation78_spill]] }
 0x1aa   :  { %144 = dma.hbm_to_vmem [thread:$0]  %s10703_s15, 1024, %s139_s4, [#allocation6], %s8532_s26, %s8532_s26, %s8533_s28  }
 0x1af   :  { %s8076_s24 = scalar_lea.hbm %s10704_s1, 3072 }
 0x1b0   :  { %p8077_p12 = scmp.ne.s32.totalorder %s10704_s1, %s8076_s24  ;;  %p8080_p13 = scmp.lt.u32.totalorder %s8076_s24, %s10704_s1 }
 0x1b2   :  { %p8082_p0 = pnand %p8080_p13, %p8077_p12 }
 0x1b4   :  { %8085 = shalt.err (!%p8082_p0)
}
 0x1b5   :  { %s8086_s30 = scalar_lea.vmem %s8929_s22, 3072  ;;  %p8091_p2 = scmp.lt.s32.totalorder %s8929_s22, %s8929_s22 }
 0x1b6   :  { %p8087_p1 = scmp.ne.s32.totalorder %s8929_s22, %s8086_s30  ;;  %p8092_p3 = scmp.lt.s32.totalorder %s8086_s30, %s8086_s30 }
 0x1b8   :  { %p8093_p4 = por %p8092_p3, %p8091_p2 }
 0x1ba   :  { %p8094_p5 = pnand %p8093_p4, %p8087_p1 }
 0x1bc   :  { %8097 = shalt.err (!%p8094_p5)
}
 0x1bd   :  { %s10705_s25 = sld [smem:[#allocation79_spill]]  ;;  %s8556_s19 = smov [#allocation13]  }
 0x1be   :  { %166 = dma.hbm_to_vmem [thread:$0]  %s10704_s1, 3072, %s8929_s22, [#allocation9], %s8536_s17, %s8536_s17, %s8537_s18  }
 0x1bf   :  { %s185_s2 = sshll.u32 %s8556_s19, 4  ;;  %s8557_s7 = smov [#allocation16]   ;;  %s186_s2 = int_to_ptr.vmem [resolvable:$true] %s185_s2 }
 0x1c0   :  { %s204_s6 = sshll.u32 %s8557_s7, 4  ;;  %s8950_s6 = int_to_ptr.vmem [resolvable:$true] %s204_s6 }
 0x1c3   :  { %s8098_s9 = scalar_lea.hbm %s10705_s25, 48 }
 0x1c4   :  { %p8099_p6 = scmp.ne.s32.totalorder %s10705_s25, %s8098_s9  ;;  %p8102_p7 = scmp.lt.u32.totalorder %s8098_s9, %s10705_s25 }
 0x1c6   :  { %p8104_p8 = pnand %p8102_p7, %p8099_p6 }
 0x1c8   :  { %8107 = shalt.err (!%p8104_p8)
}
 0x1c9   :  { %s8108_s10 = scalar_lea.vmem %s186_s2, 48  ;;  %s8112_s3 = scalar_lea.vmem %s186_s2, 64 }
 0x1ca   :  { %p8109_p9 = scmp.ne.s32.totalorder %s186_s2, %s8108_s10  ;;  %p8113_p10 = scmp.lt.s32.totalorder %s186_s2, %s186_s2 }
 0x1cb   :  { %p8114_p11 = scmp.lt.s32.totalorder %s8112_s3, %s8108_s10 }
 0x1cd   :  { %p8115_p12 = por %p8114_p11, %p8113_p10 }
 0x1cf   :  { %p8116_p13 = pnand %p8115_p12, %p8109_p9 }
 0x1d1   :  { %8119 = shalt.err (!%p8116_p13)
}
 0x1d2   :  { %s10706_s20 = sld [smem:[#allocation80_spill]] }
 0x1d3   :  { %188 = dma.hbm_to_vmem [thread:$0]  %s10705_s25, 48, %s186_s2, [#allocation12]  }
 0x1d8   :  { %s8120_s0 = scalar_lea.hbm %s10706_s20, 2048 }
 0x1d9   :  { %p8121_p0 = scmp.ne.s32.totalorder %s10706_s20, %s8120_s0  ;;  %p8124_p1 = scmp.lt.u32.totalorder %s8120_s0, %s10706_s20 }
 0x1db   :  { %p8126_p2 = pnand %p8124_p1, %p8121_p0 }
 0x1dd   :  { %8129 = shalt.err (!%p8126_p2)
}
 0x1de   :  { %s8130_s12 = scalar_lea.vmem %s8950_s6, 2048  ;;  %p8135_p4 = scmp.lt.s32.totalorder %s8950_s6, %s8950_s6 }
 0x1df   :  { %p8131_p3 = scmp.ne.s32.totalorder %s8950_s6, %s8130_s12  ;;  %p8136_p5 = scmp.lt.s32.totalorder %s8130_s12, %s8130_s12 }
 0x1e1   :  { %p8137_p6 = por %p8136_p5, %p8135_p4 }
 0x1e3   :  { %p8138_p7 = pnand %p8137_p6, %p8131_p3 }
 0x1e5   :  { %8141 = shalt.err (!%p8138_p7)
}
 0x1e6   :  { %s10707_s15 = sld [smem:[#allocation81_spill]]  ;;  %s8558_s16 = smov [#allocation19]  }
 0x1e7   :  { %210 = dma.hbm_to_vmem [thread:$0]  %s10706_s20, 2048, %s8950_s6, [#allocation15], %s8548_s27, %s8548_s27, %s8549_s11  }
 0x1e8   :  { %s229_s4 = sshll.u32 %s8558_s16, 4  ;;  %s8559_s14 = smov [#allocation22]   ;;  %s230_s4 = int_to_ptr.vmem [resolvable:$true] %s229_s4 }
 0x1e9   :  { %s249_s22 = sshll.u32 %s8559_s14, 4  ;;  %s250_s22 = int_to_ptr.vmem [resolvable:$true] %s249_s22 }
 0x1ec   :  { %s8142_s23 = scalar_lea.hbm %s10707_s15, 16 }
 0x1ed   :  { %p8143_p8 = scmp.ne.s32.totalorder %s10707_s15, %s8142_s23  ;;  %p8146_p9 = scmp.lt.u32.totalorder %s8142_s23, %s10707_s15 }
 0x1ef   :  { %p8148_p10 = pnand %p8146_p9, %p8143_p8 }
 0x1f1   :  { %8151 = shalt.err (!%p8148_p10)
}
 0x1f2   :  { %s8152_s21 = scalar_lea.vmem %s230_s4, 16  ;;  %s8156_s1 = scalar_lea.vmem %s230_s4, 32 }
 0x1f3   :  { %p8153_p11 = scmp.ne.s32.totalorder %s230_s4, %s8152_s21  ;;  %p8157_p12 = scmp.lt.s32.totalorder %s230_s4, %s230_s4 }
 0x1f4   :  { %p8158_p13 = scmp.lt.s32.totalorder %s8156_s1, %s8152_s21 }
 0x1f6   :  { %p8159_p0 = por %p8158_p13, %p8157_p12 }
 0x1f8   :  { %p8160_p1 = pnand %p8159_p0, %p8153_p11 }
 0x1fa   :  { %8163 = shalt.err (!%p8160_p1)
}
 0x1fb   :  { %s10708_s27 = sld [smem:[#allocation82_spill]] }
 0x1fc   :  { %232 = dma.hbm_to_vmem [thread:$0]  %s10707_s15, 16, %s230_s4, [#allocation18]  }
 0x201   :  { %s8164_s11 = scalar_lea.hbm %s10708_s27, 64 }
 0x202   :  { %p8165_p2 = scmp.ne.s32.totalorder %s10708_s27, %s8164_s11  ;;  %p8168_p3 = scmp.lt.u32.totalorder %s8164_s11, %s10708_s27 }
 0x204   :  { %p8170_p4 = pnand %p8168_p3, %p8165_p2 }
 0x206   :  { %8173 = shalt.err (!%p8170_p4)
}
 0x207   :  { %s8174_s24 = scalar_lea.vmem %s250_s22, 64  ;;  %p8179_p6 = scmp.lt.s32.totalorder %s250_s22, %s250_s22 }
 0x208   :  { %p8175_p5 = scmp.ne.s32.totalorder %s250_s22, %s8174_s24  ;;  %p8180_p7 = scmp.lt.s32.totalorder %s8174_s24, %s8174_s24 }
 0x20a   :  { %p8181_p8 = por %p8180_p7, %p8179_p6 }
 0x20c   :  { %p8182_p9 = pnand %p8181_p8, %p8175_p5 }
 0x20e   :  { %8185 = shalt.err (!%p8182_p9)
}
 0x20f   :  { %s10709_s30 = sld [smem:[#allocation83_spill]]  ;;  %s8560_s25 = smov [#allocation25]  }
 0x210   :  { %252 = dma.hbm_to_vmem [thread:$0]  %s10708_s27, 64, %s250_s22, [#allocation21]  }
 0x211   :  { %s268_s19 = sshll.u32 %s8560_s25, 4  ;;  %s8561_s2 = smov [#allocation28]   ;;  %s269_s19 = int_to_ptr.vmem [resolvable:$true] %s268_s19 }
 0x212   :  { %s290_s7 = sshll.u32 %s8561_s2, 4  ;;  %s8976_s7 = int_to_ptr.vmem [resolvable:$true] %s290_s7 }
 0x215   :  { %s8186_s6 = scalar_lea.hbm %s10709_s30, 1024 }
 0x216   :  { %p8187_p10 = scmp.ne.s32.totalorder %s10709_s30, %s8186_s6  ;;  %p8190_p11 = scmp.lt.u32.totalorder %s8186_s6, %s10709_s30 }
 0x218   :  { %p8192_p12 = pnand %p8190_p11, %p8187_p10 }
 0x21a   :  { %8195 = shalt.err (!%p8192_p12)
}
 0x21b   :  { %s8196_s9 = scalar_lea.vmem %s269_s19, 1024  ;;  %p8201_p0 = scmp.lt.s32.totalorder %s269_s19, %s269_s19 }
 0x21c   :  { %p8197_p13 = scmp.ne.s32.totalorder %s269_s19, %s8196_s9  ;;  %p8202_p1 = scmp.lt.s32.totalorder %s8196_s9, %s8196_s9 }
 0x21e   :  { %p8203_p2 = por %p8202_p1, %p8201_p0 }
 0x220   :  { %p8204_p3 = pnand %p8203_p2, %p8197_p13 }
 0x222   :  { %8207 = shalt.err (!%p8204_p3)
}
 0x223   :  { %s10710_s10 = sld [smem:[#allocation84_spill]] }
 0x224   :  { %274 = dma.hbm_to_vmem [thread:$0]  %s10709_s30, 1024, %s269_s19, [#allocation24], %s8532_s26, %s8532_s26, %s8533_s28  }
 0x229   :  { %s8208_s3 = scalar_lea.hbm %s10710_s10, 3072 }
 0x22a   :  { %p8209_p4 = scmp.ne.s32.totalorder %s10710_s10, %s8208_s3  ;;  %p8212_p5 = scmp.lt.u32.totalorder %s8208_s3, %s10710_s10 }
 0x22c   :  { %p8214_p6 = pnand %p8212_p5, %p8209_p4 }
 0x22e   :  { %8217 = shalt.err (!%p8214_p6)
}
 0x22f   :  { %s8218_s20 = scalar_lea.vmem %s8976_s7, 3072  ;;  %p8223_p8 = scmp.lt.s32.totalorder %s8976_s7, %s8976_s7 }
 0x230   :  { %p8219_p7 = scmp.ne.s32.totalorder %s8976_s7, %s8218_s20  ;;  %p8224_p9 = scmp.lt.s32.totalorder %s8218_s20, %s8218_s20 }
 0x232   :  { %p8225_p10 = por %p8224_p9, %p8223_p8 }
 0x234   :  { %p8226_p11 = pnand %p8225_p10, %p8219_p7 }
 0x236   :  { %8229 = shalt.err (!%p8226_p11)
}
 0x237   :  { %s10711_s0 = sld [smem:[#allocation85_spill]]  ;;  %s8562_s12 = smov [#allocation31]  }
 0x238   :  { %296 = dma.hbm_to_vmem [thread:$0]  %s10710_s10, 3072, %s8976_s7, [#allocation27], %s8536_s17, %s8536_s17, %s8537_s18  }
 0x239   :  { %s314_s15 = sshll.u32 %s8562_s12, 4  ;;  %s315_s15 = int_to_ptr.vmem [resolvable:$true] %s314_s15 }
 0x23d   :  { %s8230_s16 = scalar_lea.hbm %s10711_s0, 6144 }
 0x23e   :  { %p8231_p12 = scmp.ne.s32.totalorder %s10711_s0, %s8230_s16  ;;  %p8234_p13 = scmp.lt.u32.totalorder %s8230_s16, %s10711_s0 }
 0x240   :  { %p8236_p0 = pnand %p8234_p13, %p8231_p12 }
 0x242   :  { %8239 = shalt.err (!%p8236_p0)
}
 0x243   :  { %s8240_s4 = scalar_lea.vmem %s315_s15, 6144  ;;  %p8245_p2 = scmp.lt.s32.totalorder %s315_s15, %s315_s15 }
 0x244   :  { %p8241_p1 = scmp.ne.s32.totalorder %s315_s15, %s8240_s4  ;;  %p8246_p3 = scmp.lt.s32.totalorder %s8240_s4, %s8240_s4 }
 0x246   :  { %p8247_p4 = por %p8246_p3, %p8245_p2 }
 0x248   :  { %p8248_p5 = pnand %p8247_p4, %p8241_p1 }
 0x24a   :  { %8251 = shalt.err (!%p8248_p5)
}
 0x24b   :  { %s8563_s14 = smov 384   ;;  %s10712_s22 = sld [smem:[#allocation86_spill]] }
 0x24c   :  { %s8564_s17 = smov 24   ;;  %s8565_s18 = smov [#allocation34]  }
 0x24d   :  { %320 = dma.hbm_to_vmem [thread:$0]  %s10711_s0, 6144, %s315_s15, [#allocation30], %s8563_s14, %s8563_s14, %s8564_s17  }
 0x24e   :  { %s337_s23 = sshll.u32 %s8565_s18, 4  ;;  %s8566_s21 = smov [#allocation37]   ;;  %s338_s23 = int_to_ptr.vmem [resolvable:$true] %s337_s23 }
 0x24f   :  { %s357_s1 = sshll.u32 %s8566_s21, 4  ;;  %s358_s1 = int_to_ptr.vmem [resolvable:$true] %s357_s1 }
 0x251   :  { %s8252_s27 = scalar_lea.hbm %s10712_s22, 48 }
 0x252   :  { %p8253_p6 = scmp.ne.s32.totalorder %s10712_s22, %s8252_s27  ;;  %p8256_p7 = scmp.lt.u32.totalorder %s8252_s27, %s10712_s22 }
 0x254   :  { %p8258_p8 = pnand %p8256_p7, %p8253_p6 }
 0x256   :  { %8261 = shalt.err (!%p8258_p8)
}
 0x257   :  { %s8262_s11 = scalar_lea.vmem %s338_s23, 48  ;;  %s8266_s24 = scalar_lea.vmem %s338_s23, 64 }
 0x258   :  { %p8263_p9 = scmp.ne.s32.totalorder %s338_s23, %s8262_s11  ;;  %p8267_p10 = scmp.lt.s32.totalorder %s338_s23, %s338_s23 }
 0x259   :  { %p8268_p11 = scmp.lt.s32.totalorder %s8266_s24, %s8262_s11 }
 0x25b   :  { %p8269_p12 = por %p8268_p11, %p8267_p10 }
 0x25d   :  { %p8270_p13 = pnand %p8269_p12, %p8263_p9 }
 0x25f   :  { %8273 = shalt.err (!%p8270_p13)
}
 0x260   :  { %s10713_s30 = sld [smem:[#allocation87_spill]] }
 0x261   :  { %340 = dma.hbm_to_vmem [thread:$0]  %s10712_s22, 48, %s338_s23, [#allocation33]  }
 0x266   :  { %s8274_s25 = scalar_lea.hbm %s10713_s30, 48 }
 0x267   :  { %p8275_p0 = scmp.ne.s32.totalorder %s10713_s30, %s8274_s25  ;;  %p8278_p1 = scmp.lt.u32.totalorder %s8274_s25, %s10713_s30 }
 0x269   :  { %p8280_p2 = pnand %p8278_p1, %p8275_p0 }
 0x26b   :  { %8283 = shalt.err (!%p8280_p2)
}
 0x26c   :  { %s8284_s19 = scalar_lea.vmem %s358_s1, 48  ;;  %s8288_s2 = scalar_lea.vmem %s358_s1, 64 }
 0x26d   :  { %p8285_p3 = scmp.ne.s32.totalorder %s358_s1, %s8284_s19  ;;  %p8289_p4 = scmp.lt.s32.totalorder %s358_s1, %s358_s1 }
 0x26e   :  { %p8290_p5 = scmp.lt.s32.totalorder %s8288_s2, %s8284_s19 }
 0x270   :  { %p8291_p6 = por %p8290_p5, %p8289_p4 }
 0x272   :  { %p8292_p7 = pnand %p8291_p6, %p8285_p3 }
 0x274   :  { %8295 = shalt.err (!%p8292_p7)
}
 0x275   :  { %s10714_s7 = sld [smem:[#allocation89_spill]]  ;;  %s8567_s6 = smov [#allocation40]  }
 0x276   :  { %360 = dma.hbm_to_vmem [thread:$0]  %s10713_s30, 48, %s358_s1, [#allocation36]  }
 0x277   :  { %s381_s9 = sshll.u32 %s8567_s6, 4  ;;  %s8568_s10 = smov [#allocation43]   ;;  %s382_s9 = int_to_ptr.vmem [resolvable:$true] %s381_s9 }
 0x278   :  { %s402_s3 = sshll.u32 %s8568_s10, 4  ;;  %s403_s3 = int_to_ptr.vmem [resolvable:$true] %s402_s3 }
 0x27b   :  { %s8296_s20 = scalar_lea.hbm %s10714_s7, 16 }
 0x27c   :  { %p8297_p8 = scmp.ne.s32.totalorder %s10714_s7, %s8296_s20  ;;  %p8300_p9 = scmp.lt.u32.totalorder %s8296_s20, %s10714_s7 }
 0x27e   :  { %p8302_p10 = pnand %p8300_p9, %p8297_p8 }
 0x280   :  { %8305 = shalt.err (!%p8302_p10)
}
 0x281   :  { %s8306_s0 = scalar_lea.vmem %s382_s9, 16  ;;  %s8310_s12 = scalar_lea.vmem %s382_s9, 32 }
 0x282   :  { %p8307_p11 = scmp.ne.s32.totalorder %s382_s9, %s8306_s0  ;;  %p8311_p12 = scmp.lt.s32.totalorder %s382_s9, %s382_s9 }
 0x283   :  { %p8312_p13 = scmp.lt.s32.totalorder %s8310_s12, %s8306_s0 }
 0x285   :  { %p8313_p0 = por %p8312_p13, %p8311_p12 }
 0x287   :  { %p8314_p1 = pnand %p8313_p0, %p8307_p11 }
 0x289   :  { %8317 = shalt.err (!%p8314_p1)
}
 0x28a   :  { %s10715_s15 = sld [smem:[#allocation90_spill]] }
 0x28b   :  { %384 = dma.hbm_to_vmem [thread:$0]  %s10714_s7, 16, %s382_s9, [#allocation39]  }
 0x290   :  { %s8318_s16 = scalar_lea.hbm %s10715_s15, 1024 }
 0x291   :  { %p8319_p2 = scmp.ne.s32.totalorder %s10715_s15, %s8318_s16  ;;  %p8322_p3 = scmp.lt.u32.totalorder %s8318_s16, %s10715_s15 }
 0x293   :  { %p8324_p4 = pnand %p8322_p3, %p8319_p2 }
 0x295   :  { %8327 = shalt.err (!%p8324_p4)
}
 0x296   :  { %s8328_s4 = scalar_lea.vmem %s403_s3, 1024  ;;  %p8333_p6 = scmp.lt.s32.totalorder %s403_s3, %s403_s3 }
 0x297   :  { %p8329_p5 = scmp.ne.s32.totalorder %s403_s3, %s8328_s4  ;;  %p8334_p7 = scmp.lt.s32.totalorder %s8328_s4, %s8328_s4 }
 0x299   :  { %p8335_p8 = por %p8334_p7, %p8333_p6 }
 0x29b   :  { %p8336_p9 = pnand %p8335_p8, %p8329_p5 }
 0x29d   :  { %8339 = shalt.err (!%p8336_p9)
}
 0x29e   :  { %s10716_s14 = sld [smem:[#allocation91_spill]]  ;;  %s8569_s22 = smov [#allocation46]  }
 0x29f   :  { %408 = dma.hbm_to_vmem [thread:$0]  %s10715_s15, 1024, %s403_s3, [#allocation42], %s8532_s26, %s8532_s26, %s8533_s28  }
 0x2a0   :  { %s425_s17 = sshll.u32 %s8569_s22, 4  ;;  %s8570_s18 = smov [#allocation49]   ;;  %s426_s17 = int_to_ptr.vmem [resolvable:$true] %s425_s17 }
 0x2a1   :  { %s444_s23 = sshll.u32 %s8570_s18, 4  ;;  %s445_s23 = int_to_ptr.vmem [resolvable:$true] %s444_s23 }
 0x2a4   :  { %s8340_s21 = scalar_lea.hbm %s10716_s14, 64 }
 0x2a5   :  { %p8341_p10 = scmp.ne.s32.totalorder %s10716_s14, %s8340_s21  ;;  %p8344_p11 = scmp.lt.u32.totalorder %s8340_s21, %s10716_s14 }
 0x2a7   :  { %p8346_p12 = pnand %p8344_p11, %p8341_p10 }
 0x2a9   :  { %8349 = shalt.err (!%p8346_p12)
}
 0x2aa   :  { %s8350_s1 = scalar_lea.vmem %s426_s17, 64  ;;  %p8355_p0 = scmp.lt.s32.totalorder %s426_s17, %s426_s17 }
 0x2ab   :  { %p8351_p13 = scmp.ne.s32.totalorder %s426_s17, %s8350_s1  ;;  %p8356_p1 = scmp.lt.s32.totalorder %s8350_s1, %s8350_s1 }
 0x2ad   :  { %p8357_p2 = por %p8356_p1, %p8355_p0 }
 0x2af   :  { %p8358_p3 = pnand %p8357_p2, %p8351_p13 }
 0x2b1   :  { %8361 = shalt.err (!%p8358_p3)
}
 0x2b2   :  { %s10717_s27 = sld [smem:[#allocation93_spill]] }
 0x2b3   :  { %428 = dma.hbm_to_vmem [thread:$0]  %s10716_s14, 64, %s426_s17, [#allocation45]  }
 0x2b8   :  { %s8362_s11 = scalar_lea.hbm %s10717_s27, 1024 }
 0x2b9   :  { %p8363_p4 = scmp.ne.s32.totalorder %s10717_s27, %s8362_s11  ;;  %p8366_p5 = scmp.lt.u32.totalorder %s8362_s11, %s10717_s27 }
 0x2bb   :  { %p8368_p6 = pnand %p8366_p5, %p8363_p4 }
 0x2bd   :  { %8371 = shalt.err (!%p8368_p6)
}
 0x2be   :  { %s8372_s24 = scalar_lea.vmem %s445_s23, 1024  ;;  %p8377_p8 = scmp.lt.s32.totalorder %s445_s23, %s445_s23 }
 0x2bf   :  { %p8373_p7 = scmp.ne.s32.totalorder %s445_s23, %s8372_s24  ;;  %p8378_p9 = scmp.lt.s32.totalorder %s8372_s24, %s8372_s24 }
 0x2c1   :  { %p8379_p10 = por %p8378_p9, %p8377_p8 }
 0x2c3   :  { %p8380_p11 = pnand %p8379_p10, %p8373_p7 }
 0x2c5   :  { %8383 = shalt.err (!%p8380_p11)
}
 0x2c6   :  { %s10718_s30 = sld [smem:[#allocation95_spill]]  ;;  %s8571_s25 = smov [#allocation52]  }
 0x2c7   :  { %450 = dma.hbm_to_vmem [thread:$0]  %s10717_s27, 1024, %s445_s23, [#allocation48], %s8532_s26, %s8532_s26, %s8533_s28  }
 0x2c8   :  { %s466_s19 = sshll.u32 %s8571_s25, 4  ;;  %s8572_s2 = smov [#allocation55]   ;;  %s467_s19 = int_to_ptr.vmem [resolvable:$true] %s466_s19 }
 0x2c9   :  { %s498_s7 = sshll.u32 %s8572_s2, 4  ;;  %s499_s7 = int_to_ptr.vmem [resolvable:$true] %s498_s7 }
 0x2cc   :  { %s8384_s6 = scalar_lea.hbm %s10718_s30, 1024 }
 0x2cd   :  { %p8385_p12 = scmp.ne.s32.totalorder %s10718_s30, %s8384_s6  ;;  %p8388_p13 = scmp.lt.u32.totalorder %s8384_s6, %s10718_s30 }
 0x2cf   :  { %p8390_p0 = pnand %p8388_p13, %p8385_p12 }
 0x2d1   :  { %8393 = shalt.err (!%p8390_p0)
}
 0x2d2   :  { %s8394_s9 = scalar_lea.vmem %s467_s19, 1024  ;;  %p8399_p2 = scmp.lt.s32.totalorder %s467_s19, %s467_s19 }
 0x2d3   :  { %p8395_p1 = scmp.ne.s32.totalorder %s467_s19, %s8394_s9  ;;  %p8400_p3 = scmp.lt.s32.totalorder %s8394_s9, %s8394_s9 }
 0x2d5   :  { %p8401_p4 = por %p8400_p3, %p8399_p2 }
 0x2d7   :  { %p8402_p5 = pnand %p8401_p4, %p8395_p1 }
 0x2d9   :  { %8405 = shalt.err (!%p8402_p5)
}
 0x2da   :  { %472 = dma.hbm_to_vmem [thread:$0]  %s10718_s30, 1024, %s467_s19, [#allocation51], %s8532_s26, %s8532_s26, %s8533_s28  }
 0x2db   :  { %s8406_s10 = scalar_lea.hbm %s8786_s5, 1024 }
 0x2dc   :  { %p8407_p6 = scmp.ne.s32.totalorder %s8786_s5, %s8406_s10  ;;  %p8410_p7 = scmp.lt.u32.totalorder %s8406_s10, %s8786_s5 }
 0x2de   :  { %p8412_p8 = pnand %p8410_p7, %p8407_p6 }
 0x2e0   :  { %8415 = shalt.err (!%p8412_p8)
}
 0x2e1   :  { %s8416_s3 = scalar_lea.vmem %s499_s7, 1024  ;;  %p8421_p10 = scmp.lt.s32.totalorder %s499_s7, %s499_s7 }
 0x2e2   :  { %p8417_p9 = scmp.ne.s32.totalorder %s499_s7, %s8416_s3  ;;  %p8422_p11 = scmp.lt.s32.totalorder %s8416_s3, %s8416_s3 }
 0x2e4   :  { %p8423_p12 = por %p8422_p11, %p8421_p10 }
 0x2e6   :  { %p8424_p13 = pnand %p8423_p12, %p8417_p9 }
 0x2e8   :  { %8427 = shalt.err (!%p8424_p13)
}
 0x2e9   :  { %504 = dma.hbm_to_vmem [thread:$0]  %s8786_s5, 1024, %s499_s7, [#allocation54], %s8532_s26, %s8532_s26, %s8533_s28  }
 0x2ea   :  { %8450 = dma.done.wait [#allocation3], 128  }
 0x2eb   :  { %8451 = vsyncadd [#allocation3], 4294967168 }
 0x2ec   :  { %8452 = dma.done.wait [#allocation6], 1152  }
 0x2ed   :  { %8453 = vsyncadd [#allocation6], 4294966144 }
 0x2ee   :  { %8454 = dma.done.wait [#allocation9], 3088  }
 0x2ef   :  { %8455 = vsyncadd [#allocation9], 4294964208 }
 0x2f0   :  { %8456 = dma.done.wait [#allocation12], 3120  }
 0x2f1   :  { %8457 = vsyncadd [#allocation12], 4294964176 }
 0x2f2   :  { %8458 = dma.done.wait [#allocation15], 2096  }
 0x2f3   :  { %8459 = vsyncadd [#allocation15], 4294965200 }
 0x2f4   :  { %8460 = dma.done.wait [#allocation18], 1040  }
 0x2f5   :  { %8461 = vsyncadd [#allocation18], 4294966256 }
 0x2f6   :  { %8462 = dma.done.wait [#allocation21], 128  }
 0x2f7   :  { %8463 = vsyncadd [#allocation21], 4294967168 }
 0x2f8   :  { %8464 = dma.done.wait [#allocation24], 1088  }
 0x2f9   :  { %8465 = vsyncadd [#allocation24], 4294966208 }
 0x2fa   :  { %8466 = dma.done.wait [#allocation27], 3088  }
 0x2fb   :  { %8467 = vsyncadd [#allocation27], 4294964208 }
 0x2fc   :  { %8468 = dma.done.wait [#allocation30], 9216  }
 0x2fd   :  { %8469 = vsyncadd [#allocation30], 4294958080 }
 0x2fe   :  { %8470 = dma.done.wait [#allocation33], 96  }
 0x2ff   :  { %8471 = vsyncadd [#allocation33], 4294967200 }
 0x300   :  { %8472 = dma.done.wait [#allocation36], 96  }
 0x301   :  { %8473 = vsyncadd [#allocation36], 4294967200 }
 0x302   :  { %8474 = dma.done.wait [#allocation39], 1040  }
 0x303   :  { %8475 = vsyncadd [#allocation39], 4294966256 }
 0x304   :  { %8476 = dma.done.wait [#allocation42], 3072  }
 0x305   :  { %8477 = vsyncadd [#allocation42], 4294964224 }
 0x306   :  { %8478 = dma.done.wait [#allocation45], 80  }
 0x307   :  { %8479 = vsyncadd [#allocation45], 4294967216 }
 0x308   :  { %8480 = dma.done.wait [#allocation48], 1088  }
 0x309   :  { %8481 = vsyncadd [#allocation48], 4294966208 }
 0x30a   :  { %8482 = dma.done.wait [#allocation51], 1040  }
 0x30b   :  { %8483 = vsyncadd [#allocation51], 4294966256 }
 0x30c   :  { %8484 = dma.done.wait [#allocation54], 1040  }
 0x30d   :  { %8485 = vsyncadd [#allocation54], 4294966256  ;;  %v10516_v0 = vmov 0.0   ;;  %vm8574_vm0 = vmmov 0   ;;  %v7035_v1 = vld [vmem:[#allocation7] sm:$0xff]   ;;  %v7036_v2 = vld [vmem:[#allocation7 + $0x8] sm:$0xff]  }
 0x30e   :  { %6296 = vmatprep.subr.bf16.mxu0 %v10516_v0  ;;  %6312 = vmatprep.mubr.msk.bf16.mxu0 %vm8574_vm0, %v10516_v0  ;;  %v7037_v3 = vld [vmem:[#allocation7 + $0x10] sm:$0xff]   ;;  %v7038_v4 = vld [vmem:[#allocation7 + $0x18] sm:$0xff]   ;;  %v7039_v5 = vld [vmem:[#allocation7 + $0x20] sm:$0xff]   ;;  %vm857_vm1 = vcmask 130048   ;;  %v10512_v46 = vmov 0   ;;  %vm2603_vm2 = vcmask 1043456  }
 0x30f   :  { %6316 = vmatprep.subr.bf16.mxu1 %v10516_v0  ;;  %6318 = vmatprep.mubr.msk.bf16.mxu1 %vm8574_vm0, %v10516_v0  ;;  %v7040_v6 = vld [vmem:[#allocation7 + $0x28] sm:$0xff]   ;;  %v7041_v7 = vld [vmem:[#allocation7 + $0x30] sm:$0xff]   ;;  %v7042_v8 = vld [vmem:[#allocation7 + $0x38] sm:$0xff]   ;;  %vm2599_vm3 = vcmask 64512   ;;  %s10865_s5 = sld [smem:[#allocation88_spill]]  ;;  %s10988_s26 = sld [smem:[#allocation97_spill]] }
 0x310   :  { %6297 = vmatpush3.bf16.msra.mxu0 %v7035_v1  ;;  %v7043_v9 = vld [vmem:[#allocation2] sm:$0xff]   ;;  %v9069_v12 = vld [vmem:[#allocation10 + $0x38] ss:$12 sps:$4 sm:$0xff]   ;;  %v5726_v17 = vld [vmem:[#allocation8] ss:$0 sm:$0xff]  ;;  %7032 = vset.pattern.permute.xlu1 %v10512_v46  ;;  %vm5364_vm4 = vcmask 1040384  }
 0x311   :  { %6298 = vmatprep.subr.bf16.mxu0 %v10516_v0  ;;  %v9061_v10 = vld [vmem:[#allocation10 + $0x8] ss:$12 sps:$4 sm:$0xff]   ;;  %v9065_v11 = vld [vmem:[#allocation10 + $0x20] ss:$12 sps:$4 sm:$0xff]   ;;  %10721 = vst [vmem:[#allocation103_spill] sm:$0xff] %v9069_v12  ;;  %s10991_s28 = sld [smem:[#allocation100_spill]] }
 0x312   :  { %10719 = vst [vmem:[#allocation101_spill] sm:$0xff] %v9061_v10  ;;  %10720 = vst [vmem:[#allocation102_spill] sm:$0xff] %v9065_v11  ;;  %v9073_v13 = vld [vmem:[#allocation10 + $0x50] ss:$12 sps:$4 sm:$0xff]   ;;  %v9077_v14 = vld [vmem:[#allocation10 + $0x68] ss:$12 sps:$4 sm:$0xff]  }
 0x313   :  { %10722 = vst [vmem:[#allocation104_spill] sm:$0xff] %v9073_v13  ;;  %10723 = vst [vmem:[#allocation105_spill] sm:$0xff] %v9077_v14  ;;  %v9081_v15 = vld [vmem:[#allocation10 + $0x80] ss:$12 sps:$4 sm:$0xff]   ;;  %v9085_v16 = vld [vmem:[#allocation10 + $0x98] ss:$12 sps:$4 sm:$0xff]  }
 0x314   :  { %6299 = vmatpush3.bf16.msra.mxu0 %v7036_v2  ;;  %10724 = vst [vmem:[#allocation106_spill] sm:$0xff] %v9081_v15  ;;  %10725 = vst [vmem:[#allocation107_spill] sm:$0xff] %v9085_v16  ;;  %v9095_v26 = vld [vmem:[#allocation10 + $0x4] ss:$12 sps:$4 sm:$0xff]   ;;  %v9103_v28 = vld [vmem:[#allocation5] sm:$0xff]   ;;  %s10992_s20 = sld [smem:[#allocation98_spill]] }
 0x315   :  { %6300 = vmatprep.subr.bf16.mxu0 %v10516_v0  ;;  %v9106_v29 = vld [vmem:[#allocation10] ss:$12 sps:$4 sm:$0xff]   ;;  %v9109_v30 = vld [vmem:[#allocation10 + $0x1c] ss:$12 sps:$4 sm:$0xff]   ;;  %v9114_v31 = vld [vmem:[#allocation10 + $0x18] ss:$12 sps:$4 sm:$0xff]  }
 0x316   :  { %v9117_v32 = vld [vmem:[#allocation10 + $0x34] ss:$12 sps:$4 sm:$0xff]   ;;  %v9120_v33 = vld [vmem:[#allocation10 + $0x30] ss:$12 sps:$4 sm:$0xff]   ;;  %v9123_v34 = vld [vmem:[#allocation10 + $0x4c] ss:$12 sps:$4 sm:$0xff]  }
 0x317   :  { %v9126_v35 = vld [vmem:[#allocation10 + $0x48] ss:$12 sps:$4 sm:$0xff]   ;;  %v9129_v36 = vld [vmem:[#allocation10 + $0x64] ss:$12 sps:$4 sm:$0xff]   ;;  %v9132_v37 = vld [vmem:[#allocation10 + $0x60] ss:$12 sps:$4 sm:$0xff]  }
 0x318   :  { %6301 = vmatpush3.bf16.msra.mxu0 %v7037_v3  ;;  %v9135_v38 = vld [vmem:[#allocation10 + $0x7c] ss:$12 sps:$4 sm:$0xff]   ;;  %v9138_v39 = vld [vmem:[#allocation10 + $0x78] ss:$12 sps:$4 sm:$0xff]   ;;  %v9141_v40 = vld [vmem:[#allocation10 + $0x94] ss:$12 sps:$4 sm:$0xff]  }
 0x319   :  { %6302 = vmatprep.subr.bf16.mxu0 %v10516_v0  ;;  %v9144_v41 = vld [vmem:[#allocation10 + $0x90] ss:$12 sps:$4 sm:$0xff]   ;;  %v9148_v42 = vld [vmem:[#allocation10 + $0xac] ss:$12 sps:$4 sm:$0xff]   ;;  %v9150_v43 = vld [vmem:[#allocation10 + $0xa8] ss:$12 sps:$4 sm:$0xff]  }
 0x31a   :  { %v9152_v44 = vld [vmem:[#allocation10 + $0xb0] ss:$12 sps:$4 sm:$0xff]   ;;  %v9163_v50 = vld [vmem:[#allocation11] ss:$12 sps:$4 sm:$0xff]   ;;  %v9165_v51 = vld [vmem:[#allocation11 + $0x8] ss:$12 sps:$4 sm:$0xff]  }
 0x31b   :  { %10726 = vst [vmem:[#allocation108_spill] sm:$0xff] %v9152_v44  ;;  %v9157_v45 = vld [vmem:[#allocation11 + $0x4] ss:$12 sps:$4 sm:$0xff]   ;;  %v9167_v54 = vld [vmem:[#allocation11 + $0x1c] ss:$12 sps:$4 sm:$0xff]   ;;  %s10993_s0 = sld [smem:[#allocation99_spill]] }
 0x31c   :  { %6303 = vmatpush3.bf16.msra.mxu0 %v7038_v4  ;;  %v9171_v55 = vld [vmem:[#allocation11 + $0x18] ss:$12 sps:$4 sm:$0xff]   ;;  %v9173_v56 = vld [vmem:[#allocation11 + $0x20] ss:$12 sps:$4 sm:$0xff]   ;;  %v9184_v58 = vld [vmem:[#allocation11 + $0x30] ss:$12 sps:$4 sm:$0xff]  }
 0x31d   :  { %6304 = vmatprep.subr.bf16.mxu0 %v10516_v0  ;;  %v9177_v57 = vld [vmem:[#allocation11 + $0x34] ss:$12 sps:$4 sm:$0xff]   ;;  %v9186_v59 = vld [vmem:[#allocation11 + $0x38] ss:$12 sps:$4 sm:$0xff]   ;;  %v9196_v62 = vld [vmem:[#allocation11 + $0x50] ss:$12 sps:$4 sm:$0xff]  }
 0x31e   :  { %v9190_v60 = vld [vmem:[#allocation11 + $0x4c] ss:$12 sps:$4 sm:$0xff]   ;;  %v9194_v61 = vld [vmem:[#allocation11 + $0x48] ss:$12 sps:$4 sm:$0xff]   ;;  %v9200_v63 = vld [vmem:[#allocation11 + $0x64] ss:$12 sps:$4 sm:$0xff]  }
 0x31f   :  { %v9204_v1 = vld [vmem:[#allocation11 + $0x60] ss:$12 sps:$4 sm:$0xff]   ;;  %v9206_v2 = vld [vmem:[#allocation11 + $0x68] ss:$12 sps:$4 sm:$0xff]   ;;  %v9214_v4 = vld [vmem:[#allocation11 + $0x78] ss:$12 sps:$4 sm:$0xff]  }
 0x320   :  { %6305 = vmatpush3.bf16.msra.mxu0 %v7039_v5  ;;  %v9210_v3 = vld [vmem:[#allocation11 + $0x7c] ss:$12 sps:$4 sm:$0xff]   ;;  %v9216_v5 = vld [vmem:[#allocation11 + $0x80] ss:$12 sps:$4 sm:$0xff]   ;;  %s8577_s12 = smov [#allocation56]  }
 0x321   :  { %6306 = vmatprep.subr.bf16.mxu0 %v10516_v0  ;;  %s5658_s15 = sshll.u32 %s8577_s12, 4  ;;  %s5659_s15 = int_to_ptr.vmem [resolvable:$true] %s5658_s15 }
 0x322   :  { %s8428_s16 = scalar_lea.vmem %s5659_s15, 128  ;;  %p8433_p1 = scmp.lt.s32.totalorder %s5659_s15, %s5659_s15 }
 0x323   :  { %p8429_p0 = scmp.ne.s32.totalorder %s5659_s15, %s8428_s16  ;;  %p8434_p2 = scmp.lt.s32.totalorder %s8428_s16, %s8428_s16 }
 0x324   :  { %6307 = vmatpush3.bf16.msra.mxu0 %v7040_v6  ;;  %v9220_v6 = vld [vmem:[#allocation11 + $0x94] ss:$12 sps:$4 sm:$0xff]  }
 0x325   :  { %6308 = vmatprep.subr.bf16.mxu0 %v10516_v0  ;;  %p8435_p3 = por %p8434_p2, %p8433_p1 }
 0x327   :  { %p8436_p4 = pnand %p8435_p3, %p8429_p0 }
 0x328   :  { %6309 = vmatpush3.bf16.msra.mxu0 %v7041_v7  ;;  %v9224_v7 = vld [vmem:[#allocation11 + $0x90] ss:$12 sps:$4 sm:$0xff]  }
 0x329   :  { %6310 = vmatprep.subr.bf16.mxu0 %v10516_v0 }
 0x32c   :  { %6311 = vmatpush3.bf16.msra.mxu0 %v7042_v8  ;;  %v9226_v8 = vld [vmem:[#allocation11 + $0x98] ss:$12 sps:$4 sm:$0xff]  }
 0x32d   :  { %6322 = vmatprep.subr.bf16.mxu0 %v10516_v0  ;;  %10727 = vst [vmem:[#allocation109_spill] sm:$0xff] %v9226_v8 }
 0x32f   :  { %6313 = vmatmul.mubr.bf16.vlgmr.msra.gmra.mrb[0].mxu0 %v7043_v9  ;;  %v9230_v9 = vld [vmem:[#allocation11 + $0xac] ss:$12 sps:$4 sm:$0xff]  }
 0x330   :  { %6338 = vmatprep.mubr.msk.bf16.mxu0 %vm8574_vm0, %v10516_v0  ;;  %6323 = vmatpush3.bf16.msra.mxu0 %v9061_v10  ;;  %10728 = vst [vmem:[#allocation110_spill] sm:$0xff] %v9230_v9 }
 0x331   :  { %6324 = vmatprep.subr.bf16.mxu0 %v10516_v0 }
 0x334   :  { %6325 = vmatpush3.bf16.msra.mxu0 %v9065_v11 }
 0x335   :  { %6326 = vmatprep.subr.bf16.mxu0 %v10516_v0 }
 0x338   :  { %6327 = vmatpush3.bf16.msra.mxu0 %v9069_v12 }
 0x339   :  { %6328 = vmatprep.subr.bf16.mxu0 %v10516_v0 }
 0x33c   :  { %6329 = vmatpush3.bf16.msra.mxu0 %v9073_v13 }
 0x33d   :  { %6330 = vmatprep.subr.bf16.mxu0 %v10516_v0 }
 0x340   :  { %6331 = vmatpush3.bf16.msra.mxu0 %v9077_v14 }
 0x341   :  { %6332 = vmatprep.subr.bf16.mxu0 %v10516_v0 }
 0x344   :  { %6333 = vmatpush3.bf16.msra.mxu0 %v9081_v15 }
 0x345   :  { %6334 = vmatprep.subr.bf16.mxu0 %v10516_v0 }
 0x348   :  { %6335 = vmatpush3.bf16.msra.mxu0 %v9085_v16 }
 0x349   :  { %6336 = vmatprep.subr.bf16.mxu0 %v10516_v0 }
 0x34c   :  { %6337 = vmatpush3.bf16.msra.mxu0 %v9152_v44 }
 0x34d   :  { %6342 = vmatprep.subr.bf16.mxu0 %v10516_v0 }
 0x402   :  { %v842_v18 = vpop.f32.mrb[0].mxu0 }
 0x403   :  { %v9089_v19 = vadd.f32 %v5726_v17, %v842_v18  ;;  %v6314_v20 = vpop.f32.mrb[1].mxu0  ;;  %v9236_v18 = vld [vmem:[#allocation11 + $0xb0] ss:$12 sps:$4 sm:$0xff]  }
 0x404   :  { %v845_v21 = vpop.f32.mrb[2].mxu0  ;;  %10730 = vst [vmem:[#allocation112_spill] sm:$0xff] %v9236_v18  ;;  %v9264_v20 = vld [vmem:[#allocation16 + $0x4] ss:$8 sps:$4 sm:$0xff]  }
 0x405   :  { %v9091_v22 = vadd.f32 %v5726_v17, %v845_v21  ;;  %v6315_v23 = vpop.f32.mrb[3].mxu0  ;;  %v10515_v24 = vmax.f32 %v9089_v19, 0.0  ;;  %v9234_v17 = vld [vmem:[#allocation11 + $0xa8] ss:$12 sps:$4 sm:$0xff]   ;;  %10731 = vst [vmem:[#allocation113_spill] sm:$0xff] %v9264_v20 }
 0x406   :  { %10729 = vst [vmem:[#allocation111_spill] sm:$0xff] %v9234_v17  ;;  %v9266_v21 = vld [vmem:[#allocation16] ss:$8 sps:$4 sm:$0xff]   ;;  %v9270_v23 = vld [vmem:[#allocation16 + $0x14] ss:$8 sps:$4 sm:$0xff]  }
 0x407   :  { %v10514_v25 = vmax.f32 %v9091_v22, 0.0  ;;  %10732 = vst [vmem:[#allocation114_spill] sm:$0xff] %v9266_v21  ;;  %10733 = vst [vmem:[#allocation115_spill] sm:$0xff] %v9270_v23 }
 0x409   :  { %v9101_v27 = vpack.c.bf16 %v10514_v25, %v10515_v24  ;;  %v9292_v25 = vld [vmem:[#allocation16 + $0x54] ss:$8 sps:$4 sm:$0xff]   ;;  %v9296_v24 = vld [vmem:[#allocation16 + $0x50] ss:$8 sps:$4 sm:$0xff]  }
 0x40a   :  { %10741 = vst [vmem:[#allocation123_spill] sm:$0xff] %v9292_v25  ;;  %10742 = vst [vmem:[#allocation124_spill] sm:$0xff] %v9296_v24 }
 0x40b   :  { %6317 = vmatpush3.bf16.msra.mxu1 %v9101_v27 }
 0x40c   :  { %1031 = vmatprep.subr.bf16.mxu1 %v9095_v26 }
 0x40e   :  { %6319 = vmatmul.mubr.msk.bf16.vlgmr.msra.gmra.mrb[0].mxu1 %vm857_vm1, %v9103_v28 }
 0x40f   :  { %1032 = vmatpush1.bf16.msra.mxu1 %v9106_v29  ;;  %1063 = vmatprep.mubr.bf16.mxu1 %v10512_v46 }
 0x410   :  { %1033 = vmatprep.subr.bf16.mxu1 %v9109_v30 }
 0x413   :  { %1034 = vmatpush1.bf16.msra.mxu1 %v9114_v31 }
 0x414   :  { %1035 = vmatprep.subr.bf16.mxu1 %v9117_v32 }
 0x417   :  { %1036 = vmatpush1.bf16.msra.mxu1 %v9120_v33 }
 0x418   :  { %1037 = vmatprep.subr.bf16.mxu1 %v9123_v34 }
 0x41b   :  { %1038 = vmatpush1.bf16.msra.mxu1 %v9126_v35 }
 0x41c   :  { %1039 = vmatprep.subr.bf16.mxu1 %v9129_v36 }
 0x41f   :  { %1040 = vmatpush1.bf16.msra.mxu1 %v9132_v37 }
 0x420   :  { %1041 = vmatprep.subr.bf16.mxu1 %v9135_v38 }
 0x423   :  { %1042 = vmatpush1.bf16.msra.mxu1 %v9138_v39 }
 0x424   :  { %1043 = vmatprep.subr.bf16.mxu1 %v9141_v40 }
 0x427   :  { %1044 = vmatpush1.bf16.msra.mxu1 %v9144_v41 }
 0x428   :  { %1045 = vmatprep.subr.bf16.mxu1 %v9148_v42 }
 0x42b   :  { %1046 = vmatpush1.bf16.msra.mxu1 %v9150_v43 }
 0x42c   :  { %1243 = vmatprep.subr.bf16.mxu1 %v9157_v45 }
 0x4e1   :  { %v895_v47 = vpop.f32.mrb[0].mxu1 }
 0x4e2   :  { %v6320_v48 = vpop.f32.mrb[1].mxu1 }
 0x4e3   :  { %v898_v49 = vpop.f32.mrb[2].mxu1  ;;  %v9278_v48 = vld [vmem:[#allocation16 + $0x20] ss:$8 sps:$4 sm:$0xff]  }
 0x4e4   :  { %v902_v52 = vpack.c.bf16 %v898_v49, %v895_v47  ;;  %v6321_v53 = vpop.f32.mrb[3].mxu1  ;;  %v9276_v47 = vld [vmem:[#allocation16 + $0x24] ss:$8 sps:$4 sm:$0xff]   ;;  %10736 = vst [vmem:[#allocation118_spill] sm:$0xff] %v9278_v48  ;;  %v9282_v49 = vld [vmem:[#allocation16 + $0x34] ss:$8 sps:$4 sm:$0xff]  }
 0x4e5   :  { %10735 = vst [vmem:[#allocation117_spill] sm:$0xff] %v9276_v47  ;;  %10737 = vst [vmem:[#allocation119_spill] sm:$0xff] %v9282_v49  ;;  %v9288_v53 = vld [vmem:[#allocation16 + $0x44] ss:$8 sps:$4 sm:$0xff]  }
 0x4e6   :  { %1064 = vmatmul.mubr.bf16.vlgmr.msra.gmra.mrb[4].mxu1 %v902_v52  ;;  %6339 = vmatmul.mubr.bf16.vlgmr.msra.gmra.mrb[4].mxu0 %v902_v52  ;;  %v9284_v52 = vld [vmem:[#allocation16 + $0x30] ss:$8 sps:$4 sm:$0xff]   ;;  %10739 = vst [vmem:[#allocation121_spill] sm:$0xff] %v9288_v53 }
 0x4e7   :  { %1244 = vmatpush1.bf16.msra.mxu1 %v9163_v50  ;;  %6343 = vmatpush3.bf16.msra.mxu0 %v9165_v51  ;;  %10738 = vst [vmem:[#allocation120_spill] sm:$0xff] %v9284_v52 }
 0x4e8   :  { %1245 = vmatprep.subr.bf16.mxu1 %v9167_v54  ;;  %6344 = vmatprep.subr.bf16.mxu0 %v10516_v0 }
 0x4e9   :  { %1275 = vmatprep.mubr.bf16.mxu1 %v10512_v46  ;;  %6358 = vmatprep.mubr.msk.bf16.mxu0 %vm8574_vm0, %v10516_v0 }
 0x4eb   :  { %1246 = vmatpush1.bf16.msra.mxu1 %v9171_v55  ;;  %6345 = vmatpush3.bf16.msra.mxu0 %v9173_v56 }
 0x4ec   :  { %1247 = vmatprep.subr.bf16.mxu1 %v9177_v57  ;;  %6346 = vmatprep.subr.bf16.mxu0 %v10516_v0 }
 0x4ef   :  { %1248 = vmatpush1.bf16.msra.mxu1 %v9184_v58  ;;  %6347 = vmatpush3.bf16.msra.mxu0 %v9186_v59 }
 0x4f0   :  { %1249 = vmatprep.subr.bf16.mxu1 %v9190_v60  ;;  %6348 = vmatprep.subr.bf16.mxu0 %v10516_v0 }
 0x4f3   :  { %1250 = vmatpush1.bf16.msra.mxu1 %v9194_v61  ;;  %6349 = vmatpush3.bf16.msra.mxu0 %v9196_v62 }
 0x4f4   :  { %1251 = vmatprep.subr.bf16.mxu1 %v9200_v63  ;;  %6350 = vmatprep.subr.bf16.mxu0 %v10516_v0 }
 0x4f7   :  { %1252 = vmatpush1.bf16.msra.mxu1 %v9204_v1  ;;  %6351 = vmatpush3.bf16.msra.mxu0 %v9206_v2 }
 0x4f8   :  { %1253 = vmatprep.subr.bf16.mxu1 %v9210_v3  ;;  %6352 = vmatprep.subr.bf16.mxu0 %v10516_v0 }
 0x4fb   :  { %1254 = vmatpush1.bf16.msra.mxu1 %v9214_v4  ;;  %6353 = vmatpush3.bf16.msra.mxu0 %v9216_v5 }
 0x4fc   :  { %1255 = vmatprep.subr.bf16.mxu1 %v9220_v6  ;;  %6354 = vmatprep.subr.bf16.mxu0 %v10516_v0 }
 0x4ff   :  { %1256 = vmatpush1.bf16.msra.mxu1 %v9224_v7  ;;  %6355 = vmatpush3.bf16.msra.mxu0 %v9226_v8 }
 0x500   :  { %1257 = vmatprep.subr.bf16.mxu1 %v9230_v9  ;;  %6356 = vmatprep.subr.bf16.mxu0 %v10516_v0 }
 0x503   :  { %1258 = vmatpush1.bf16.msra.mxu1 %v9234_v17  ;;  %6357 = vmatpush3.bf16.msra.mxu0 %v9236_v18 }
 0x504   :  { %6368 = vmatprep.subr.bf16.mxu0 %v10516_v0  ;;  %1450 = vmatprep.subr.bf16.mxu1 %v9264_v20 }
 0x506   :  { %1276 = vmatmul.mubr.bf16.vlgmr.msra.gmra.mrb[4].mxu1 %v9101_v27  ;;  %6359 = vmatmul.mubr.bf16.vlgmr.msra.gmra.mrb[8].mxu0 %v9101_v27  ;;  %v9272_v27 = vld [vmem:[#allocation16 + $0x10] ss:$8 sps:$4 sm:$0xff]  }
 0x507   :  { %1482 = vmatprep.mubr.bf16.mxu1 %v10512_v46  ;;  %6369 = vmatpush3.bf16.msra.mxu0 %v9061_v10  ;;  %10734 = vst [vmem:[#allocation116_spill] sm:$0xff] %v9272_v27  ;;  %v9290_v46 = vld [vmem:[#allocation16 + $0x40] ss:$8 sps:$4 sm:$0xff]  }
 0x508   :  { %6370 = vmatprep.subr.bf16.mxu0 %v10516_v0  ;;  %6384 = vmatprep.mubr.msk.bf16.mxu0 %vm8574_vm0, %v10516_v0  ;;  %10740 = vst [vmem:[#allocation122_spill] sm:$0xff] %v9290_v46 }
 0x509   :  { %1451 = vmatpush1.bf16.msra.mxu1 %v9266_v21 }
 0x50a   :  { %1452 = vmatprep.subr.bf16.mxu1 %v9270_v23 }
 0x50b   :  { %6371 = vmatpush3.bf16.msra.mxu0 %v9065_v11 }
 0x50c   :  { %6372 = vmatprep.subr.bf16.mxu0 %v10516_v0 }
 0x50d   :  { %1453 = vmatpush1.bf16.msra.mxu1 %v9272_v27 }
 0x50e   :  { %1454 = vmatprep.subr.bf16.mxu1 %v9276_v47 }
 0x50f   :  { %6373 = vmatpush3.bf16.msra.mxu0 %v9069_v12 }
 0x510   :  { %6374 = vmatprep.subr.bf16.mxu0 %v10516_v0 }
 0x511   :  { %1455 = vmatpush1.bf16.msra.mxu1 %v9278_v48 }
 0x512   :  { %1456 = vmatprep.subr.bf16.mxu1 %v9282_v49 }
 0x513   :  { %6375 = vmatpush3.bf16.msra.mxu0 %v9073_v13 }
 0x514   :  { %6376 = vmatprep.subr.bf16.mxu0 %v10516_v0 }
 0x515   :  { %1457 = vmatpush1.bf16.msra.mxu1 %v9284_v52 }
 0x516   :  { %1458 = vmatprep.subr.bf16.mxu1 %v9288_v53  ;;  %v695_v53 = vld [vmem:[#allocation13] sm:$0x7] }
 0x517   :  { %6377 = vmatpush3.bf16.msra.mxu0 %v9077_v14  ;;  %v10747_v14 = vmov 0.0  }
 0x518   :  { %6378 = vmatprep.subr.bf16.mxu0 %v10516_v0 }
 0x519   :  { %1459 = vmatpush1.bf16.msra.mxu1 %v9290_v46  ;;  %v712_v46 = vld [vmem:[#allocation14] sm:$0x7] }
 0x51a   :  { %1460 = vmatprep.subr.bf16.mxu1 %v9292_v25 }
 0x51b   :  { %6379 = vmatpush3.bf16.msra.mxu0 %v9081_v15  ;;  %v9308_v15 = vld [vmem:[#allocation16 + $0x70] ss:$8 sps:$4 sm:$0xff]  }
 0x51c   :  { %6380 = vmatprep.subr.bf16.mxu0 %v10516_v0  ;;  %10746 = vst [vmem:[#allocation128_spill] sm:$0xff] %v9308_v15 }
 0x51d   :  { %1461 = vmatpush1.bf16.msra.mxu1 %v9296_v24  ;;  %v10550_v24 = vlaneseq }
 0x51f   :  { %6381 = vmatpush3.bf16.msra.mxu0 %v9085_v16  ;;  %v9305_v16 = vld [vmem:[#allocation16 + $0x74] ss:$8 sps:$4 sm:$0xff]   ;;  %v698_v25 = vshrl.u32 %v10550_v24, 7 }
 0x520   :  { %6382 = vmatprep.subr.bf16.mxu0 %v10516_v0  ;;  %10745 = vst [vmem:[#allocation127_spill] sm:$0xff] %v9305_v16 }
 0x523   :  { %6383 = vmatpush3.bf16.msra.mxu0 %v9152_v44  ;;  %v9302_v44 = vld [vmem:[#allocation16 + $0x60] ss:$8 sps:$4 sm:$0xff]  }
 0x524   :  { %6388 = vmatprep.subr.bf16.mxu0 %v10516_v0  ;;  %v9299_v0 = vld [vmem:[#allocation16 + $0x64] ss:$8 sps:$4 sm:$0xff]   ;;  %10744 = vst [vmem:[#allocation126_spill] sm:$0xff] %v9302_v44 }
 0x525   :  { %10743 = vst [vmem:[#allocation125_spill] sm:$0xff] %v9299_v0  ;;  %1462 = vmatprep.subr.bf16.mxu1 %v9299_v0  ;;  %v9314_v0 = vsub.s32 0, %v698_v25 }
 0x526   :  { %1463 = vmatpush1.bf16.msra.mxu1 %v9302_v44  ;;  %v9316_v44 = vsub.s32 1, %v698_v25 }
 0x527   :  { %1464 = vmatprep.subr.bf16.mxu1 %v9305_v16  ;;  %10748 = vst [vmem:[#allocation129_spill] sm:$0xff] %v9314_v0  ;;  %v700_v52 = vrot.slane %v695_v53, %v9314_v0  ;;  %v717_v16 = vrot.slane %v712_v46, %v9314_v0 }
 0x528   :  { %10749 = vst [vmem:[#allocation130_spill] sm:$0xff] %v9316_v44  ;;  %v721_v49 = vrot.slane %v712_v46, %v9316_v44 }
 0x52a   :  { %1465 = vmatpush1.bf16.msra.mxu1 %v9308_v15  ;;  %v704_v15 = vrot.slane %v695_v53, %v9316_v44 }
 0x52b   :  { %6362 = vmatprep.subr.bf16.mxu1 %v10747_v14 }
 0x52c   :  { %v9324_v47 = vadd.f32 %v721_v49, %v704_v15 }
 0x52e   :  { %10751 = vst [vmem:[#allocation132_spill] sm:$0xff] %v9324_v47 }
 0x5b9   :  { %v1108_v13 = vpop.f32.mrb[4].mxu0 }
 0x5ba   :  { %v6340_v12 = vpop.f32.mrb[5].mxu0 }
 0x5bb   :  { %v1111_v11 = vpop.f32.mrb[6].mxu0  ;;  %v9322_v12 = vadd.f32 %v717_v16, %v700_v52 }
 0x5bc   :  { %v6341_v10 = vpop.f32.mrb[7].mxu0 }
 0x5bd   :  { %10750 = vst [vmem:[#allocation131_spill] sm:$0xff] %v9322_v12 }
 0x5d9   :  { %v1277_v10 = vpop.f32.mrb[4].mxu1  ;;  %v1320_v48 = vpop.f32.mrb[8].mxu0 }
 0x5da   :  { %v6883_v24 = vadd.f32 %v9322_v12, %v1277_v10  ;;  %v1279_v27 = vpop.f32.mrb[5].mxu1  ;;  %v6360_v23 = vpop.f32.mrb[9].mxu0 }
 0x5db   :  { %v1281_v21 = vpop.f32.mrb[6].mxu1  ;;  %v1323_v20 = vpop.f32.mrb[10].mxu0  ;;  %v6885_v8 = vadd.f32 %v9324_v47, %v1279_v27 }
 0x5dc   :  { %v5786_v18 = vmul.f32 -1.442695, %v6883_v24  ;;  %v6887_v17 = vadd.f32 %v9322_v12, %v1281_v21  ;;  %v1283_v0 = vpop.f32.mrb[7].mxu1  ;;  %v6361_v9 = vpop.f32.mrb[11].mxu0  ;;  %v9330_v21 = vsub.s32 2, %v698_v25 }
 0x5dd   :  { %v6889_v52 = vadd.f32 %v9324_v47, %v1283_v0  ;;  %v5788_v15 = vmul.f32 -1.442695, %v6885_v8 }
 0x5de   :  { %7365 = vpow2.f32 %v5786_v18  ;;  %v5787_v16 = vmul.f32 -1.442695, %v6887_v17  ;;  %10752 = vst [vmem:[#allocation133_spill] sm:$0xff] %v9330_v21  ;;  %v9333_v27 = vrot.slane %v712_v46, %v9330_v21  ;;  %v9336_v0 = vrot.slane %v695_v53, %v9330_v21 }
 0x5df   :  { %v5789_v49 = vmul.f32 -1.442695, %v6889_v52 }
 0x5e0   :  { %7367 = vpow2.f32 %v5787_v16  ;;  %v1321_v18 = vadd.f32 %v1320_v48, %v9333_v27  ;;  %v1324_v25 = vadd.f32 %v1323_v20, %v9333_v27 }
 0x5e1   :  { %7369 = vpow2.f32 %v5788_v15  ;;  %v1109_v15 = vadd.f32 %v1108_v13, %v9336_v0  ;;  %v10753_v13 = vmax.f32 %v9089_v19, 0.0 }
 0x5e2   :  { %7371 = vpow2.f32 %v5789_v49 }
 0x5e8   :  { %v7366_v10 = vpop.eup %7365 }
 0x5e9   :  { %v1335_v23 = vadd.f32 1.0, %v7366_v10  ;;  %v1112_v10 = vadd.f32 %v1111_v11, %v9336_v0 }
 0x5ea   :  { %v7368_v44 = vpop.eup %7367 }
 0x5eb   :  { %7373 = vrcp.f32 %v1335_v23  ;;  %v1336_v24 = vadd.f32 1.0, %v7368_v44  ;;  %v7370_v9 = vpop.eup %7369 }
 0x5ec   :  { %v7372_v17 = vpop.eup %7371  ;;  %v1349_v8 = vadd.f32 1.0, %v7370_v9 }
 0x5ed   :  { %7375 = vrcp.f32 %v1336_v24  ;;  %v1350_v16 = vadd.f32 1.0, %v7372_v17 }
 0x5ee   :  { %7377 = vrcp.f32 %v1349_v8 }
 0x5ef   :  { %7379 = vrcp.f32 %v1350_v16 }
 0x5f5   :  { %v7374_v52 = vpop.eup %7373 }
 0x5f6   :  { %v1355_v49 = vmul.f32 %v7374_v52, %v1321_v18  ;;  %v10754_v52 = vmax.f32 %v9091_v22, 0.0 }
 0x5f7   :  { %v7376_v44 = vpop.eup %7375 }
 0x5f8   :  { %v1357_v46 = vadd.f32 %v1355_v49, %v1109_v15  ;;  %v1356_v23 = vmul.f32 %v7376_v44, %v1324_v25  ;;  %v7378_v24 = vpop.eup %7377 }
 0x5f9   :  { %v7380_v9 = vpop.eup %7379  ;;  %v1361_v48 = vsub.f32 1.0, %v7378_v24  ;;  %v1365_v8 = vmul.f32 %v7378_v24, %v10753_v13 }
 0x5fa   :  { %7381 = vtanh.f32 %v1357_v46  ;;  %v1358_v53 = vadd.f32 %v1356_v23, %v1112_v10  ;;  %v1362_v21 = vsub.f32 1.0, %v7380_v9  ;;  %v1366_v11 = vmul.f32 %v7380_v9, %v10754_v52 }
 0x5fc   :  { %7383 = vtanh.f32 %v1358_v53 }
 0x604   :  { %v7382_v17 = vpop.eup %7381 }
 0x605   :  { %v1363_v47 = vmul.f32 %v7382_v17, %v1361_v48 }
 0x606   :  { %v7384_v18 = vpop.eup %7383 }
 0x607   :  { %v1364_v20 = vmul.f32 %v7384_v18, %v1362_v21  ;;  %v1367_v15 = vadd.f32 %v1365_v8, %v1363_v47 }
 0x609   :  { %v1368_v49 = vadd.f32 %v1366_v11, %v1364_v20  ;;  %v10755_v20 = vmov 0  }
 0x60b   :  { %v1369_v16 = vpack.c.bf16 %v1368_v49, %v1367_v15 }
 0x60d   :  { %1483 = vmatmul.mubr.bf16.vlgmr.msra.gmra.mrb[8].mxu1 %v1369_v16 }
 0x60e   :  { %6364 = vmatprep.mubr.msk.bf16.mxu1 %vm8574_vm0, %v10747_v14 }
 0x6e0   :  { %v1484_v25 = vpop.f32.mrb[8].mxu1 }
 0x6e1   :  { %v5806_v44 = vmul.f32 -1.442695, %v1484_v25  ;;  %v1486_v10 = vpop.f32.mrb[9].mxu1 }
 0x6e2   :  { %v1488_v46 = vpop.f32.mrb[10].mxu1 }
 0x6e3   :  { %7385 = vpow2.f32 %v5806_v44  ;;  %v5807_v23 = vmul.f32 -1.442695, %v1488_v46  ;;  %v1490_v19 = vpop.f32.mrb[11].mxu1  ;;  %v10757_v44 = vld [vmem:[#allocation110_spill] sm:$0xff] }
 0x6e5   :  { %7387 = vpow2.f32 %v5807_v23  ;;  %v10760_v23 = vld [vmem:[#allocation113_spill] sm:$0xff] }
 0x6ed   :  { %v7386_v53 = vpop.eup %7385 }
 0x6ee   :  { %v1499_v21 = vadd.f32 1.0, %v7386_v53  ;;  %v10762_v53 = vld [vmem:[#allocation115_spill] sm:$0xff] }
 0x6ef   :  { %v7388_v24 = vpop.eup %7387 }
 0x6f0   :  { %7389 = vrcp.f32 %v1499_v21  ;;  %v1500_v22 = vadd.f32 1.0, %v7388_v24  ;;  %v10763_v21 = vld [vmem:[#allocation116_spill] sm:$0xff]  ;;  %v10764_v24 = vld [vmem:[#allocation117_spill] sm:$0xff] }
 0x6f2   :  { %7391 = vrcp.f32 %v1500_v22  ;;  %v10765_v22 = vld [vmem:[#allocation118_spill] sm:$0xff] }
 0x6fa   :  { %v7390_v47 = vpop.eup %7389 }
 0x6fb   :  { %v1505_v9 = vmul.f32 %v7390_v47, %v1484_v25  ;;  %v10756_v25 = vld [vmem:[#allocation109_spill] sm:$0xff]  ;;  %v10766_v47 = vld [vmem:[#allocation119_spill] sm:$0xff] }
 0x6fc   :  { %v7392_v48 = vpop.eup %7391 }
 0x6fd   :  { %v9348_v17 = vmul.f32 %v1505_v9, %v1486_v10  ;;  %v1506_v13 = vmul.f32 %v7392_v48, %v1488_v46  ;;  %v10758_v10 = vld [vmem:[#allocation111_spill] sm:$0xff]  ;;  %v10759_v46 = vld [vmem:[#allocation112_spill] sm:$0xff]  ;;  %v10768_v48 = vld [vmem:[#allocation121_spill] sm:$0xff] }
 0x6fe   :  { %v10767_v9 = vld [vmem:[#allocation120_spill] sm:$0xff] }
 0x6ff   :  { %v9350_v8 = vmul.f32 %v1506_v13, %v1490_v19  ;;  %v10761_v19 = vld [vmem:[#allocation114_spill] sm:$0xff] }
 0x700   :  { %v10769_v13 = vld [vmem:[#allocation122_spill] sm:$0xff] }
 0x701   :  { %v1509_v18 = vpack.c.bf16 %v9350_v8, %v9348_v17 }
 0x703   :  { %6363 = vmatpush3.bf16.msra.mxu1 %v1509_v18 }
 0x704   :  { %1552 = vmatprep.subr.bf16.mxu1 %v9095_v26 }
 0x706   :  { %6365 = vmatmul.mubr.msk.bf16.vlgmr.msra.gmra.mrb[12].mxu1 %vm857_vm1, %v9103_v28 }
 0x707   :  { %1553 = vmatpush1.bf16.msra.mxu1 %v9106_v29  ;;  %1584 = vmatprep.mubr.bf16.mxu1 %v10755_v20 }
 0x708   :  { %1554 = vmatprep.subr.bf16.mxu1 %v9109_v30 }
 0x70b   :  { %1555 = vmatpush1.bf16.msra.mxu1 %v9114_v31 }
 0x70c   :  { %1556 = vmatprep.subr.bf16.mxu1 %v9117_v32 }
 0x70f   :  { %1557 = vmatpush1.bf16.msra.mxu1 %v9120_v33 }
 0x710   :  { %1558 = vmatprep.subr.bf16.mxu1 %v9123_v34 }
 0x713   :  { %1559 = vmatpush1.bf16.msra.mxu1 %v9126_v35 }
 0x714   :  { %1560 = vmatprep.subr.bf16.mxu1 %v9129_v36 }
 0x717   :  { %1561 = vmatpush1.bf16.msra.mxu1 %v9132_v37 }
 0x718   :  { %1562 = vmatprep.subr.bf16.mxu1 %v9135_v38 }
 0x71b   :  { %1563 = vmatpush1.bf16.msra.mxu1 %v9138_v39 }
 0x71c   :  { %1564 = vmatprep.subr.bf16.mxu1 %v9141_v40 }
 0x71f   :  { %1565 = vmatpush1.bf16.msra.mxu1 %v9144_v41 }
 0x720   :  { %1566 = vmatprep.subr.bf16.mxu1 %v9148_v42 }
 0x723   :  { %1567 = vmatpush1.bf16.msra.mxu1 %v9150_v43 }
 0x724   :  { %1636 = vmatprep.subr.bf16.mxu1 %v9157_v45 }
 0x7d9   :  { %v1544_v52 = vpop.f32.mrb[12].mxu1 }
 0x7da   :  { %v6366_v11 = vpop.f32.mrb[13].mxu1 }
 0x7db   :  { %v1547_v15 = vpop.f32.mrb[14].mxu1  ;;  %v10772_v11 = vld [vmem:[#allocation125_spill] sm:$0xff] }
 0x7dc   :  { %v1551_v49 = vpack.c.bf16 %v1547_v15, %v1544_v52  ;;  %v6367_v16 = vpop.f32.mrb[15].mxu1  ;;  %v10771_v52 = vld [vmem:[#allocation124_spill] sm:$0xff]  ;;  %v10773_v15 = vld [vmem:[#allocation126_spill] sm:$0xff] }
 0x7dd   :  { %v10775_v16 = vld [vmem:[#allocation128_spill] sm:$0xff] }
 0x7de   :  { %1585 = vmatmul.mubr.bf16.vlgmr.msra.gmra.mrb[16].mxu1 %v1551_v49  ;;  %6385 = vmatmul.mubr.bf16.vlgmr.msra.gmra.mrb[12].mxu0 %v1551_v49  ;;  %v10774_v49 = vld [vmem:[#allocation127_spill] sm:$0xff] }
 0x7df   :  { %1637 = vmatpush1.bf16.msra.mxu1 %v9163_v50  ;;  %6389 = vmatpush3.bf16.msra.mxu0 %v9165_v51 }
 0x7e0   :  { %1638 = vmatprep.subr.bf16.mxu1 %v9167_v54  ;;  %6390 = vmatprep.subr.bf16.mxu0 %v10747_v14 }
 0x7e1   :  { %1668 = vmatprep.mubr.bf16.mxu1 %v10755_v20  ;;  %6404 = vmatprep.mubr.msk.bf16.mxu0 %vm8574_vm0, %v10747_v14 }
 0x7e3   :  { %1639 = vmatpush1.bf16.msra.mxu1 %v9171_v55  ;;  %6391 = vmatpush3.bf16.msra.mxu0 %v9173_v56 }
 0x7e4   :  { %1640 = vmatprep.subr.bf16.mxu1 %v9177_v57  ;;  %6392 = vmatprep.subr.bf16.mxu0 %v10747_v14 }
 0x7e7   :  { %1641 = vmatpush1.bf16.msra.mxu1 %v9184_v58  ;;  %6393 = vmatpush3.bf16.msra.mxu0 %v9186_v59 }
 0x7e8   :  { %1642 = vmatprep.subr.bf16.mxu1 %v9190_v60  ;;  %6394 = vmatprep.subr.bf16.mxu0 %v10747_v14 }
 0x7eb   :  { %1643 = vmatpush1.bf16.msra.mxu1 %v9194_v61  ;;  %6395 = vmatpush3.bf16.msra.mxu0 %v9196_v62 }
 0x7ec   :  { %1644 = vmatprep.subr.bf16.mxu1 %v9200_v63  ;;  %6396 = vmatprep.subr.bf16.mxu0 %v10747_v14 }
 0x7ef   :  { %1645 = vmatpush1.bf16.msra.mxu1 %v9204_v1  ;;  %6397 = vmatpush3.bf16.msra.mxu0 %v9206_v2 }
 0x7f0   :  { %1646 = vmatprep.subr.bf16.mxu1 %v9210_v3  ;;  %6398 = vmatprep.subr.bf16.mxu0 %v10747_v14 }
 0x7f3   :  { %1647 = vmatpush1.bf16.msra.mxu1 %v9214_v4  ;;  %6399 = vmatpush3.bf16.msra.mxu0 %v9216_v5 }
 0x7f4   :  { %1648 = vmatprep.subr.bf16.mxu1 %v9220_v6  ;;  %6400 = vmatprep.subr.bf16.mxu0 %v10747_v14 }
 0x7f7   :  { %1649 = vmatpush1.bf16.msra.mxu1 %v9224_v7  ;;  %6401 = vmatpush3.bf16.msra.mxu0 %v10756_v25 }
 0x7f8   :  { %1650 = vmatprep.subr.bf16.mxu1 %v10757_v44  ;;  %6402 = vmatprep.subr.bf16.mxu0 %v10747_v14 }
 0x7fb   :  { %1651 = vmatpush1.bf16.msra.mxu1 %v10758_v10  ;;  %6403 = vmatpush3.bf16.msra.mxu0 %v10759_v46 }
 0x7fc   :  { %1763 = vmatprep.subr.bf16.mxu1 %v10760_v23  ;;  %6408 = vmatprep.subr.bf16.mxu0 %v10747_v14 }
 0x7fe   :  { %1669 = vmatmul.mubr.bf16.vlgmr.msra.gmra.mrb[16].mxu1 %v1509_v18  ;;  %6405 = vmatmul.mubr.bf16.vlgmr.msra.gmra.mrb[16].mxu0 %v1509_v18  ;;  %v10770_v18 = vld [vmem:[#allocation123_spill] sm:$0xff] }
 0x7ff   :  { %1764 = vmatpush1.bf16.msra.mxu1 %v10761_v19  ;;  %1795 = vmatprep.mubr.bf16.mxu1 %v10755_v20 }
 0x800   :  { %1765 = vmatprep.subr.bf16.mxu1 %v10762_v53  ;;  %6410 = vmatprep.mubr.msk.bf16.mxu0 %vm8574_vm0, %v10747_v14 }
 0x803   :  { %1766 = vmatpush1.bf16.msra.mxu1 %v10763_v21 }
 0x804   :  { %1767 = vmatprep.subr.bf16.mxu1 %v10764_v24 }
 0x807   :  { %1768 = vmatpush1.bf16.msra.mxu1 %v10765_v22 }
 0x808   :  { %1769 = vmatprep.subr.bf16.mxu1 %v10766_v47 }
 0x80b   :  { %1770 = vmatpush1.bf16.msra.mxu1 %v10767_v9 }
 0x80c   :  { %1771 = vmatprep.subr.bf16.mxu1 %v10768_v48 }
 0x80f   :  { %1772 = vmatpush1.bf16.msra.mxu1 %v10769_v13 }
 0x810   :  { %1773 = vmatprep.subr.bf16.mxu1 %v10770_v18 }
 0x813   :  { %1774 = vmatpush1.bf16.msra.mxu1 %v10771_v52 }
 0x814   :  { %1775 = vmatprep.subr.bf16.mxu1 %v10772_v11 }
 0x817   :  { %1776 = vmatpush1.bf16.msra.mxu1 %v10773_v15 }
 0x818   :  { %1777 = vmatprep.subr.bf16.mxu1 %v10774_v49 }
 0x81b   :  { %1778 = vmatpush1.bf16.msra.mxu1 %v10775_v16  ;;  %v10776_v16 = vld [vmem:[#allocation132_spill] sm:$0xff] }
 0x81c   :  { %6414 = vmatprep.subr.bf16.mxu1 %v10747_v14 }
 0x8b1   :  { %v1629_v47 = vpop.f32.mrb[12].mxu0 }
 0x8b2   :  { %v6386_v9 = vpop.f32.mrb[13].mxu0 }
 0x8b3   :  { %v1632_v22 = vpop.f32.mrb[14].mxu0 }
 0x8b4   :  { %v6387_v48 = vpop.f32.mrb[15].mxu0 }
 0x8d1   :  { %v1670_v24 = vpop.f32.mrb[16].mxu1  ;;  %v1713_v13 = vpop.f32.mrb[16].mxu0 }
 0x8d2   :  { %v6891_v18 = vadd.f32 %v9322_v12, %v1670_v24  ;;  %v1672_v21 = vpop.f32.mrb[17].mxu1  ;;  %v6406_v52 = vpop.f32.mrb[17].mxu0 }
 0x8d3   :  { %v1674_v53 = vpop.f32.mrb[18].mxu1  ;;  %v1716_v11 = vpop.f32.mrb[18].mxu0  ;;  %v6893_v46 = vadd.f32 %v10776_v16, %v1672_v21  ;;  %v1714_v21 = vadd.f32 %v1713_v13, %v9333_v27 }
 0x8d4   :  { %v5809_v19 = vmul.f32 -1.442695, %v6891_v18  ;;  %v6895_v15 = vadd.f32 %v9322_v12, %v1674_v53  ;;  %v1676_v49 = vpop.f32.mrb[19].mxu1  ;;  %v6407_v23 = vpop.f32.mrb[19].mxu0 }
 0x8d5   :  { %v6897_v9 = vadd.f32 %v10776_v16, %v1676_v49  ;;  %v5811_v48 = vmul.f32 -1.442695, %v6893_v46  ;;  %v1630_v49 = vadd.f32 %v1629_v47, %v9336_v0  ;;  %v1717_v46 = vadd.f32 %v1716_v11, %v9333_v27 }
 0x8d6   :  { %7393 = vpow2.f32 %v5809_v19  ;;  %v5810_v10 = vmul.f32 -1.442695, %v6895_v15 }
 0x8d7   :  { %v5812_v44 = vmul.f32 -1.442695, %v6897_v9  ;;  %v1633_v9 = vadd.f32 %v1632_v22, %v9336_v0 }
 0x8d8   :  { %7395 = vpow2.f32 %v5810_v10 }
 0x8d9   :  { %7397 = vpow2.f32 %v5811_v48 }
 0x8da   :  { %7399 = vpow2.f32 %v5812_v44 }
 0x8e0   :  { %v7394_v24 = vpop.eup %7393 }
 0x8e1   :  { %v1728_v52 = vadd.f32 1.0, %v7394_v24 }
 0x8e2   :  { %v7396_v25 = vpop.eup %7395 }
 0x8e3   :  { %7401 = vrcp.f32 %v1728_v52  ;;  %v1729_v18 = vadd.f32 1.0, %v7396_v25  ;;  %v7398_v53 = vpop.eup %7397 }
 0x8e4   :  { %v7400_v12 = vpop.eup %7399  ;;  %v1742_v23 = vadd.f32 1.0, %v7398_v53 }
 0x8e5   :  { %7403 = vrcp.f32 %v1729_v18  ;;  %v1743_v19 = vadd.f32 1.0, %v7400_v12 }
 0x8e6   :  { %7405 = vrcp.f32 %v1742_v23 }
 0x8e7   :  { %7407 = vrcp.f32 %v1743_v19  ;;  %v10777_v19 = vld [vmem:[#allocation101_spill] sm:$0xff] }
 0x8ed   :  { %v7402_v15 = vpop.eup %7401 }
 0x8ee   :  { %v1748_v10 = vmul.f32 %v7402_v15, %v1714_v21 }
 0x8ef   :  { %v7404_v44 = vpop.eup %7403 }
 0x8f0   :  { %v1750_v48 = vadd.f32 %v1748_v10, %v1630_v49  ;;  %v1749_v24 = vmul.f32 %v7404_v44, %v1717_v46  ;;  %v7406_v52 = vpop.eup %7405  ;;  %v10778_v10 = vld [vmem:[#allocation102_spill] sm:$0xff]  ;;  %v10783_v44 = vld [vmem:[#allocation107_spill] sm:$0xff] }
 0x8f1   :  { %v7408_v18 = vpop.eup %7407  ;;  %v1754_v13 = vsub.f32 1.0, %v7406_v52  ;;  %v1758_v47 = vmul.f32 %v7406_v52, %v9348_v17  ;;  %v10779_v17 = vld [vmem:[#allocation103_spill] sm:$0xff]  ;;  %v10782_v46 = vld [vmem:[#allocation106_spill] sm:$0xff] }
 0x8f2   :  { %7409 = vtanh.f32 %v1750_v48  ;;  %v1751_v25 = vadd.f32 %v1749_v24, %v1633_v9  ;;  %v1755_v53 = vsub.f32 1.0, %v7408_v18  ;;  %v1759_v11 = vmul.f32 %v7408_v18, %v9350_v8  ;;  %v10780_v8 = vld [vmem:[#allocation104_spill] sm:$0xff] }
 0x8f3   :  { %v10784_v9 = vld [vmem:[#allocation108_spill] sm:$0xff] }
 0x8f4   :  { %7411 = vtanh.f32 %v1751_v25 }
 0x8fc   :  { %v7410_v12 = vpop.eup %7409 }
 0x8fd   :  { %v1756_v16 = vmul.f32 %v7410_v12, %v1754_v13 }
 0x8fe   :  { %v7412_v23 = vpop.eup %7411 }
 0x8ff   :  { %v1757_v21 = vmul.f32 %v7412_v23, %v1755_v53  ;;  %v1760_v15 = vadd.f32 %v1758_v47, %v1756_v16  ;;  %v10781_v16 = vld [vmem:[#allocation105_spill] sm:$0xff] }
 0x901   :  { %v1761_v22 = vadd.f32 %v1759_v11, %v1757_v21 }
 0x903   :  { %v1762_v49 = vpack.c.bf16 %v1761_v22, %v1760_v15 }
 0x905   :  { %1796 = vmatmul.mubr.bf16.vlgmr.msra.gmra.mrb[20].mxu1 %v1762_v49 }
 0x906   :  { %6415 = vmatpush3.bf16.msra.mxu1 %v10777_v19  ;;  %6430 = vmatprep.mubr.msk.bf16.mxu1 %vm8574_vm0, %v10747_v14 }
 0x907   :  { %6416 = vmatprep.subr.bf16.mxu1 %v10747_v14 }
 0x90a   :  { %6417 = vmatpush3.bf16.msra.mxu1 %v10778_v10 }
 0x90b   :  { %6418 = vmatprep.subr.bf16.mxu1 %v10747_v14 }
 0x90e   :  { %6419 = vmatpush3.bf16.msra.mxu1 %v10779_v17 }
 0x90f   :  { %6420 = vmatprep.subr.bf16.mxu1 %v10747_v14 }
 0x912   :  { %6421 = vmatpush3.bf16.msra.mxu1 %v10780_v8 }
 0x913   :  { %6422 = vmatprep.subr.bf16.mxu1 %v10747_v14 }
 0x916   :  { %6423 = vmatpush3.bf16.msra.mxu1 %v10781_v16 }
 0x917   :  { %6424 = vmatprep.subr.bf16.mxu1 %v10747_v14 }
 0x91a   :  { %6425 = vmatpush3.bf16.msra.mxu1 %v10782_v46 }
 0x91b   :  { %6426 = vmatprep.subr.bf16.mxu1 %v10747_v14 }
 0x91e   :  { %6427 = vmatpush3.bf16.msra.mxu1 %v10783_v44  ;;  %v10806_v44 = vld [vmem:[#allocation132_spill] sm:$0xff] }
 0x91f   :  { %6428 = vmatprep.subr.bf16.mxu1 %v10747_v14 }
 0x922   :  { %6429 = vmatpush3.bf16.msra.mxu1 %v10784_v9 }
 0x923   :  { %6434 = vmatprep.subr.bf16.mxu1 %v10747_v14 }
 0x9d8   :  { %v1797_v48 = vpop.f32.mrb[20].mxu1 }
 0x9d9   :  { %v5813_v24 = vmul.f32 -1.442695, %v1797_v48  ;;  %v1799_v25 = vpop.f32.mrb[21].mxu1 }
 0x9da   :  { %v1801_v52 = vpop.f32.mrb[22].mxu1 }
 0x9db   :  { %7413 = vpow2.f32 %v5813_v24  ;;  %v5814_v18 = vmul.f32 -1.442695, %v1801_v52  ;;  %v1803_v13 = vpop.f32.mrb[23].mxu1 }
 0x9dd   :  { %7415 = vpow2.f32 %v5814_v18 }
 0x9e5   :  { %v7414_v12 = vpop.eup %7413 }
 0x9e6   :  { %v1812_v53 = vadd.f32 1.0, %v7414_v12 }
 0x9e7   :  { %v7416_v47 = vpop.eup %7415 }
 0x9e8   :  { %7417 = vrcp.f32 %v1812_v53  ;;  %v1813_v23 = vadd.f32 1.0, %v7416_v47 }
 0x9ea   :  { %7419 = vrcp.f32 %v1813_v23 }
 0x9f2   :  { %v7418_v21 = vpop.eup %7417 }
 0x9f3   :  { %v1818_v11 = vmul.f32 %v7418_v21, %v1797_v48 }
 0x9f4   :  { %v7420_v15 = vpop.eup %7419 }
 0x9f5   :  { %v9456_v22 = vmul.f32 %v1818_v11, %v1799_v25  ;;  %v1819_v49 = vmul.f32 %v7420_v15, %v1801_v52 }
 0x9f7   :  { %v9458_v19 = vmul.f32 %v1819_v49, %v1803_v13 }
 0x9f9   :  { %v1822_v10 = vpack.c.bf16 %v9458_v19, %v9456_v22 }
 0x9fb   :  { %6409 = vmatpush3.bf16.msra.mxu0 %v1822_v10 }
 0x9fc   :  { %1865 = vmatprep.subr.bf16.mxu0 %v9095_v26 }
 0x9fe   :  { %6411 = vmatmul.mubr.msk.bf16.vlgmr.msra.gmra.mrb[20].mxu0 %vm857_vm1, %v9103_v28 }
 0x9ff   :  { %1866 = vmatpush1.bf16.msra.mxu0 %v9106_v29  ;;  %1897 = vmatprep.mubr.bf16.mxu0 %v10755_v20 }
 0xa00   :  { %1867 = vmatprep.subr.bf16.mxu0 %v9109_v30 }
 0xa03   :  { %1868 = vmatpush1.bf16.msra.mxu0 %v9114_v31 }
 0xa04   :  { %1869 = vmatprep.subr.bf16.mxu0 %v9117_v32  ;;  %v10785_v32 = vld [vmem:[#allocation109_spill] sm:$0xff] }
 0xa07   :  { %1870 = vmatpush1.bf16.msra.mxu0 %v9120_v33  ;;  %v10786_v33 = vld [vmem:[#allocation110_spill] sm:$0xff] }
 0xa08   :  { %1871 = vmatprep.subr.bf16.mxu0 %v9123_v34  ;;  %v10787_v34 = vld [vmem:[#allocation111_spill] sm:$0xff] }
 0xa0b   :  { %1872 = vmatpush1.bf16.msra.mxu0 %v9126_v35  ;;  %v10788_v35 = vld [vmem:[#allocation112_spill] sm:$0xff] }
 0xa0c   :  { %1873 = vmatprep.subr.bf16.mxu0 %v9129_v36  ;;  %v10789_v36 = vld [vmem:[#allocation113_spill] sm:$0xff] }
 0xa0f   :  { %1874 = vmatpush1.bf16.msra.mxu0 %v9132_v37  ;;  %v10790_v37 = vld [vmem:[#allocation114_spill] sm:$0xff] }
 0xa10   :  { %1875 = vmatprep.subr.bf16.mxu0 %v9135_v38  ;;  %v10791_v38 = vld [vmem:[#allocation115_spill] sm:$0xff] }
 0xa13   :  { %1876 = vmatpush1.bf16.msra.mxu0 %v9138_v39  ;;  %v10792_v39 = vld [vmem:[#allocation116_spill] sm:$0xff] }
 0xa14   :  { %1877 = vmatprep.subr.bf16.mxu0 %v9141_v40  ;;  %v10793_v40 = vld [vmem:[#allocation117_spill] sm:$0xff] }
 0xa17   :  { %1878 = vmatpush1.bf16.msra.mxu0 %v9144_v41  ;;  %v10794_v41 = vld [vmem:[#allocation118_spill] sm:$0xff] }
 0xa18   :  { %1879 = vmatprep.subr.bf16.mxu0 %v9148_v42  ;;  %v10795_v42 = vld [vmem:[#allocation119_spill] sm:$0xff] }
 0xa1b   :  { %1880 = vmatpush1.bf16.msra.mxu0 %v9150_v43  ;;  %v10796_v43 = vld [vmem:[#allocation120_spill] sm:$0xff] }
 0xa1c   :  { %1949 = vmatprep.subr.bf16.mxu0 %v9157_v45  ;;  %v10797_v45 = vld [vmem:[#allocation121_spill] sm:$0xff] }
 0xad1   :  { %v1857_v26 = vpop.f32.mrb[20].mxu0 }
 0xad2   :  { %v6412_v28 = vpop.f32.mrb[21].mxu0 }
 0xad3   :  { %v1860_v29 = vpop.f32.mrb[22].mxu0 }
 0xad4   :  { %v1864_v30 = vpack.c.bf16 %v1860_v29, %v1857_v26  ;;  %v6413_v31 = vpop.f32.mrb[23].mxu0 }
 0xad6   :  { %1898 = vmatmul.mubr.bf16.vlgmr.msra.gmra.mrb[24].mxu0 %v1864_v30  ;;  %6431 = vmatmul.mubr.bf16.vlgmr.msra.gmra.mrb[24].mxu1 %v1864_v30 }
 0xad7   :  { %1950 = vmatpush1.bf16.msra.mxu0 %v9163_v50  ;;  %6435 = vmatpush3.bf16.msra.mxu1 %v9165_v51  ;;  %v10798_v50 = vld [vmem:[#allocation122_spill] sm:$0xff]  ;;  %v10799_v51 = vld [vmem:[#allocation123_spill] sm:$0xff] }
 0xad8   :  { %1951 = vmatprep.subr.bf16.mxu0 %v9167_v54  ;;  %6436 = vmatprep.subr.bf16.mxu1 %v10747_v14  ;;  %v10800_v54 = vld [vmem:[#allocation124_spill] sm:$0xff] }
 0xad9   :  { %1981 = vmatprep.mubr.bf16.mxu0 %v10755_v20  ;;  %6450 = vmatprep.mubr.msk.bf16.mxu1 %vm8574_vm0, %v10747_v14 }
 0xadb   :  { %1952 = vmatpush1.bf16.msra.mxu0 %v9171_v55  ;;  %6437 = vmatpush3.bf16.msra.mxu1 %v9173_v56  ;;  %v10801_v55 = vld [vmem:[#allocation125_spill] sm:$0xff]  ;;  %v10802_v56 = vld [vmem:[#allocation126_spill] sm:$0xff] }
 0xadc   :  { %1953 = vmatprep.subr.bf16.mxu0 %v9177_v57  ;;  %6438 = vmatprep.subr.bf16.mxu1 %v10747_v14  ;;  %v10803_v57 = vld [vmem:[#allocation127_spill] sm:$0xff] }
 0xadf   :  { %1954 = vmatpush1.bf16.msra.mxu0 %v9184_v58  ;;  %6439 = vmatpush3.bf16.msra.mxu1 %v9186_v59  ;;  %v10804_v58 = vld [vmem:[#allocation128_spill] sm:$0xff] }
 0xae0   :  { %1955 = vmatprep.subr.bf16.mxu0 %v9190_v60  ;;  %6440 = vmatprep.subr.bf16.mxu1 %v10747_v14 }
 0xae3   :  { %1956 = vmatpush1.bf16.msra.mxu0 %v9194_v61  ;;  %6441 = vmatpush3.bf16.msra.mxu1 %v9196_v62 }
 0xae4   :  { %1957 = vmatprep.subr.bf16.mxu0 %v9200_v63  ;;  %6442 = vmatprep.subr.bf16.mxu1 %v10747_v14 }
 0xae7   :  { %1958 = vmatpush1.bf16.msra.mxu0 %v9204_v1  ;;  %6443 = vmatpush3.bf16.msra.mxu1 %v9206_v2  ;;  %v10805_v2 = vld [vmem:[#allocation131_spill] sm:$0xff] }
 0xae8   :  { %1959 = vmatprep.subr.bf16.mxu0 %v9210_v3  ;;  %6444 = vmatprep.subr.bf16.mxu1 %v10747_v14 }
 0xaeb   :  { %1960 = vmatpush1.bf16.msra.mxu0 %v9214_v4  ;;  %6445 = vmatpush3.bf16.msra.mxu1 %v9216_v5 }
 0xaec   :  { %1961 = vmatprep.subr.bf16.mxu0 %v9220_v6  ;;  %6446 = vmatprep.subr.bf16.mxu1 %v10747_v14 }
 0xaef   :  { %1962 = vmatpush1.bf16.msra.mxu0 %v9224_v7  ;;  %6447 = vmatpush3.bf16.msra.mxu1 %v10785_v32 }
 0xaf0   :  { %1963 = vmatprep.subr.bf16.mxu0 %v10786_v33  ;;  %6448 = vmatprep.subr.bf16.mxu1 %v10747_v14 }
 0xaf3   :  { %1964 = vmatpush1.bf16.msra.mxu0 %v10787_v34  ;;  %6449 = vmatpush3.bf16.msra.mxu1 %v10788_v35 }
 0xaf4   :  { %2076 = vmatprep.subr.bf16.mxu0 %v10789_v36  ;;  %6454 = vmatprep.subr.bf16.mxu1 %v10747_v14 }
 0xaf6   :  { %1982 = vmatmul.mubr.bf16.vlgmr.msra.gmra.mrb[24].mxu0 %v1822_v10  ;;  %6451 = vmatmul.mubr.bf16.vlgmr.msra.gmra.mrb[28].mxu1 %v1822_v10 }
 0xaf7   :  { %2077 = vmatpush1.bf16.msra.mxu0 %v10790_v37  ;;  %2108 = vmatprep.mubr.bf16.mxu0 %v10755_v20 }
 0xaf8   :  { %2078 = vmatprep.subr.bf16.mxu0 %v10791_v38  ;;  %6470 = vmatprep.mubr.msk.bf16.mxu1 %vm8574_vm0, %v10747_v14 }
 0xafb   :  { %2079 = vmatpush1.bf16.msra.mxu0 %v10792_v39 }
 0xafc   :  { %2080 = vmatprep.subr.bf16.mxu0 %v10793_v40 }
 0xaff   :  { %2081 = vmatpush1.bf16.msra.mxu0 %v10794_v41 }
 0xb00   :  { %2082 = vmatprep.subr.bf16.mxu0 %v10795_v42 }
 0xb03   :  { %2083 = vmatpush1.bf16.msra.mxu0 %v10796_v43 }
 0xb04   :  { %2084 = vmatprep.subr.bf16.mxu0 %v10797_v45  ;;  %v7133_v45 = vld [vmem:[#allocation25] sm:$0xff]  }
 0xb07   :  { %2085 = vmatpush1.bf16.msra.mxu0 %v10798_v50 }
 0xb08   :  { %2086 = vmatprep.subr.bf16.mxu0 %v10799_v51  ;;  %v7134_v51 = vld [vmem:[#allocation25 + $0x8] sm:$0xff]  }
 0xb0b   :  { %2087 = vmatpush1.bf16.msra.mxu0 %v10800_v54  ;;  %v7135_v54 = vld [vmem:[#allocation25 + $0x10] sm:$0xff]  }
 0xb0c   :  { %2088 = vmatprep.subr.bf16.mxu0 %v10801_v55  ;;  %v7138_v55 = vld [vmem:[#allocation25 + $0x28] sm:$0xff]  }
 0xb0f   :  { %2089 = vmatpush1.bf16.msra.mxu0 %v10802_v56  ;;  %v7139_v56 = vld [vmem:[#allocation25 + $0x30] sm:$0xff]  }
 0xb10   :  { %2090 = vmatprep.subr.bf16.mxu0 %v10803_v57  ;;  %v7140_v57 = vld [vmem:[#allocation25 + $0x38] sm:$0xff]  }
 0xb13   :  { %2091 = vmatpush1.bf16.msra.mxu0 %v10804_v58  ;;  %v2485_v58 = vld [vmem:[#allocation20] sm:$0xf] }
 0xb14   :  { %6474 = vmatprep.subr.bf16.mxu0 %v10747_v14 }
 0xba9   :  { %v1942_v59 = vpop.f32.mrb[24].mxu1 }
 0xbaa   :  { %v6432_v60 = vpop.f32.mrb[25].mxu1  ;;  %v1943_v10 = vadd.f32 %v1942_v59, %v9336_v0  ;;  %v7141_v59 = vld [vmem:[#allocation17] sm:$0xff]  }
 0xbab   :  { %v1945_v61 = vpop.f32.mrb[26].mxu1  ;;  %v7144_v60 = vld [vmem:[#allocation31 + $0x4] ss:$24 sps:$4 sm:$0xff]   ;;  %6455 = vmatpush3.bf16.msra.mxu1 %v7141_v59  ;;  %v9637_v59 = vld [vmem:[#allocation31 + $0xd4] ss:$24 sps:$4 sm:$0xff]  }
 0xbac   :  { %v6433_v62 = vpop.f32.mrb[27].mxu1  ;;  %v1946_v30 = vadd.f32 %v1945_v61, %v9336_v0  ;;  %v7142_v61 = vld [vmem:[#allocation31] ss:$24 sps:$4 sm:$0xff]   ;;  %6456 = vmatprep.subr.bf16.mxu1 %v10747_v14  ;;  %10809 = vst [vmem:[#allocation103_spill] sm:$0xff] %v9637_v59 }
 0xbad   :  { %v7145_v62 = vld [vmem:[#allocation17 + $0x8] sm:$0xff]  }
 0xbaf   :  { %6457 = vmatpush3.bf16.msra.mxu1 %v7145_v62  ;;  %v9647_v62 = vld [vmem:[#allocation31 + $0x38] ss:$24 sps:$4 sm:$0xff]  }
 0xbb0   :  { %6458 = vmatprep.subr.bf16.mxu1 %v10747_v14 }
 0xbc9   :  { %v1983_v63 = vpop.f32.mrb[24].mxu0  ;;  %v2026_v1 = vpop.f32.mrb[28].mxu1 }
 0xbca   :  { %v6899_v3 = vadd.f32 %v10805_v2, %v1983_v63  ;;  %v1985_v4 = vpop.f32.mrb[25].mxu0  ;;  %v6452_v5 = vpop.f32.mrb[29].mxu1  ;;  %v2027_v11 = vadd.f32 %v2026_v1, %v9333_v27  ;;  %v7148_v63 = vld [vmem:[#allocation31 + $0x34] ss:$24 sps:$4 sm:$0xff]   ;;  %v7146_v1 = vld [vmem:[#allocation31 + $0x30] ss:$24 sps:$4 sm:$0xff]  }
 0xbcb   :  { %v1987_v6 = vpop.f32.mrb[26].mxu0  ;;  %v2029_v7 = vpop.f32.mrb[30].mxu1  ;;  %v6901_v9 = vadd.f32 %v10806_v44, %v1985_v4  ;;  %v7150_v4 = vld [vmem:[#allocation31 + $0x60] ss:$24 sps:$4 sm:$0xff]   ;;  %v7153_v5 = vld [vmem:[#allocation17 + $0x18] sm:$0xff]  }
 0xbcc   :  { %v5816_v17 = vmul.f32 -1.442695, %v6899_v3  ;;  %v6903_v8 = vadd.f32 %v10805_v2, %v1987_v6  ;;  %v1989_v16 = vpop.f32.mrb[27].mxu0  ;;  %v6453_v46 = vpop.f32.mrb[31].mxu1  ;;  %v2030_v28 = vadd.f32 %v2029_v7, %v9333_v27  ;;  %v7149_v2 = vld [vmem:[#allocation17 + $0x10] sm:$0xff]  }
 0xbcd   :  { %v6905_v24 = vadd.f32 %v10806_v44, %v1989_v16  ;;  %v5818_v25 = vmul.f32 -1.442695, %v6901_v9  ;;  %v7152_v3 = vld [vmem:[#allocation31 + $0x64] ss:$24 sps:$4 sm:$0xff]   ;;  %6459 = vmatpush3.bf16.msra.mxu1 %v7149_v2  ;;  %v7156_v6 = vld [vmem:[#allocation31 + $0x94] ss:$24 sps:$4 sm:$0xff]  }
 0xbce   :  { %7421 = vpow2.f32 %v5816_v17  ;;  %v5817_v48 = vmul.f32 -1.442695, %v6903_v8  ;;  %6460 = vmatprep.subr.bf16.mxu1 %v10747_v14  ;;  %v7154_v7 = vld [vmem:[#allocation31 + $0x90] ss:$24 sps:$4 sm:$0xff]   ;;  %v9560_v8 = vld [vmem:[#allocation31 + $0xc4] ss:$24 sps:$4 sm:$0xff]  }
 0xbcf   :  { %v5819_v52 = vmul.f32 -1.442695, %v6905_v24  ;;  %v7157_v17 = vld [vmem:[#allocation17 + $0x20] sm:$0xff]   ;;  %v9562_v16 = vld [vmem:[#allocation31 + $0xc0] ss:$24 sps:$4 sm:$0xff]  }
 0xbd0   :  { %7423 = vpow2.f32 %v5817_v48  ;;  %v7161_v46 = vld [vmem:[#allocation17 + $0x28] sm:$0xff]   ;;  %v9567_v44 = vld [vmem:[#allocation31 + $0xf4] ss:$24 sps:$4 sm:$0xff]   ;;  %v9569_v9 = vld [vmem:[#allocation31 + $0xf0] ss:$24 sps:$4 sm:$0xff]  }
 0xbd1   :  { %7425 = vpow2.f32 %v5818_v25  ;;  %6461 = vmatpush3.bf16.msra.mxu1 %v7153_v5  ;;  %v7165_v48 = vld [vmem:[#allocation17 + $0x30] sm:$0xff]   ;;  %v9666_v5 = vld [vmem:[#allocation31 + $0x9c] ss:$24 sps:$4 sm:$0xff]  }
 0xbd2   :  { %7427 = vpow2.f32 %v5819_v52  ;;  %6462 = vmatprep.subr.bf16.mxu1 %v10747_v14  ;;  %v9574_v24 = vld [vmem:[#allocation31 + $0x124] ss:$24 sps:$4 sm:$0xff]   ;;  %v9576_v25 = vld [vmem:[#allocation31 + $0x120] ss:$24 sps:$4 sm:$0xff]   ;;  %v7169_v52 = vld [vmem:[#allocation17 + $0x38] sm:$0xff]  }
 0xbd3   :  { %v9658_v2 = vld [vmem:[#allocation31 + $0x100] ss:$24 sps:$4 sm:$0xff]  }
 0xbd4   :  { %10812 = vst [vmem:[#allocation106_spill] sm:$0xff] %v9658_v2 }
 0xbd5   :  { %6463 = vmatpush3.bf16.msra.mxu1 %v7157_v17  ;;  %v9676_v17 = vld [vmem:[#allocation31 + $0x164] ss:$24 sps:$4 sm:$0xff]  }
 0xbd6   :  { %6464 = vmatprep.subr.bf16.mxu1 %v10747_v14  ;;  %10815 = vst [vmem:[#allocation109_spill] sm:$0xff] %v9676_v17 }
 0xbd8   :  { %v7422_v18 = vpop.eup %7421 }
 0xbd9   :  { %v2041_v13 = vadd.f32 1.0, %v7422_v18  ;;  %6465 = vmatpush3.bf16.msra.mxu1 %v7161_v46  ;;  %v9581_v18 = vld [vmem:[#allocation31 + $0x154] ss:$24 sps:$4 sm:$0xff]  }
 0xbda   :  { %v7424_v12 = vpop.eup %7423  ;;  %6466 = vmatprep.subr.bf16.mxu1 %v10747_v14  ;;  %v9678_v46 = vld [vmem:[#allocation31 + $0xcc] ss:$24 sps:$4 sm:$0xff]  }
 0xbdb   :  { %7429 = vrcp.f32 %v2041_v13  ;;  %v2042_v53 = vadd.f32 1.0, %v7424_v12  ;;  %v7426_v47 = vpop.eup %7425  ;;  %v9583_v13 = vld [vmem:[#allocation31 + $0x150] ss:$24 sps:$4 sm:$0xff]   ;;  %v9588_v12 = vld [vmem:[#allocation31 + $0x14] ss:$24 sps:$4 sm:$0xff]  }
 0xbdc   :  { %v7428_v23 = vpop.eup %7427  ;;  %v2055_v21 = vadd.f32 1.0, %v7426_v47 }
 0xbdd   :  { %7431 = vrcp.f32 %v2042_v53  ;;  %v2056_v15 = vadd.f32 1.0, %v7428_v23  ;;  %6467 = vmatpush3.bf16.msra.mxu1 %v7165_v48  ;;  %v9682_v48 = vld [vmem:[#allocation31 + $0x160] ss:$24 sps:$4 sm:$0xff]  }
 0xbde   :  { %7433 = vrcp.f32 %v2055_v21  ;;  %6468 = vmatprep.subr.bf16.mxu1 %v10747_v14  ;;  %10816 = vst [vmem:[#allocation110_spill] sm:$0xff] %v9682_v48 }
 0xbdf   :  { %7435 = vrcp.f32 %v2056_v15 }
 0xbe1   :  { %6469 = vmatpush3.bf16.msra.mxu1 %v7169_v52  ;;  %v9684_v52 = vld [vmem:[#allocation31 + $0xc8] ss:$24 sps:$4 sm:$0xff]  }
 0xbe2   :  { %6494 = vmatprep.subr.bf16.mxu1 %v10747_v14 }
 0xbe5   :  { %v7430_v49 = vpop.eup %7429 }
 0xbe6   :  { %v2061_v26 = vmul.f32 %v7430_v49, %v2027_v11 }
 0xbe7   :  { %v7432_v29 = vpop.eup %7431 }
 0xbe8   :  { %v2063_v31 = vadd.f32 %v2061_v26, %v1943_v10  ;;  %v2062_v32 = vmul.f32 %v7432_v29, %v2030_v28  ;;  %v7434_v34 = vpop.eup %7433 }
 0xbe9   :  { %v7436_v35 = vpop.eup %7435  ;;  %v2067_v36 = vsub.f32 1.0, %v7434_v34  ;;  %v2071_v40 = vmul.f32 %v7434_v34, %v9456_v22  ;;  %v7136_v22 = vld [vmem:[#allocation25 + $0x18] sm:$0xff]   ;;  %v5832_v34 = vld [vmem:[#allocation26] ss:$0 sm:$0xff] }
 0xbea   :  { %7437 = vtanh.f32 %v2063_v31  ;;  %v2064_v33 = vadd.f32 %v2062_v32, %v1946_v30  ;;  %v2068_v38 = vsub.f32 1.0, %v7436_v35  ;;  %v2072_v27 = vmul.f32 %v7436_v35, %v9458_v19  ;;  %v7137_v19 = vld [vmem:[#allocation25 + $0x20] sm:$0xff]  }
 0xbec   :  { %7439 = vtanh.f32 %v2064_v33 }
 0xbf4   :  { %v7438_v37 = vpop.eup %7437 }
 0xbf5   :  { %v2069_v39 = vmul.f32 %v7438_v37, %v2067_v36 }
 0xbf6   :  { %v7440_v41 = vpop.eup %7439 }
 0xbf7   :  { %v2070_v42 = vmul.f32 %v7440_v41, %v2068_v38  ;;  %v2073_v43 = vadd.f32 %v2071_v40, %v2069_v39 }
 0xbf9   :  { %v2074_v0 = vadd.f32 %v2072_v27, %v2070_v42  ;;  %v9593_v27 = vld [vmem:[#allocation31 + $0x10] ss:$24 sps:$4 sm:$0xff]  }
 0xbfb   :  { %v2075_v50 = vpack.c.bf16 %v2074_v0, %v2073_v43  ;;  %v9601_v0 = vld [vmem:[#allocation31 + $0x44] ss:$24 sps:$4 sm:$0xff]  }
 0xbfd   :  { %2109 = vmatmul.mubr.bf16.vlgmr.msra.gmra.mrb[28].mxu0 %v2075_v50  ;;  %v9607_v50 = vld [vmem:[#allocation31 + $0x40] ss:$24 sps:$4 sm:$0xff]  }
 0xbfe   :  { %6475 = vmatpush3.bf16.msra.mxu0 %v7133_v45  ;;  %6490 = vmatprep.mubr.msk.bf16.mxu0 %vm8574_vm0, %v10747_v14 }
 0xbff   :  { %6476 = vmatprep.subr.bf16.mxu0 %v10747_v14 }
 0xc02   :  { %6477 = vmatpush3.bf16.msra.mxu0 %v7134_v51  ;;  %v9609_v51 = vld [vmem:[#allocation22] sm:$0xf] }
 0xc03   :  { %6478 = vmatprep.subr.bf16.mxu0 %v10747_v14 }
 0xc06   :  { %6479 = vmatpush3.bf16.msra.mxu0 %v7135_v54  ;;  %v9613_v54 = vld [vmem:[#allocation31 + $0x74] ss:$24 sps:$4 sm:$0xff]  }
 0xc07   :  { %6480 = vmatprep.subr.bf16.mxu0 %v10747_v14 }
 0xc0a   :  { %6481 = vmatpush3.bf16.msra.mxu0 %v7136_v22  ;;  %v9615_v22 = vld [vmem:[#allocation31 + $0xc] ss:$24 sps:$4 sm:$0xff]  }
 0xc0b   :  { %6482 = vmatprep.subr.bf16.mxu0 %v10747_v14 }
 0xc0e   :  { %6483 = vmatpush3.bf16.msra.mxu0 %v7137_v19  ;;  %v9621_v19 = vld [vmem:[#allocation31 + $0x70] ss:$24 sps:$4 sm:$0xff]  }
 0xc0f   :  { %6484 = vmatprep.subr.bf16.mxu0 %v10747_v14 }
 0xc12   :  { %6485 = vmatpush3.bf16.msra.mxu0 %v7138_v55  ;;  %v9624_v55 = vld [vmem:[#allocation31 + $0xa4] ss:$24 sps:$4 sm:$0xff]  }
 0xc13   :  { %6486 = vmatprep.subr.bf16.mxu0 %v10747_v14  ;;  %10807 = vst [vmem:[#allocation101_spill] sm:$0xff] %v9624_v55 }
 0xc16   :  { %6487 = vmatpush3.bf16.msra.mxu0 %v7139_v56  ;;  %v9630_v56 = vld [vmem:[#allocation31 + $0xa0] ss:$24 sps:$4 sm:$0xff]  }
 0xc17   :  { %6488 = vmatprep.subr.bf16.mxu0 %v10747_v14  ;;  %10808 = vst [vmem:[#allocation102_spill] sm:$0xff] %v9630_v56 }
 0xc1a   :  { %6489 = vmatpush3.bf16.msra.mxu0 %v7140_v57  ;;  %v9632_v57 = vld [vmem:[#allocation31 + $0x8] ss:$24 sps:$4 sm:$0xff]  }
 0xc1b   :  { %2930 = vmatprep.subr.bf16.mxu0 %v7144_v60  ;;  %v9639_v60 = vld [vmem:[#allocation31 + $0x3c] ss:$24 sps:$4 sm:$0xff]  }
 0xc1d   :  { %6491 = vmatmul.mubr.bf16.vlgmr.msra.gmra.mrb[32].mxu0 %v2485_v58  ;;  %v9634_v58 = vld [vmem:[#allocation23] sm:$0xf] }
 0xc1e   :  { %2962 = vmatprep.mubr.bf16.mxu0 %v10755_v20  ;;  %2931 = vmatpush1.bf16.msra.mxu0 %v7142_v61  ;;  %v9645_v61 = vld [vmem:[#allocation31 + $0xd0] ss:$24 sps:$4 sm:$0xff]  }
 0xc1f   :  { %2932 = vmatprep.subr.bf16.mxu0 %v7148_v63  ;;  %10810 = vst [vmem:[#allocation104_spill] sm:$0xff] %v9645_v61  ;;  %v9651_v63 = vld [vmem:[#allocation31 + $0x104] ss:$24 sps:$4 sm:$0xff]  }
 0xc20   :  { %10811 = vst [vmem:[#allocation105_spill] sm:$0xff] %v9651_v63 }
 0xc22   :  { %2933 = vmatpush1.bf16.msra.mxu0 %v7146_v1  ;;  %v9653_v1 = vld [vmem:[#allocation31 + $0x6c] ss:$24 sps:$4 sm:$0xff]  }
 0xc23   :  { %2934 = vmatprep.subr.bf16.mxu0 %v7152_v3  ;;  %v9660_v3 = vld [vmem:[#allocation31 + $0x68] ss:$24 sps:$4 sm:$0xff]  }
 0xc26   :  { %2935 = vmatpush1.bf16.msra.mxu0 %v7150_v4  ;;  %v9664_v4 = vld [vmem:[#allocation31 + $0x134] ss:$24 sps:$4 sm:$0xff]  }
 0xc27   :  { %2936 = vmatprep.subr.bf16.mxu0 %v7156_v6  ;;  %10813 = vst [vmem:[#allocation107_spill] sm:$0xff] %v9664_v4  ;;  %v9670_v6 = vld [vmem:[#allocation31 + $0x130] ss:$24 sps:$4 sm:$0xff]  }
 0xc28   :  { %10814 = vst [vmem:[#allocation108_spill] sm:$0xff] %v9670_v6 }
 0xc2a   :  { %2937 = vmatpush1.bf16.msra.mxu0 %v7154_v7  ;;  %v9672_v7 = vld [vmem:[#allocation31 + $0x98] ss:$24 sps:$4 sm:$0xff]  }
 0xc2b   :  { %2938 = vmatprep.subr.bf16.mxu0 %v9560_v8 }
 0xc2e   :  { %2939 = vmatpush1.bf16.msra.mxu0 %v9562_v16 }
 0xc2f   :  { %2940 = vmatprep.subr.bf16.mxu0 %v9567_v44 }
 0xc32   :  { %2941 = vmatpush1.bf16.msra.mxu0 %v9569_v9 }
 0xc33   :  { %2942 = vmatprep.subr.bf16.mxu0 %v9574_v24 }
 0xc36   :  { %2943 = vmatpush1.bf16.msra.mxu0 %v9576_v25 }
 0xc37   :  { %2944 = vmatprep.subr.bf16.mxu0 %v9581_v18 }
 0xc3a   :  { %2945 = vmatpush1.bf16.msra.mxu0 %v9583_v13 }
 0xc3b   :  { %3012 = vmatprep.subr.bf16.mxu0 %v9588_v12 }
 0xcd0   :  { %v2110_v53 = vpop.f32.mrb[28].mxu0 }
 0xcd1   :  { %v5820_v47 = vmul.f32 -1.442695, %v2110_v53  ;;  %v2112_v23 = vpop.f32.mrb[29].mxu0 }
 0xcd2   :  { %v2114_v21 = vpop.f32.mrb[30].mxu0 }
 0xcd3   :  { %7441 = vpow2.f32 %v5820_v47  ;;  %v5821_v11 = vmul.f32 -1.442695, %v2114_v21  ;;  %v2116_v15 = vpop.f32.mrb[31].mxu0  ;;  %v9690_v47 = vld [vmem:[#allocation28 + $0x4] ss:$12 sps:$4 sm:$0xff]  }
 0xcd4   :  { %10817 = vst [vmem:[#allocation111_spill] sm:$0xff] %v9690_v47 }
 0xcd5   :  { %7443 = vpow2.f32 %v5821_v11  ;;  %v9699_v11 = vld [vmem:[#allocation31 + $0x12c] ss:$24 sps:$4 sm:$0xff]  }
 0xcdd   :  { %v7442_v49 = vpop.eup %7441 }
 0xcde   :  { %v2125_v10 = vadd.f32 1.0, %v7442_v49  ;;  %v9706_v49 = vld [vmem:[#allocation31 + $0x128] ss:$24 sps:$4 sm:$0xff]  }
 0xcdf   :  { %v7444_v26 = vpop.eup %7443 }
 0xce0   :  { %7445 = vrcp.f32 %v2125_v10  ;;  %v2126_v28 = vadd.f32 1.0, %v7444_v26  ;;  %v9709_v10 = vld [vmem:[#allocation28 + $0x18] ss:$12 sps:$4 sm:$0xff]   ;;  %v9712_v26 = vld [vmem:[#allocation31 + $0x15c] ss:$24 sps:$4 sm:$0xff]  }
 0xce1   :  { %10820 = vst [vmem:[#allocation114_spill] sm:$0xff] %v9709_v10 }
 0xce2   :  { %7447 = vrcp.f32 %v2126_v28  ;;  %v9715_v28 = vld [vmem:[#allocation28 + $0x34] ss:$12 sps:$4 sm:$0xff]  }
 0xce3   :  { %10821 = vst [vmem:[#allocation115_spill] sm:$0xff] %v9715_v28 }
 0xcea   :  { %v7446_v29 = vpop.eup %7445 }
 0xceb   :  { %v2131_v30 = vmul.f32 %v7446_v29, %v2110_v53  ;;  %v9688_v53 = vld [vmem:[#allocation31 + $0xfc] ss:$24 sps:$4 sm:$0xff]   ;;  %v9719_v29 = vld [vmem:[#allocation31 + $0x158] ss:$24 sps:$4 sm:$0xff]  }
 0xcec   :  { %v7448_v31 = vpop.eup %7447 }
 0xced   :  { %v2133_v32 = vmul.f32 %v2131_v30, %v2112_v23  ;;  %v2132_v33 = vmul.f32 %v7448_v31, %v2114_v21  ;;  %v9694_v23 = vld [vmem:[#allocation31 + $0xf8] ss:$24 sps:$4 sm:$0xff]   ;;  %v9696_v21 = vld [vmem:[#allocation28] ss:$12 sps:$4 sm:$0xff]  }
 0xcee   :  { %10818 = vst [vmem:[#allocation112_spill] sm:$0xff] %v9696_v21  ;;  %v9722_v30 = vld [vmem:[#allocation28 + $0x30] ss:$12 sps:$4 sm:$0xff]   ;;  %v9726_v31 = vld [vmem:[#allocation28 + $0x4c] ss:$12 sps:$4 sm:$0xff]  }
 0xcef   :  { %v2134_v35 = vmul.f32 %v2132_v33, %v2116_v15  ;;  %v9702_v15 = vld [vmem:[#allocation28 + $0x1c] ss:$12 sps:$4 sm:$0xff]   ;;  %10822 = vst [vmem:[#allocation116_spill] sm:$0xff] %v9722_v30  ;;  %10823 = vst [vmem:[#allocation117_spill] sm:$0xff] %v9726_v31 }
 0xcf0   :  { %v2591_v36 = vpop.f32.mrb[32].mxu0  ;;  %10819 = vst [vmem:[#allocation113_spill] sm:$0xff] %v9702_v15  ;;  %v9732_v33 = vld [vmem:[#allocation28 + $0x48] ss:$12 sps:$4 sm:$0xff]  }
 0xcf1   :  { %v2135_v37 = vpack.c.bf16 %v2134_v35, %v2133_v32  ;;  %v2592_v38 = vadd.f32 %v5832_v34, %v2591_v36  ;;  %v6492_v39 = vpop.f32.mrb[33].mxu0  ;;  %v9729_v32 = vld [vmem:[#allocation28 + $0x8] ss:$12 sps:$4 sm:$0xff]   ;;  %10824 = vst [vmem:[#allocation118_spill] sm:$0xff] %v9732_v33  ;;  %v9736_v34 = vld [vmem:[#allocation28 + $0x64] ss:$12 sps:$4 sm:$0xff]  }
 0xcf2   :  { %v2594_v40 = vpop.f32.mrb[34].mxu0  ;;  %10825 = vst [vmem:[#allocation119_spill] sm:$0xff] %v9736_v34  ;;  %v9740_v35 = vld [vmem:[#allocation28 + $0x20] ss:$12 sps:$4 sm:$0xff]   ;;  %v9755_v39 = vld [vmem:[#allocation28 + $0x78] ss:$12 sps:$4 sm:$0xff]  }
 0xcf3   :  { %v9591_v41 = vmax.f32 %v2592_v38, 0.0  ;;  %v6493_v42 = vpop.f32.mrb[35].mxu0  ;;  %6471 = vmatmul.mubr.bf16.vlgmr.msra.gmra.mrb[32].mxu1 %v2135_v37  ;;  %v9743_v36 = vld [vmem:[#allocation28 + $0x60] ss:$12 sps:$4 sm:$0xff]   ;;  %v9747_v37 = vld [vmem:[#allocation28 + $0x7c] ss:$12 sps:$4 sm:$0xff]  }
 0xcf4   :  { %6496 = vmatprep.mubr.msk.bf16.mxu1 %vm8574_vm0, %v10747_v14  ;;  %10826 = vst [vmem:[#allocation120_spill] sm:$0xff] %v9743_v36  ;;  %10827 = vst [vmem:[#allocation121_spill] sm:$0xff] %v9747_v37  ;;  %v9752_v38 = vld [vmem:[#allocation28 + $0x38] ss:$12 sps:$4 sm:$0xff]   ;;  %v9760_v40 = vld [vmem:[#allocation28 + $0x50] ss:$12 sps:$4 sm:$0xff]  }
 0xcf5   :  { %v9599_v43 = vpack.c.bf16 %v9591_v41, %v9591_v41  ;;  %10828 = vst [vmem:[#allocation122_spill] sm:$0xff] %v9752_v38  ;;  %10829 = vst [vmem:[#allocation123_spill] sm:$0xff] %v9755_v39  ;;  %v9765_v42 = vld [vmem:[#allocation28 + $0x68] ss:$12 sps:$4 sm:$0xff]  }
 0xcf6   :  { %10830 = vst [vmem:[#allocation124_spill] sm:$0xff] %v9760_v40  ;;  %10831 = vst [vmem:[#allocation125_spill] sm:$0xff] %v9765_v42 }
 0xcf7   :  { %2963 = vmatmul.mubr.bf16.vlgmr.msra.gmra.mrb[36].mxu0 %v9599_v43  ;;  %v2605_v45 = vsel %vm2603_vm2, %v9599_v43, 0 }
 0xcf8   :  { %3013 = vmatpush1.bf16.msra.mxu0 %v9593_v27  ;;  %6495 = vmatpush3.bf16.msra.mxu1 %v2605_v45 }
 0xcf9   :  { %3014 = vmatprep.subr.bf16.mxu0 %v9601_v0  ;;  %6500 = vmatprep.subr.bf16.mxu1 %v10747_v14 }
 0xcfa   :  { %3044 = vmatprep.mubr.bf16.mxu0 %v10755_v20 }
 0xcfb   :  { %6497 = vmatmul.mubr.msk.bf16.vlgmr.msra.gmra.mrb[36].mxu1 %vm2599_vm3, %v9609_v51 }
 0xcfc   :  { %3015 = vmatpush1.bf16.msra.mxu0 %v9607_v50  ;;  %6501 = vmatpush3.bf16.msra.mxu1 %v2605_v45  ;;  %v9774_v45 = vld [vmem:[#allocation28 + $0x94] ss:$12 sps:$4 sm:$0xff]  }
 0xcfd   :  { %3016 = vmatprep.subr.bf16.mxu0 %v9613_v54  ;;  %6502 = vmatprep.mubr.msk.bf16.mxu1 %vm8574_vm0, %v10747_v14  ;;  %10833 = vst [vmem:[#allocation127_spill] sm:$0xff] %v9774_v45 }
 0xcfe   :  { %2971 = vmatprep.subr.bf16.mxu1 %v9615_v22 }
 0xd00   :  { %3017 = vmatpush1.bf16.msra.mxu0 %v9621_v19 }
 0xd01   :  { %3018 = vmatprep.subr.bf16.mxu0 %v9624_v55 }
 0xd03   :  { %6503 = vmatmul.mubr.msk.bf16.vlgmr.msra.gmra.mrb[40].mxu1 %vm2599_vm3, %v9634_v58 }
 0xd04   :  { %3019 = vmatpush1.bf16.msra.mxu0 %v9630_v56  ;;  %2972 = vmatpush1.bf16.msra.mxu1 %v9632_v57 }
 0xd05   :  { %3020 = vmatprep.subr.bf16.mxu0 %v9637_v59  ;;  %2973 = vmatprep.subr.bf16.mxu1 %v9639_v60 }
 0xd06   :  { %3003 = vmatprep.mubr.bf16.mxu1 %v10755_v20 }
 0xd08   :  { %3021 = vmatpush1.bf16.msra.mxu0 %v9645_v61  ;;  %2974 = vmatpush1.bf16.msra.mxu1 %v9647_v62 }
 0xd09   :  { %3022 = vmatprep.subr.bf16.mxu0 %v9651_v63  ;;  %2975 = vmatprep.subr.bf16.mxu1 %v9653_v1 }
 0xd0c   :  { %3023 = vmatpush1.bf16.msra.mxu0 %v9658_v2  ;;  %2976 = vmatpush1.bf16.msra.mxu1 %v9660_v3 }
 0xd0d   :  { %3024 = vmatprep.subr.bf16.mxu0 %v9664_v4  ;;  %2977 = vmatprep.subr.bf16.mxu1 %v9666_v5 }
 0xd10   :  { %3025 = vmatpush1.bf16.msra.mxu0 %v9670_v6  ;;  %2978 = vmatpush1.bf16.msra.mxu1 %v9672_v7 }
 0xd11   :  { %3026 = vmatprep.subr.bf16.mxu0 %v9676_v17  ;;  %2979 = vmatprep.subr.bf16.mxu1 %v9678_v46 }
 0xd14   :  { %3027 = vmatpush1.bf16.msra.mxu0 %v9682_v48  ;;  %2980 = vmatpush1.bf16.msra.mxu1 %v9684_v52 }
 0xd15   :  { %2981 = vmatprep.subr.bf16.mxu1 %v9688_v53  ;;  %3182 = vmatprep.subr.bf16.mxu0 %v9690_v47  ;;  %v9805_v47 = vld [vmem:[#allocation29 + $0x8] ss:$12 sps:$4 sm:$0xff]  }
 0xd16   :  { %10843 = vst [vmem:[#allocation140_spill] sm:$0xff] %v9805_v47 }
 0xd17   :  { %3045 = vmatmul.mubr.bf16.vlgmr.msra.gmra.mrb[40].mxu0 %v9599_v43 }
 0xd18   :  { %2982 = vmatpush1.bf16.msra.mxu1 %v9694_v23  ;;  %3183 = vmatpush1.bf16.msra.mxu0 %v9696_v21 }
 0xd19   :  { %2983 = vmatprep.subr.bf16.mxu1 %v9699_v11  ;;  %3184 = vmatprep.subr.bf16.mxu0 %v9702_v15 }
 0xd1a   :  { %3214 = vmatprep.mubr.bf16.mxu0 %v10755_v20 }
 0xd1c   :  { %2984 = vmatpush1.bf16.msra.mxu1 %v9706_v49  ;;  %3185 = vmatpush1.bf16.msra.mxu0 %v9709_v10 }
 0xd1d   :  { %2985 = vmatprep.subr.bf16.mxu1 %v9712_v26  ;;  %3186 = vmatprep.subr.bf16.mxu0 %v9715_v28 }
 0xd20   :  { %2986 = vmatpush1.bf16.msra.mxu1 %v9719_v29  ;;  %3187 = vmatpush1.bf16.msra.mxu0 %v9722_v30 }
 0xd21   :  { %6506 = vmatprep.subr.bf16.mxu1 %v10747_v14  ;;  %3188 = vmatprep.subr.bf16.mxu0 %v9726_v31  ;;  %v9793_v31 = vld [vmem:[#allocation29 + $0x4] ss:$12 sps:$4 sm:$0xff]  }
 0xd22   :  { %10839 = vst [vmem:[#allocation136_spill] sm:$0xff] %v9793_v31 }
 0xd23   :  { %3004 = vmatmul.mubr.bf16.vlgmr.msra.gmra.mrb[44].mxu1 %v9599_v43  ;;  %v9769_v43 = vld [vmem:[#allocation28 + $0x80] ss:$12 sps:$4 sm:$0xff]  }
 0xd24   :  { %6507 = vmatpush3.bf16.msra.mxu1 %v9729_v32  ;;  %3189 = vmatpush1.bf16.msra.mxu0 %v9732_v33  ;;  %10832 = vst [vmem:[#allocation126_spill] sm:$0xff] %v9769_v43  ;;  %v9787_v33 = vld [vmem:[#allocation28 + $0xb0] ss:$12 sps:$4 sm:$0xff]  }
 0xd25   :  { %6508 = vmatprep.subr.bf16.mxu1 %v10747_v14  ;;  %3190 = vmatprep.subr.bf16.mxu0 %v9736_v34  ;;  %v9785_v34 = vld [vmem:[#allocation28 + $0xac] ss:$12 sps:$4 sm:$0xff]   ;;  %10838 = vst [vmem:[#allocation135_spill] sm:$0xff] %v9787_v33 }
 0xd26   :  { %6522 = vmatprep.mubr.msk.bf16.mxu1 %vm8574_vm0, %v10747_v14  ;;  %10837 = vst [vmem:[#allocation134_spill] sm:$0xff] %v9785_v34 }
 0xd28   :  { %6509 = vmatpush3.bf16.msra.mxu1 %v9740_v35  ;;  %3191 = vmatpush1.bf16.msra.mxu0 %v9743_v36  ;;  %v9783_v36 = vld [vmem:[#allocation28 + $0xa8] ss:$12 sps:$4 sm:$0xff]  }
 0xd29   :  { %6510 = vmatprep.subr.bf16.mxu1 %v10747_v14  ;;  %3192 = vmatprep.subr.bf16.mxu0 %v9747_v37  ;;  %v9778_v37 = vld [vmem:[#allocation28 + $0x98] ss:$12 sps:$4 sm:$0xff]   ;;  %10836 = vst [vmem:[#allocation132_spill] sm:$0xff] %v9783_v36 }
 0xd2a   :  { %10835 = vst [vmem:[#allocation131_spill] sm:$0xff] %v9778_v37 }
 0xd2c   :  { %6511 = vmatpush3.bf16.msra.mxu1 %v9752_v38  ;;  %3193 = vmatpush1.bf16.msra.mxu0 %v9755_v39  ;;  %v9776_v39 = vld [vmem:[#allocation28 + $0x90] ss:$12 sps:$4 sm:$0xff]  }
 0xd2d   :  { %6512 = vmatprep.subr.bf16.mxu1 %v10747_v14  ;;  %10834 = vst [vmem:[#allocation128_spill] sm:$0xff] %v9776_v39  ;;  %3194 = vmatprep.subr.bf16.mxu0 %v9774_v45 }
 0xd30   :  { %6513 = vmatpush3.bf16.msra.mxu1 %v9760_v40  ;;  %3195 = vmatpush1.bf16.msra.mxu0 %v9776_v39  ;;  %v5822_v39 = vld [vmem:[#allocation19] ss:$0 sm:$0xff] }
 0xd31   :  { %6514 = vmatprep.subr.bf16.mxu1 %v10747_v14  ;;  %3196 = vmatprep.subr.bf16.mxu0 %v9785_v34 }
 0xd34   :  { %6515 = vmatpush3.bf16.msra.mxu1 %v9765_v42  ;;  %3197 = vmatpush1.bf16.msra.mxu0 %v9783_v36 }
 0xd35   :  { %6516 = vmatprep.subr.bf16.mxu1 %v10747_v14  ;;  %6526 = vmatprep.subr.bf16.mxu0 %v10747_v14 }
 0xd38   :  { %6517 = vmatpush3.bf16.msra.mxu1 %v9769_v43 }
 0xd39   :  { %6518 = vmatprep.subr.bf16.mxu1 %v10747_v14 }
 0xd3c   :  { %6519 = vmatpush3.bf16.msra.mxu1 %v9778_v37 }
 0xd3d   :  { %6520 = vmatprep.subr.bf16.mxu1 %v10747_v14 }
 0xd40   :  { %6521 = vmatpush3.bf16.msra.mxu1 %v9787_v33  ;;  %v9803_v33 = vld [vmem:[#allocation29] ss:$12 sps:$4 sm:$0xff]  }
 0xd41   :  { %3392 = vmatprep.subr.bf16.mxu1 %v9793_v31  ;;  %10842 = vst [vmem:[#allocation139_spill] sm:$0xff] %v9803_v33  ;;  %v9807_v31 = vld [vmem:[#allocation29 + $0x1c] ss:$12 sps:$4 sm:$0xff]  }
 0xd42   :  { %10844 = vst [vmem:[#allocation141_spill] sm:$0xff] %v9807_v31 }
 0xdc6   :  { %v2241_v45 = vpop.f32.mrb[32].mxu1 }
 0xdc7   :  { %v6472_v30 = vpop.f32.mrb[33].mxu1  ;;  %v9797_v10 = vadd.f32 %v5822_v39, %v2241_v45 }
 0xdc8   :  { %v2244_v28 = vpop.f32.mrb[34].mxu1 }
 0xdc9   :  { %10840 = vst [vmem:[#allocation137_spill] sm:$0xff] %v9797_v10  ;;  %v9799_v15 = vadd.f32 %v5822_v39, %v2244_v28  ;;  %v6473_v21 = vpop.f32.mrb[35].mxu1  ;;  %v9813_v28 = vld [vmem:[#allocation29 + $0x20] ss:$12 sps:$4 sm:$0xff]   ;;  %v9834_v10 = vld [vmem:[#allocation29 + $0x48] ss:$12 sps:$4 sm:$0xff]  }
 0xdca   :  { %v9811_v21 = vld [vmem:[#allocation29 + $0x18] ss:$12 sps:$4 sm:$0xff]   ;;  %10846 = vst [vmem:[#allocation143_spill] sm:$0xff] %v9813_v28  ;;  %10851 = vst [vmem:[#allocation148_spill] sm:$0xff] %v9834_v10 }
 0xdcb   :  { %10841 = vst [vmem:[#allocation138_spill] sm:$0xff] %v9799_v15  ;;  %10845 = vst [vmem:[#allocation142_spill] sm:$0xff] %v9811_v21  ;;  %v9830_v39 = vld [vmem:[#allocation29 + $0x4c] ss:$12 sps:$4 sm:$0xff]   ;;  %v9836_v15 = vld [vmem:[#allocation29 + $0x50] ss:$12 sps:$4 sm:$0xff]  }
 0xdcc   :  { %10850 = vst [vmem:[#allocation147_spill] sm:$0xff] %v9830_v39  ;;  %10852 = vst [vmem:[#allocation149_spill] sm:$0xff] %v9836_v15 }
 0xdce   :  { %v2641_v34 = vpop.f32.mrb[36].mxu1 }
 0xdcf   :  { %v3053_v48 = vpack.c.bf16 %v2641_v34, %v2641_v34  ;;  %v6498_v37 = vpop.f32.mrb[37].mxu1  ;;  %v9817_v34 = vld [vmem:[#allocation29 + $0x34] ss:$12 sps:$4 sm:$0xff]  }
 0xdd0   :  { %v2644_v17 = vpop.f32.mrb[38].mxu1  ;;  %10847 = vst [vmem:[#allocation144_spill] sm:$0xff] %v9817_v34 }
 0xdd1   :  { %v6499_v30 = vpop.f32.mrb[39].mxu1  ;;  %3215 = vmatmul.mubr.bf16.vlgmr.msra.gmra.mrb[36].mxu0 %v3053_v48  ;;  %6523 = vmatmul.mubr.bf16.vlgmr.msra.gmra.mrb[48].mxu1 %v3053_v48  ;;  %v9824_v17 = vld [vmem:[#allocation29 + $0x30] ss:$12 sps:$4 sm:$0xff]   ;;  %v9826_v48 = vld [vmem:[#allocation29 + $0x38] ss:$12 sps:$4 sm:$0xff]  }
 0xdd2   :  { %3393 = vmatpush1.bf16.msra.mxu1 %v9803_v33  ;;  %6527 = vmatpush3.bf16.msra.mxu0 %v9805_v47  ;;  %10848 = vst [vmem:[#allocation145_spill] sm:$0xff] %v9824_v17  ;;  %10849 = vst [vmem:[#allocation146_spill] sm:$0xff] %v9826_v48 }
 0xdd3   :  { %3394 = vmatprep.subr.bf16.mxu1 %v9807_v31  ;;  %6528 = vmatprep.subr.bf16.mxu0 %v10747_v14  ;;  %v10883_v31 = vld [vmem:[#allocation130_spill] sm:$0xff] }
 0xdd4   :  { %3424 = vmatprep.mubr.bf16.mxu1 %v10755_v20  ;;  %6542 = vmatprep.mubr.msk.bf16.mxu0 %vm8574_vm0, %v10747_v14 }
 0xdd6   :  { %3395 = vmatpush1.bf16.msra.mxu1 %v9811_v21  ;;  %6529 = vmatpush3.bf16.msra.mxu0 %v9813_v28  ;;  %v2684_v37 = vpop.f32.mrb[40].mxu1 }
 0xdd7   :  { %3396 = vmatprep.subr.bf16.mxu1 %v9817_v34  ;;  %6530 = vmatprep.subr.bf16.mxu0 %v10747_v14  ;;  %v6504_v45 = vpop.f32.mrb[41].mxu1  ;;  %v9840_v34 = vld [vmem:[#allocation29 + $0x64] ss:$12 sps:$4 sm:$0xff]  }
 0xdd8   :  { %v2687_v30 = vpop.f32.mrb[42].mxu1  ;;  %10853 = vst [vmem:[#allocation150_spill] sm:$0xff] %v9840_v34  ;;  %v9844_v45 = vld [vmem:[#allocation29 + $0x60] ss:$12 sps:$4 sm:$0xff]  }
 0xdd9   :  { %v6505_v36 = vpop.f32.mrb[43].mxu1  ;;  %10854 = vst [vmem:[#allocation151_spill] sm:$0xff] %v9844_v45  ;;  %v9850_v30 = vld [vmem:[#allocation29 + $0x7c] ss:$12 sps:$4 sm:$0xff]  }
 0xdda   :  { %3397 = vmatpush1.bf16.msra.mxu1 %v9824_v17  ;;  %6531 = vmatpush3.bf16.msra.mxu0 %v9826_v48  ;;  %v9846_v36 = vld [vmem:[#allocation29 + $0x68] ss:$12 sps:$4 sm:$0xff]   ;;  %10856 = vst [vmem:[#allocation153_spill] sm:$0xff] %v9850_v30  ;;  %v9856_v48 = vld [vmem:[#allocation29 + $0x80] ss:$12 sps:$4 sm:$0xff]   ;;  %v3263_v17 = vpack.c.bf16 %v2684_v37, %v2684_v37 }
 0xddb   :  { %3398 = vmatprep.subr.bf16.mxu1 %v9830_v39  ;;  %6532 = vmatprep.subr.bf16.mxu0 %v10747_v14  ;;  %10855 = vst [vmem:[#allocation152_spill] sm:$0xff] %v9846_v36  ;;  %v9854_v39 = vld [vmem:[#allocation29 + $0x78] ss:$12 sps:$4 sm:$0xff]   ;;  %10858 = vst [vmem:[#allocation155_spill] sm:$0xff] %v9856_v48 }
 0xddc   :  { %10857 = vst [vmem:[#allocation154_spill] sm:$0xff] %v9854_v39 }
 0xdde   :  { %3399 = vmatpush1.bf16.msra.mxu1 %v9834_v10  ;;  %6533 = vmatpush3.bf16.msra.mxu0 %v9836_v15  ;;  %v9860_v15 = vld [vmem:[#allocation29 + $0x94] ss:$12 sps:$4 sm:$0xff]   ;;  %v9866_v10 = vld [vmem:[#allocation29 + $0x98] ss:$12 sps:$4 sm:$0xff]  }
 0xddf   :  { %3400 = vmatprep.subr.bf16.mxu1 %v9840_v34  ;;  %6534 = vmatprep.subr.bf16.mxu0 %v10747_v14  ;;  %10859 = vst [vmem:[#allocation156_spill] sm:$0xff] %v9860_v15  ;;  %v9864_v34 = vld [vmem:[#allocation29 + $0x90] ss:$12 sps:$4 sm:$0xff]   ;;  %10861 = vst [vmem:[#allocation158_spill] sm:$0xff] %v9866_v10 }
 0xde0   :  { %10860 = vst [vmem:[#allocation157_spill] sm:$0xff] %v9864_v34 }
 0xde2   :  { %3401 = vmatpush1.bf16.msra.mxu1 %v9844_v45  ;;  %6535 = vmatpush3.bf16.msra.mxu0 %v9846_v36  ;;  %v9870_v36 = vld [vmem:[#allocation29 + $0xac] ss:$12 sps:$4 sm:$0xff]  }
 0xde3   :  { %3402 = vmatprep.subr.bf16.mxu1 %v9850_v30  ;;  %6536 = vmatprep.subr.bf16.mxu0 %v10747_v14  ;;  %10862 = vst [vmem:[#allocation159_spill] sm:$0xff] %v9870_v36  ;;  %v9876_v30 = vld [vmem:[#allocation29 + $0xa8] ss:$12 sps:$4 sm:$0xff]  }
 0xde4   :  { %10863 = vst [vmem:[#allocation160_spill] sm:$0xff] %v9876_v30 }
 0xde6   :  { %3403 = vmatpush1.bf16.msra.mxu1 %v9854_v39  ;;  %6537 = vmatpush3.bf16.msra.mxu0 %v9856_v48  ;;  %v9878_v39 = vld [vmem:[#allocation29 + $0xb0] ss:$12 sps:$4 sm:$0xff]  }
 0xde7   :  { %3404 = vmatprep.subr.bf16.mxu1 %v9860_v15  ;;  %6538 = vmatprep.subr.bf16.mxu0 %v10747_v14  ;;  %10864 = vst [vmem:[#allocation161_spill] sm:$0xff] %v9878_v39 }
 0xdea   :  { %v9872_v45 = vpop.f32.mrb[40].mxu0  ;;  %3405 = vmatpush1.bf16.msra.mxu1 %v9864_v34  ;;  %6539 = vmatpush3.bf16.msra.mxu0 %v9866_v10  ;;  %v10882_v10 = vld [vmem:[#allocation129_spill] sm:$0xff] }
 0xdeb   :  { %v9880_v48 = vpop.f32.mrb[41].mxu0  ;;  %3406 = vmatprep.subr.bf16.mxu1 %v9870_v36  ;;  %6540 = vmatprep.subr.bf16.mxu0 %v10747_v14  ;;  %v9907_v36 = vld [vmem:[%s10865_s5 + $0x10] sm:$0xff]  }
 0xdec   :  { %v3050_v15 = vpop.f32.mrb[42].mxu0  ;;  %10868 = vst [vmem:[#allocation164_spill] sm:$0xff] %v9907_v36 }
 0xded   :  { %v3051_v28 = vpop.f32.mrb[43].mxu0 }
 0xdee   :  { %3407 = vmatpush1.bf16.msra.mxu1 %v9876_v30  ;;  %6541 = vmatpush3.bf16.msra.mxu0 %v9878_v39  ;;  %v9897_v30 = vld [vmem:[%s10865_s5] sm:$0xff]  }
 0xdef   :  { %6566 = vmatprep.subr.bf16.mxu0 %v10747_v14  ;;  %6546 = vmatprep.subr.bf16.mxu1 %v10747_v14  ;;  %10866 = vst [vmem:[#allocation162_spill] sm:$0xff] %v9897_v30 }
 0xdf1   :  { %3425 = vmatmul.mubr.bf16.vlgmr.msra.gmra.mrb[52].mxu1 %v3263_v17  ;;  %6543 = vmatmul.mubr.bf16.vlgmr.msra.gmra.mrb[44].mxu0 %v3263_v17  ;;  %v9902_v17 = vld [vmem:[%s10865_s5 + $0x8] sm:$0xff]  }
 0xdf2   :  { %6582 = vmatprep.mubr.msk.bf16.mxu0 %vm8574_vm0, %v10747_v14  ;;  %6562 = vmatprep.mubr.msk.bf16.mxu1 %vm8574_vm0, %v10747_v14  ;;  %10867 = vst [vmem:[#allocation163_spill] sm:$0xff] %v9902_v17 }
 0xdf3   :  { %6567 = vmatpush3.bf16.msra.mxu0 %v9897_v30  ;;  %v9955_v30 = vld [vmem:[#allocation38 + $0x28] sm:$0xff]  }
 0xdf4   :  { %6568 = vmatprep.subr.bf16.mxu0 %v10747_v14  ;;  %10879 = vst [vmem:[#allocation175_spill] sm:$0xff] %v9955_v30 }
 0xdf6   :  { %v9892_v15 = vpop.f32.mrb[44].mxu1 }
 0xdf7   :  { %v9894_v28 = vpop.f32.mrb[45].mxu1  ;;  %6569 = vmatpush3.bf16.msra.mxu0 %v9902_v17  ;;  %v9922_v17 = vld [vmem:[%s10865_s5 + $0x28] sm:$0xff]  }
 0xdf8   :  { %v3009_v37 = vpop.f32.mrb[46].mxu1  ;;  %6570 = vmatprep.subr.bf16.mxu0 %v10747_v14  ;;  %10871 = vst [vmem:[#allocation167_spill] sm:$0xff] %v9922_v17 }
 0xdf9   :  { %v3010_v39 = vpop.f32.mrb[47].mxu1  ;;  %v9917_v37 = vld [vmem:[%s10865_s5 + $0x20] sm:$0xff]  }
 0xdfa   :  { %v9912_v39 = vld [vmem:[%s10865_s5 + $0x18] sm:$0xff]   ;;  %10870 = vst [vmem:[#allocation166_spill] sm:$0xff] %v9917_v37 }
 0xdfb   :  { %6571 = vmatpush3.bf16.msra.mxu0 %v9907_v36  ;;  %10869 = vst [vmem:[#allocation165_spill] sm:$0xff] %v9912_v39  ;;  %v9927_v36 = vld [vmem:[%s10865_s5 + $0x30] sm:$0xff]  }
 0xdfc   :  { %6572 = vmatprep.subr.bf16.mxu0 %v10747_v14  ;;  %10872 = vst [vmem:[#allocation168_spill] sm:$0xff] %v9927_v36 }
 0xdff   :  { %6573 = vmatpush3.bf16.msra.mxu0 %v9912_v39  ;;  %v9932_v39 = vld [vmem:[%s10865_s5 + $0x38] sm:$0xff]  }
 0xe00   :  { %6574 = vmatprep.subr.bf16.mxu0 %v10747_v14  ;;  %10873 = vst [vmem:[#allocation169_spill] sm:$0xff] %v9932_v39 }
 0xe03   :  { %6575 = vmatpush3.bf16.msra.mxu0 %v9917_v37  ;;  %v9936_v37 = vld [vmem:[#allocation38] sm:$0xff]  }
 0xe04   :  { %6576 = vmatprep.subr.bf16.mxu0 %v10747_v14  ;;  %10874 = vst [vmem:[#allocation170_spill] sm:$0xff] %v9936_v37  ;;  %6547 = vmatpush3.bf16.msra.mxu1 %v9936_v37  ;;  %v9952_v37 = vld [vmem:[#allocation38 + $0x20] sm:$0xff]  }
 0xe05   :  { %6548 = vmatprep.subr.bf16.mxu1 %v10747_v14  ;;  %10878 = vst [vmem:[#allocation174_spill] sm:$0xff] %v9952_v37 }
 0xe07   :  { %6577 = vmatpush3.bf16.msra.mxu0 %v9922_v17  ;;  %v9940_v17 = vld [vmem:[#allocation38 + $0x8] sm:$0xff]  }
 0xe08   :  { %6578 = vmatprep.subr.bf16.mxu0 %v10747_v14  ;;  %10875 = vst [vmem:[#allocation171_spill] sm:$0xff] %v9940_v17  ;;  %6549 = vmatpush3.bf16.msra.mxu1 %v9940_v17  ;;  %v9959_v17 = vld [vmem:[#allocation38 + $0x30] sm:$0xff]  }
 0xe09   :  { %6550 = vmatprep.subr.bf16.mxu1 %v10747_v14  ;;  %10880 = vst [vmem:[#allocation176_spill] sm:$0xff] %v9959_v17 }
 0xe0b   :  { %6579 = vmatpush3.bf16.msra.mxu0 %v9927_v36  ;;  %v9944_v36 = vld [vmem:[#allocation38 + $0x10] sm:$0xff]  }
 0xe0c   :  { %6580 = vmatprep.subr.bf16.mxu0 %v10747_v14  ;;  %10876 = vst [vmem:[#allocation172_spill] sm:$0xff] %v9944_v36  ;;  %6551 = vmatpush3.bf16.msra.mxu1 %v9944_v36  ;;  %v9963_v36 = vld [vmem:[#allocation38 + $0x38] sm:$0xff]  }
 0xe0d   :  { %6552 = vmatprep.subr.bf16.mxu1 %v10747_v14  ;;  %10881 = vst [vmem:[#allocation177_spill] sm:$0xff] %v9963_v36 }
 0xe0f   :  { %6581 = vmatpush3.bf16.msra.mxu0 %v9932_v39  ;;  %v9948_v39 = vld [vmem:[#allocation38 + $0x18] sm:$0xff]  }
 0xe10   :  { %6586 = vmatprep.subr.bf16.mxu0 %v10747_v14  ;;  %10877 = vst [vmem:[#allocation173_spill] sm:$0xff] %v9948_v39  ;;  %6553 = vmatpush3.bf16.msra.mxu1 %v9948_v39  ;;  %v2410_v39 = vld [vmem:[#allocation32] sm:$0x7] }
 0xe11   :  { %6554 = vmatprep.subr.bf16.mxu1 %v10747_v14  ;;  %v2415_v34 = vrot.slane %v2410_v39, %v10882_v10 }
 0xe14   :  { %6555 = vmatpush3.bf16.msra.mxu1 %v9952_v37  ;;  %v2427_v37 = vld [vmem:[#allocation34] sm:$0x7] }
 0xe15   :  { %6556 = vmatprep.subr.bf16.mxu1 %v10747_v14  ;;  %v2432_v21 = vrot.slane %v2427_v37, %v10882_v10  ;;  %v2436_v47 = vrot.slane %v2427_v37, %v10883_v31 }
 0xe17   :  { %v9971_v33 = vadd.f32 %v2432_v21, %v2415_v34 }
 0xe18   :  { %6557 = vmatpush3.bf16.msra.mxu1 %v9955_v30  ;;  %v2419_v30 = vrot.slane %v2410_v39, %v10883_v31 }
 0xe19   :  { %6558 = vmatprep.subr.bf16.mxu1 %v10747_v14  ;;  %10884 = vst [vmem:[#allocation130_spill] sm:$0xff] %v9971_v33 }
 0xe1a   :  { %v9973_v43 = vadd.f32 %v2436_v47, %v2419_v30  ;;  %v10886_v47 = vld [vmem:[#allocation133_spill] sm:$0xff] }
 0xe1b   :  { %v9978_v30 = vrot.slane %v2427_v37, %v10886_v47 }
 0xe1c   :  { %6559 = vmatpush3.bf16.msra.mxu1 %v9959_v17  ;;  %10885 = vst [vmem:[#allocation178_spill] sm:$0xff] %v9973_v43 }
 0xe1d   :  { %6560 = vmatprep.subr.bf16.mxu1 %v10747_v14  ;;  %10887 = vst [vmem:[#allocation133_spill] sm:$0xff] %v9978_v30 }
 0xe20   :  { %6561 = vmatpush3.bf16.msra.mxu1 %v9963_v36 }
 0xea4   :  { %v3216_v6 = vpop.f32.mrb[36].mxu0  ;;  %v3257_v17 = vpop.f32.mrb[48].mxu1 }
 0xea5   :  { %v6907_v4 = vadd.f32 %v9971_v33, %v3216_v6  ;;  %v3218_v2 = vpop.f32.mrb[37].mxu0  ;;  %v6524_v36 = vpop.f32.mrb[49].mxu1  ;;  %v9981_v6 = vrot.slane %v2410_v39, %v10886_v47 }
 0xea6   :  { %v3220_v42 = vpop.f32.mrb[38].mxu0  ;;  %v3260_v63 = vpop.f32.mrb[50].mxu1  ;;  %v6909_v56 = vadd.f32 %v9973_v43, %v3218_v2 }
 0xea7   :  { %v5939_v61 = vmul.f32 -1.442695, %v6907_v4  ;;  %v3221_v40 = vpop.f32.mrb[39].mxu0  ;;  %v6525_v59 = vpop.f32.mrb[51].mxu1  ;;  %10888 = vst [vmem:[#allocation179_spill] sm:$0xff] %v9981_v6 }
 0xea8   :  { %v5940_v38 = vmul.f32 -1.442695, %v6909_v56  ;;  %v2444_v63 = vld [vmem:[#allocation35] sm:$0x7]  ;;  %v2461_v4 = vld [vmem:[#allocation37] sm:$0x7]  ;;  %v3475_v59 = vadd.f32 %v9892_v15, %v9978_v30 }
 0xea9   :  { %7449 = vpow2.f32 %v5939_v61  ;;  %v9986_v56 = vrot.slane %v2461_v4, %v10882_v10  ;;  %v3258_v61 = vadd.f32 %v3257_v17, %v9981_v6  ;;  %v9990_v40 = vrot.slane %v2444_v63, %v10882_v10 }
 0xeaa   :  { %7451 = vpow2.f32 %v5940_v38  ;;  %v9993_v36 = vrot.slane %v2461_v4, %v10883_v31 }
 0xeab   :  { %10889 = vst [vmem:[#allocation180_spill] sm:$0xff] %v9986_v56  ;;  %10890 = vst [vmem:[#allocation181_spill] sm:$0xff] %v9990_v40 }
 0xeac   :  { %10891 = vst [vmem:[#allocation182_spill] sm:$0xff] %v9993_v36 }
 0xeb3   :  { %v7450_v21 = vpop.eup %7449 }
 0xeb4   :  { %v3480_v34 = vadd.f32 1.0, %v7450_v21  ;;  %v7452_v55 = vpop.eup %7451  ;;  %v3497_v21 = vadd.f32 %v9894_v28, %v9986_v56 }
 0xeb5   :  { %v3487_v42 = vadd.f32 1.0, %v7452_v55  ;;  %v9996_v55 = vrot.slane %v2444_v63, %v10883_v31 }
 0xeb6   :  { %7453 = vrcp.f32 %v3480_v34 }
 0xeb7   :  { %7455 = vrcp.f32 %v3487_v42 }
 0xec0   :  { %v7454_v2 = vpop.eup %7453 }
 0xec1   :  { %v3490_v38 = vmul.f32 %v7454_v2, %v3475_v59  ;;  %v3498_v59 = vadd.f32 %v9872_v45, %v9993_v36  ;;  %v7456_v33 = vpop.eup %7455 }
 0xec3   :  { %v3491_v39 = vadd.f32 %v3490_v38, %v3258_v61 }
 0xec4   :  { %v3426_v37 = vpop.f32.mrb[52].mxu1  ;;  %v3467_v15 = vpop.f32.mrb[44].mxu0 }
 0xec5   :  { %7457 = vtanh.f32 %v3491_v39  ;;  %v3427_v17 = vadd.f32 %v3426_v37, %v9990_v40  ;;  %v3428_v34 = vpop.f32.mrb[53].mxu1  ;;  %v6544_v42 = vpop.f32.mrb[45].mxu0  ;;  %v3493_v39 = vsub.f32 1.0, %v7456_v33 }
 0xec6   :  { %v3429_v2 = vadd.f32 %v3428_v34, %v9996_v55  ;;  %v3430_v10 = vpop.f32.mrb[54].mxu1  ;;  %v3470_v6 = vpop.f32.mrb[46].mxu0  ;;  %v3495_v42 = vmul.f32 %v7456_v33, %v9591_v41 }
 0xec7   :  { %v3500_v31 = vadd.f32 %v3497_v21, %v3427_v17  ;;  %v3431_v30 = vpop.f32.mrb[55].mxu1  ;;  %v6545_v61 = vpop.f32.mrb[47].mxu0 }
 0xec8   :  { %v3507_v38 = vadd.f32 %v3498_v59, %v3429_v2  ;;  %v10008_v30 = vrot.slane %v2461_v4, %v10886_v47 }
 0xec9   :  { %v5941_v43 = vmul.f32 -1.442695, %v3500_v31 }
 0xeca   :  { %v5942_v28 = vmul.f32 -1.442695, %v3507_v38  ;;  %v3499_v33 = vadd.f32 %v9880_v48, %v10008_v30  ;;  %v10020_v48 = vld [vmem:[#allocation41 + $0x4] ss:$8 sps:$4 sm:$0xff]   ;;  %v10026_v38 = vld [vmem:[#allocation41 + $0x10] ss:$8 sps:$4 sm:$0xff]  }
 0xecb   :  { %7459 = vpow2.f32 %v5941_v43  ;;  %v10011_v43 = vrot.slane %v2444_v63, %v10886_v47  ;;  %v10018_v63 = vld [vmem:[#allocation41] ss:$8 sps:$4 sm:$0xff]   ;;  %3781 = vmatprep.subr.bf16.mxu1 %v10020_v48 }
 0xecc   :  { %7461 = vpow2.f32 %v5942_v28  ;;  %v10032_v28 = vld [vmem:[#allocation41 + $0x20] ss:$8 sps:$4 sm:$0xff]  }
 0xecf   :  { %v7458_v56 = vpop.eup %7457 }
 0xed0   :  { %v3494_v37 = vmul.f32 %v7458_v56, %v3493_v39  ;;  %v10035_v39 = vld [vmem:[#allocation41 + $0x34] ss:$8 sps:$4 sm:$0xff]  }
 0xed2   :  { %v3496_v40 = vadd.f32 %v3495_v42, %v3494_v37  ;;  %v10038_v37 = vld [vmem:[#allocation41 + $0x30] ss:$8 sps:$4 sm:$0xff]   ;;  %v10041_v42 = vld [vmem:[#allocation41 + $0x44] ss:$8 sps:$4 sm:$0xff]  }
 0xed4   :  { %v3521_v45 = vpack.c.bf16 %v3496_v40, %v3496_v40  ;;  %v3468_v40 = vadd.f32 %v3467_v15, %v10011_v43  ;;  %v10022_v15 = vld [vmem:[#allocation41 + $0x14] ss:$8 sps:$4 sm:$0xff]  }
 0xed5   :  { %v7460_v36 = vpop.eup %7459 }
 0xed6   :  { %v3504_v34 = vadd.f32 1.0, %v7460_v36  ;;  %6583 = vmatmul.mubr.bf16.vlgmr.msra.gmra.mrb[48].mxu0 %v3521_v45  ;;  %v7462_v10 = vpop.eup %7461  ;;  %v10044_v45 = vld [vmem:[#allocation41 + $0x40] ss:$8 sps:$4 sm:$0xff]  }
 0xed7   :  { %6588 = vmatprep.mubr.msk.bf16.mxu0 %vm8574_vm0, %v10747_v14  ;;  %v3511_v6 = vadd.f32 1.0, %v7462_v10  ;;  %10892 = vst [vmem:[#allocation183_spill] sm:$0xff] %v10044_v45  ;;  %v10050_v10 = vld [vmem:[#allocation41 + $0x50] ss:$8 sps:$4 sm:$0xff]  }
 0xed8   :  { %7463 = vrcp.f32 %v3504_v34  ;;  %v10047_v34 = vld [vmem:[#allocation41 + $0x54] ss:$8 sps:$4 sm:$0xff]   ;;  %10894 = vst [vmem:[#allocation185_spill] sm:$0xff] %v10050_v10 }
 0xed9   :  { %7465 = vrcp.f32 %v3511_v6  ;;  %10893 = vst [vmem:[#allocation184_spill] sm:$0xff] %v10047_v34  ;;  %v10053_v6 = vld [vmem:[#allocation41 + $0x64] ss:$8 sps:$4 sm:$0xff]  }
 0xeda   :  { %10895 = vst [vmem:[#allocation186_spill] sm:$0xff] %v10053_v6 }
 0xee2   :  { %v7464_v56 = vpop.eup %7463 }
 0xee3   :  { %v3514_v36 = vmul.f32 %v7464_v56, %v3499_v33  ;;  %v7466_v17 = vpop.eup %7465  ;;  %v10056_v33 = vld [vmem:[#allocation41 + $0x60] ss:$8 sps:$4 sm:$0xff]   ;;  %v10060_v56 = vld [vmem:[#allocation41 + $0x74] ss:$8 sps:$4 sm:$0xff]  }
 0xee4   :  { %v3517_v59 = vsub.f32 1.0, %v7466_v17  ;;  %v3519_v4 = vmul.f32 %v7466_v17, %v9591_v41  ;;  %v10029_v41 = vld [vmem:[#allocation41 + $0x24] ss:$8 sps:$4 sm:$0xff]   ;;  %10896 = vst [vmem:[#allocation187_spill] sm:$0xff] %v10056_v33  ;;  %10897 = vst [vmem:[#allocation188_spill] sm:$0xff] %v10060_v56 }
 0xee5   :  { %v3515_v21 = vadd.f32 %v3514_v36, %v3468_v40  ;;  %v10062_v40 = vld [vmem:[#allocation41 + $0x70] ss:$8 sps:$4 sm:$0xff]  }
 0xee6   :  { %10898 = vst [vmem:[#allocation189_spill] sm:$0xff] %v10062_v40 }
 0xee7   :  { %7467 = vtanh.f32 %v3515_v21 }
 0xef1   :  { %v7468_v2 = vpop.eup %7467 }
 0xef2   :  { %v3518_v31 = vmul.f32 %v7468_v2, %v3517_v59  ;;  %v10067_v2 = vld [vmem:[#allocation40] ss:$0 sm:$0xff] }
 0xef4   :  { %v3520_v61 = vadd.f32 %v3519_v4, %v3518_v31 }
 0xef6   :  { %v3522_v47 = vpack.c.bf16 %v3520_v61, %v3520_v61 }
 0xef8   :  { %6563 = vmatmul.mubr.bf16.vlgmr.msra.gmra.mrb[56].mxu1 %v3522_v47 }
 0xef9   :  { %3813 = vmatprep.mubr.bf16.mxu1 %v10755_v20  ;;  %3782 = vmatpush1.bf16.msra.mxu1 %v10018_v63 }
 0xefa   :  { %3783 = vmatprep.subr.bf16.mxu1 %v10022_v15 }
 0xefd   :  { %3784 = vmatpush1.bf16.msra.mxu1 %v10026_v38 }
 0xefe   :  { %3785 = vmatprep.subr.bf16.mxu1 %v10029_v41 }
 0xf01   :  { %3786 = vmatpush1.bf16.msra.mxu1 %v10032_v28 }
 0xf02   :  { %3787 = vmatprep.subr.bf16.mxu1 %v10035_v39 }
 0xf05   :  { %3788 = vmatpush1.bf16.msra.mxu1 %v10038_v37 }
 0xf06   :  { %3789 = vmatprep.subr.bf16.mxu1 %v10041_v42 }
 0xf09   :  { %3790 = vmatpush1.bf16.msra.mxu1 %v10044_v45 }
 0xf0a   :  { %3791 = vmatprep.subr.bf16.mxu1 %v10047_v34 }
 0xf0d   :  { %3792 = vmatpush1.bf16.msra.mxu1 %v10050_v10 }
 0xf0e   :  { %3793 = vmatprep.subr.bf16.mxu1 %v10053_v6 }
 0xf11   :  { %3794 = vmatpush1.bf16.msra.mxu1 %v10056_v33 }
 0xf12   :  { %3795 = vmatprep.subr.bf16.mxu1 %v10060_v56 }
 0xf15   :  { %3796 = vmatpush1.bf16.msra.mxu1 %v10062_v40 }
 0xf16   :  { %6592 = vmatprep.subr.bf16.mxu1 %v10747_v14 }
 0xfa9   :  { %v3693_v36 = vpop.f32.mrb[48].mxu0 }
 0xfaa   :  { %v6584_v21 = vpop.f32.mrb[49].mxu0 }
 0xfab   :  { %v3696_v17 = vpop.f32.mrb[50].mxu0 }
 0xfac   :  { %v6585_v59 = vpop.f32.mrb[51].mxu0 }
 0xfcb   :  { %v3605_v31 = vpop.f32.mrb[56].mxu1 }
 0xfcc   :  { %v3694_v4 = vadd.f32 %v3693_v36, %v3605_v31  ;;  %v6564_v61 = vpop.f32.mrb[57].mxu1 }
 0xfcd   :  { %v3608_v47 = vpop.f32.mrb[58].mxu1 }
 0xfce   :  { %v3699_v33 = vadd.f32 %v10067_v2, %v3694_v4  ;;  %v6565_v6 = vpop.f32.mrb[59].mxu1  ;;  %v10930_v4 = vld [vmem:[#allocation134_spill] sm:$0xff]  ;;  %v10931_v47 = vld [vmem:[#allocation132_spill] sm:$0xff] }
 0xfd0   :  { %v3700_v10 = vpack.c.bf16 %v3699_v33, %v3699_v33  ;;  %v10080_v33 = vld [vmem:[#allocation31 + $0x4] ss:$24 sps:$4 sm:$0xff]  }
 0xfd2   :  { %3814 = vmatmul.mubr.bf16.vlgmr.msra.gmra.mrb[60].mxu1 %v3700_v10 }
 0xfd3   :  { %6594 = vmatprep.mubr.msk.bf16.mxu1 %vm8574_vm0, %v10747_v14 }
0x10a5   :  { %v3815_v40 = vpop.f32.mrb[60].mxu1 }
0x10a6   :  { %v5975_v56 = vmul.f32 -1.442695, %v3815_v40  ;;  %v3817_v34 = vpop.f32.mrb[61].mxu1 }
0x10a7   :  { %v3819_v21 = vpop.f32.mrb[62].mxu1 }
0x10a8   :  { %7469 = vpow2.f32 %v5975_v56  ;;  %v3820_v17 = vpop.f32.mrb[63].mxu1  ;;  %v10928_v56 = vld [vmem:[#allocation127_spill] sm:$0xff] }
0x10b2   :  { %v7470_v59 = vpop.eup %7469 }
0x10b3   :  { %v3825_v45 = vadd.f32 1.0, %v7470_v59 }
0x10b5   :  { %7471 = vrcp.f32 %v3825_v45  ;;  %v10088_v45 = vld [vmem:[#allocation31] ss:$24 sps:$4 sm:$0xff]  }
0x10bf   :  { %v7472_v36 = vpop.eup %7471 }
0x10c0   :  { %v3828_v31 = vmul.f32 %v7472_v36, %v3815_v40  ;;  %v10929_v40 = vld [vmem:[#allocation128_spill] sm:$0xff] }
0x10c2   :  { %v10072_v61 = vmul.f32 %v3828_v31, %v3817_v34  ;;  %v10092_v34 = vld [vmem:[#allocation31 + $0x34] ss:$24 sps:$4 sm:$0xff]  }
0x10c4   :  { %v10076_v6 = vpack.c.bf16 %v10072_v61, %v10072_v61 }
0x10c6   :  { %v3832_v10 = vsel %vm2603_vm2, %v10076_v6, 0 }
0x10c7   :  { %6587 = vmatpush3.bf16.msra.mxu0 %v3832_v10  ;;  %6593 = vmatpush3.bf16.msra.mxu1 %v3832_v10 }
0x10c8   :  { %3914 = vmatprep.subr.bf16.mxu0 %v10080_v33  ;;  %3955 = vmatprep.subr.bf16.mxu1 %v9615_v22  ;;  %v10102_v22 = vld [vmem:[#allocation31 + $0x64] ss:$24 sps:$4 sm:$0xff]  }
0x10ca   :  { %6589 = vmatmul.mubr.msk.bf16.vlgmr.msra.gmra.mrb[52].mxu0 %vm2599_vm3, %v9609_v51  ;;  %6595 = vmatmul.mubr.msk.bf16.vlgmr.msra.gmra.mrb[64].mxu1 %vm2599_vm3, %v9634_v58  ;;  %v10098_v51 = vld [vmem:[#allocation31 + $0x30] ss:$24 sps:$4 sm:$0xff]   ;;  %v10110_v58 = vld [vmem:[#allocation31 + $0x94] ss:$24 sps:$4 sm:$0xff]  }
0x10cb   :  { %3915 = vmatpush1.bf16.msra.mxu0 %v10088_v45  ;;  %3956 = vmatpush1.bf16.msra.mxu1 %v9632_v57  ;;  %v10106_v57 = vld [vmem:[#allocation31 + $0x60] ss:$24 sps:$4 sm:$0xff]  }
0x10cc   :  { %3916 = vmatprep.subr.bf16.mxu0 %v10092_v34  ;;  %3957 = vmatprep.subr.bf16.mxu1 %v9639_v60  ;;  %v10114_v60 = vld [vmem:[#allocation31 + $0x90] ss:$24 sps:$4 sm:$0xff]  }
0x10cd   :  { %3946 = vmatprep.mubr.bf16.mxu0 %v10755_v20  ;;  %3987 = vmatprep.mubr.bf16.mxu1 %v10755_v20 }
0x10cf   :  { %3917 = vmatpush1.bf16.msra.mxu0 %v10098_v51  ;;  %3958 = vmatpush1.bf16.msra.mxu1 %v9647_v62  ;;  %v10913_v62 = vld [vmem:[#allocation110_spill] sm:$0xff] }
0x10d0   :  { %3918 = vmatprep.subr.bf16.mxu0 %v10102_v22  ;;  %3959 = vmatprep.subr.bf16.mxu1 %v9653_v1  ;;  %v10914_v1 = vld [vmem:[#allocation111_spill] sm:$0xff] }
0x10d3   :  { %3919 = vmatpush1.bf16.msra.mxu0 %v10106_v57  ;;  %3960 = vmatpush1.bf16.msra.mxu1 %v9660_v3  ;;  %v10915_v3 = vld [vmem:[#allocation135_spill] sm:$0xff] }
0x10d4   :  { %3920 = vmatprep.subr.bf16.mxu0 %v10110_v58  ;;  %3961 = vmatprep.subr.bf16.mxu1 %v9666_v5  ;;  %v10916_v5 = vld [vmem:[#allocation136_spill] sm:$0xff] }
0x10d7   :  { %3921 = vmatpush1.bf16.msra.mxu0 %v10114_v60  ;;  %3962 = vmatpush1.bf16.msra.mxu1 %v9672_v7  ;;  %v10917_v7 = vld [vmem:[#allocation112_spill] sm:$0xff] }
0x10d8   :  { %3922 = vmatprep.subr.bf16.mxu0 %v9560_v8  ;;  %3963 = vmatprep.subr.bf16.mxu1 %v9678_v46  ;;  %v10899_v8 = vld [vmem:[#allocation101_spill] sm:$0xff] }
0x10d9   :  { %v10918_v46 = vld [vmem:[#allocation113_spill] sm:$0xff] }
0x10db   :  { %3923 = vmatpush1.bf16.msra.mxu0 %v9562_v16  ;;  %3964 = vmatpush1.bf16.msra.mxu1 %v9684_v52  ;;  %v10900_v16 = vld [vmem:[#allocation122_spill] sm:$0xff] }
0x10dc   :  { %3924 = vmatprep.subr.bf16.mxu0 %v9567_v44  ;;  %3965 = vmatprep.subr.bf16.mxu1 %v9688_v53  ;;  %v10901_v44 = vld [vmem:[#allocation102_spill] sm:$0xff]  ;;  %v10920_v53 = vld [vmem:[#allocation115_spill] sm:$0xff] }
0x10dd   :  { %v10919_v52 = vld [vmem:[#allocation114_spill] sm:$0xff] }
0x10df   :  { %3925 = vmatpush1.bf16.msra.mxu0 %v9569_v9  ;;  %3966 = vmatpush1.bf16.msra.mxu1 %v9694_v23  ;;  %v10902_v9 = vld [vmem:[#allocation103_spill] sm:$0xff]  ;;  %v10921_v23 = vld [vmem:[#allocation116_spill] sm:$0xff] }
0x10e0   :  { %3926 = vmatprep.subr.bf16.mxu0 %v9574_v24  ;;  %3967 = vmatprep.subr.bf16.mxu1 %v9699_v11  ;;  %v10903_v24 = vld [vmem:[#allocation124_spill] sm:$0xff]  ;;  %v10922_v11 = vld [vmem:[#allocation117_spill] sm:$0xff] }
0x10e3   :  { %3927 = vmatpush1.bf16.msra.mxu0 %v9576_v25  ;;  %3968 = vmatpush1.bf16.msra.mxu1 %v9706_v49  ;;  %v10904_v25 = vld [vmem:[#allocation104_spill] sm:$0xff]  ;;  %v10923_v49 = vld [vmem:[#allocation118_spill] sm:$0xff] }
0x10e4   :  { %3928 = vmatprep.subr.bf16.mxu0 %v9581_v18  ;;  %3969 = vmatprep.subr.bf16.mxu1 %v9712_v26  ;;  %v10905_v18 = vld [vmem:[#allocation105_spill] sm:$0xff]  ;;  %v10924_v26 = vld [vmem:[#allocation119_spill] sm:$0xff] }
0x10e7   :  { %3929 = vmatpush1.bf16.msra.mxu0 %v9583_v13  ;;  %3970 = vmatpush1.bf16.msra.mxu1 %v9719_v29  ;;  %v10906_v13 = vld [vmem:[#allocation125_spill] sm:$0xff]  ;;  %v10925_v29 = vld [vmem:[#allocation120_spill] sm:$0xff] }
0x10e8   :  { %3996 = vmatprep.subr.bf16.mxu0 %v9588_v12  ;;  %6598 = vmatprep.subr.bf16.mxu1 %v10747_v14  ;;  %v10907_v12 = vld [vmem:[#allocation106_spill] sm:$0xff] }
0x10ea   :  { %3947 = vmatmul.mubr.bf16.vlgmr.msra.gmra.mrb[56].mxu0 %v10076_v6  ;;  %3988 = vmatmul.mubr.bf16.vlgmr.msra.gmra.mrb[68].mxu1 %v10076_v6 }
0x10eb   :  { %3997 = vmatpush1.bf16.msra.mxu0 %v9593_v27  ;;  %4028 = vmatprep.mubr.bf16.mxu0 %v10755_v20  ;;  %v10908_v27 = vld [vmem:[#allocation107_spill] sm:$0xff] }
0x10ec   :  { %3998 = vmatprep.subr.bf16.mxu0 %v9601_v0  ;;  %6599 = vmatpush3.bf16.msra.mxu1 %v9729_v32  ;;  %v10909_v0 = vld [vmem:[#allocation126_spill] sm:$0xff]  ;;  %v10926_v32 = vld [vmem:[#allocation121_spill] sm:$0xff] }
0x10ed   :  { %6600 = vmatprep.subr.bf16.mxu1 %v10747_v14  ;;  %6614 = vmatprep.mubr.msk.bf16.mxu1 %vm8574_vm0, %v10747_v14 }
0x10ef   :  { %3999 = vmatpush1.bf16.msra.mxu0 %v9607_v50  ;;  %v10910_v50 = vld [vmem:[#allocation108_spill] sm:$0xff] }
0x10f0   :  { %4000 = vmatprep.subr.bf16.mxu0 %v9613_v54  ;;  %6601 = vmatpush3.bf16.msra.mxu1 %v9740_v35  ;;  %v10911_v54 = vld [vmem:[#allocation109_spill] sm:$0xff]  ;;  %v10927_v35 = vld [vmem:[#allocation123_spill] sm:$0xff] }
0x10f1   :  { %6602 = vmatprep.subr.bf16.mxu1 %v10747_v14 }
0x10f3   :  { %4001 = vmatpush1.bf16.msra.mxu0 %v9621_v19  ;;  %v10912_v19 = vld [vmem:[#allocation131_spill] sm:$0xff] }
0x10f4   :  { %4002 = vmatprep.subr.bf16.mxu0 %v10899_v8  ;;  %6603 = vmatpush3.bf16.msra.mxu1 %v10900_v16 }
0x10f5   :  { %6604 = vmatprep.subr.bf16.mxu1 %v10747_v14 }
0x10f7   :  { %4003 = vmatpush1.bf16.msra.mxu0 %v10901_v44  ;;  %v10932_v44 = vld [vmem:[#allocation139_spill] sm:$0xff] }
0x10f8   :  { %4004 = vmatprep.subr.bf16.mxu0 %v10902_v9  ;;  %6605 = vmatpush3.bf16.msra.mxu1 %v10903_v24  ;;  %v10933_v9 = vld [vmem:[#allocation140_spill] sm:$0xff]  ;;  %v10934_v24 = vld [vmem:[#allocation141_spill] sm:$0xff] }
0x10f9   :  { %6606 = vmatprep.subr.bf16.mxu1 %v10747_v14 }
0x10fb   :  { %4005 = vmatpush1.bf16.msra.mxu0 %v10904_v25  ;;  %v10935_v25 = vld [vmem:[#allocation142_spill] sm:$0xff] }
0x10fc   :  { %4006 = vmatprep.subr.bf16.mxu0 %v10905_v18  ;;  %6607 = vmatpush3.bf16.msra.mxu1 %v10906_v13  ;;  %v10936_v18 = vld [vmem:[#allocation143_spill] sm:$0xff]  ;;  %v10937_v13 = vld [vmem:[#allocation144_spill] sm:$0xff] }
0x10fd   :  { %6608 = vmatprep.subr.bf16.mxu1 %v10747_v14 }
0x10ff   :  { %4007 = vmatpush1.bf16.msra.mxu0 %v10907_v12  ;;  %v10938_v12 = vld [vmem:[#allocation145_spill] sm:$0xff] }
0x1100   :  { %4008 = vmatprep.subr.bf16.mxu0 %v10908_v27  ;;  %6609 = vmatpush3.bf16.msra.mxu1 %v10909_v0  ;;  %v10939_v27 = vld [vmem:[#allocation146_spill] sm:$0xff]  ;;  %v10940_v0 = vld [vmem:[#allocation147_spill] sm:$0xff] }
0x1101   :  { %6610 = vmatprep.subr.bf16.mxu1 %v10747_v14 }
0x1103   :  { %4009 = vmatpush1.bf16.msra.mxu0 %v10910_v50  ;;  %v10941_v50 = vld [vmem:[#allocation148_spill] sm:$0xff] }
0x1104   :  { %4010 = vmatprep.subr.bf16.mxu0 %v10911_v54  ;;  %6611 = vmatpush3.bf16.msra.mxu1 %v10912_v19  ;;  %v10942_v54 = vld [vmem:[#allocation149_spill] sm:$0xff]  ;;  %v10943_v19 = vld [vmem:[#allocation150_spill] sm:$0xff] }
0x1105   :  { %6612 = vmatprep.subr.bf16.mxu1 %v10747_v14 }
0x1107   :  { %4011 = vmatpush1.bf16.msra.mxu0 %v10913_v62  ;;  %v10944_v62 = vld [vmem:[#allocation151_spill] sm:$0xff] }
0x1108   :  { %4038 = vmatprep.subr.bf16.mxu0 %v10914_v1  ;;  %6613 = vmatpush3.bf16.msra.mxu1 %v10915_v3  ;;  %v10945_v1 = vld [vmem:[#allocation152_spill] sm:$0xff]  ;;  %v10946_v3 = vld [vmem:[#allocation153_spill] sm:$0xff] }
0x1109   :  { %4120 = vmatprep.subr.bf16.mxu1 %v10916_v5  ;;  %v10947_v5 = vld [vmem:[#allocation154_spill] sm:$0xff] }
0x110a   :  { %4029 = vmatmul.mubr.bf16.vlgmr.msra.gmra.mrb[60].mxu0 %v10076_v6 }
0x110b   :  { %4039 = vmatpush1.bf16.msra.mxu0 %v10917_v7  ;;  %4070 = vmatprep.mubr.bf16.mxu0 %v10755_v20  ;;  %v10948_v7 = vld [vmem:[#allocation155_spill] sm:$0xff] }
0x110c   :  { %4040 = vmatprep.subr.bf16.mxu0 %v10918_v46  ;;  %v10949_v46 = vld [vmem:[#allocation156_spill] sm:$0xff] }
0x110f   :  { %4041 = vmatpush1.bf16.msra.mxu0 %v10919_v52  ;;  %v10950_v52 = vld [vmem:[#allocation157_spill] sm:$0xff] }
0x1110   :  { %4042 = vmatprep.subr.bf16.mxu0 %v10920_v53  ;;  %v10951_v53 = vld [vmem:[#allocation158_spill] sm:$0xff] }
0x1113   :  { %4043 = vmatpush1.bf16.msra.mxu0 %v10921_v23  ;;  %v10952_v23 = vld [vmem:[#allocation159_spill] sm:$0xff] }
0x1114   :  { %4044 = vmatprep.subr.bf16.mxu0 %v10922_v11 }
0x1117   :  { %4045 = vmatpush1.bf16.msra.mxu0 %v10923_v49  ;;  %v10953_v49 = vld [vmem:[#allocation160_spill] sm:$0xff] }
0x1118   :  { %4046 = vmatprep.subr.bf16.mxu0 %v10924_v26  ;;  %v10954_v26 = vld [vmem:[#allocation161_spill] sm:$0xff] }
0x111b   :  { %4047 = vmatpush1.bf16.msra.mxu0 %v10925_v29 }
0x111c   :  { %4048 = vmatprep.subr.bf16.mxu0 %v10926_v32 }
0x111f   :  { %4049 = vmatpush1.bf16.msra.mxu0 %v10927_v35 }
0x1120   :  { %4050 = vmatprep.subr.bf16.mxu0 %v10928_v56 }
0x1123   :  { %4051 = vmatpush1.bf16.msra.mxu0 %v10929_v40  ;;  %v10955_v40 = vld [vmem:[#allocation162_spill] sm:$0xff] }
0x1124   :  { %4052 = vmatprep.subr.bf16.mxu0 %v10930_v4  ;;  %v10956_v4 = vld [vmem:[#allocation170_spill] sm:$0xff] }
0x1127   :  { %4053 = vmatpush1.bf16.msra.mxu0 %v10931_v47  ;;  %v10957_v47 = vld [vmem:[#allocation163_spill] sm:$0xff] }
0x1128   :  { %6618 = vmatprep.subr.bf16.mxu0 %v10747_v14 }
0x119d   :  { %v3868_v21 = vpop.f32.mrb[52].mxu0  ;;  %v3908_v17 = vpop.f32.mrb[64].mxu1 }
0x119e   :  { %v4037_v59 = vpack.c.bf16 %v3868_v21, %v3868_v21  ;;  %v6590_v36 = vpop.f32.mrb[53].mxu0  ;;  %v6596_v31 = vpop.f32.mrb[65].mxu1  ;;  %v4119_v11 = vpack.c.bf16 %v3908_v17, %v3908_v17  ;;  %v10958_v21 = vld [vmem:[#allocation171_spill] sm:$0xff]  ;;  %v10959_v17 = vld [vmem:[#allocation164_spill] sm:$0xff] }
0x119f   :  { %v3871_v6 = vpop.f32.mrb[54].mxu0  ;;  %v3911_v10 = vpop.f32.mrb[66].mxu1  ;;  %v10961_v36 = vld [vmem:[#allocation165_spill] sm:$0xff] }
0x11a0   :  { %v6591_v8 = vpop.f32.mrb[55].mxu0  ;;  %4071 = vmatmul.mubr.bf16.vlgmr.msra.gmra.mrb[56].mxu0 %v4037_v59  ;;  %6615 = vmatmul.mubr.bf16.vlgmr.msra.gmra.mrb[72].mxu1 %v4037_v59  ;;  %v6597_v16 = vpop.f32.mrb[67].mxu1  ;;  %v10960_v59 = vld [vmem:[#allocation172_spill] sm:$0xff]  ;;  %v10962_v31 = vld [vmem:[#allocation173_spill] sm:$0xff]  ;;  %v10963_v6 = vld [vmem:[#allocation166_spill] sm:$0xff] }
0x11a1   :  { %4121 = vmatpush1.bf16.msra.mxu1 %v10932_v44  ;;  %6619 = vmatpush3.bf16.msra.mxu0 %v10933_v9  ;;  %v10964_v10 = vld [vmem:[#allocation174_spill] sm:$0xff]  ;;  %v10965_v8 = vld [vmem:[#allocation167_spill] sm:$0xff]  ;;  %v10967_v44 = vld [vmem:[#allocation168_spill] sm:$0xff] }
0x11a2   :  { %4122 = vmatprep.subr.bf16.mxu1 %v10934_v24  ;;  %6620 = vmatprep.subr.bf16.mxu0 %v10747_v14  ;;  %v10966_v16 = vld [vmem:[#allocation175_spill] sm:$0xff]  ;;  %v10968_v9 = vld [vmem:[#allocation176_spill] sm:$0xff] }
0x11a3   :  { %4152 = vmatprep.mubr.bf16.mxu1 %v10755_v20  ;;  %6634 = vmatprep.mubr.msk.bf16.mxu0 %vm8574_vm0, %v10747_v14 }
0x11a5   :  { %4123 = vmatpush1.bf16.msra.mxu1 %v10935_v25  ;;  %6621 = vmatpush3.bf16.msra.mxu0 %v10936_v18  ;;  %v10969_v25 = vld [vmem:[#allocation169_spill] sm:$0xff] }
0x11a6   :  { %4124 = vmatprep.subr.bf16.mxu1 %v10937_v13  ;;  %6622 = vmatprep.subr.bf16.mxu0 %v10747_v14  ;;  %v10970_v13 = vld [vmem:[#allocation177_spill] sm:$0xff] }
0x11a9   :  { %4125 = vmatpush1.bf16.msra.mxu1 %v10938_v12  ;;  %6623 = vmatpush3.bf16.msra.mxu0 %v10939_v27 }
0x11aa   :  { %4126 = vmatprep.subr.bf16.mxu1 %v10940_v0  ;;  %6624 = vmatprep.subr.bf16.mxu0 %v10747_v14 }
0x11ad   :  { %4127 = vmatpush1.bf16.msra.mxu1 %v10941_v50  ;;  %6625 = vmatpush3.bf16.msra.mxu0 %v10942_v54  ;;  %v10971_v54 = vld [vmem:[#allocation130_spill] sm:$0xff] }
0x11ae   :  { %4128 = vmatprep.subr.bf16.mxu1 %v10943_v19  ;;  %6626 = vmatprep.subr.bf16.mxu0 %v10747_v14 }
0x11b1   :  { %4129 = vmatpush1.bf16.msra.mxu1 %v10944_v62  ;;  %6627 = vmatpush3.bf16.msra.mxu0 %v10945_v1 }
0x11b2   :  { %4130 = vmatprep.subr.bf16.mxu1 %v10946_v3  ;;  %6628 = vmatprep.subr.bf16.mxu0 %v10747_v14 }
0x11b5   :  { %4131 = vmatpush1.bf16.msra.mxu1 %v10947_v5  ;;  %6629 = vmatpush3.bf16.msra.mxu0 %v10948_v7 }
0x11b6   :  { %4132 = vmatprep.subr.bf16.mxu1 %v10949_v46  ;;  %6630 = vmatprep.subr.bf16.mxu0 %v10747_v14 }
0x11b9   :  { %4133 = vmatpush1.bf16.msra.mxu1 %v10950_v52  ;;  %6631 = vmatpush3.bf16.msra.mxu0 %v10951_v53  ;;  %v10972_v53 = vld [vmem:[#allocation178_spill] sm:$0xff] }
0x11ba   :  { %4134 = vmatprep.subr.bf16.mxu1 %v10952_v23  ;;  %6632 = vmatprep.subr.bf16.mxu0 %v10747_v14 }
0x11bd   :  { %4135 = vmatpush1.bf16.msra.mxu1 %v10953_v49  ;;  %6633 = vmatpush3.bf16.msra.mxu0 %v10954_v26  ;;  %v10224_v29 = vpop.f32.mrb[68].mxu1 }
0x11be   :  { %v10226_v32 = vpop.f32.mrb[69].mxu1  ;;  %6658 = vmatprep.subr.bf16.mxu0 %v10747_v14  ;;  %6638 = vmatprep.subr.bf16.mxu1 %v10747_v14 }
0x11bf   :  { %v3993_v35 = vpop.f32.mrb[70].mxu1 }
0x11c0   :  { %4153 = vmatmul.mubr.bf16.vlgmr.msra.gmra.mrb[76].mxu1 %v4119_v11  ;;  %6635 = vmatmul.mubr.bf16.vlgmr.msra.gmra.mrb[64].mxu0 %v4119_v11  ;;  %v3994_v56 = vpop.f32.mrb[71].mxu1 }
0x11c1   :  { %6659 = vmatpush3.bf16.msra.mxu0 %v10955_v40  ;;  %6674 = vmatprep.mubr.msk.bf16.mxu0 %vm8574_vm0, %v10747_v14  ;;  %v10973_v56 = vld [vmem:[#allocation133_spill] sm:$0xff] }
0x11c2   :  { %6660 = vmatprep.subr.bf16.mxu0 %v10747_v14  ;;  %6639 = vmatpush3.bf16.msra.mxu1 %v10956_v4  ;;  %v4203_v40 = vadd.f32 %v10224_v29, %v10973_v56 }
0x11c3   :  { %6640 = vmatprep.subr.bf16.mxu1 %v10747_v14  ;;  %6654 = vmatprep.mubr.msk.bf16.mxu1 %vm8574_vm0, %v10747_v14 }
0x11c5   :  { %6661 = vmatpush3.bf16.msra.mxu0 %v10957_v47  ;;  %v10974_v47 = vld [vmem:[#allocation179_spill] sm:$0xff] }
0x11c6   :  { %6662 = vmatprep.subr.bf16.mxu0 %v10747_v14  ;;  %6641 = vmatpush3.bf16.msra.mxu1 %v10958_v21 }
0x11c7   :  { %6642 = vmatprep.subr.bf16.mxu1 %v10747_v14 }
0x11c9   :  { %6663 = vmatpush3.bf16.msra.mxu0 %v10959_v17 }
0x11ca   :  { %6664 = vmatprep.subr.bf16.mxu0 %v10747_v14  ;;  %6643 = vmatpush3.bf16.msra.mxu1 %v10960_v59 }
0x11cb   :  { %6644 = vmatprep.subr.bf16.mxu1 %v10747_v14 }
0x11cd   :  { %6665 = vmatpush3.bf16.msra.mxu0 %v10961_v36 }
0x11ce   :  { %6666 = vmatprep.subr.bf16.mxu0 %v10747_v14  ;;  %6645 = vmatpush3.bf16.msra.mxu1 %v10962_v31 }
0x11cf   :  { %6646 = vmatprep.subr.bf16.mxu1 %v10747_v14 }
0x11d1   :  { %6667 = vmatpush3.bf16.msra.mxu0 %v10963_v6  ;;  %v10975_v6 = vld [vmem:[#allocation180_spill] sm:$0xff] }
0x11d2   :  { %6668 = vmatprep.subr.bf16.mxu0 %v10747_v14  ;;  %6647 = vmatpush3.bf16.msra.mxu1 %v10964_v10  ;;  %v4225_v10 = vadd.f32 %v10226_v32, %v10975_v6 }
0x11d3   :  { %6648 = vmatprep.subr.bf16.mxu1 %v10747_v14 }
0x11d5   :  { %6669 = vmatpush3.bf16.msra.mxu0 %v10965_v8  ;;  %v10976_v8 = vld [vmem:[#allocation181_spill] sm:$0xff] }
0x11d6   :  { %6670 = vmatprep.subr.bf16.mxu0 %v10747_v14  ;;  %6649 = vmatpush3.bf16.msra.mxu1 %v10966_v16 }
0x11d7   :  { %6650 = vmatprep.subr.bf16.mxu1 %v10747_v14 }
0x11d9   :  { %6671 = vmatpush3.bf16.msra.mxu0 %v10967_v44 }
0x11da   :  { %6672 = vmatprep.subr.bf16.mxu0 %v10747_v14  ;;  %6651 = vmatpush3.bf16.msra.mxu1 %v10968_v9 }
0x11db   :  { %6652 = vmatprep.subr.bf16.mxu1 %v10747_v14 }
0x11dd   :  { %v4030_v24 = vpop.f32.mrb[60].mxu0  ;;  %6673 = vmatpush3.bf16.msra.mxu0 %v10969_v25  ;;  %v10977_v25 = vld [vmem:[#allocation182_spill] sm:$0xff] }
0x11de   :  { %v10263_v18 = vpop.f32.mrb[61].mxu0  ;;  %6653 = vmatpush3.bf16.msra.mxu1 %v10970_v13  ;;  %6678 = vmatprep.subr.bf16.mxu0 %v10747_v14  ;;  %v4226_v13 = vadd.f32 %v4030_v24, %v10977_v25 }
0x11df   :  { %v4034_v12 = vpop.f32.mrb[62].mxu0  ;;  %4333 = vmatprep.subr.bf16.mxu1 %v10020_v48 }
0x11e0   :  { %v4035_v27 = vpop.f32.mrb[63].mxu0 }
0x1273   :  { %v4072_v0 = vpop.f32.mrb[56].mxu0  ;;  %v4113_v50 = vpop.f32.mrb[72].mxu1 }
0x1274   :  { %v6911_v19 = vadd.f32 %v10971_v54, %v4072_v0  ;;  %v4074_v62 = vpop.f32.mrb[57].mxu0  ;;  %v6616_v1 = vpop.f32.mrb[73].mxu1  ;;  %v4114_v21 = vadd.f32 %v4113_v50, %v10974_v47 }
0x1275   :  { %v4076_v3 = vpop.f32.mrb[58].mxu0  ;;  %v4116_v5 = vpop.f32.mrb[74].mxu1  ;;  %v6913_v23 = vadd.f32 %v10972_v53, %v4074_v62 }
0x1276   :  { %v5978_v7 = vmul.f32 -1.442695, %v6911_v19  ;;  %v4077_v46 = vpop.f32.mrb[59].mxu0  ;;  %v6617_v52 = vpop.f32.mrb[75].mxu1 }
0x1277   :  { %v5979_v11 = vmul.f32 -1.442695, %v6913_v23 }
0x1278   :  { %7473 = vpow2.f32 %v5978_v7 }
0x1279   :  { %7475 = vpow2.f32 %v5979_v11 }
0x1282   :  { %v7474_v49 = vpop.eup %7473 }
0x1283   :  { %v4208_v26 = vadd.f32 1.0, %v7474_v49  ;;  %v7476_v48 = vpop.eup %7475 }
0x1284   :  { %v4215_v35 = vadd.f32 1.0, %v7476_v48 }
0x1285   :  { %7477 = vrcp.f32 %v4208_v26 }
0x1286   :  { %7479 = vrcp.f32 %v4215_v35  ;;  %v4227_v35 = vadd.f32 %v10263_v18, %v10008_v30  ;;  %v10979_v18 = vld [vmem:[#allocation184_spill] sm:$0xff] }
0x128f   :  { %v7478_v4 = vpop.eup %7477 }
0x1290   :  { %v4218_v17 = vmul.f32 %v7478_v4, %v4203_v40  ;;  %v7480_v3 = vpop.eup %7479 }
0x1291   :  { %v4221_v32 = vsub.f32 1.0, %v7480_v3  ;;  %v4223_v52 = vmul.f32 %v7480_v3, %v10072_v61 }
0x1292   :  { %v4219_v59 = vadd.f32 %v4218_v17, %v4114_v21 }
0x1293   :  { %v4154_v36 = vpop.f32.mrb[76].mxu1  ;;  %v4195_v31 = vpop.f32.mrb[64].mxu0 }
0x1294   :  { %7481 = vtanh.f32 %v4219_v59  ;;  %v4155_v16 = vadd.f32 %v4154_v36, %v10976_v8  ;;  %v4156_v44 = vpop.f32.mrb[77].mxu1  ;;  %v6636_v9 = vpop.f32.mrb[65].mxu0  ;;  %v4196_v4 = vadd.f32 %v4195_v31, %v10011_v43  ;;  %v10981_v31 = vld [vmem:[#allocation186_spill] sm:$0xff] }
0x1295   :  { %v4157_v29 = vadd.f32 %v4156_v44, %v9996_v55  ;;  %v4158_v12 = vpop.f32.mrb[78].mxu1  ;;  %v4198_v27 = vpop.f32.mrb[66].mxu0 }
0x1296   :  { %v4228_v0 = vadd.f32 %v4225_v10, %v4155_v16  ;;  %v4159_v50 = vpop.f32.mrb[79].mxu1  ;;  %v6637_v19 = vpop.f32.mrb[67].mxu0 }
0x1297   :  { %v4235_v62 = vadd.f32 %v4226_v13, %v4157_v29 }
0x1298   :  { %v5980_v1 = vmul.f32 -1.442695, %v4228_v0 }
0x1299   :  { %v5981_v5 = vmul.f32 -1.442695, %v4235_v62 }
0x129a   :  { %7483 = vpow2.f32 %v5980_v1 }
0x129b   :  { %7485 = vpow2.f32 %v5981_v5 }
0x129e   :  { %v7482_v7 = vpop.eup %7481 }
0x129f   :  { %v4222_v46 = vmul.f32 %v7482_v7, %v4221_v32 }
0x12a1   :  { %v4224_v23 = vadd.f32 %v4223_v52, %v4222_v46 }
0x12a3   :  { %v4249_v24 = vpack.c.bf16 %v4224_v23, %v4224_v23 }
0x12a4   :  { %v7484_v11 = vpop.eup %7483 }
0x12a5   :  { %v4232_v49 = vadd.f32 1.0, %v7484_v11  ;;  %6675 = vmatmul.mubr.bf16.vlgmr.msra.gmra.mrb[68].mxu0 %v4249_v24  ;;  %v7486_v26 = vpop.eup %7485 }
0x12a6   :  { %6680 = vmatprep.mubr.msk.bf16.mxu0 %vm8574_vm0, %v10747_v14  ;;  %v4239_v48 = vadd.f32 1.0, %v7486_v26  ;;  %v7535_v26 = vld [vmem:[#allocation31 + $0xc] ss:$24 sps:$4 sm:$0xff]  }
0x12a7   :  { %7487 = vrcp.f32 %v4232_v49 }
0x12a8   :  { %7489 = vrcp.f32 %v4239_v48  ;;  %v7536_v48 = vld [vmem:[#allocation22] sm:$0xf] }
0x12b1   :  { %v7488_v40 = vpop.eup %7487 }
0x12b2   :  { %v4242_v21 = vmul.f32 %v7488_v40, %v4227_v35  ;;  %v7490_v59 = vpop.eup %7489  ;;  %v7537_v35 = vld [vmem:[#allocation23] sm:$0xf]  ;;  %v7538_v40 = vld [vmem:[#allocation31 + $0x8] ss:$24 sps:$4 sm:$0xff]  }
0x12b3   :  { %v4245_v36 = vsub.f32 1.0, %v7490_v59  ;;  %v4247_v44 = vmul.f32 %v7490_v59, %v10072_v61  ;;  %v10978_v61 = vld [vmem:[#allocation183_spill] sm:$0xff] }
0x12b4   :  { %v4243_v17 = vadd.f32 %v4242_v21, %v4196_v4  ;;  %v7539_v4 = vld [vmem:[#allocation31 + $0x3c] ss:$24 sps:$4 sm:$0xff]   ;;  %v7541_v21 = vld [vmem:[#allocation31 + $0x6c] ss:$24 sps:$4 sm:$0xff]  }
0x12b5   :  { %v7545_v59 = vld [vmem:[#allocation31 + $0xc4] ss:$24 sps:$4 sm:$0xff]  }
0x12b6   :  { %7491 = vtanh.f32 %v4243_v17  ;;  %v7544_v17 = vld [vmem:[#allocation31 + $0x98] ss:$24 sps:$4 sm:$0xff]  }
0x12c0   :  { %v7492_v10 = vpop.eup %7491 }
0x12c1   :  { %v4246_v16 = vmul.f32 %v7492_v10, %v4245_v36  ;;  %v7547_v36 = vld [vmem:[#allocation31 + $0xc0] ss:$24 sps:$4 sm:$0xff]   ;;  %v7549_v10 = vld [vmem:[#allocation31 + $0xf4] ss:$24 sps:$4 sm:$0xff]  }
0x12c3   :  { %v4248_v9 = vadd.f32 %v4247_v44, %v4246_v16  ;;  %v7551_v16 = vld [vmem:[#allocation31 + $0xf0] ss:$24 sps:$4 sm:$0xff]   ;;  %v7553_v44 = vld [vmem:[#allocation31 + $0x124] ss:$24 sps:$4 sm:$0xff]  }
0x12c5   :  { %v4250_v13 = vpack.c.bf16 %v4248_v9, %v4248_v9  ;;  %v7555_v9 = vld [vmem:[#allocation31 + $0x120] ss:$24 sps:$4 sm:$0xff]  }
0x12c7   :  { %6655 = vmatmul.mubr.bf16.vlgmr.msra.gmra.mrb[80].mxu1 %v4250_v13  ;;  %v7556_v13 = vld [vmem:[#allocation31 + $0x128] ss:$24 sps:$4 sm:$0xff]  }
0x12c8   :  { %4334 = vmatpush1.bf16.msra.mxu1 %v10018_v63  ;;  %4365 = vmatprep.mubr.bf16.mxu1 %v10755_v20  ;;  %v10980_v63 = vld [vmem:[#allocation185_spill] sm:$0xff] }
0x12c9   :  { %4335 = vmatprep.subr.bf16.mxu1 %v10022_v15  ;;  %v10982_v15 = vld [vmem:[#allocation187_spill] sm:$0xff] }
0x12cc   :  { %4336 = vmatpush1.bf16.msra.mxu1 %v10026_v38  ;;  %v10983_v38 = vld [vmem:[#allocation188_spill] sm:$0xff] }
0x12cd   :  { %4337 = vmatprep.subr.bf16.mxu1 %v10029_v41  ;;  %v10984_v41 = vld [vmem:[#allocation189_spill] sm:$0xff] }
0x12d0   :  { %4338 = vmatpush1.bf16.msra.mxu1 %v10032_v28 }
0x12d1   :  { %4339 = vmatprep.subr.bf16.mxu1 %v10035_v39 }
0x12d4   :  { %4340 = vmatpush1.bf16.msra.mxu1 %v10038_v37 }
0x12d5   :  { %4341 = vmatprep.subr.bf16.mxu1 %v10041_v42 }
0x12d8   :  { %4342 = vmatpush1.bf16.msra.mxu1 %v10978_v61  ;;  %v7557_v61 = vld [vmem:[#allocation31 + $0x154] ss:$24 sps:$4 sm:$0xff]  }
0x12d9   :  { %4343 = vmatprep.subr.bf16.mxu1 %v10979_v18  ;;  %v7558_v18 = vld [vmem:[#allocation31 + $0x15c] ss:$24 sps:$4 sm:$0xff]  }
0x12dc   :  { %4344 = vmatpush1.bf16.msra.mxu1 %v10980_v63  ;;  %v7559_v63 = vld [vmem:[#allocation31 + $0x150] ss:$24 sps:$4 sm:$0xff]  }
0x12dd   :  { %4345 = vmatprep.subr.bf16.mxu1 %v10981_v31  ;;  %v7560_v31 = vld [vmem:[#allocation31 + $0x158] ss:$24 sps:$4 sm:$0xff]  }
0x12e0   :  { %4346 = vmatpush1.bf16.msra.mxu1 %v10982_v15  ;;  %v7561_v15 = vld [vmem:[#allocation31 + $0x14] ss:$24 sps:$4 sm:$0xff]  }
0x12e1   :  { %4347 = vmatprep.subr.bf16.mxu1 %v10983_v38  ;;  %v7562_v38 = vld [vmem:[#allocation31 + $0x10] ss:$24 sps:$4 sm:$0xff]  }
0x12e4   :  { %4348 = vmatpush1.bf16.msra.mxu1 %v10984_v41  ;;  %v7563_v41 = vld [vmem:[#allocation31 + $0x44] ss:$24 sps:$4 sm:$0xff]  }
0x12e5   :  { %6684 = vmatprep.subr.bf16.mxu1 %v10747_v14 }
0x1378   :  { %v4325_v28 = vpop.f32.mrb[68].mxu0 }
0x1379   :  { %v6676_v39 = vpop.f32.mrb[69].mxu0 }
0x137a   :  { %v4328_v37 = vpop.f32.mrb[70].mxu0  ;;  %v7565_v39 = vld [vmem:[#allocation31 + $0x40] ss:$24 sps:$4 sm:$0xff]  }
0x137b   :  { %v6677_v42 = vpop.f32.mrb[71].mxu0  ;;  %v7566_v37 = vld [vmem:[#allocation31 + $0x74] ss:$24 sps:$4 sm:$0xff]  }
0x137c   :  { %v7567_v42 = vld [vmem:[#allocation28 + $0x20] ss:$12 sps:$4 sm:$0xff]  }
0x139a   :  { %v4285_v29 = vpop.f32.mrb[80].mxu1 }
0x139b   :  { %v4326_v12 = vadd.f32 %v4325_v28, %v4285_v29  ;;  %v6656_v27 = vpop.f32.mrb[81].mxu1  ;;  %v7564_v28 = vld [vmem:[#allocation28 + $0x8] ss:$12 sps:$4 sm:$0xff]  }
0x139c   :  { %v4288_v0 = vpop.f32.mrb[82].mxu1  ;;  %v7568_v29 = vld [vmem:[#allocation31 + $0x70] ss:$24 sps:$4 sm:$0xff]   ;;  %v7570_v27 = vld [vmem:[#allocation28 + $0x38] ss:$12 sps:$4 sm:$0xff]  }
0x139d   :  { %v4331_v50 = vadd.f32 %v10067_v2, %v4326_v12  ;;  %v6657_v19 = vpop.f32.mrb[83].mxu1  ;;  %v7569_v12 = vld [vmem:[#allocation31 + $0xa4] ss:$24 sps:$4 sm:$0xff]   ;;  %v7571_v0 = vld [vmem:[#allocation31 + $0xa0] ss:$24 sps:$4 sm:$0xff]  }
0x139e   :  { %v7573_v19 = vld [vmem:[#allocation28 + $0x50] ss:$12 sps:$4 sm:$0xff]  }
0x139f   :  { %v4332_v62 = vpack.c.bf16 %v4331_v50, %v4331_v50  ;;  %v7572_v50 = vld [vmem:[#allocation31 + $0xd4] ss:$24 sps:$4 sm:$0xff]  }
0x13a1   :  { %4366 = vmatmul.mubr.bf16.vlgmr.msra.gmra.mrb[84].mxu1 %v4332_v62  ;;  %v7574_v62 = vld [vmem:[#allocation31 + $0xd0] ss:$24 sps:$4 sm:$0xff]  }
0x13a2   :  { %6686 = vmatprep.mubr.msk.bf16.mxu1 %vm8574_vm0, %v10747_v14 }
0x1474   :  { %v4367_v1 = vpop.f32.mrb[84].mxu1 }
0x1475   :  { %v5982_v3 = vmul.f32 -1.442695, %v4367_v1  ;;  %v4369_v5 = vpop.f32.mrb[85].mxu1 }
0x1476   :  { %v4371_v32 = vpop.f32.mrb[86].mxu1 }
0x1477   :  { %7493 = vpow2.f32 %v5982_v3  ;;  %v4372_v7 = vpop.f32.mrb[87].mxu1  ;;  %v7576_v3 = vld [vmem:[#allocation28 + $0x68] ss:$12 sps:$4 sm:$0xff]  }
0x1478   :  { %v7578_v32 = vld [vmem:[#allocation31 + $0x134] ss:$24 sps:$4 sm:$0xff]  }
0x1479   :  { %v7579_v7 = vld [vmem:[#allocation28 + $0x80] ss:$12 sps:$4 sm:$0xff]  }
0x1481   :  { %v7494_v46 = vpop.eup %7493 }
0x1482   :  { %v4377_v52 = vadd.f32 1.0, %v7494_v46  ;;  %v7580_v46 = vld [vmem:[#allocation31 + $0x130] ss:$24 sps:$4 sm:$0xff]  }
0x1484   :  { %7495 = vrcp.f32 %v4377_v52  ;;  %v7581_v52 = vld [vmem:[#allocation31 + $0x164] ss:$24 sps:$4 sm:$0xff]  }
0x148e   :  { %v7496_v23 = vpop.eup %7495 }
0x148f   :  { %v4380_v24 = vmul.f32 %v7496_v23, %v4367_v1  ;;  %v7575_v1 = vld [vmem:[#allocation31 + $0x104] ss:$24 sps:$4 sm:$0xff]  }
0x1490   :  { %v7582_v23 = vld [vmem:[#allocation28 + $0x98] ss:$12 sps:$4 sm:$0xff]  }
0x1491   :  { %v10305_v11 = vmul.f32 %v4380_v24, %v4369_v5  ;;  %v7577_v5 = vld [vmem:[#allocation31 + $0x100] ss:$24 sps:$4 sm:$0xff]  }
0x1492   :  { %v7583_v24 = vld [vmem:[#allocation31 + $0x160] ss:$24 sps:$4 sm:$0xff]  }
0x1493   :  { %v10309_v2 = vpack.c.bf16 %v10305_v11, %v10305_v11 }
0x1495   :  { %v4384_v49 = vsel %vm2603_vm2, %v10309_v2, 0 }
0x1496   :  { %6679 = vmatpush3.bf16.msra.mxu0 %v4384_v49  ;;  %6685 = vmatpush3.bf16.msra.mxu1 %v4384_v49  ;;  %v7584_v49 = vld [vmem:[#allocation28 + $0x4] ss:$12 sps:$4 sm:$0xff]  }
0x1497   :  { %4466 = vmatprep.subr.bf16.mxu0 %v10080_v33  ;;  %4507 = vmatprep.subr.bf16.mxu1 %v7535_v26  ;;  %v7540_v33 = vld [vmem:[#allocation31 + $0x38] ss:$24 sps:$4 sm:$0xff]  }
0x1498   :  { %v7585_v26 = vld [vmem:[#allocation28 + $0xb0] ss:$12 sps:$4 sm:$0xff]  }
0x1499   :  { %6681 = vmatmul.mubr.msk.bf16.vlgmr.msra.gmra.mrb[72].mxu0 %vm2599_vm3, %v7536_v48  ;;  %6687 = vmatmul.mubr.msk.bf16.vlgmr.msra.gmra.mrb[88].mxu1 %vm2599_vm3, %v7537_v35  ;;  %v7586_v48 = vld [vmem:[#allocation29 + $0x4] ss:$12 sps:$4 sm:$0xff]   ;;  %v7587_v35 = vld [vmem:[#allocation28] ss:$12 sps:$4 sm:$0xff]  }
0x149a   :  { %4467 = vmatpush1.bf16.msra.mxu0 %v10088_v45  ;;  %4508 = vmatpush1.bf16.msra.mxu1 %v7538_v40  ;;  %v7542_v45 = vld [vmem:[#allocation31 + $0x68] ss:$24 sps:$4 sm:$0xff]  }
0x149b   :  { %4468 = vmatprep.subr.bf16.mxu0 %v10092_v34  ;;  %4509 = vmatprep.subr.bf16.mxu1 %v7539_v4  ;;  %v7543_v34 = vld [vmem:[#allocation31 + $0x9c] ss:$24 sps:$4 sm:$0xff]   ;;  %v7589_v4 = vld [vmem:[#allocation28 + $0x18] ss:$12 sps:$4 sm:$0xff]  }
0x149c   :  { %4498 = vmatprep.mubr.bf16.mxu0 %v10755_v20  ;;  %4539 = vmatprep.mubr.bf16.mxu1 %v10755_v20  ;;  %v7588_v40 = vld [vmem:[#allocation28 + $0x1c] ss:$12 sps:$4 sm:$0xff]  }
0x149e   :  { %4469 = vmatpush1.bf16.msra.mxu0 %v10098_v51  ;;  %4510 = vmatpush1.bf16.msra.mxu1 %v7540_v33  ;;  %v7546_v51 = vld [vmem:[#allocation31 + $0xcc] ss:$24 sps:$4 sm:$0xff]   ;;  %v7590_v33 = vld [vmem:[#allocation28 + $0x34] ss:$12 sps:$4 sm:$0xff]  }
0x149f   :  { %4470 = vmatprep.subr.bf16.mxu0 %v10102_v22  ;;  %4511 = vmatprep.subr.bf16.mxu1 %v7541_v21  ;;  %v7548_v22 = vld [vmem:[#allocation31 + $0xc8] ss:$24 sps:$4 sm:$0xff]   ;;  %v7591_v21 = vld [vmem:[#allocation28 + $0x30] ss:$12 sps:$4 sm:$0xff]  }
0x14a2   :  { %4471 = vmatpush1.bf16.msra.mxu0 %v10106_v57  ;;  %4512 = vmatpush1.bf16.msra.mxu1 %v7542_v45  ;;  %v7550_v57 = vld [vmem:[#allocation31 + $0xfc] ss:$24 sps:$4 sm:$0xff]   ;;  %v7592_v45 = vld [vmem:[#allocation28 + $0x4c] ss:$12 sps:$4 sm:$0xff]  }
0x14a3   :  { %4472 = vmatprep.subr.bf16.mxu0 %v10110_v58  ;;  %4513 = vmatprep.subr.bf16.mxu1 %v7543_v34  ;;  %v7552_v58 = vld [vmem:[#allocation31 + $0xf8] ss:$24 sps:$4 sm:$0xff]   ;;  %v7593_v34 = vld [vmem:[#allocation28 + $0x48] ss:$12 sps:$4 sm:$0xff]  }
0x14a6   :  { %4473 = vmatpush1.bf16.msra.mxu0 %v10114_v60  ;;  %4514 = vmatpush1.bf16.msra.mxu1 %v7544_v17  ;;  %v7554_v60 = vld [vmem:[#allocation31 + $0x12c] ss:$24 sps:$4 sm:$0xff]  }
0x14a7   :  { %4474 = vmatprep.subr.bf16.mxu0 %v7545_v59  ;;  %4515 = vmatprep.subr.bf16.mxu1 %v7546_v51  ;;  %v7594_v17 = vld [vmem:[#allocation28 + $0x64] ss:$12 sps:$4 sm:$0xff]   ;;  %v7595_v59 = vld [vmem:[#allocation28 + $0x60] ss:$12 sps:$4 sm:$0xff]  }
0x14a8   :  { %v7597_v51 = vld [vmem:[#allocation28 + $0x78] ss:$12 sps:$4 sm:$0xff]  }
0x14aa   :  { %4475 = vmatpush1.bf16.msra.mxu0 %v7547_v36  ;;  %4516 = vmatpush1.bf16.msra.mxu1 %v7548_v22  ;;  %v7598_v36 = vld [vmem:[#allocation28 + $0x94] ss:$12 sps:$4 sm:$0xff]   ;;  %v7599_v22 = vld [vmem:[#allocation28 + $0x90] ss:$12 sps:$4 sm:$0xff]  }
0x14ab   :  { %4476 = vmatprep.subr.bf16.mxu0 %v7549_v10  ;;  %4517 = vmatprep.subr.bf16.mxu1 %v7550_v57  ;;  %v7600_v10 = vld [vmem:[#allocation28 + $0xac] ss:$12 sps:$4 sm:$0xff]   ;;  %v7601_v57 = vld [vmem:[#allocation28 + $0xa8] ss:$12 sps:$4 sm:$0xff]  }
0x14ae   :  { %4477 = vmatpush1.bf16.msra.mxu0 %v7551_v16  ;;  %4518 = vmatpush1.bf16.msra.mxu1 %v7552_v58 }
0x14af   :  { %4478 = vmatprep.subr.bf16.mxu0 %v7553_v44  ;;  %4519 = vmatprep.subr.bf16.mxu1 %v7554_v60 }
0x14b2   :  { %4479 = vmatpush1.bf16.msra.mxu0 %v7555_v9  ;;  %4520 = vmatpush1.bf16.msra.mxu1 %v7556_v13 }
0x14b3   :  { %4480 = vmatprep.subr.bf16.mxu0 %v7557_v61  ;;  %4521 = vmatprep.subr.bf16.mxu1 %v7558_v18 }
0x14b6   :  { %4481 = vmatpush1.bf16.msra.mxu0 %v7559_v63  ;;  %4522 = vmatpush1.bf16.msra.mxu1 %v7560_v31  ;;  %v7602_v31 = vld [vmem:[#allocation29] ss:$12 sps:$4 sm:$0xff]  }
0x14b7   :  { %4548 = vmatprep.subr.bf16.mxu0 %v7561_v15  ;;  %6690 = vmatprep.subr.bf16.mxu1 %v10747_v14  ;;  %v7603_v15 = vld [vmem:[#allocation29 + $0x8] ss:$12 sps:$4 sm:$0xff]  }
0x14b9   :  { %4499 = vmatmul.mubr.bf16.vlgmr.msra.gmra.mrb[76].mxu0 %v10309_v2  ;;  %4540 = vmatmul.mubr.bf16.vlgmr.msra.gmra.mrb[92].mxu1 %v10309_v2 }
0x14ba   :  { %4549 = vmatpush1.bf16.msra.mxu0 %v7562_v38  ;;  %4580 = vmatprep.mubr.bf16.mxu0 %v10755_v20  ;;  %v7604_v38 = vld [vmem:[#allocation29 + $0x1c] ss:$12 sps:$4 sm:$0xff]  }
0x14bb   :  { %4550 = vmatprep.subr.bf16.mxu0 %v7563_v41  ;;  %6691 = vmatpush3.bf16.msra.mxu1 %v7564_v28  ;;  %v7605_v41 = vld [vmem:[#allocation29 + $0x18] ss:$12 sps:$4 sm:$0xff]   ;;  %v7606_v28 = vld [vmem:[#allocation29 + $0x20] ss:$12 sps:$4 sm:$0xff]  }
0x14bc   :  { %6692 = vmatprep.subr.bf16.mxu1 %v10747_v14  ;;  %6706 = vmatprep.mubr.msk.bf16.mxu1 %vm8574_vm0, %v10747_v14 }
0x14be   :  { %4551 = vmatpush1.bf16.msra.mxu0 %v7565_v39  ;;  %v7607_v39 = vld [vmem:[#allocation29 + $0x34] ss:$12 sps:$4 sm:$0xff]  }
0x14bf   :  { %4552 = vmatprep.subr.bf16.mxu0 %v7566_v37  ;;  %6693 = vmatpush3.bf16.msra.mxu1 %v7567_v42  ;;  %v7608_v37 = vld [vmem:[#allocation29 + $0x30] ss:$12 sps:$4 sm:$0xff]   ;;  %v7609_v42 = vld [vmem:[#allocation29 + $0x38] ss:$12 sps:$4 sm:$0xff]  }
0x14c0   :  { %6694 = vmatprep.subr.bf16.mxu1 %v10747_v14 }
0x14c2   :  { %4553 = vmatpush1.bf16.msra.mxu0 %v7568_v29  ;;  %v7610_v29 = vld [vmem:[#allocation29 + $0x4c] ss:$12 sps:$4 sm:$0xff]  }
0x14c3   :  { %4554 = vmatprep.subr.bf16.mxu0 %v7569_v12  ;;  %6695 = vmatpush3.bf16.msra.mxu1 %v7570_v27  ;;  %v7611_v12 = vld [vmem:[#allocation29 + $0x48] ss:$12 sps:$4 sm:$0xff]   ;;  %v7612_v27 = vld [vmem:[#allocation29 + $0x50] ss:$12 sps:$4 sm:$0xff]  }
0x14c4   :  { %6696 = vmatprep.subr.bf16.mxu1 %v10747_v14 }
0x14c6   :  { %4555 = vmatpush1.bf16.msra.mxu0 %v7571_v0  ;;  %v7613_v0 = vld [vmem:[#allocation29 + $0x64] ss:$12 sps:$4 sm:$0xff]  }
0x14c7   :  { %4556 = vmatprep.subr.bf16.mxu0 %v7572_v50  ;;  %6697 = vmatpush3.bf16.msra.mxu1 %v7573_v19  ;;  %v7614_v50 = vld [vmem:[#allocation29 + $0x60] ss:$12 sps:$4 sm:$0xff]   ;;  %v7615_v19 = vld [vmem:[#allocation29 + $0x68] ss:$12 sps:$4 sm:$0xff]  }
0x14c8   :  { %6698 = vmatprep.subr.bf16.mxu1 %v10747_v14 }
0x14ca   :  { %4557 = vmatpush1.bf16.msra.mxu0 %v7574_v62  ;;  %v7616_v62 = vld [vmem:[#allocation29 + $0x7c] ss:$12 sps:$4 sm:$0xff]  }
0x14cb   :  { %4558 = vmatprep.subr.bf16.mxu0 %v7575_v1  ;;  %6699 = vmatpush3.bf16.msra.mxu1 %v7576_v3  ;;  %v7617_v1 = vld [vmem:[#allocation29 + $0x78] ss:$12 sps:$4 sm:$0xff]   ;;  %v7618_v3 = vld [vmem:[#allocation29 + $0x80] ss:$12 sps:$4 sm:$0xff]  }
0x14cc   :  { %6700 = vmatprep.subr.bf16.mxu1 %v10747_v14 }
0x14ce   :  { %4559 = vmatpush1.bf16.msra.mxu0 %v7577_v5  ;;  %v7619_v5 = vld [vmem:[#allocation29 + $0x94] ss:$12 sps:$4 sm:$0xff]  }
0x14cf   :  { %4560 = vmatprep.subr.bf16.mxu0 %v7578_v32  ;;  %6701 = vmatpush3.bf16.msra.mxu1 %v7579_v7  ;;  %v7620_v32 = vld [vmem:[#allocation29 + $0x90] ss:$12 sps:$4 sm:$0xff]   ;;  %v7621_v7 = vld [vmem:[#allocation29 + $0x98] ss:$12 sps:$4 sm:$0xff]  }
0x14d0   :  { %6702 = vmatprep.subr.bf16.mxu1 %v10747_v14 }
0x14d2   :  { %4561 = vmatpush1.bf16.msra.mxu0 %v7580_v46  ;;  %v7622_v46 = vld [vmem:[#allocation29 + $0xac] ss:$12 sps:$4 sm:$0xff]  }
0x14d3   :  { %4562 = vmatprep.subr.bf16.mxu0 %v7581_v52  ;;  %6703 = vmatpush3.bf16.msra.mxu1 %v7582_v23  ;;  %v7623_v23 = vld [vmem:[#allocation29 + $0xa8] ss:$12 sps:$4 sm:$0xff]  }
0x14d4   :  { %6704 = vmatprep.subr.bf16.mxu1 %v10747_v14 }
0x14d6   :  { %4563 = vmatpush1.bf16.msra.mxu0 %v7583_v24  ;;  %v7624_v24 = vld [vmem:[#allocation29 + $0xb0] ss:$12 sps:$4 sm:$0xff]  }
0x14d7   :  { %4590 = vmatprep.subr.bf16.mxu0 %v7584_v49  ;;  %6705 = vmatpush3.bf16.msra.mxu1 %v7585_v26 }
0x14d8   :  { %4672 = vmatprep.subr.bf16.mxu1 %v7586_v48 }
0x14d9   :  { %4581 = vmatmul.mubr.bf16.vlgmr.msra.gmra.mrb[80].mxu0 %v10309_v2  ;;  %v7596_v2 = vld [vmem:[#allocation28 + $0x7c] ss:$12 sps:$4 sm:$0xff]  }
0x14da   :  { %4591 = vmatpush1.bf16.msra.mxu0 %v7587_v35  ;;  %4622 = vmatprep.mubr.bf16.mxu0 %v10755_v20 }
0x14db   :  { %4592 = vmatprep.subr.bf16.mxu0 %v7588_v40  ;;  %v7625_v40 = vld [vmem:[%s10865_s5] sm:$0xff]  }
0x14de   :  { %4593 = vmatpush1.bf16.msra.mxu0 %v7589_v4  ;;  %v7626_v4 = vld [vmem:[#allocation38] sm:$0xff]  }
0x14df   :  { %4594 = vmatprep.subr.bf16.mxu0 %v7590_v33  ;;  %v7627_v33 = vld [vmem:[%s10865_s5 + $0x8] sm:$0xff]  }
0x14e2   :  { %4595 = vmatpush1.bf16.msra.mxu0 %v7591_v21  ;;  %v7628_v21 = vld [vmem:[#allocation38 + $0x8] sm:$0xff]  }
0x14e3   :  { %4596 = vmatprep.subr.bf16.mxu0 %v7592_v45  ;;  %v7629_v45 = vld [vmem:[%s10865_s5 + $0x10] sm:$0xff]  }
0x14e6   :  { %4597 = vmatpush1.bf16.msra.mxu0 %v7593_v34  ;;  %v7630_v34 = vld [vmem:[#allocation38 + $0x10] sm:$0xff]  }
0x14e7   :  { %4598 = vmatprep.subr.bf16.mxu0 %v7594_v17  ;;  %v7631_v17 = vld [vmem:[%s10865_s5 + $0x18] sm:$0xff]  }
0x14ea   :  { %4599 = vmatpush1.bf16.msra.mxu0 %v7595_v59  ;;  %v7632_v59 = vld [vmem:[#allocation38 + $0x18] sm:$0xff]  }
0x14eb   :  { %4600 = vmatprep.subr.bf16.mxu0 %v7596_v2  ;;  %v7633_v2 = vld [vmem:[%s10865_s5 + $0x20] sm:$0xff]  }
0x14ee   :  { %4601 = vmatpush1.bf16.msra.mxu0 %v7597_v51  ;;  %v7634_v51 = vld [vmem:[#allocation38 + $0x20] sm:$0xff]  }
0x14ef   :  { %4602 = vmatprep.subr.bf16.mxu0 %v7598_v36  ;;  %v7635_v36 = vld [vmem:[%s10865_s5 + $0x28] sm:$0xff]  }
0x14f2   :  { %4603 = vmatpush1.bf16.msra.mxu0 %v7599_v22  ;;  %v7636_v22 = vld [vmem:[#allocation38 + $0x28] sm:$0xff]  }
0x14f3   :  { %4604 = vmatprep.subr.bf16.mxu0 %v7600_v10  ;;  %v7637_v10 = vld [vmem:[%s10865_s5 + $0x30] sm:$0xff]  }
0x14f6   :  { %4605 = vmatpush1.bf16.msra.mxu0 %v7601_v57  ;;  %v7638_v57 = vld [vmem:[#allocation38 + $0x30] sm:$0xff]  }
0x14f7   :  { %6710 = vmatprep.subr.bf16.mxu0 %v10747_v14 }
0x156c   :  { %v4420_v16 = vpop.f32.mrb[72].mxu0  ;;  %v4460_v58 = vpop.f32.mrb[88].mxu1 }
0x156d   :  { %v4589_v44 = vpack.c.bf16 %v4420_v16, %v4420_v16  ;;  %v6682_v60 = vpop.f32.mrb[73].mxu0  ;;  %v6688_v9 = vpop.f32.mrb[89].mxu1  ;;  %v4671_v52 = vpack.c.bf16 %v4460_v58, %v4460_v58  ;;  %v7639_v58 = vld [vmem:[%s10865_s5 + $0x38] sm:$0xff]  }
0x156e   :  { %v4423_v13 = vpop.f32.mrb[74].mxu0  ;;  %v4463_v61 = vpop.f32.mrb[90].mxu1  ;;  %v7640_v60 = vld [vmem:[#allocation38 + $0x38] sm:$0xff]  }
0x156f   :  { %v6683_v18 = vpop.f32.mrb[75].mxu0  ;;  %4623 = vmatmul.mubr.bf16.vlgmr.msra.gmra.mrb[76].mxu0 %v4589_v44  ;;  %6707 = vmatmul.mubr.bf16.vlgmr.msra.gmra.mrb[96].mxu1 %v4589_v44  ;;  %v6689_v63 = vpop.f32.mrb[91].mxu1  ;;  %v7641_v13 = vld [vmem:[#allocation41 + $0x4] ss:$8 sps:$4 sm:$0xff]  }
0x1570   :  { %4673 = vmatpush1.bf16.msra.mxu1 %v7602_v31  ;;  %6711 = vmatpush3.bf16.msra.mxu0 %v7603_v15 }
0x1571   :  { %4674 = vmatprep.subr.bf16.mxu1 %v7604_v38  ;;  %6712 = vmatprep.subr.bf16.mxu0 %v10747_v14 }
0x1572   :  { %4704 = vmatprep.mubr.bf16.mxu1 %v10755_v20  ;;  %6726 = vmatprep.mubr.msk.bf16.mxu0 %vm8574_vm0, %v10747_v14 }
0x1574   :  { %4675 = vmatpush1.bf16.msra.mxu1 %v7605_v41  ;;  %6713 = vmatpush3.bf16.msra.mxu0 %v7606_v28 }
0x1575   :  { %4676 = vmatprep.subr.bf16.mxu1 %v7607_v39  ;;  %6714 = vmatprep.subr.bf16.mxu0 %v10747_v14 }
0x1578   :  { %4677 = vmatpush1.bf16.msra.mxu1 %v7608_v37  ;;  %6715 = vmatpush3.bf16.msra.mxu0 %v7609_v42 }
0x1579   :  { %4678 = vmatprep.subr.bf16.mxu1 %v7610_v29  ;;  %6716 = vmatprep.subr.bf16.mxu0 %v10747_v14 }
0x157c   :  { %4679 = vmatpush1.bf16.msra.mxu1 %v7611_v12  ;;  %6717 = vmatpush3.bf16.msra.mxu0 %v7612_v27 }
0x157d   :  { %4680 = vmatprep.subr.bf16.mxu1 %v7613_v0  ;;  %6718 = vmatprep.subr.bf16.mxu0 %v10747_v14 }
0x1580   :  { %4681 = vmatpush1.bf16.msra.mxu1 %v7614_v50  ;;  %6719 = vmatpush3.bf16.msra.mxu0 %v7615_v19 }
0x1581   :  { %4682 = vmatprep.subr.bf16.mxu1 %v7616_v62  ;;  %6720 = vmatprep.subr.bf16.mxu0 %v10747_v14 }
0x1584   :  { %4683 = vmatpush1.bf16.msra.mxu1 %v7617_v1  ;;  %6721 = vmatpush3.bf16.msra.mxu0 %v7618_v3 }
0x1585   :  { %4684 = vmatprep.subr.bf16.mxu1 %v7619_v5  ;;  %6722 = vmatprep.subr.bf16.mxu0 %v10747_v14 }
0x1588   :  { %4685 = vmatpush1.bf16.msra.mxu1 %v7620_v32  ;;  %6723 = vmatpush3.bf16.msra.mxu0 %v7621_v7 }
0x1589   :  { %4686 = vmatprep.subr.bf16.mxu1 %v7622_v46  ;;  %6724 = vmatprep.subr.bf16.mxu0 %v10747_v14 }
0x158c   :  { %4687 = vmatpush1.bf16.msra.mxu1 %v7623_v23  ;;  %6725 = vmatpush3.bf16.msra.mxu0 %v7624_v24  ;;  %v10351_v49 = vpop.f32.mrb[92].mxu1 }
0x158d   :  { %v10353_v26 = vpop.f32.mrb[93].mxu1  ;;  %6750 = vmatprep.subr.bf16.mxu0 %v10747_v14  ;;  %6730 = vmatprep.subr.bf16.mxu1 %v10747_v14 }
0x158e   :  { %v4545_v48 = vpop.f32.mrb[94].mxu1 }
0x158f   :  { %4705 = vmatmul.mubr.bf16.vlgmr.msra.gmra.mrb[100].mxu1 %v4671_v52  ;;  %6727 = vmatmul.mubr.bf16.vlgmr.msra.gmra.mrb[84].mxu0 %v4671_v52  ;;  %v4546_v35 = vpop.f32.mrb[95].mxu1 }
0x1590   :  { %6751 = vmatpush3.bf16.msra.mxu0 %v7625_v40  ;;  %6766 = vmatprep.mubr.msk.bf16.mxu0 %vm8574_vm0, %v10747_v14 }
0x1591   :  { %6752 = vmatprep.subr.bf16.mxu0 %v10747_v14  ;;  %6731 = vmatpush3.bf16.msra.mxu1 %v7626_v4 }
0x1592   :  { %6732 = vmatprep.subr.bf16.mxu1 %v10747_v14  ;;  %6746 = vmatprep.mubr.msk.bf16.mxu1 %vm8574_vm0, %v10747_v14 }
0x1594   :  { %6753 = vmatpush3.bf16.msra.mxu0 %v7627_v33 }
0x1595   :  { %6754 = vmatprep.subr.bf16.mxu0 %v10747_v14  ;;  %6733 = vmatpush3.bf16.msra.mxu1 %v7628_v21 }
0x1596   :  { %6734 = vmatprep.subr.bf16.mxu1 %v10747_v14 }
0x1598   :  { %6755 = vmatpush3.bf16.msra.mxu0 %v7629_v45 }
0x1599   :  { %6756 = vmatprep.subr.bf16.mxu0 %v10747_v14  ;;  %6735 = vmatpush3.bf16.msra.mxu1 %v7630_v34 }
0x159a   :  { %6736 = vmatprep.subr.bf16.mxu1 %v10747_v14 }
0x159c   :  { %6757 = vmatpush3.bf16.msra.mxu0 %v7631_v17 }
0x159d   :  { %6758 = vmatprep.subr.bf16.mxu0 %v10747_v14  ;;  %6737 = vmatpush3.bf16.msra.mxu1 %v7632_v59 }
0x159e   :  { %6738 = vmatprep.subr.bf16.mxu1 %v10747_v14 }
0x15a0   :  { %6759 = vmatpush3.bf16.msra.mxu0 %v7633_v2 }
0x15a1   :  { %6760 = vmatprep.subr.bf16.mxu0 %v10747_v14  ;;  %6739 = vmatpush3.bf16.msra.mxu1 %v7634_v51 }
0x15a2   :  { %6740 = vmatprep.subr.bf16.mxu1 %v10747_v14 }
0x15a4   :  { %6761 = vmatpush3.bf16.msra.mxu0 %v7635_v36 }
0x15a5   :  { %6762 = vmatprep.subr.bf16.mxu0 %v10747_v14  ;;  %6741 = vmatpush3.bf16.msra.mxu1 %v7636_v22 }
0x15a6   :  { %6742 = vmatprep.subr.bf16.mxu1 %v10747_v14 }
0x15a8   :  { %6763 = vmatpush3.bf16.msra.mxu0 %v7637_v10 }
0x15a9   :  { %6764 = vmatprep.subr.bf16.mxu0 %v10747_v14  ;;  %6743 = vmatpush3.bf16.msra.mxu1 %v7638_v57 }
0x15aa   :  { %6744 = vmatprep.subr.bf16.mxu1 %v10747_v14 }
0x15ac   :  { %v4582_v16 = vpop.f32.mrb[80].mxu0  ;;  %6765 = vmatpush3.bf16.msra.mxu0 %v7639_v58 }
0x15ad   :  { %v10383_v44 = vpop.f32.mrb[81].mxu0  ;;  %6745 = vmatpush3.bf16.msra.mxu1 %v7640_v60  ;;  %6770 = vmatprep.subr.bf16.mxu0 %v10747_v14  ;;  %v4778_v24 = vadd.f32 %v4582_v16, %v10977_v25 }
0x15ae   :  { %v4586_v9 = vpop.f32.mrb[82].mxu0  ;;  %4885 = vmatprep.subr.bf16.mxu1 %v7641_v13  ;;  %v4779_v36 = vadd.f32 %v10383_v44, %v10008_v30  ;;  %v7643_v30 = vld [vmem:[#allocation41 + $0x14] ss:$8 sps:$4 sm:$0xff]   ;;  %v7645_v44 = vld [vmem:[#allocation41 + $0x24] ss:$8 sps:$4 sm:$0xff]  }
0x15af   :  { %v4587_v61 = vpop.f32.mrb[83].mxu0 }
0x1642   :  { %v4624_v18 = vpop.f32.mrb[76].mxu0  ;;  %v4665_v63 = vpop.f32.mrb[96].mxu1 }
0x1643   :  { %v6915_v31 = vadd.f32 %v10971_v54, %v4624_v18  ;;  %v4626_v15 = vpop.f32.mrb[77].mxu0  ;;  %v6708_v38 = vpop.f32.mrb[97].mxu1  ;;  %v4755_v54 = vadd.f32 %v10351_v49, %v10973_v56  ;;  %v4666_v1 = vadd.f32 %v4665_v63, %v10974_v47 }
0x1644   :  { %v4628_v41 = vpop.f32.mrb[78].mxu0  ;;  %v4668_v28 = vpop.f32.mrb[98].mxu1  ;;  %v6917_v29 = vadd.f32 %v10972_v53, %v4626_v15  ;;  %v4777_v53 = vadd.f32 %v10353_v26, %v10975_v6  ;;  %v7646_v15 = vld [vmem:[#allocation41 + $0x20] ss:$8 sps:$4 sm:$0xff]   ;;  %v7647_v38 = vld [vmem:[#allocation41 + $0x34] ss:$8 sps:$4 sm:$0xff]  }
0x1645   :  { %v5985_v39 = vmul.f32 -1.442695, %v6915_v31  ;;  %v4629_v37 = vpop.f32.mrb[79].mxu0  ;;  %v6709_v42 = vpop.f32.mrb[99].mxu1  ;;  %v7642_v31 = vld [vmem:[#allocation41] ss:$8 sps:$4 sm:$0xff]  }
0x1646   :  { %v5986_v12 = vmul.f32 -1.442695, %v6917_v29  ;;  %v7648_v41 = vld [vmem:[#allocation41 + $0x30] ss:$8 sps:$4 sm:$0xff]   ;;  %v7650_v28 = vld [vmem:[#allocation41 + $0x40] ss:$8 sps:$4 sm:$0xff]  }
0x1647   :  { %7497 = vpow2.f32 %v5985_v39  ;;  %v7651_v39 = vld [vmem:[#allocation41 + $0x54] ss:$8 sps:$4 sm:$0xff]   ;;  %v7652_v37 = vld [vmem:[#allocation41 + $0x50] ss:$8 sps:$4 sm:$0xff]   ;;  %v7654_v42 = vld [vmem:[#allocation41 + $0x60] ss:$8 sps:$4 sm:$0xff]  }
0x1648   :  { %7499 = vpow2.f32 %v5986_v12  ;;  %v7655_v29 = vld [vmem:[#allocation41 + $0x74] ss:$8 sps:$4 sm:$0xff]   ;;  %v7656_v12 = vld [vmem:[#allocation41 + $0x70] ss:$8 sps:$4 sm:$0xff]  }
0x1651   :  { %v7498_v27 = vpop.eup %7497 }
0x1652   :  { %v4760_v0 = vadd.f32 1.0, %v7498_v27  ;;  %v7500_v50 = vpop.eup %7499 }
0x1653   :  { %v4767_v19 = vadd.f32 1.0, %v7500_v50 }
0x1654   :  { %7501 = vrcp.f32 %v4760_v0 }
0x1655   :  { %7503 = vrcp.f32 %v4767_v19 }
0x165e   :  { %v7502_v62 = vpop.eup %7501 }
0x165f   :  { %v4770_v3 = vmul.f32 %v7502_v62, %v4755_v54  ;;  %v7504_v21 = vpop.eup %7503 }
0x1660   :  { %v4773_v6 = vsub.f32 1.0, %v7504_v21 }
0x1661   :  { %v4771_v5 = vadd.f32 %v4770_v3, %v4666_v1 }
0x1662   :  { %v4706_v32 = vpop.f32.mrb[100].mxu1  ;;  %v4747_v7 = vpop.f32.mrb[84].mxu0 }
0x1663   :  { %7505 = vtanh.f32 %v4771_v5  ;;  %v4707_v46 = vadd.f32 %v4706_v32, %v10976_v8  ;;  %v4708_v52 = vpop.f32.mrb[101].mxu1  ;;  %v6728_v23 = vpop.f32.mrb[85].mxu0  ;;  %v4775_v8 = vmul.f32 %v7504_v21, %v10305_v11  ;;  %v4748_v10 = vadd.f32 %v4747_v7, %v10011_v43  ;;  %v7644_v43 = vld [vmem:[#allocation41 + $0x10] ss:$8 sps:$4 sm:$0xff]   ;;  %v7657_v5 = vld [vmem:[#allocation40] ss:$0 sm:$0xff] }
0x1664   :  { %v4709_v56 = vadd.f32 %v4708_v52, %v9996_v55  ;;  %v4710_v49 = vpop.f32.mrb[102].mxu1  ;;  %v4750_v48 = vpop.f32.mrb[86].mxu0  ;;  %v10986_v52 = vld [vmem:[#allocation137_spill] sm:$0xff]  ;;  %v5046_v21 = vld [vmem:[#allocation46] sm:$0xf] }
0x1665   :  { %v4780_v47 = vadd.f32 %v4777_v53, %v4707_v46  ;;  %v4711_v35 = vpop.f32.mrb[103].mxu1  ;;  %v6729_v40 = vpop.f32.mrb[87].mxu0  ;;  %v10985_v46 = vld [vmem:[#allocation138_spill] sm:$0xff]  ;;  %v7327_v49 = vld [vmem:[#allocation43 + $0x10] sm:$0xff]  }
0x1666   :  { %v4787_v4 = vadd.f32 %v4778_v24, %v4709_v56  ;;  %v10987_v23 = vpack.c.bf16 %v10985_v46, %v10986_v52  ;;  %v7325_v24 = vld [vmem:[#allocation43] sm:$0xff]   ;;  %v7326_v56 = vld [vmem:[#allocation43 + $0x8] sm:$0xff]   ;;  %v7328_v48 = vld [vmem:[#allocation43 + $0x18] sm:$0xff]  }
0x1667   :  { %v5987_v33 = vmul.f32 -1.442695, %v4780_v47  ;;  %v7329_v47 = vld [vmem:[#allocation43 + $0x20] sm:$0xff]   ;;  %v7330_v35 = vld [vmem:[#allocation43 + $0x28] sm:$0xff]   ;;  %v7331_v40 = vld [vmem:[#allocation43 + $0x30] sm:$0xff]  }
0x1668   :  { %v5988_v45 = vmul.f32 -1.442695, %v4787_v4  ;;  %v7332_v4 = vld [vmem:[#allocation43 + $0x38] sm:$0xff]   ;;  %v7340_v46 = vld [vmem:[#allocation49 + $0x38] sm:$0xff]  }
0x1669   :  { %7507 = vpow2.f32 %v5987_v33  ;;  %v5363_v33 = vld [vmem:[%s10988_s26] sm:$0x1] }
0x166a   :  { %7509 = vpow2.f32 %v5988_v45  ;;  %v5365_v45 = vsel %vm5364_vm4, %v5363_v33, -inf }
0x166b   :  { %5366 = vmax.xlane.f32.xlu0 %v5365_v45  ;;  %v6001_v45 = vld [vmem:[#allocation50] ss:$0 sm:$0xff] }
0x166d   :  { %v7506_v26 = vpop.eup %7505 }
0x166e   :  { %v4774_v34 = vmul.f32 %v7506_v26, %v4773_v6 }
0x1670   :  { %v4776_v17 = vadd.f32 %v4775_v8, %v4774_v34 }
0x1672   :  { %v4801_v25 = vpack.c.bf16 %v4776_v17, %v4776_v17 }
0x1673   :  { %v7508_v59 = vpop.eup %7507 }
0x1674   :  { %v4784_v55 = vadd.f32 1.0, %v7508_v59  ;;  %6767 = vmatmul.mubr.bf16.vlgmr.msra.gmra.mrb[88].mxu0 %v4801_v25  ;;  %v7510_v2 = vpop.eup %7509 }
0x1675   :  { %6786 = vmatprep.mubr.msk.bf16.mxu0 %vm8574_vm0, %v10747_v14  ;;  %v4791_v51 = vadd.f32 1.0, %v7510_v2  ;;  %6771 = vmatpush3.bf16.msra.mxu0 %v7325_v24 }
0x1676   :  { %7511 = vrcp.f32 %v4784_v55  ;;  %6772 = vmatprep.subr.bf16.mxu0 %v10747_v14 }
0x1677   :  { %7513 = vrcp.f32 %v4791_v51 }
0x1679   :  { %6773 = vmatpush3.bf16.msra.mxu0 %v7326_v56 }
0x167a   :  { %6774 = vmatprep.subr.bf16.mxu0 %v10747_v14 }
0x167d   :  { %6775 = vmatpush3.bf16.msra.mxu0 %v7327_v49 }
0x167e   :  { %6776 = vmatprep.subr.bf16.mxu0 %v10747_v14 }
0x1680   :  { %v7512_v22 = vpop.eup %7511 }
0x1681   :  { %v4794_v57 = vmul.f32 %v7512_v22, %v4779_v36  ;;  %v7514_v58 = vpop.eup %7513  ;;  %6777 = vmatpush3.bf16.msra.mxu0 %v7328_v48 }
0x1682   :  { %v4797_v60 = vsub.f32 1.0, %v7514_v58  ;;  %v4799_v61 = vmul.f32 %v7514_v58, %v10305_v11  ;;  %v7649_v11 = vld [vmem:[#allocation41 + $0x44] ss:$8 sps:$4 sm:$0xff]   ;;  %6778 = vmatprep.subr.bf16.mxu0 %v10747_v14 }
0x1683   :  { %v4795_v16 = vadd.f32 %v4794_v57, %v4748_v10 }
0x1685   :  { %7515 = vtanh.f32 %v4795_v16  ;;  %6779 = vmatpush3.bf16.msra.mxu0 %v7329_v47 }
0x1686   :  { %6780 = vmatprep.subr.bf16.mxu0 %v10747_v14 }
0x1689   :  { %6781 = vmatpush3.bf16.msra.mxu0 %v7330_v35 }
0x168a   :  { %6782 = vmatprep.subr.bf16.mxu0 %v10747_v14 }
0x168d   :  { %6783 = vmatpush3.bf16.msra.mxu0 %v7331_v40 }
0x168e   :  { %6784 = vmatprep.subr.bf16.mxu0 %v10747_v14 }
0x168f   :  { %v7516_v9 = vpop.eup %7515 }
0x1690   :  { %v4798_v13 = vmul.f32 %v7516_v9, %v4797_v60 }
0x1691   :  { %6785 = vmatpush3.bf16.msra.mxu0 %v7332_v4 }
0x1692   :  { %v4800_v18 = vadd.f32 %v4799_v61, %v4798_v13  ;;  %6822 = vmatprep.subr.bf16.mxu0 %v10747_v14 }
0x1694   :  { %v4802_v63 = vpack.c.bf16 %v4800_v18, %v4800_v18  ;;  %v7341_v18 = vld [vmem:[#allocation52] sm:$0xff]  }
0x1696   :  { %6747 = vmatmul.mubr.bf16.vlgmr.msra.gmra.mrb[104].mxu1 %v4802_v63  ;;  %v8576_v63 = vmov 1  }
0x1697   :  { %4886 = vmatpush1.bf16.msra.mxu1 %v7642_v31  ;;  %4917 = vmatprep.mubr.bf16.mxu1 %v10755_v20  ;;  %v7653_v20 = vld [vmem:[#allocation41 + $0x64] ss:$8 sps:$4 sm:$0xff]   ;;  %v7342_v31 = vld [vmem:[#allocation52 + $0x8] sm:$0xff]  }
0x1698   :  { %4887 = vmatprep.subr.bf16.mxu1 %v7643_v30  ;;  %7034 = vset.pattern.permute.xlu0 %v8576_v63  ;;  %v7343_v30 = vld [vmem:[#allocation52 + $0x10] sm:$0xff]  }
0x169b   :  { %4888 = vmatpush1.bf16.msra.mxu1 %v7644_v43  ;;  %v7344_v43 = vld [vmem:[#allocation52 + $0x18] sm:$0xff]  }
0x169c   :  { %4889 = vmatprep.subr.bf16.mxu1 %v7645_v44  ;;  %v7345_v44 = vld [vmem:[#allocation52 + $0x20] sm:$0xff]  }
0x169f   :  { %4890 = vmatpush1.bf16.msra.mxu1 %v7646_v15  ;;  %v7346_v15 = vld [vmem:[#allocation52 + $0x28] sm:$0xff]  }
0x16a0   :  { %4891 = vmatprep.subr.bf16.mxu1 %v7647_v38  ;;  %v7347_v38 = vld [vmem:[#allocation52 + $0x30] sm:$0xff]  }
0x16a3   :  { %4892 = vmatpush1.bf16.msra.mxu1 %v7648_v41 }
0x16a4   :  { %4893 = vmatprep.subr.bf16.mxu1 %v7649_v11 }
0x16a7   :  { %4894 = vmatpush1.bf16.msra.mxu1 %v7650_v28 }
0x16a8   :  { %4895 = vmatprep.subr.bf16.mxu1 %v7651_v39  ;;  %v10989_v39 = vld [vmem:[#allocation129_spill] sm:$0xff] }
0x16ab   :  { %4896 = vmatpush1.bf16.msra.mxu1 %v7652_v37 }
0x16ac   :  { %4897 = vmatprep.subr.bf16.mxu1 %v7653_v20  ;;  %v5990_v20 = vld [vmem:[#allocation44] ss:$0 sm:$0xff] }
0x16af   :  { %4898 = vmatpush1.bf16.msra.mxu1 %v7654_v42 }
0x16b0   :  { %4899 = vmatprep.subr.bf16.mxu1 %v7655_v29 }
0x16b3   :  { %4900 = vmatpush1.bf16.msra.mxu1 %v7656_v12 }
0x16b4   :  { %6790 = vmatprep.subr.bf16.mxu1 %v10747_v14 }
0x16f8   :  { %v5367_v22 = vpop.xlane.xlu0 %5366 }
0x16f9   :  { %v5368_v10 = vsub.f32 %v5363_v33, %v5367_v22 }
0x16fb   :  { %v5369_v57 = vmul.f32 1.442695, %v5368_v10 }
0x1747   :  { %v4877_v27 = vpop.f32.mrb[88].mxu0 }
0x1748   :  { %v6768_v0 = vpop.f32.mrb[89].mxu0 }
0x1749   :  { %v4880_v50 = vpop.f32.mrb[90].mxu0 }
0x174a   :  { %v6769_v19 = vpop.f32.mrb[91].mxu0 }
0x1769   :  { %v4837_v54 = vpop.f32.mrb[104].mxu1 }
0x176a   :  { %v4878_v62 = vadd.f32 %v4877_v27, %v4837_v54  ;;  %v6748_v1 = vpop.f32.mrb[105].mxu1  ;;  %v5091_v54 = vld [vmem:[#allocation47] sm:$0xf] }
0x176b   :  { %v4840_v3 = vpop.f32.mrb[106].mxu1  ;;  %v7334_v1 = vld [vmem:[#allocation49 + $0x8] sm:$0xff]  }
0x176c   :  { %v4883_v32 = vadd.f32 %v7657_v5, %v4878_v62  ;;  %v6749_v7 = vpop.f32.mrb[107].mxu1  ;;  %v7333_v62 = vld [vmem:[#allocation49] sm:$0xff]   ;;  %v7335_v3 = vld [vmem:[#allocation49 + $0x10] sm:$0xff]   ;;  %v7336_v5 = vld [vmem:[#allocation49 + $0x18] sm:$0xff]  }
0x176d   :  { %v7338_v7 = vld [vmem:[#allocation49 + $0x28] sm:$0xff]  }
0x176e   :  { %v4884_v53 = vpack.c.bf16 %v4883_v32, %v4883_v32  ;;  %v7337_v32 = vld [vmem:[#allocation49 + $0x20] sm:$0xff]  }
0x1770   :  { %4918 = vmatmul.mubr.bf16.vlgmr.msra.gmra.mrb[108].mxu1 %v4884_v53  ;;  %v7339_v53 = vld [vmem:[#allocation49 + $0x30] sm:$0xff]  }
0x1771   :  { %6791 = vmatpush3.bf16.msra.mxu1 %v10987_v23  ;;  %6792 = vmatprep.mubr.msk.bf16.mxu1 %vm8574_vm0, %v10747_v14  ;;  %v7348_v23 = vld [vmem:[#allocation52 + $0x38] sm:$0xff]  }
0x1772   :  { %6796 = vmatprep.subr.bf16.mxu1 %v10747_v14 }
0x1778   :  { %6793 = vmatmul.mubr.msk.bf16.vlgmr.msra.gmra.mrb[112].mxu1 %vm857_vm1, %v5046_v21 }
0x1779   :  { %6798 = vmatprep.mubr.msk.bf16.mxu1 %vm8574_vm0, %v10747_v14 }
0x1843   :  { %v4919_v6 = vpop.f32.mrb[108].mxu1 }
0x1844   :  { %v5989_v26 = vmul.f32 -1.442695, %v4919_v6  ;;  %v4921_v34 = vpop.f32.mrb[109].mxu1 }
0x1845   :  { %v4923_v8 = vpop.f32.mrb[110].mxu1 }
0x1846   :  { %7517 = vpow2.f32 %v5989_v26  ;;  %v4924_v17 = vpop.f32.mrb[111].mxu1 }
0x184b   :  { %v10427_v60 = vpop.f32.mrb[112].mxu1 }
0x184c   :  { %v6794_v9 = vpop.f32.mrb[113].mxu1  ;;  %v5139_v52 = vpack.c.bf16 %v10427_v60, %v10427_v60  ;;  %v7350_v60 = vld [vmem:[%s10991_s28 + $0x8] sm:$0xff]  }
0x184d   :  { %v5088_v13 = vpop.f32.mrb[114].mxu1 }
0x184e   :  { %v6795_v61 = vpop.f32.mrb[115].mxu1 }
0x1850   :  { %v7518_v25 = vpop.eup %7517 }
0x1851   :  { %v4929_v59 = vadd.f32 1.0, %v7518_v25 }
0x1853   :  { %7519 = vrcp.f32 %v4929_v59 }
0x1854   :  { %7521 = vpow2.f32 %v5369_v57 }
0x185d   :  { %v7520_v55 = vpop.eup %7519 }
0x185e   :  { %v4932_v2 = vmul.f32 %v7520_v55, %v4919_v6  ;;  %v7522_v16 = vpop.eup %7521  ;;  %v10990_v6 = vlaneseq }
0x185f   :  { %v5371_v58 = vsel %vm5364_vm4, %v7522_v16, 0.0 }
0x1860   :  { %v4933_v51 = vmul.f32 %v4932_v2, %v4921_v34  ;;  %5372 = vadd.xlane.f32.xlu0 %v5371_v58  ;;  %v5393_v26 = vand.u32 127, %v10990_v6  ;;  %v6010_v34 = vld [vmem:[#allocation53] ss:$0 sm:$0xff]  ;;  %v7349_v58 = vld [vmem:[%s10991_s28] sm:$0xff]  }
0x1862   :  { %v4934_v36 = vpack.c.bf16 %v4933_v51, %v4933_v51  ;;  %vm5394_vm5 = vcmp.lt.s32.totalorder %v5393_v26, 16 }
0x1863   :  { %v6019_v10 = vsel %vm5394_vm5, 1.0, %v10747_v14 }
0x1864   :  { %6787 = vmatmul.mubr.bf16.vlgmr.msra.gmra.mrb[92].mxu0 %v4934_v36 }
0x1865   :  { %6838 = vmatprep.mubr.msk.bf16.mxu0 %vm8574_vm0, %v10747_v14  ;;  %6823 = vmatpush3.bf16.msra.mxu0 %v7341_v18 }
0x1866   :  { %6824 = vmatprep.subr.bf16.mxu0 %v10747_v14 }
0x1869   :  { %6825 = vmatpush3.bf16.msra.mxu0 %v7342_v31  ;;  %v7351_v31 = vld [vmem:[%s10991_s28 + $0x10] sm:$0xff]  }
0x186a   :  { %6826 = vmatprep.subr.bf16.mxu0 %v10747_v14 }
0x186d   :  { %6827 = vmatpush3.bf16.msra.mxu0 %v7343_v30  ;;  %v7352_v30 = vld [vmem:[%s10991_s28 + $0x18] sm:$0xff]  }
0x186e   :  { %6828 = vmatprep.subr.bf16.mxu0 %v10747_v14 }
0x1871   :  { %6829 = vmatpush3.bf16.msra.mxu0 %v7344_v43  ;;  %v7353_v43 = vld [vmem:[%s10991_s28 + $0x20] sm:$0xff]  }
0x1872   :  { %6830 = vmatprep.subr.bf16.mxu0 %v10747_v14 }
0x1875   :  { %6831 = vmatpush3.bf16.msra.mxu0 %v7345_v44  ;;  %v7354_v44 = vld [vmem:[%s10991_s28 + $0x28] sm:$0xff]  }
0x1876   :  { %6832 = vmatprep.subr.bf16.mxu0 %v10747_v14 }
0x1879   :  { %6833 = vmatpush3.bf16.msra.mxu0 %v7346_v15  ;;  %v7355_v15 = vld [vmem:[%s10991_s28 + $0x30] sm:$0xff]  }
0x187a   :  { %6834 = vmatprep.subr.bf16.mxu0 %v10747_v14 }
0x187d   :  { %6835 = vmatpush3.bf16.msra.mxu0 %v7347_v38  ;;  %v7356_v38 = vld [vmem:[%s10991_s28 + $0x38] sm:$0xff]  }
0x187e   :  { %6836 = vmatprep.subr.bf16.mxu0 %v10747_v14 }
0x1881   :  { %6837 = vmatpush3.bf16.msra.mxu0 %v7348_v23 }
0x1882   :  { %6862 = vmatprep.subr.bf16.mxu0 %v10747_v14 }
0x18ed   :  { %v5373_v41 = vpop.xlane.xlu0 %5372 }
0x18ee   :  { %7523 = vrcp.f32 %v5373_v41  ;;  %v7357_v41 = vld [vmem:[#allocation55] sm:$0xff]  }
0x18f8   :  { %v7524_v11 = vpop.eup %7523 }
0x18f9   :  { %v5375_v28 = vmul.f32 %v7524_v11, %v7522_v16  ;;  %v7358_v11 = vld [vmem:[#allocation55 + $0x8] sm:$0xff]  }
0x18fb   :  { %v5380_v37 = vrot.slane %v5375_v28, %v10989_v39  ;;  %v7359_v28 = vld [vmem:[#allocation55 + $0x10] sm:$0xff]   ;;  %v7360_v39 = vld [vmem:[#allocation55 + $0x18] sm:$0xff]  }
0x18fd   :  { %5382 = vperm.xlu1 %7032, %v5380_v37  }
0x1901   :  { %7033 = vset.pattern.permute.xlu1 %v8576_v63 }
0x1902   :  { %5387 = vperm.xlu1 %7033, %v5380_v37   ;;  %v7361_v37 = vld [vmem:[#allocation55 + $0x20] sm:$0xff]  }
0x1937   :  { %v5040_v42 = vpop.f32.mrb[92].mxu0 }
0x1938   :  { %v5041_v29 = vadd.f32 %v5990_v20, %v5040_v42  ;;  %v6788_v12 = vpop.f32.mrb[93].mxu0  ;;  %v7362_v20 = vld [vmem:[#allocation55 + $0x28] sm:$0xff]  }
0x1939   :  { %v5043_v27 = vpop.f32.mrb[94].mxu0 }
0x193a   :  { %v5092_v0 = vpack.c.bf16 %v5041_v29, %v5041_v29  ;;  %v6789_v50 = vpop.f32.mrb[95].mxu0 }
0x193c   :  { %v5097_v19 = vsel %vm2603_vm2, %v5092_v0, 0  ;;  %v6020_v0 = vld [vmem:[%s10992_s20] ss:$0 sm:$0xff] }
0x193d   :  { %6797 = vmatpush3.bf16.msra.mxu1 %v5097_v19  ;;  %v6021_v19 = vld [vmem:[%s10993_s0] ss:$0 sm:$0xff] }
0x193e   :  { %6802 = vmatprep.subr.bf16.mxu1 %v10747_v14 }
0x1940   :  { %6799 = vmatmul.mubr.msk.bf16.vlgmr.msra.gmra.mrb[116].mxu1 %vm2599_vm3, %v5091_v54 }
0x1941   :  { %6803 = vmatpush3.bf16.msra.mxu1 %v7333_v62  ;;  %6818 = vmatprep.mubr.msk.bf16.mxu1 %vm8574_vm0, %v10747_v14 }
0x1942   :  { %6804 = vmatprep.subr.bf16.mxu1 %v10747_v14 }
0x1945   :  { %6805 = vmatpush3.bf16.msra.mxu1 %v7334_v1 }
0x1946   :  { %6806 = vmatprep.subr.bf16.mxu1 %v10747_v14 }
0x1949   :  { %6807 = vmatpush3.bf16.msra.mxu1 %v7335_v3  ;;  %v7363_v3 = vld [vmem:[#allocation55 + $0x30] sm:$0xff]  }
0x194a   :  { %6808 = vmatprep.subr.bf16.mxu1 %v10747_v14 }
0x194d   :  { %6809 = vmatpush3.bf16.msra.mxu1 %v7336_v5  ;;  %v7364_v5 = vld [vmem:[#allocation55 + $0x38] sm:$0xff]  }
0x194e   :  { %6810 = vmatprep.subr.bf16.mxu1 %v10747_v14 }
0x1951   :  { %6811 = vmatpush3.bf16.msra.mxu1 %v7337_v32  ;;  %v6022_v32 = vld [vmem:[%s8781_s8] ss:$0 sm:$0xff] }
0x1952   :  { %6812 = vmatprep.subr.bf16.mxu1 %v10747_v14 }
0x1955   :  { %6813 = vmatpush3.bf16.msra.mxu1 %v7338_v7 }
0x1956   :  { %6814 = vmatprep.subr.bf16.mxu1 %v10747_v14 }
0x1959   :  { %6815 = vmatpush3.bf16.msra.mxu1 %v7339_v53 }
0x195a   :  { %6816 = vmatprep.subr.bf16.mxu1 %v10747_v14 }
0x195d   :  { %6817 = vmatpush3.bf16.msra.mxu1 %v7340_v46 }
0x195e   :  { %6842 = vmatprep.subr.bf16.mxu1 %v10747_v14 }
0x1960   :  { %6819 = vmatmul.mubr.bf16.vlgmr.msra.gmra.mrb[120].mxu1 %v5139_v52 }
0x1961   :  { %6858 = vmatprep.mubr.msk.bf16.mxu1 %vm8574_vm0, %v10747_v14  ;;  %6843 = vmatpush3.bf16.msra.mxu1 %v7349_v58 }
0x1962   :  { %6844 = vmatprep.subr.bf16.mxu1 %v10747_v14 }
0x1965   :  { %6845 = vmatpush3.bf16.msra.mxu1 %v7350_v60 }
0x1966   :  { %6846 = vmatprep.subr.bf16.mxu1 %v10747_v14 }
0x1969   :  { %6847 = vmatpush3.bf16.msra.mxu1 %v7351_v31 }
0x196a   :  { %6848 = vmatprep.subr.bf16.mxu1 %v10747_v14 }
0x196d   :  { %6849 = vmatpush3.bf16.msra.mxu1 %v7352_v30 }
0x196e   :  { %6850 = vmatprep.subr.bf16.mxu1 %v10747_v14 }
0x1971   :  { %6851 = vmatpush3.bf16.msra.mxu1 %v7353_v43 }
0x1972   :  { %6852 = vmatprep.subr.bf16.mxu1 %v10747_v14 }
0x1975   :  { %6853 = vmatpush3.bf16.msra.mxu1 %v7354_v44 }
0x1976   :  { %6854 = vmatprep.subr.bf16.mxu1 %v10747_v14 }
0x1979   :  { %6855 = vmatpush3.bf16.msra.mxu1 %v7355_v15 }
0x197a   :  { %6856 = vmatprep.subr.bf16.mxu1 %v10747_v14 }
0x197c   :  { %v5383_v21 = vpop.permute.xlu1 %5382 }
0x197d   :  { %6857 = vmatpush3.bf16.msra.mxu1 %v7356_v38 }
0x1981   :  { %v5388_v55 = vpop.permute.xlu1 %5387 }
0x1a13   :  { %v5133_v24 = vpop.f32.mrb[116].mxu1 }
0x1a14   :  { %v5251_v56 = vpack.c.bf16 %v5133_v24, %v5133_v24  ;;  %v6800_v49 = vpop.f32.mrb[117].mxu1 }
0x1a15   :  { %v5136_v48 = vpop.f32.mrb[118].mxu1  ;;  %v6031_v49 = vld [vmem:[%s8791_s29] ss:$0 sm:$0xff] }
0x1a16   :  { %6839 = vmatmul.mubr.bf16.vlgmr.msra.gmra.mrb[96].mxu0 %v5251_v56  ;;  %v6801_v47 = vpop.f32.mrb[119].mxu1 }
0x1a17   :  { %6878 = vmatprep.mubr.msk.bf16.mxu0 %vm8574_vm0, %v10747_v14  ;;  %6863 = vmatpush3.bf16.msra.mxu0 %v7357_v41 }
0x1a18   :  { %6864 = vmatprep.subr.bf16.mxu0 %v10747_v14 }
0x1a1b   :  { %6865 = vmatpush3.bf16.msra.mxu0 %v7358_v11 }
0x1a1c   :  { %6866 = vmatprep.subr.bf16.mxu0 %v10747_v14 }
0x1a1f   :  { %6867 = vmatpush3.bf16.msra.mxu0 %v7359_v28 }
0x1a20   :  { %6868 = vmatprep.subr.bf16.mxu0 %v10747_v14 }
0x1a23   :  { %6869 = vmatpush3.bf16.msra.mxu0 %v7360_v39 }
0x1a24   :  { %6870 = vmatprep.subr.bf16.mxu0 %v10747_v14 }
0x1a27   :  { %6871 = vmatpush3.bf16.msra.mxu0 %v7361_v37 }
0x1a28   :  { %6872 = vmatprep.subr.bf16.mxu0 %v10747_v14 }
0x1a2b   :  { %6873 = vmatpush3.bf16.msra.mxu0 %v7362_v20 }
0x1a2c   :  { %6874 = vmatprep.subr.bf16.mxu0 %v10747_v14 }
0x1a2f   :  { %6875 = vmatpush3.bf16.msra.mxu0 %v7363_v3 }
0x1a30   :  { %6876 = vmatprep.subr.bf16.mxu0 %v10747_v14 }
0x1a33   :  { %v5245_v35 = vpop.f32.mrb[120].mxu1  ;;  %6877 = vmatpush3.bf16.msra.mxu0 %v7364_v5 }
0x1a34   :  { %v6820_v40 = vpop.f32.mrb[121].mxu1  ;;  %v5246_v8 = vadd.f32 %v6001_v45, %v5245_v35 }
0x1a35   :  { %v5248_v4 = vpop.f32.mrb[122].mxu1 }
0x1a36   :  { %v6821_v33 = vpop.f32.mrb[123].mxu1  ;;  %v5385_v51 = vmul.f32 %v5383_v21, %v5246_v8 }
0x1ae9   :  { %v5357_v17 = vpop.f32.mrb[96].mxu0 }
0x1aea   :  { %v5358_v25 = vadd.f32 %v6010_v34, %v5357_v17  ;;  %v6840_v59 = vpop.f32.mrb[97].mxu0 }
0x1aeb   :  { %v5360_v2 = vpop.f32.mrb[98].mxu0 }
0x1aec   :  { %v5390_v36 = vmul.f32 %v5388_v55, %v5358_v25  ;;  %v6841_v22 = vpop.f32.mrb[99].mxu0 }
0x1aee   :  { %v5391_v57 = vadd.f32 %v5390_v36, %v5385_v51 }
0x1af0   :  { %v5397_v16 = vmul.f32 %v6019_v10, %v5391_v57 }
0x1af2   :  { %5398 = vadd.xlane.f32.xlu0 %v5397_v16 }
0x1b7f   :  { %v5399_v9 = vpop.xlane.xlu0 %5398 }
0x1b80   :  { %v5400_v13 = vmul.f32 0.0625, %v5399_v9 }
0x1b82   :  { %v5401_v61 = vsub.f32 %v5391_v57, %v5400_v13 }
0x1b84   :  { %v5402_v18 = vmul.f32 %v6019_v10, %v5401_v61 }
0x1b86   :  { %v5403_v63 = vmul.f32 %v5402_v18, %v5402_v18 }
0x1b88   :  { %5404 = vadd.xlane.f32.xlu1 %v5403_v63 }
0x1c15   :  { %v5405_v42 = vpop.xlane.xlu1 %5404 }
0x1c16   :  { %v5406_v29 = vmul.f32 0.0625, %v5405_v42 }
0x1c18   :  { %v5407_v12 = vadd.f32 1e-05, %v5406_v29 }
0x1c1a   :  { %7525 = vrsqrt.f32 %v5407_v12 }
0x1c24   :  { %v7526_v27 = vpop.eup %7525 }
0x1c25   :  { %v5409_v50 = vmul.f32 %v7526_v27, %v5402_v18 }
0x1c27   :  { %v5417_v54 = vmul.f32 %v6020_v0, %v5409_v50 }
0x1c29   :  { %v5425_v62 = vadd.f32 %v6021_v19, %v5417_v54 }
0x1c2b   :  { %v5426_v1 = vpack.c.bf16 %v5425_v62, %v5425_v62 }
0x1c2d   :  { %6859 = vmatmul.mubr.bf16.vlgmr.msra.gmra.mrb[124].mxu1 %v5426_v1 }
0x1d00   :  { %v5532_v7 = vpop.f32.mrb[124].mxu1 }
0x1d01   :  { %v5533_v53 = vadd.f32 %v6022_v32, %v5532_v7  ;;  %v6860_v46 = vpop.f32.mrb[125].mxu1 }
0x1d02   :  { %v5535_v52 = vpop.f32.mrb[126].mxu1 }
0x1d03   :  { %v5538_v23 = vmax.f32 %v5533_v53, 0.0  ;;  %v6861_v24 = vpop.f32.mrb[127].mxu1 }
0x1d05   :  { %v5539_v56 = vpack.c.bf16 %v5538_v23, %v5538_v23 }
0x1d07   :  { %6879 = vmatmul.mubr.bf16.vlgmr.msra.gmra.mrb[100].mxu0 %v5539_v56 }
0x1dda   :  { %v5645_v48 = vpop.f32.mrb[100].mxu0 }
0x1ddb   :  { %v5646_v47 = vadd.f32 %v6031_v49, %v5645_v48  ;;  %v6880_v35 = vpop.f32.mrb[101].mxu0 }
0x1ddc   :  { %v5648_v40 = vpop.f32.mrb[102].mxu0 }
0x1ddd   :  { %5651 = vst [vmem:[#allocation56] sm:$0xff] %v5646_v47  ;;  %v6881_v14 = vpop.f32.mrb[103].mxu0 }
0x1dde   :  { %8439 = shalt.err (!%p8436_p4)
}
0x1ddf   :  { %s8440_s29 = scalar_lea.hbm %s8796_s13, 128 }
0x1de0   :  { %p8441_p5 = scmp.ne.s32.totalorder %s8796_s13, %s8440_s29  ;;  %p8444_p6 = scmp.lt.u32.totalorder %s8440_s29, %s8796_s13 }
0x1de2   :  { %p8446_p7 = pnand %p8444_p6, %p8441_p5 }
0x1de4   :  { %8449 = shalt.err (!%p8446_p7)
}
0x1de5   :  { %5661 = dma.vmem_to_hbm [thread:$0]  %s5659_s15, 128, %s8796_s13, [#allocation4]  }
0x1de6   :  { %8486 = dma.done.wait [#allocation4], 128  }
0x1de7   :  { %8487 = vsyncadd [#allocation4], 4294967168 }
0x1de8   :  { %5665 = vsyncpa [#allocation3], 1 }
0x1de9   :  { %5666 = vsyncpa [#allocation6], 1 }
0x1dea   :  { %5667 = vsyncpa [#allocation9], 1 }
0x1deb   :  { %5668 = vsyncpa [#allocation12], 1 }
0x1dec   :  { %5669 = vsyncpa [#allocation15], 1 }
0x1ded   :  { %5670 = vsyncpa [#allocation18], 1 }
0x1dee   :  { %5671 = vsyncpa [#allocation21], 1 }
0x1def   :  { %5672 = vsyncpa [#allocation24], 1 }
0x1df0   :  { %5673 = vsyncpa [#allocation27], 1 }
0x1df1   :  { %5674 = vsyncpa [#allocation30], 1 }
0x1df2   :  { %5675 = vsyncpa [#allocation33], 1 }
0x1df3   :  { %5676 = vsyncpa [#allocation36], 1 }
0x1df4   :  { %5677 = vsyncpa [#allocation39], 1 }
0x1df5   :  { %5678 = vsyncpa [#allocation42], 1 }
0x1df6   :  { %5679 = vsyncpa [#allocation45], 1 }
0x1df7   :  { %5680 = vsyncpa [#allocation48], 1 }
0x1df8   :  { %5681 = vsyncpa [#allocation51], 1 }
0x1df9   :  { %5682 = vsyncpa [#allocation54], 1 }
0x1dfa   :  { %5683 = vsyncpa [#allocation4], 1 }

</bundles_post_ra>
